<compile_context>
chip_gen: v7x
topology: tpu7x:2x2x1
jax: 0.10.0
libtpu: 0.0.40
codegen_flags: <defaults>
</compile_context>

<pallas_src>
import jax
import jax.numpy as jnp
from jax.experimental import pallas as pl
from jax.experimental.pallas import tpu as pltpu


def _layer_norm(h, g, b, eps=1e-5):
    mu = jnp.mean(h, axis=-1, keepdims=True)
    var = jnp.mean((h - mu) ** 2, axis=-1, keepdims=True)
    return (h - mu) * jax.lax.rsqrt(var + eps) * g + b


def encoder_kernel(
    x_ref,       # (M, D)   bf16 token embeddings (Bt sequences flattened)
    mask_ref,    # (1, 1, M) f32 key-padding mask (1 keep / 0 pad), lane-dense
    bdiag_ref,   # (M, M)   f32 block-diag bias (0 same-seq / -1e9 cross-seq)
    sp_ref,      # (8, D)   f32 stacked small params (LN gains/biases, bo, b2)
    wqkv_ref,    # (D, 3D)  bf16 fused QKV weight
    bqkv_ref,    # (1, 3D)  f32 fused QKV bias
    wo_ref,      # (D, D)   bf16
    w1_ref,      # (D, F)   bf16
    b1_ref,      # (1, F)   f32
    w2_ref,      # (F, D)   bf16
    o_ref,       # (M, D)   f32 hidden states out
):
    M, D = x_ref.shape
    inv_sqrt_d = 1.0 / (float(D) ** 0.5)

    x = x_ref[...].astype(jnp.float32)                 # residual path in f32
    mask = mask_ref[0]                                  # (1, M) f32

    sp = sp_ref[...]                                    # (8, D) f32
    ln1_g, ln1_b = sp[0:1], sp[1:2]
    ln2_g, ln2_b = sp[2:3], sp[3:4]
    lnf_g, lnf_b = sp[4:5], sp[5:6]
    bo, b2 = sp[6:7], sp[7:8]

    # Combined additive attention bias: block-diagonal (no cross-sequence
    # attention) + key-padding.  (M, M) f32, lane-dense.
    bias = bdiag_ref[...] + (mask - 1.0) * 1e9

    # --- self-attention block (pre-LN), all matmuls flattened on the MXU ---
    h1 = _layer_norm(x, ln1_g, ln1_b).astype(jnp.bfloat16)
    qkv = jnp.dot(h1, wqkv_ref[...],
                  preferred_element_type=jnp.float32) + bqkv_ref[...]
    # 1/sqrt(d) folded into q before the bf16 cast (an (M,D) mul, not (M,M)).
    q = (qkv[:, :D] * inv_sqrt_d).astype(jnp.bfloat16)
    k = qkv[:, D:2 * D].astype(jnp.bfloat16)
    v = qkv[:, 2 * D:].astype(jnp.bfloat16)

    # One (M, M) score matmul (q @ k^T, NT contraction, no explicit transpose)
    # instead of Bt tiny per-sequence LxL matmuls.
    scores = jax.lax.dot_general(
        q, k, (((1,), (1,)), ((), ())),
        preferred_element_type=jnp.float32) + bias

    # f32 softmax over a lane-dense M-wide axis.  Fully padded rows (from
    # batch padding) get a uniform distribution; they are sliced off outside.
    mx = jnp.max(scores, axis=-1, keepdims=True)
    p = jnp.exp(scores - mx)
    p = p * pl.reciprocal(jnp.sum(p, axis=-1, keepdims=True), approx=True)

    attn = jnp.dot(p.astype(jnp.bfloat16), v,
                   preferred_element_type=jnp.float32)
    attn = jnp.dot(attn.astype(jnp.bfloat16), wo_ref[...],
                   preferred_element_type=jnp.float32) + bo
    x = x + attn

    # --- feed-forward block (pre-LN) ---
    h2 = _layer_norm(x, ln2_g, ln2_b).astype(jnp.bfloat16)
    f = jnp.dot(h2, w1_ref[...],
                preferred_element_type=jnp.float32) + b1_ref[...]
    f = jax.nn.gelu(f)   # TODO(synk): ESM uses exact erf GELU, not the tanh approx.
    f = jnp.dot(f.astype(jnp.bfloat16), w2_ref[...],
                preferred_element_type=jnp.float32) + b2
    x = x + f

    # --- final layer norm (ESM "emb_layer_norm_after") ---
    # Output kept f32 to match the torch hidden-state dtype; could be emitted
    # bf16 to halve output HBM traffic at real ESM dims.
    o_ref[...] = _layer_norm(x, lnf_g, lnf_b).astype(o_ref.dtype)


def esm_hidden_states(x_emb, attn_mask, params, *, target_rows=256):
    """x_emb: (B, L, D) bf16/f32 token embeddings; attn_mask: (B, L) int."""
    B, L, D = x_emb.shape
    F = params["w1"].shape[-1]

    # Rows per grid step M = Bt*L: aim for >= 256 to fill the v6e/v7x 256^2
    # MXU (v5e's 128^2 is already full at 128).  Keep the grid >= 2 steps
    # (parallel axis) so v7x's two TensorCores both get work, as long as M
    # does not drop below 128.
    Bt = max(1, min(target_rows // L, B))
    n_blk = -(-B // Bt)
    while n_blk < 2 and Bt > 1 and (Bt // 2) * L >= 128:
        Bt //= 2
        n_blk = -(-B // Bt)
    Bp = n_blk * Bt
    M = Bt * L

    if Bp != B:
        x_emb = jnp.pad(x_emb, ((0, Bp - B), (0, 0), (0, 0)))
        attn_mask_p = jnp.pad(attn_mask, ((0, Bp - B), (0, 0)))
    else:
        attn_mask_p = attn_mask

    # Flatten to a (Bp*L, D) bf16 row matrix (lane-dense D, fat MXU M-dim)
    # and a lane-dense (n_blk, 1, M) f32 key-padding mask.
    x_flat = x_emb.reshape(Bp * L, D).astype(jnp.bfloat16)
    mask_flat = attn_mask_p.astype(jnp.float32).reshape(n_blk, 1, M)

    # Constant block-diagonal bias (does not scale with batch): row i may only
    # attend to keys of its own packed sequence.
    seq_id = jnp.arange(M, dtype=jnp.int32) // L
    bdiag = jnp.where(seq_id[:, None] == seq_id[None, :], 0.0, -1e9
                      ).astype(jnp.float32)

    def const(shape):
        # Constant operands: index_map never changes, so single-buffer them
        # (one resident VMEM copy instead of two).
        return pl.BlockSpec(shape, lambda b, _s=len(shape): (0,) * _s,
                            pipeline_mode=pl.Buffered(1))

    grid_spec = pltpu.PrefetchScalarGridSpec(
        num_scalar_prefetch=0,
        grid=(n_blk,),
        in_specs=[
            pl.BlockSpec((M, D), lambda b: (b, 0)),        # x rows
            pl.BlockSpec((1, 1, M), lambda b: (b, 0, 0)),  # key-padding mask
            const((M, M)),                                  # block-diag bias
            const((8, D)),                                  # stacked small params
            const((D, 3 * D)),                              # fused Wqkv
            const((1, 3 * D)),                              # fused bqkv
            const((D, D)),                                  # Wo
            const((D, F)),                                  # W1
            const((1, F)),                                  # b1
            const((F, D)),                                  # W2
        ],
        out_specs=pl.BlockSpec((M, D), lambda b: (b, 0)),
    )

    # VMEM budget from actual footprint (constants single-buffered, streamed
    # blocks double-buffered, plus live f32 intermediates), with 2x headroom;
    # floored at 16 MiB and capped well below v7x's 64 MiB physical VMEM.
    const_bytes = (M * M * 4 + 8 * D * 4 + D * 3 * D * 2 + 3 * D * 4 +
                   D * D * 2 + D * F * 2 + F * 4 + F * D * 2)
    stream_bytes = 2 * (M * D * 2 + M * 4) + 2 * (M * D * 4)
    live_bytes = M * 3 * D * 4 + 2 * M * M * 4 + 2 * M * F * 4
    vmem_limit = int(min(48 * 1024 * 1024,
                         max(16 * 1024 * 1024,
                             2 * (const_bytes + stream_bytes + live_bytes))))

    fn = pl.pallas_call(
        encoder_kernel,
        out_shape=jax.ShapeDtypeStruct((Bp * L, D), jnp.float32),
        grid_spec=grid_spec,
        compiler_params=pltpu.CompilerParams(
            dimension_semantics=("parallel",),
            vmem_limit_bytes=vmem_limit,
        ),
    )
    hidden = fn(
        x_flat, mask_flat, bdiag,
        params["small"],
        params["wqkv"], params["bqkv"],
        params["wo"],
        params["w1"], params["b1"],
        params["w2"],
    )
    return hidden.reshape(Bp, L, D)[:B]


def make_params(key, vocab_size, d_model, d_ff):
    ks = jax.random.split(key, 8)
    s = 0.02
    wq = jax.random.normal(ks[1], (d_model, d_model), jnp.float32) * s
    wk = jax.random.normal(ks[2], (d_model, d_model), jnp.float32) * s
    wv = jax.random.normal(ks[3], (d_model, d_model), jnp.float32) * s
    ones = jnp.ones((d_model,), jnp.float32)
    zeros = jnp.zeros((d_model,), jnp.float32)
    # rows: ln1_g, ln1_b, ln2_g, ln2_b, lnf_g, lnf_b, bo, b2
    small = jnp.stack([ones, zeros, ones, zeros, ones, zeros, zeros, zeros], axis=0)
    return {
        # bf16 embedding table: halves the per-step input HBM traffic.
        "embed": (jax.random.normal(ks[0], (vocab_size, d_model), jnp.float32) * s
                  ).astype(jnp.bfloat16),
        # MXU operands stored in bf16 (halves weight DMA / VMEM footprint).
        "wqkv": jnp.concatenate([wq, wk, wv], axis=1).astype(jnp.bfloat16),
        "wo": (jax.random.normal(ks[4], (d_model, d_model), jnp.float32) * s
               ).astype(jnp.bfloat16),
        "w1": (jax.random.normal(ks[5], (d_model, d_ff), jnp.float32) * s
               ).astype(jnp.bfloat16),
        "w2": (jax.random.normal(ks[6], (d_ff, d_model), jnp.float32) * s
               ).astype(jnp.bfloat16),
        "bqkv": jnp.zeros((1, 3 * d_model), jnp.float32),
        "b1": jnp.zeros((1, d_ff), jnp.float32),
        "small": small,
    }


def pretrain_interface_forward(batch, params, esm_dim):
    """Mirrors PretrainInterface.forward for the ESM* branch."""
    seqs, attn_mask = batch["seqs"], batch["attn_mask"]        # (B,L,1), (B,L)
    input_ids = seqs[:, :, 0]                                   # (B, L)
    x_emb = jnp.take(params["embed"], input_ids, axis=0)        # glue: embedding lookup
    hidden = esm_hidden_states(x_emb, attn_mask, params)        # (B, L, D) Pallas hot path
    flat = hidden.reshape(-1, esm_dim)
    # Data-dependent row selection (dynamic output shape) stays in host JAX,
    # matching `pretrain_embedding.reshape(-1, esm_dim)[attn_mask.view(-1) == 1]`.
    sel = flat[attn_mask.reshape(-1) == 1]
    return sel


if __name__ == "__main__":
    # Small synthetic shapes consistent with the ESM branch of the module.
    # B=32, L=16 -> Bt=16 (M=256 fills v6e/v7x MXU) with an even grid of 2.
    B, L, D, F_FF, VOCAB = 32, 16, 128, 256, 33

    key = jax.random.PRNGKey(0)
    kp, ks = jax.random.split(key)
    params = make_params(kp, VOCAB, D, F_FF)

    seqs = jax.random.randint(ks, (B, L, 1), 0, VOCAB, dtype=jnp.int32)
    # Deterministic per-sequence valid lengths (>= 1, varying padding).
    lengths = jnp.array([L - (i % (L // 2)) for i in range(B)], dtype=jnp.int32)
    attn_mask = (jnp.arange(L)[None, :] < lengths[:, None]).astype(jnp.int32)

    batch = {"seqs": seqs, "attn_mask": attn_mask}
    out = pretrain_interface_forward(batch, params, esm_dim=D)
    out = jax.block_until_ready(out)

    expected_rows = int(attn_mask.sum())
    assert out.shape == (expected_rows, D), out.shape
    assert bool(jnp.all(jnp.isfinite(out)))
    print("KERNEL_OK")
</pallas_src>

<mosaic_0001>
module attributes {stable_mosaic.version = 11 : i64} {
  func.func @encoder_kernel(%arg0: i32, %arg1: memref<256x128xbf16, #tpu.memory_space<vmem>>, %arg2: memref<1x1x256xf32, #tpu.memory_space<vmem>>, %arg3: memref<256x256xf32, #tpu.memory_space<vmem>>, %arg4: memref<8x128xf32, #tpu.memory_space<vmem>>, %arg5: memref<128x384xbf16, #tpu.memory_space<vmem>>, %arg6: memref<1x384xf32, #tpu.memory_space<vmem>>, %arg7: memref<128x128xbf16, #tpu.memory_space<vmem>>, %arg8: memref<128x256xbf16, #tpu.memory_space<vmem>>, %arg9: memref<1x256xf32, #tpu.memory_space<vmem>>, %arg10: memref<256x128xbf16, #tpu.memory_space<vmem>>, %arg11: memref<256x128xf32, #tpu.memory_space<vmem>>) attributes {dimension_semantics = [#tpu.dimension_semantics<parallel>], iteration_bounds = array<i64: 2>, scalar_prefetch = 0 : i64, scratch_operands = 0 : i64, tpu.core_type = #tpu.core_type<tc>, window_params = [{transform_indices = @transform_0, window_bounds = array<i64: 256, 128>}, {transform_indices = @transform_1, window_bounds = array<i64: 1, 1, 256>}, {pipeline_mode = #tpu.pipeline_mode<synchronous>, transform_indices = @transform_2, window_bounds = array<i64: 256, 256>}, {pipeline_mode = #tpu.pipeline_mode<synchronous>, transform_indices = @transform_3, window_bounds = array<i64: 8, 128>}, {pipeline_mode = #tpu.pipeline_mode<synchronous>, transform_indices = @transform_4, window_bounds = array<i64: 128, 384>}, {pipeline_mode = #tpu.pipeline_mode<synchronous>, transform_indices = @transform_5, window_bounds = array<i64: 1, 384>}, {pipeline_mode = #tpu.pipeline_mode<synchronous>, transform_indices = @transform_6, window_bounds = array<i64: 128, 128>}, {pipeline_mode = #tpu.pipeline_mode<synchronous>, transform_indices = @transform_7, window_bounds = array<i64: 128, 256>}, {pipeline_mode = #tpu.pipeline_mode<synchronous>, transform_indices = @transform_8, window_bounds = array<i64: 1, 256>}, {pipeline_mode = #tpu.pipeline_mode<synchronous>, transform_indices = @transform_9, window_bounds = array<i64: 256, 128>}, {transform_indices = @transform_10, window_bounds = array<i64: 256, 128>}]} {
    %c0 = arith.constant 0 : index
    %c0_0 = arith.constant 0 : index
    %0 = vector.load %arg1[%c0, %c0_0] : memref<256x128xbf16, #tpu.memory_space<vmem>>, vector<256x128xbf16>
    %1 = arith.extf %0 : vector<256x128xbf16> to vector<256x128xf32>
    %c0_1 = arith.constant 0 : index
    %c0_2 = arith.constant 0 : index
    %c0_3 = arith.constant 0 : index
    %2 = vector.load %arg2[%c0_1, %c0_2, %c0_3] : memref<1x1x256xf32, #tpu.memory_space<vmem>>, vector<1x1x256xf32>
    %3 = vector.shape_cast %2 : vector<1x1x256xf32> to vector<1x256xf32>
    %c0_4 = arith.constant 0 : index
    %c0_5 = arith.constant 0 : index
    %4 = vector.load %arg4[%c0_4, %c0_5] : memref<8x128xf32, #tpu.memory_space<vmem>>, vector<8x128xf32>
    %5 = vector.extract_strided_slice %4 {offsets = [0, 0], sizes = [1, 128], strides = [1, 1]} : vector<8x128xf32> to vector<1x128xf32>
    %6 = vector.extract_strided_slice %4 {offsets = [1, 0], sizes = [1, 128], strides = [1, 1]} : vector<8x128xf32> to vector<1x128xf32>
    %7 = vector.extract_strided_slice %4 {offsets = [2, 0], sizes = [1, 128], strides = [1, 1]} : vector<8x128xf32> to vector<1x128xf32>
    %8 = vector.extract_strided_slice %4 {offsets = [3, 0], sizes = [1, 128], strides = [1, 1]} : vector<8x128xf32> to vector<1x128xf32>
    %9 = vector.extract_strided_slice %4 {offsets = [4, 0], sizes = [1, 128], strides = [1, 1]} : vector<8x128xf32> to vector<1x128xf32>
    %10 = vector.extract_strided_slice %4 {offsets = [5, 0], sizes = [1, 128], strides = [1, 1]} : vector<8x128xf32> to vector<1x128xf32>
    %11 = vector.extract_strided_slice %4 {offsets = [6, 0], sizes = [1, 128], strides = [1, 1]} : vector<8x128xf32> to vector<1x128xf32>
    %12 = vector.extract_strided_slice %4 {offsets = [7, 0], sizes = [1, 128], strides = [1, 1]} : vector<8x128xf32> to vector<1x128xf32>
    %c0_6 = arith.constant 0 : index
    %c0_7 = arith.constant 0 : index
    %13 = vector.load %arg3[%c0_6, %c0_7] : memref<256x256xf32, #tpu.memory_space<vmem>>, vector<256x256xf32>
    %cst = arith.constant 1.000000e+00 : f32
    %14 = vector.broadcast %cst : f32 to vector<1x256xf32>
    %15 = arith.subf %3, %14 : vector<1x256xf32>
    %cst_8 = arith.constant 1.000000e+09 : f32
    %16 = vector.broadcast %cst_8 : f32 to vector<1x256xf32>
    %17 = arith.mulf %15, %16 : vector<1x256xf32>
    %18 = vector.broadcast %17 : vector<1x256xf32> to vector<256x256xf32>
    %19 = arith.addf %13, %18 : vector<256x256xf32>
    %cst_9 = arith.constant dense<0.000000e+00> : vector<256xf32>
    %20 = vector.multi_reduction <add>, %1, %cst_9 [1] : vector<256x128xf32> to vector<256xf32>
    %21 = vector.shape_cast %20 : vector<256xf32> to vector<256x1xf32>
    %cst_10 = arith.constant 1.280000e+02 : f32
    %22 = vector.broadcast %cst_10 : f32 to vector<256x1xf32>
    %23 = arith.divf %21, %22 : vector<256x1xf32>
    %24 = vector.broadcast %23 : vector<256x1xf32> to vector<256x128xf32>
    %25 = arith.subf %1, %24 : vector<256x128xf32>
    %26 = arith.mulf %25, %25 : vector<256x128xf32>
    %cst_11 = arith.constant dense<0.000000e+00> : vector<256xf32>
    %27 = vector.multi_reduction <add>, %26, %cst_11 [1] : vector<256x128xf32> to vector<256xf32>
    %28 = vector.shape_cast %27 : vector<256xf32> to vector<256x1xf32>
    %cst_12 = arith.constant 1.280000e+02 : f32
    %29 = vector.broadcast %cst_12 : f32 to vector<256x1xf32>
    %30 = arith.divf %28, %29 : vector<256x1xf32>
    %31 = vector.broadcast %23 : vector<256x1xf32> to vector<256x128xf32>
    %32 = arith.subf %1, %31 : vector<256x128xf32>
    %cst_13 = arith.constant 9.99999974E-6 : f32
    %33 = vector.broadcast %cst_13 : f32 to vector<256x1xf32>
    %34 = arith.addf %30, %33 : vector<256x1xf32>
    %35 = math.rsqrt %34 : vector<256x1xf32>
    %36 = vector.broadcast %35 : vector<256x1xf32> to vector<256x128xf32>
    %37 = arith.mulf %32, %36 : vector<256x128xf32>
    %38 = vector.broadcast %5 : vector<1x128xf32> to vector<256x128xf32>
    %39 = arith.mulf %37, %38 : vector<256x128xf32>
    %40 = vector.broadcast %6 : vector<1x128xf32> to vector<256x128xf32>
    %41 = arith.addf %39, %40 : vector<256x128xf32>
    %42 = arith.truncf %41 : vector<256x128xf32> to vector<256x128xbf16>
    %c0_14 = arith.constant 0 : index
    %c0_15 = arith.constant 0 : index
    %43 = vector.load %arg5[%c0_14, %c0_15] : memref<128x384xbf16, #tpu.memory_space<vmem>>, vector<128x384xbf16>
    %cst_16 = arith.constant dense<0.000000e+00> : vector<256x384xf32>
    %44 = tpu.matmul %42, %43, %cst_16 {dimension_numbers = #tpu.dot_dimension_numbers<[1], [0], [0], [1], [0, 0, 1, 1], [], []>} : vector<256x128xbf16>, vector<128x384xbf16>, vector<256x384xf32> -> vector<256x384xf32>
    %c0_17 = arith.constant 0 : index
    %c0_18 = arith.constant 0 : index
    %45 = vector.load %arg6[%c0_17, %c0_18] : memref<1x384xf32, #tpu.memory_space<vmem>>, vector<1x384xf32>
    %46 = vector.broadcast %45 : vector<1x384xf32> to vector<256x384xf32>
    %47 = arith.addf %44, %46 : vector<256x384xf32>
    %48 = vector.extract_strided_slice %47 {offsets = [0, 0], sizes = [256, 128], strides = [1, 1]} : vector<256x384xf32> to vector<256x128xf32>
    %cst_19 = arith.constant 0.0883883461 : f32
    %49 = vector.broadcast %cst_19 : f32 to vector<256x128xf32>
    %50 = arith.mulf %48, %49 : vector<256x128xf32>
    %51 = arith.truncf %50 : vector<256x128xf32> to vector<256x128xbf16>
    %52 = vector.extract_strided_slice %47 {offsets = [0, 128], sizes = [256, 128], strides = [1, 1]} : vector<256x384xf32> to vector<256x128xf32>
    %53 = arith.truncf %52 : vector<256x128xf32> to vector<256x128xbf16>
    %54 = vector.extract_strided_slice %47 {offsets = [0, 256], sizes = [256, 128], strides = [1, 1]} : vector<256x384xf32> to vector<256x128xf32>
    %55 = arith.truncf %54 : vector<256x128xf32> to vector<256x128xbf16>
    %cst_20 = arith.constant dense<0.000000e+00> : vector<256x256xf32>
    %56 = tpu.matmul %51, %53, %cst_20 {dimension_numbers = #tpu.dot_dimension_numbers<[1], [1], [0], [0], [0, 0, 1, 0], [], []>} : vector<256x128xbf16>, vector<256x128xbf16>, vector<256x256xf32> -> vector<256x256xf32>
    %57 = arith.addf %56, %19 : vector<256x256xf32>
    %cst_21 = arith.constant dense<0xFF800000> : vector<256xf32>
    %58 = vector.multi_reduction <maximumf>, %57, %cst_21 [1] : vector<256x256xf32> to vector<256xf32>
    %59 = vector.shape_cast %58 : vector<256xf32> to vector<256x1xf32>
    %60 = vector.broadcast %59 : vector<256x1xf32> to vector<256x256xf32>
    %61 = arith.subf %57, %60 : vector<256x256xf32>
    %62 = math.exp %61 : vector<256x256xf32>
    %cst_22 = arith.constant dense<0.000000e+00> : vector<256xf32>
    %63 = vector.multi_reduction <add>, %62, %cst_22 [1] : vector<256x256xf32> to vector<256xf32>
    %64 = vector.shape_cast %63 : vector<256xf32> to vector<256x1xf32>
    %65 = tpu.reciprocal %64 {approx = true} : vector<256x1xf32> -> vector<256x1xf32>
    %66 = vector.broadcast %65 : vector<256x1xf32> to vector<256x256xf32>
    %67 = arith.mulf %62, %66 : vector<256x256xf32>
    %68 = arith.truncf %67 : vector<256x256xf32> to vector<256x256xbf16>
    %cst_23 = arith.constant dense<0.000000e+00> : vector<256x128xf32>
    %69 = tpu.matmul %68, %55, %cst_23 {dimension_numbers = #tpu.dot_dimension_numbers<[1], [0], [0], [1], [0, 0, 1, 1], [], []>} : vector<256x256xbf16>, vector<256x128xbf16>, vector<256x128xf32> -> vector<256x128xf32>
    %70 = arith.truncf %69 : vector<256x128xf32> to vector<256x128xbf16>
    %c0_24 = arith.constant 0 : index
    %c0_25 = arith.constant 0 : index
    %71 = vector.load %arg7[%c0_24, %c0_25] : memref<128x128xbf16, #tpu.memory_space<vmem>>, vector<128x128xbf16>
    %cst_26 = arith.constant dense<0.000000e+00> : vector<256x128xf32>
    %72 = tpu.matmul %70, %71, %cst_26 {dimension_numbers = #tpu.dot_dimension_numbers<[1], [0], [0], [1], [0, 0, 1, 1], [], []>} : vector<256x128xbf16>, vector<128x128xbf16>, vector<256x128xf32> -> vector<256x128xf32>
    %73 = vector.broadcast %11 : vector<1x128xf32> to vector<256x128xf32>
    %74 = arith.addf %72, %73 : vector<256x128xf32>
    %75 = arith.addf %1, %74 : vector<256x128xf32>
    %cst_27 = arith.constant dense<0.000000e+00> : vector<256xf32>
    %76 = vector.multi_reduction <add>, %75, %cst_27 [1] : vector<256x128xf32> to vector<256xf32>
    %77 = vector.shape_cast %76 : vector<256xf32> to vector<256x1xf32>
    %cst_28 = arith.constant 1.280000e+02 : f32
    %78 = vector.broadcast %cst_28 : f32 to vector<256x1xf32>
    %79 = arith.divf %77, %78 : vector<256x1xf32>
    %80 = vector.broadcast %79 : vector<256x1xf32> to vector<256x128xf32>
    %81 = arith.subf %75, %80 : vector<256x128xf32>
    %82 = arith.mulf %81, %81 : vector<256x128xf32>
    %cst_29 = arith.constant dense<0.000000e+00> : vector<256xf32>
    %83 = vector.multi_reduction <add>, %82, %cst_29 [1] : vector<256x128xf32> to vector<256xf32>
    %84 = vector.shape_cast %83 : vector<256xf32> to vector<256x1xf32>
    %cst_30 = arith.constant 1.280000e+02 : f32
    %85 = vector.broadcast %cst_30 : f32 to vector<256x1xf32>
    %86 = arith.divf %84, %85 : vector<256x1xf32>
    %87 = vector.broadcast %79 : vector<256x1xf32> to vector<256x128xf32>
    %88 = arith.subf %75, %87 : vector<256x128xf32>
    %cst_31 = arith.constant 9.99999974E-6 : f32
    %89 = vector.broadcast %cst_31 : f32 to vector<256x1xf32>
    %90 = arith.addf %86, %89 : vector<256x1xf32>
    %91 = math.rsqrt %90 : vector<256x1xf32>
    %92 = vector.broadcast %91 : vector<256x1xf32> to vector<256x128xf32>
    %93 = arith.mulf %88, %92 : vector<256x128xf32>
    %94 = vector.broadcast %7 : vector<1x128xf32> to vector<256x128xf32>
    %95 = arith.mulf %93, %94 : vector<256x128xf32>
    %96 = vector.broadcast %8 : vector<1x128xf32> to vector<256x128xf32>
    %97 = arith.addf %95, %96 : vector<256x128xf32>
    %98 = arith.truncf %97 : vector<256x128xf32> to vector<256x128xbf16>
    %c0_32 = arith.constant 0 : index
    %c0_33 = arith.constant 0 : index
    %99 = vector.load %arg8[%c0_32, %c0_33] : memref<128x256xbf16, #tpu.memory_space<vmem>>, vector<128x256xbf16>
    %cst_34 = arith.constant dense<0.000000e+00> : vector<256x256xf32>
    %100 = tpu.matmul %98, %99, %cst_34 {dimension_numbers = #tpu.dot_dimension_numbers<[1], [0], [0], [1], [0, 0, 1, 1], [], []>} : vector<256x128xbf16>, vector<128x256xbf16>, vector<256x256xf32> -> vector<256x256xf32>
    %c0_35 = arith.constant 0 : index
    %c0_36 = arith.constant 0 : index
    %101 = vector.load %arg9[%c0_35, %c0_36] : memref<1x256xf32, #tpu.memory_space<vmem>>, vector<1x256xf32>
    %102 = vector.broadcast %101 : vector<1x256xf32> to vector<256x256xf32>
    %103 = arith.addf %100, %102 : vector<256x256xf32>
    %104 = arith.mulf %103, %103 : vector<256x256xf32>
    %105 = arith.mulf %103, %104 : vector<256x256xf32>
    %cst_37 = arith.constant 4.471500e-02 : f32
    %106 = vector.broadcast %cst_37 : f32 to vector<256x256xf32>
    %107 = arith.mulf %106, %105 : vector<256x256xf32>
    %108 = arith.addf %103, %107 : vector<256x256xf32>
    %cst_38 = arith.constant 0.797884583 : f32
    %109 = vector.broadcast %cst_38 : f32 to vector<256x256xf32>
    %110 = arith.mulf %109, %108 : vector<256x256xf32>
    %111 = math.tanh %110 : vector<256x256xf32>
    %cst_39 = arith.constant 1.000000e+00 : f32
    %112 = vector.broadcast %cst_39 : f32 to vector<256x256xf32>
    %113 = arith.addf %112, %111 : vector<256x256xf32>
    %cst_40 = arith.constant 5.000000e-01 : f32
    %114 = vector.broadcast %cst_40 : f32 to vector<256x256xf32>
    %115 = arith.mulf %114, %113 : vector<256x256xf32>
    %116 = arith.mulf %103, %115 : vector<256x256xf32>
    %117 = arith.truncf %116 : vector<256x256xf32> to vector<256x256xbf16>
    %c0_41 = arith.constant 0 : index
    %c0_42 = arith.constant 0 : index
    %118 = vector.load %arg10[%c0_41, %c0_42] : memref<256x128xbf16, #tpu.memory_space<vmem>>, vector<256x128xbf16>
    %cst_43 = arith.constant dense<0.000000e+00> : vector<256x128xf32>
    %119 = tpu.matmul %117, %118, %cst_43 {dimension_numbers = #tpu.dot_dimension_numbers<[1], [0], [0], [1], [0, 0, 1, 1], [], []>} : vector<256x256xbf16>, vector<256x128xbf16>, vector<256x128xf32> -> vector<256x128xf32>
    %120 = vector.broadcast %12 : vector<1x128xf32> to vector<256x128xf32>
    %121 = arith.addf %119, %120 : vector<256x128xf32>
    %122 = arith.addf %75, %121 : vector<256x128xf32>
    %cst_44 = arith.constant dense<0.000000e+00> : vector<256xf32>
    %123 = vector.multi_reduction <add>, %122, %cst_44 [1] : vector<256x128xf32> to vector<256xf32>
    %124 = vector.shape_cast %123 : vector<256xf32> to vector<256x1xf32>
    %cst_45 = arith.constant 1.280000e+02 : f32
    %125 = vector.broadcast %cst_45 : f32 to vector<256x1xf32>
    %126 = arith.divf %124, %125 : vector<256x1xf32>
    %127 = vector.broadcast %126 : vector<256x1xf32> to vector<256x128xf32>
    %128 = arith.subf %122, %127 : vector<256x128xf32>
    %129 = arith.mulf %128, %128 : vector<256x128xf32>
    %cst_46 = arith.constant dense<0.000000e+00> : vector<256xf32>
    %130 = vector.multi_reduction <add>, %129, %cst_46 [1] : vector<256x128xf32> to vector<256xf32>
    %131 = vector.shape_cast %130 : vector<256xf32> to vector<256x1xf32>
    %cst_47 = arith.constant 1.280000e+02 : f32
    %132 = vector.broadcast %cst_47 : f32 to vector<256x1xf32>
    %133 = arith.divf %131, %132 : vector<256x1xf32>
    %134 = vector.broadcast %126 : vector<256x1xf32> to vector<256x128xf32>
    %135 = arith.subf %122, %134 : vector<256x128xf32>
    %cst_48 = arith.constant 9.99999974E-6 : f32
    %136 = vector.broadcast %cst_48 : f32 to vector<256x1xf32>
    %137 = arith.addf %133, %136 : vector<256x1xf32>
    %138 = math.rsqrt %137 : vector<256x1xf32>
    %139 = vector.broadcast %138 : vector<256x1xf32> to vector<256x128xf32>
    %140 = arith.mulf %135, %139 : vector<256x128xf32>
    %141 = vector.broadcast %9 : vector<1x128xf32> to vector<256x128xf32>
    %142 = arith.mulf %140, %141 : vector<256x128xf32>
    %143 = vector.broadcast %10 : vector<1x128xf32> to vector<256x128xf32>
    %144 = arith.addf %142, %143 : vector<256x128xf32>
    %c0_49 = arith.constant 0 : index
    %c0_50 = arith.constant 0 : index
    %145 = vector.load %arg11[%c0_49, %c0_50] : memref<256x128xf32, #tpu.memory_space<vmem>>, vector<256x128xf32>
    tpu.vector_store %arg11[%c0_49, %c0_50], %144 {strides = array<i32>} : memref<256x128xf32, #tpu.memory_space<vmem>>, vector<256x128xf32>,
    return
  }
  func.func @transform_0(%arg0: i32) -> (i32, i32) {
    %c0_i32 = arith.constant 0 : i32
    %c0_i32_0 = arith.constant 0 : i32
    return %arg0, %c0_i32 : i32, i32
  }
  func.func @transform_1(%arg0: i32) -> (i32, i32, i32) {
    %c0_i32 = arith.constant 0 : i32
    %c0_i32_0 = arith.constant 0 : i32
    %c0_i32_1 = arith.constant 0 : i32
    return %arg0, %c0_i32, %c0_i32_0 : i32, i32, i32
  }
  func.func @transform_2(%arg0: i32) -> (i32, i32) {
    %c0_i32 = arith.constant 0 : i32
    %c0_i32_0 = arith.constant 0 : i32
    %c0_i32_1 = arith.constant 0 : i32
    return %c0_i32, %c0_i32_0 : i32, i32
  }
  func.func @transform_3(%arg0: i32) -> (i32, i32) {
    %c0_i32 = arith.constant 0 : i32
    %c0_i32_0 = arith.constant 0 : i32
    %c0_i32_1 = arith.constant 0 : i32
    return %c0_i32, %c0_i32_0 : i32, i32
  }
  func.func @transform_4(%arg0: i32) -> (i32, i32) {
    %c0_i32 = arith.constant 0 : i32
    %c0_i32_0 = arith.constant 0 : i32
    %c0_i32_1 = arith.constant 0 : i32
    return %c0_i32, %c0_i32_0 : i32, i32
  }
  func.func @transform_5(%arg0: i32) -> (i32, i32) {
    %c0_i32 = arith.constant 0 : i32
    %c0_i32_0 = arith.constant 0 : i32
    %c0_i32_1 = arith.constant 0 : i32
    return %c0_i32, %c0_i32_0 : i32, i32
  }
  func.func @transform_6(%arg0: i32) -> (i32, i32) {
    %c0_i32 = arith.constant 0 : i32
    %c0_i32_0 = arith.constant 0 : i32
    %c0_i32_1 = arith.constant 0 : i32
    return %c0_i32, %c0_i32_0 : i32, i32
  }
  func.func @transform_7(%arg0: i32) -> (i32, i32) {
    %c0_i32 = arith.constant 0 : i32
    %c0_i32_0 = arith.constant 0 : i32
    %c0_i32_1 = arith.constant 0 : i32
    return %c0_i32, %c0_i32_0 : i32, i32
  }
  func.func @transform_8(%arg0: i32) -> (i32, i32) {
    %c0_i32 = arith.constant 0 : i32
    %c0_i32_0 = arith.constant 0 : i32
    %c0_i32_1 = arith.constant 0 : i32
    return %c0_i32, %c0_i32_0 : i32, i32
  }
  func.func @transform_9(%arg0: i32) -> (i32, i32) {
    %c0_i32 = arith.constant 0 : i32
    %c0_i32_0 = arith.constant 0 : i32
    %c0_i32_1 = arith.constant 0 : i32
    return %c0_i32, %c0_i32_0 : i32, i32
  }
  func.func @transform_10(%arg0: i32) -> (i32, i32) {
    %c0_i32 = arith.constant 0 : i32
    %c0_i32_0 = arith.constant 0 : i32
    return %arg0, %c0_i32 : i32, i32
  }
}

</mosaic_0001>

<bundles_post_ra>
// kernel: tpu_custom_call.1
= control target key start
LH: loop header
LB: loop body
LE: loop exit
PB: predicated region body
PF: predicated region fallthrough
CT: control target
= control target key end

     0   :  { %s10080_s0 = inlined_call_operand.hbm [shape: bf16[512,128], index: 0, kind: input, shape index: {}]   ;;  %s10081_s1 = inlined_call_operand.hbm [shape: f32[2,1,256], index: 1, kind: input, shape index: {}]   ;;  %s10082_s2 = inlined_call_operand.hbm [shape: f32[256,256], index: 2, kind: input, shape index: {}]   ;;  %s10083_s3 = inlined_call_operand.vmem [shape: f32[8,128], index: 3, kind: input, shape index: {}]   ;;  %s10084_s4 = inlined_call_operand.hbm [shape: bf16[128,384], index: 4, kind: input, shape index: {}]   ;;  %s10085_s5 = inlined_call_operand.vmem [shape: f32[1,384], index: 5, kind: input, shape index: {}]   ;;  %s10086_s6 = inlined_call_operand.hbm [shape: bf16[128,128], index: 6, kind: input, shape index: {}]   ;;  %s10087_s7 = inlined_call_operand.hbm [shape: bf16[128,256], index: 7, kind: input, shape index: {}]   ;;  %s10088_s8 = inlined_call_operand.vmem [shape: f32[1,256], index: 8, kind: input, shape index: {}]   ;;  %s10089_s9 = inlined_call_operand.hbm [shape: bf16[256,128], index: 9, kind: input, shape index: {}]   ;;  %s10090_s10 = inlined_call_operand.hbm [shape: f32[512,128], index: 10, kind: output, shape index: {}]  }
   0x1   :  { %10193 = sst [smem:[#allocation71_spill]] %s10080_s0 }
   0x2   :  { %10194 = sst [smem:[#allocation72_spill]] %s10082_s2 }
   0x3   :  { %10195 = sst [smem:[#allocation73_spill]] %s10084_s4 }
   0x4   :  { %10196 = sst [smem:[#allocation74_spill]] %s10086_s6 }
   0x5   :  { %10197 = sst [smem:[#allocation75_spill]] %s10087_s7 }
   0x6   :  { %10198 = sst [smem:[#allocation76_spill]] %s10088_s8 }
   0x7   :  { %10199 = sst [smem:[#allocation77_spill]] %s10089_s9 }
   0x8   :  { %10200 = sst [smem:[#allocation78_spill]] %s10090_s10 }
   0x9   :  { %15 = vsyncpa [#allocation3], 0 }
   0xa   :  { %17 = vsyncpa [#allocation3 + $0x1], 0 }
   0xb   :  { %18 = vsyncpa [#allocation6], 0 }
   0xc   :  { %20 = vsyncpa [#allocation6 + $0x1], 0 }
   0xd   :  { %21 = vsyncpa [#allocation9], 0 }
   0xe   :  { %22 = vsyncpa [#allocation12], 0 }
   0xf   :  { %23 = vsyncpa [#allocation4], 0 }
  0x10   :  { %25 = vsyncpa [#allocation4 + $0x1], 0  ;;  %s6836_s13 = smov 0   ;;  %s6838_s14 = smov 0  }
  0x11   :  { %s6840_s15 = smov 0   ;;  %s6842_s16 = smov 0  }
  0x12 LB: > { %s6762_s17 = smov [#allocation7]   ;;  %s6857_s19 = sadd.s32 4294967295, %s6760_s16   ;;  %s6760_s16 = sphi %s6842_s16, %s10434_s16   ;;  %s6756_s15 = sphi %s6840_s15, %s10433_s15   ;;  %s6752_s14 = sphi %s6838_s14, %s10432_s14   ;;  %s6748_s13 = sphi %s6836_s13, %s10431_s13  }
  0x13   : > { %s294_s18 = sshll.u32 %s6762_s17, 4  ;;  %p5181_p0 = scmp.ge.s32.totalorder %s6760_s16, 1  ;;  %s6862_s18 = int_to_ptr.vmem [resolvable:$true] %s294_s18 }
  0x14   : > { %p10092_p1 = scmp.eq.s32.totalorder %s6857_s19, 0  ;;  %p282_p2 = scmp.lt.s32.totalorder %s6760_s16, 3 }
  0x15   : > { %s6763_s21 = smov [#allocation8]   ;;  %s6764_s24 = smov [#allocation11]  }
  0x16   : > { %p6864_p3 = pnand %p5181_p0, %p282_p2  ;;  %s310_s22 = sshll.u32 %s6763_s21, 4  ;;  %s6877_s22 = int_to_ptr.vmem [resolvable:$true] %s310_s22 }
  0x17   : > { %s6879_s25 = sshll.u32 %s6764_s24, 4  ;;  %s10203_s2 = sld [smem:[#allocation72_spill]]  ;;  %s340_s25 = int_to_ptr.vmem [resolvable:$true] %s6879_s25 }
  0x18   : > { %s10201_s20 = scalar_select %p6864_p3, 1, 0 }
  0x19   : > { %p5797_p5 = pneg %p6864_p3 }
  0x1b   : > { %p6873_p6 = pnand %p5797_p5, %p10092_p1 }
  0x1d   : > { %s6478_s28 = scalar_lea.hbm %s10203_s2, 8192  ;;  %p6889_p8 = pneg %p6873_p6 }
  0x1e   : > { %p6479_p7 = scmp.ne.s32.totalorder %s10203_s2, %s6478_s28  ;;  %p6485_p11 = scmp.lt.u32.totalorder %s6478_s28, %s10203_s2 }
  0x20   : > { %p6481_p9 = pnand %p6889_p8, %p6479_p7 }
  0x22   : > { %p6482_p10 = pneg %p6481_p9 }
  0x24   : > { %p6487_p12 = pnand %p6485_p11, %p6482_p10 }
  0x26   : > { %6490 = shalt.err (!%p6487_p12)
}
  0x27   : > { %s6491_s21 = scalar_lea.vmem %s6862_s18, 8192  ;;  %p6499_p5 = scmp.lt.s32.totalorder %s6862_s18, %s6862_s18 }
  0x28   : > { %p6492_p13 = scmp.ne.s32.totalorder %s6862_s18, %s6491_s21  ;;  %p6500_p4 = scmp.lt.s32.totalorder %s6491_s21, %s6491_s21 }
  0x2a   : > { %p6494_p0 = pnand %p6492_p13, %p6889_p8  ;;  %p6501_p7 = por %p6500_p4, %p6499_p5 }
  0x2c   : > { %p6495_p2 = pneg %p6494_p0 }
  0x2e   : > { %p6502_p9 = pnand %p6501_p7, %p6495_p2 }
  0x30   : > { %6505 = shalt.err (!%p6502_p9)
}
  0x31   : > { %s6765_s24 = smov 256   ;;  %s6766_s26 = smov 16  }
  0x32   : > { %5800 = dma.hbm_to_vmem [thread:$0]  (!%p6873_p6), %s10203_s2, 8192, %s6862_s18, [#allocation6], %s6765_s24, %s6765_s24, %s6766_s26  }
  0x33   : > { %s10205_s4 = sld [smem:[#allocation73_spill]] }
  0x39   : > { %s6506_s12 = scalar_lea.hbm %s10205_s4, 3072 }
  0x3a   : > { %p6507_p4 = scmp.ne.s32.totalorder %s10205_s4, %s6506_s12  ;;  %p6513_p12 = scmp.lt.u32.totalorder %s6506_s12, %s10205_s4 }
  0x3c   : > { %p6509_p10 = pnand %p6507_p4, %p6889_p8 }
  0x3e   : > { %p6510_p11 = pneg %p6509_p10 }
  0x40   : > { %p6515_p13 = pnand %p6513_p12, %p6510_p11 }
  0x42   : > { %6518 = shalt.err (!%p6515_p13)
}
  0x43   : > { %s6519_s18 = scalar_lea.vmem %s6877_s22, 3072  ;;  %p6527_p7 = scmp.lt.s32.totalorder %s6877_s22, %s6877_s22 }
  0x44   : > { %p6520_p0 = scmp.ne.s32.totalorder %s6877_s22, %s6519_s18  ;;  %p6528_p9 = scmp.lt.s32.totalorder %s6519_s18, %s6519_s18 }
  0x46   : > { %p6522_p2 = pnand %p6520_p0, %p6889_p8  ;;  %p6529_p4 = por %p6528_p9, %p6527_p7 }
  0x48   : > { %p6523_p5 = pneg %p6522_p2 }
  0x4a   : > { %p6530_p10 = pnand %p6529_p4, %p6523_p5 }
  0x4c   : > { %6533 = shalt.err (!%p6530_p10)
}
  0x4d   : > { %s6767_s10 = smov 192   ;;  %s6768_s8 = smov 12  }
  0x4e   : > { %5803 = dma.hbm_to_vmem [thread:$0]  (!%p6873_p6), %s10205_s4, 3072, %s6877_s22, [#allocation9], %s6767_s10, %s6767_s10, %s6768_s8  }
  0x4f   : > { %s10206_s7 = sld [smem:[#allocation75_spill]] }
  0x55   : > { %s6534_s29 = scalar_lea.hbm %s10206_s7, 2048 }
  0x56   : > { %p6535_p11 = scmp.ne.s32.totalorder %s10206_s7, %s6534_s29  ;;  %p6541_p0 = scmp.lt.u32.totalorder %s6534_s29, %s10206_s7 }
  0x58   : > { %p6537_p12 = pnand %p6535_p11, %p6889_p8 }
  0x5a   : > { %p6538_p13 = pneg %p6537_p12 }
  0x5c   : > { %p6543_p2 = pnand %p6541_p0, %p6538_p13 }
  0x5e   : > { %6546 = shalt.err (!%p6543_p2)
}
  0x5f   : > { %s6547_s18 = scalar_lea.vmem %s340_s25, 2048  ;;  %p6555_p4 = scmp.lt.s32.totalorder %s340_s25, %s340_s25 }
  0x60   : > { %p6548_p5 = scmp.ne.s32.totalorder %s340_s25, %s6547_s18  ;;  %p6556_p10 = scmp.lt.s32.totalorder %s6547_s18, %s6547_s18 }
  0x62   : > { %p6550_p7 = pnand %p6548_p5, %p6889_p8  ;;  %p6557_p1 = por %p6556_p10, %p6555_p4 }
  0x64   : > { %p6551_p9 = pneg %p6550_p7 }
  0x66   : > { %p6558_p3 = pnand %p6557_p1, %p6551_p9 }
  0x68   : > { %6561 = shalt.err (!%p6558_p3)
}
  0x69   : > { %s6769_s22 = smov 128   ;;  %s6770_s10 = smov 8  }
  0x6a   : > { %5809 = dma.hbm_to_vmem [thread:$0]  (!%p6873_p6), %s10206_s7, 2048, %s340_s25, [#allocation12], %s6769_s22, %s6769_s22, %s6770_s10  }
  0x6b   : > { %s6771_s26 = smov [#allocation10]   ;;  %s10207_s6 = sld [smem:[#allocation74_spill]] }
  0x6c   : > { %s326_s27 = sshll.u32 %s6771_s26, 4  ;;  %s327_s27 = int_to_ptr.vmem [resolvable:$true] %s326_s27 }
  0x71   : > { %s6562_s30 = scalar_lea.hbm %s10207_s6, 1024 }
  0x72   : > { %p6563_p1 = scmp.ne.s32.totalorder %s10207_s6, %s6562_s30  ;;  %p6569_p12 = scmp.lt.u32.totalorder %s6562_s30, %s10207_s6 }
  0x74   : > { %p6565_p3 = pnand %p6563_p1, %p6889_p8 }
  0x76   : > { %p6566_p11 = pneg %p6565_p3 }
  0x78   : > { %p6571_p13 = pnand %p6569_p12, %p6566_p11 }
  0x7a   : > { %6574 = shalt.err (!%p6571_p13)
}
  0x7b   : > { %s6575_s25 = scalar_lea.vmem %s327_s27, 1024  ;;  %p6583_p7 = scmp.lt.s32.totalorder %s327_s27, %s327_s27 }
  0x7c   : > { %p6576_p0 = scmp.ne.s32.totalorder %s327_s27, %s6575_s25  ;;  %p6584_p9 = scmp.lt.s32.totalorder %s6575_s25, %s6575_s25 }
  0x7e   : > { %p6578_p2 = pnand %p6576_p0, %p6889_p8  ;;  %p6585_p4 = por %p6584_p9, %p6583_p7 }
  0x80   : > { %p6579_p5 = pneg %p6578_p2 }
  0x82   : > { %p6586_p10 = pnand %p6585_p4, %p6579_p5 }
  0x84   : > { %6589 = shalt.err (!%p6586_p10)
}
  0x85   : > { %s10094_s22 = smov 64   ;;  %s10095_s10 = smov 4  }
  0x86   : > { %5806 = dma.hbm_to_vmem [thread:$0]  (!%p6873_p6), %s10207_s6, 1024, %s327_s27, [#allocation9], %s10094_s22, %s10094_s22, %s10095_s10  }
  0x87   : > { %s6774_s26 = smov [#allocation13]   ;;  %s10208_s9 = sld [smem:[#allocation77_spill]] }
  0x88   : > { %s355_s28 = sshll.u32 %s6774_s26, 4  ;;  %s356_s28 = int_to_ptr.vmem [resolvable:$true] %s355_s28 }
  0x8d   : > { %s6590_s12 = scalar_lea.hbm %s10208_s9, 2048 }
  0x8e   : > { %p6591_p1 = scmp.ne.s32.totalorder %s10208_s9, %s6590_s12  ;;  %p6597_p12 = scmp.lt.u32.totalorder %s6590_s12, %s10208_s9 }
  0x90   : > { %p6593_p3 = pnand %p6591_p1, %p6889_p8 }
  0x92   : > { %p6594_p11 = pneg %p6593_p3 }
  0x94   : > { %p6599_p13 = pnand %p6597_p12, %p6594_p11 }
  0x96   : > { %6602 = shalt.err (!%p6599_p13)
}
  0x97   : > { %s6603_s27 = scalar_lea.vmem %s356_s28, 2048  ;;  %p6611_p7 = scmp.lt.s32.totalorder %s356_s28, %s356_s28 }
  0x98   : > { %p6604_p0 = scmp.ne.s32.totalorder %s356_s28, %s6603_s27  ;;  %p6612_p9 = scmp.lt.s32.totalorder %s6603_s27, %s6603_s27 }
  0x9a   : > { %p6606_p2 = pnand %p6604_p0, %p6889_p8  ;;  %p6613_p4 = por %p6612_p9, %p6611_p7 }
  0x9c   : > { %p6607_p5 = pneg %p6606_p2 }
  0x9e   : > { %p6614_p10 = pnand %p6613_p4, %p6607_p5 }
  0xa0   : > { %6617 = shalt.err (!%p6614_p10)
}
  0xa1   : > { %5812 = dma.hbm_to_vmem [thread:$0]  (!%p6873_p6), %s10208_s9, 2048, %s356_s28, [#allocation12], %s10094_s22, %s10094_s22, %s10095_s10  }
  0xa2   : > { %s5180_s23 = sadd.s32 4294967294, %s6760_s16   ;;  %s6996_s11 = sadd.s32 1, %s6760_s16  }
  0xa3   : > { %s38_s26 = sadd.s32 1, %s6756_s15  ;;  %s35_s29 = ssub.s32 %s6760_s16, %s6996_s11 }
  0xa4   : > { %p45_p8 = scmp.ne.s32.totalorder %s6756_s15, %s6752_s14  ;;  %p36_p1 = scmp.eq.s32.totalorder %s35_s29, 0 }
  0xa5   : > { %p46_p3 = scmp.eq.s32.totalorder %s6760_s16, 0  ;;  %p51_p11 = scmp.ne.s32.totalorder %s6752_s14, %s6748_s13 }
  0xa6   : > { %p269_p12 = scmp.eq.s32.totalorder %s6857_s19, 1  ;;  %p10209_p0 = scmp.eq.s32.totalorder %s6857_s19, 0 }
  0xa7   : > { %s7008_s30 = scalar_select %p36_p1, %s6756_s15, %s38_s26  }
  0xa8   : > { %p47_p13 = por %p46_p3, %p45_p8  ;;  %p7012_p2 = por %p10209_p0, %p51_p11 }
  0xa9   : > { %p7016_p6 = por %p269_p12, %p45_p8  ;;  %p275_p5 = scmp.eq.s32.totalorder %s5180_s23, 1 }
  0xaa   : > { %s10210_s28 = scalar_select %p7012_p2, 1, 0 }
  0xab   : > { %s10211_s12 = scalar_select %p7016_p6, 1, 0 }
  0xac   : > { %p5829_p7 = scmp.lt.s32.totalorder %s6760_s16, 2  ;;  %s7022_s17 = sand.u32 1, %s6756_s15  }
  0xad   : > { %p7024_p9 = por %p275_p5, %p51_p11  ;;  %s5188_s18 = sshll.u32 %s7022_s17, 7 }
  0xae   : > { %s5273_s25 = sshll.u32 %s6760_s16, 11  ;;  %s10213_s0 = sld [smem:[#allocation71_spill]] }
  0xaf   : > { %s10212_s21 = scalar_select %p7024_p9, 1, 0 }
  0xb0   : > { %s373_s23 = scalar_lea.vmem [#allocation2], %s5188_s18  ;;  %p7035_p4 = pnand %p5829_p7, %p47_p13 }
  0xb1   : > { %s380_s26 = sshll.u32 %s373_s23, 4  ;;  %s370_s10 = scalar_lea.sflag [#allocation3], %s7022_s17  ;;  %s7039_s26 = int_to_ptr.vmem [resolvable:$true] %s380_s26 }
  0xb2   : > { %p6620_p8 = pneg %p7035_p4 }
  0xb4   : > { %s7033_s24 = scalar_lea.hbm %s10213_s0, %s5273_s25  ;;  %s6623_s27 = scalar_lea.hbm %s10213_s0, 4096 }
  0xb5   : > { %s6618_s2 = scalar_lea.hbm %s7033_s24, 2048  ;;  %p6624_p11 = scmp.lt.u32.totalorder %s7033_s24, %s10213_s0 }
  0xb6   : > { %p6619_p10 = scmp.ne.s32.totalorder %s7033_s24, %s6618_s2  ;;  %p6625_p12 = scmp.lt.u32.totalorder %s6623_s27, %s6618_s2 }
  0xb7   : > { %p6627_p0 = scmp.lt.u32.totalorder %s6618_s2, %s7033_s24 }
  0xb8   : > { %p6621_p1 = pnand %p6620_p8, %p6619_p10  ;;  %p6626_p13 = por %p6625_p12, %p6624_p11 }
  0xba   : > { %p6622_p3 = pneg %p6621_p1  ;;  %p6628_p5 = por %p6627_p0, %p6626_p13 }
  0xbc   : > { %p6629_p7 = pnand %p6628_p5, %p6622_p3 }
  0xbe   : > { %6632 = shalt.err (!%p6629_p7)
}
  0xbf   : > { %s6633_s22 = scalar_lea.vmem %s7039_s26, 2048  ;;  %s6775_s18 = smov [#allocation2]  }
  0xc0   : > { %p6634_p10 = scmp.ne.s32.totalorder %s7039_s26, %s6633_s22  ;;  %s6638_s25 = sshll.u32 %s6775_s18, 4  ;;  %s6639_s25 = int_to_ptr.vmem [resolvable:$false] %s6638_s25 }
  0xc1   : > { %s6640_s8 = scalar_lea.vmem %s6639_s25, 4096  ;;  %p6641_p6 = scmp.lt.s32.totalorder %s7039_s26, %s6639_s25 }
  0xc2   : > { %p6636_p1 = pnand %p6634_p10, %p6620_p8  ;;  %p6642_p11 = scmp.lt.s32.totalorder %s6640_s8, %s6633_s22 }
  0xc4   : > { %p6637_p9 = pneg %p6636_p1  ;;  %p6643_p12 = por %p6642_p11, %p6641_p6 }
  0xc6   : > { %p6644_p13 = pnand %p6643_p12, %p6637_p9 }
  0xc8   : > { %6647 = shalt.err (!%p6644_p13)
}
  0xc9   : > { %s10215_s2 = smov 4   ;;  %s10216_s27 = smov 64  }
  0xca   : > { %5816 = dma.hbm_to_vmem [thread:$0]  (!%p7035_p4), %s7033_s24, 2048, %s7039_s26, %s370_s10, %s10216_s27, %s10216_s27, %s10215_s2  }
  0xcb   : > { %s5191_s23 = sshll.u32 %s7022_s17, 1  ;;  %s5274_s18 = sshll.u32 %s6760_s16, 5 }
  0xcc   : > { %s7078_s8 = scalar_lea.hbm %s10081_s1, %s5274_s18  ;;  %s394_s0 = scalar_lea.vmem [#allocation5], %s5191_s23 }
  0xcd   : > { %s402_s4 = sshll.u32 %s394_s0, 4  ;;  %s10217_s6 = sand.u32 1, %s6760_s16   ;;  %s403_s4 = int_to_ptr.vmem [resolvable:$true] %s402_s4 }
  0xce   : > { %s391_s7 = scalar_lea.sflag [#allocation6], %s10217_s6  ;;  %s6648_s9 = scalar_lea.hbm %s7078_s8, 32 }
  0xcf   : > { %p6649_p6 = scmp.ne.s32.totalorder %s7078_s8, %s6648_s9  ;;  %s6653_s24 = scalar_lea.hbm %s10081_s1, 64 }
  0xd0   : > { %p6654_p0 = scmp.lt.u32.totalorder %s7078_s8, %s10081_s1  ;;  %p6655_p5 = scmp.lt.u32.totalorder %s6653_s24, %s6648_s9 }
  0xd1   : > { %p6651_p9 = pnand %p6649_p6, %p6620_p8  ;;  %p6657_p10 = scmp.lt.u32.totalorder %s6648_s9, %s7078_s8 }
  0xd2   : > { %p6656_p7 = por %p6655_p5, %p6654_p0 }
  0xd3   : > { %p6652_p3 = pneg %p6651_p9 }
  0xd4   : > { %p6658_p1 = por %p6657_p10, %p6656_p7 }
  0xd6   : > { %p6659_p11 = pnand %p6658_p1, %p6652_p3 }
  0xd8   : > { %6662 = shalt.err (!%p6659_p11)
}
  0xd9   : > { %s6663_s0 = scalar_lea.vmem %s403_s4, 32  ;;  %s6776_s6 = smov [#allocation5]  }
  0xda   : > { %p6664_p12 = scmp.ne.s32.totalorder %s403_s4, %s6663_s0  ;;  %s6668_s27 = sshll.u32 %s6776_s6, 4  ;;  %s6669_s27 = int_to_ptr.vmem [resolvable:$false] %s6668_s27 }
  0xdb   : > { %s6670_s23 = scalar_lea.vmem %s6669_s27, 64  ;;  %p6671_p9 = scmp.lt.s32.totalorder %s403_s4, %s6669_s27 }
  0xdc   : > { %p6666_p13 = pnand %p6664_p12, %p6620_p8  ;;  %p6672_p2 = scmp.lt.s32.totalorder %s6670_s23, %s6663_s0 }
  0xde   : > { %p6667_p6 = pneg %p6666_p13  ;;  %p6673_p0 = por %p6672_p2, %p6671_p9 }
  0xe0   : > { %p6674_p5 = pnand %p6673_p0, %p6667_p6 }
  0xe2   : > { %6677 = shalt.err (!%p6674_p5)
}
  0xe3   : > { %5819 = dma.hbm_to_vmem [thread:$0]  (!%p7035_p4), %s7078_s8, 32, %s403_s4, %s391_s7  }
  0xe4   : > { %p10218_p3 = scmp.ne.s32.totalorder %s10201_s20, 0 }
  0xe6   : > { %411 = sbr.rel (%p10218_p3) target bundleno = 3291 (0xcdb), region = 60 }
  0xed   : > { %s7104_s9 = sand.u32 1, %s6752_s14   ;;  %p10219_p2 = scmp.ne.s32.totalorder %s10210_s28, 0 }
  0xee   : > { %s5195_s18 = sshll.u32 %s7104_s9, 7  ;;  %s414_s22 = scalar_lea.sflag [#allocation3], %s7104_s9 }
  0xef   : > { %s7108_s25 = scalar_lea.vmem [#allocation2], %s5195_s18 }
  0xf0   : > { %6723 = dma.done.wait (%p10219_p2), %s414_s22, 2048  }
  0xf1   : > { %6725 = vsyncadd (%p10219_p2), %s414_s22, 4294965248  ;;  %s422_s4 = sand.u32 1, %s6857_s19   ;;  %s5196_s7 = sshll.u32 %s7104_s9, 1 }
  0xf2   : > { %s423_s20 = scalar_lea.sflag [#allocation6], %s422_s4  ;;  %s7116_s29 = scalar_lea.vmem [#allocation5], %s5196_s7 }
  0xf3   : > { %6727 = dma.done.wait (%p10219_p2), %s423_s20, 32  }
  0xf4   : > { %6729 = vsyncadd (%p10219_p2), %s423_s20, 4294967264  ;;  %p10220_p4 = scmp.eq.s32.totalorder %s6857_s19, 0 }
  0xf6   : > { %6731 = dma.done.wait (%p10220_p4), [#allocation6], 8192   ;;  %p10221_p8 = pmov %p10220_p4 }
  0xf7   : > { %p10222_p7 = pmov %p10220_p4 }
  0xf8   : > { %6733 = vsyncadd (%p10221_p8), [#allocation6], 4294959104 }
  0xf9   : > { %6735 = dma.done.wait (%p10222_p7), [#allocation9], 4096   ;;  %p10223_p10 = pmov %p10220_p4 }
  0xfa   : > { %p10224_p1 = pmov %p10220_p4 }
  0xfb   : > { %6737 = vsyncadd (%p10223_p10), [#allocation9], 4294963200 }
  0xfc   : > { %6739 = dma.done.wait (%p10224_p1), [#allocation12], 4096   ;;  %p10225_p11 = pmov %p10224_p1 }
  0xfd   : > { %v5277_v0 = vld [vmem:[%s7108_s25] sm:$0xff]   ;;  %v5340_v1 = vld [vmem:[%s7108_s25 + $0x8] sm:$0xff]   ;;  %v5341_v6 = vld [vmem:[%s7108_s25 + $0x10] sm:$0xff]   ;;  %s10397_s6 = sld [smem:[#allocation76_spill]]  ;;  %s5202_s18 = sshll.u32 %s7104_s9, 8 }
  0xfe   : > { %6741 = vsyncadd (%p10225_p11), [#allocation12], 4294963200  ;;  %v7136_v2 = vunpack.c.l.bf16 %v5277_v0  ;;  %v7138_v3 = vunpack.c.l.bf16 %v5340_v1  ;;  %v7141_v4 = vunpack.c.h.bf16 %v5277_v0  ;;  %v7144_v5 = vunpack.c.h.bf16 %v5340_v1  ;;  %v5342_v7 = vld [vmem:[%s7108_s25 + $0x18] sm:$0xff]   ;;  %v5343_v10 = vld [vmem:[%s7108_s25 + $0x20] sm:$0xff]   ;;  %s9905_s22 = scalar_lea.vmem [#allocation14], %s5202_s18  ;;  %p10428_p13 = scmp.ne.s32.totalorder %s10211_s12, 0 }
  0xff   : > { %v7150_v8 = vunpack.c.l.bf16 %v5341_v6  ;;  %v7152_v9 = vunpack.c.h.bf16 %v5341_v6  ;;  %v7157_v11 = vunpack.c.l.bf16 %v5342_v7  ;;  %v7159_v12 = vunpack.c.h.bf16 %v5342_v7  ;;  %v5344_v13 = vld [vmem:[%s7108_s25 + $0x28] sm:$0xff]   ;;  %v5345_v16 = vld [vmem:[%s7108_s25 + $0x30] sm:$0xff]   ;;  %v5346_v21 = vld [vmem:[%s7108_s25 + $0x38] sm:$0xff]   ;;  %s5037_s4 = sshll.u32 %s9905_s22, 4  ;;  %s6778_s10 = smov [#allocation14]   ;;  %s10033_s4 = int_to_ptr.vmem [resolvable:$true] %s5037_s4 }
 0x100   : > { %10226 = vst [vmem:[#allocation21_spill] sm:$0xff] %v7136_v2  ;;  %10227 = vst [vmem:[#allocation22_spill] sm:$0xff] %v7138_v3  ;;  %698 = vadd.xlane.f32.xlu0 %v7136_v2  ;;  %702 = vadd.xlane.f32.xlu1 %v7138_v3  ;;  %v7164_v14 = vunpack.c.l.bf16 %v5343_v10  ;;  %v7166_v15 = vunpack.c.h.bf16 %v5343_v10  ;;  %v7171_v17 = vunpack.c.l.bf16 %v5344_v13  ;;  %v7173_v18 = vunpack.c.h.bf16 %v5344_v13  ;;  %v5347_v22 = vld [vmem:[%s7108_s25 + $0x40] sm:$0xff]   ;;  %v5348_v27 = vld [vmem:[%s7108_s25 + $0x48] sm:$0xff]   ;;  %s6678_s8 = scalar_lea.vmem %s10033_s4, 4096  ;;  %s6682_s17 = sshll.u32 %s6778_s10, 4  ;;  %s6683_s17 = int_to_ptr.vmem [resolvable:$false] %s6682_s17 }
 0x101   : > { %10228 = vst [vmem:[#allocation23_spill] sm:$0xff] %v7141_v4  ;;  %10229 = vst [vmem:[#allocation24_spill] sm:$0xff] %v7144_v5  ;;  %v7177_v19 = vunpack.c.l.bf16 %v5345_v16  ;;  %v7179_v20 = vunpack.c.h.bf16 %v5345_v16  ;;  %v7185_v23 = vunpack.c.l.bf16 %v5346_v21  ;;  %v7187_v24 = vunpack.c.h.bf16 %v5346_v21  ;;  %v5884_v30 = vld [vmem:[#allocation8 + $0x4] ss:$12 sps:$4 sm:$0xff]   ;;  %v5886_v31 = vld [vmem:[#allocation8] ss:$12 sps:$4 sm:$0xff]   ;;  %p6679_p12 = scmp.ne.s32.totalorder %s10033_s4, %s6678_s8  ;;  %p6685_p0 = scmp.lt.s32.totalorder %s10033_s4, %s6683_s17 }
 0x102   : > { %10230 = vst [vmem:[#allocation25_spill] sm:$0xff] %v7150_v8  ;;  %10231 = vst [vmem:[#allocation26_spill] sm:$0xff] %v7152_v9  ;;  %v7191_v25 = vunpack.c.l.bf16 %v5347_v22  ;;  %v7193_v26 = vunpack.c.h.bf16 %v5347_v22  ;;  %v7198_v28 = vunpack.c.l.bf16 %v5348_v27  ;;  %v7200_v29 = vunpack.c.h.bf16 %v5348_v27  ;;  %v5887_v32 = vld [vmem:[#allocation8 + $0x1c] ss:$12 sps:$4 sm:$0xff]   ;;  %1316 = vmatprep.subr.bf16.mxu0 %v5884_v30  ;;  %v5349_v39 = vld [vmem:[%s7108_s25 + $0x50] sm:$0xff]   ;;  %s6684_s24 = scalar_lea.vmem %s6683_s17, 8192 }
 0x103   : > { %10232 = vst [vmem:[#allocation27_spill] sm:$0xff] %v7157_v11  ;;  %10233 = vst [vmem:[#allocation28_spill] sm:$0xff] %v7159_v12  ;;  %1317 = vmatpush1.bf16.msra.mxu0 %v5886_v31  ;;  %v7210_v43 = vunpack.c.l.bf16 %v5349_v39  ;;  %v7223_v50 = vunpack.c.h.bf16 %v5349_v39  ;;  %v5350_v53 = vld [vmem:[%s7108_s25 + $0x58] sm:$0xff]   ;;  %v5351_v1 = vld [vmem:[%s7108_s25 + $0x60] sm:$0xff]   ;;  %p6680_p6 = pnand %p6679_p12, %p10428_p13  ;;  %p6686_p5 = scmp.lt.s32.totalorder %s6684_s24, %s6678_s8 }
 0x104   : > { %700 = vadd.xlane.f32.xlu0 %v7141_v4  ;;  %704 = vadd.xlane.f32.xlu1 %v7144_v5  ;;  %10234 = vst [vmem:[#allocation29_spill] sm:$0xff] %v7164_v14  ;;  %10235 = vst [vmem:[#allocation30_spill] sm:$0xff] %v7166_v15  ;;  %v7230_v55 = vunpack.c.l.bf16 %v5350_v53  ;;  %v7238_v60 = vunpack.c.h.bf16 %v5350_v53  ;;  %v5889_v0 = vld [vmem:[#allocation8 + $0x18] ss:$12 sps:$4 sm:$0xff]   ;;  %v5890_v7 = vld [vmem:[#allocation8 + $0x34] ss:$12 sps:$4 sm:$0xff]   ;;  %v7249_v16 = vunpack.c.l.bf16 %v5351_v1 }
 0x105   : > { %10236 = vst [vmem:[#allocation31_spill] sm:$0xff] %v7171_v17  ;;  %10237 = vst [vmem:[#allocation32_spill] sm:$0xff] %v7173_v18  ;;  %1318 = vmatprep.subr.bf16.mxu0 %v5887_v32  ;;  %v5892_v10 = vld [vmem:[#allocation8 + $0x8] ss:$12 sps:$4 sm:$0xff]   ;;  %v5893_v27 = vld [vmem:[#allocation8 + $0x30] ss:$12 sps:$4 sm:$0xff]   ;;  %p6681_p9 = pneg %p6680_p6  ;;  %p6687_p3 = por %p6686_p5, %p6685_p0 }
 0x106   : > { %10238 = vst [vmem:[#allocation33_spill] sm:$0xff] %v7177_v19  ;;  %10239 = vst [vmem:[#allocation34_spill] sm:$0xff] %v7179_v20  ;;  %5675 = vmatprep.subr.bf16.mxu1 %v5892_v10  ;;  %v5894_v31 = vld [vmem:[#allocation8 + $0x4c] ss:$12 sps:$4 sm:$0xff]   ;;  %v5352_v39 = vld [vmem:[%s7108_s25 + $0x68] sm:$0xff]  }
 0x107   : > { %10240 = vst [vmem:[#allocation35_spill] sm:$0xff] %v7185_v23  ;;  %10241 = vst [vmem:[#allocation36_spill] sm:$0xff] %v7187_v24  ;;  %1319 = vmatpush1.bf16.msra.mxu0 %v5889_v0  ;;  %5676 = vmatpush3.bf16.msra.mxu1 %v5892_v10  ;;  %v5896_v32 = vld [vmem:[#allocation8 + $0x20] ss:$12 sps:$4 sm:$0xff]   ;;  %p6688_p2 = pnand %p6687_p3, %p6681_p9 }
 0x108   : > { %706 = vadd.xlane.f32.xlu0 %v7150_v8  ;;  %708 = vadd.xlane.f32.xlu1 %v7152_v9  ;;  %10242 = vst [vmem:[#allocation37_spill] sm:$0xff] %v7191_v25  ;;  %10243 = vst [vmem:[#allocation38_spill] sm:$0xff] %v7193_v26  ;;  %v5901_v53 = vld [vmem:[#allocation8 + $0x60] ss:$12 sps:$4 sm:$0xff]  }
 0x109   : > { %10244 = vst [vmem:[#allocation39_spill] sm:$0xff] %v7198_v28  ;;  %10245 = vst [vmem:[#allocation40_spill] sm:$0xff] %v7200_v29  ;;  %1320 = vmatprep.subr.bf16.mxu0 %v5890_v7  ;;  %5677 = vmatprep.subr.bf16.mxu1 %v5896_v32  ;;  %v5353_v7 = vld [vmem:[%s7108_s25 + $0x70] sm:$0xff]  }
 0x10a   : > { %10246 = vst [vmem:[#allocation41_spill] sm:$0xff] %v7210_v43  ;;  %10247 = vst [vmem:[#allocation42_spill] sm:$0xff] %v7223_v50 }
 0x10b   : > { %10248 = vst [vmem:[#allocation43_spill] sm:$0xff] %v7230_v55  ;;  %10249 = vst [vmem:[#allocation44_spill] sm:$0xff] %v7238_v60  ;;  %1321 = vmatpush1.bf16.msra.mxu0 %v5893_v27  ;;  %5678 = vmatpush3.bf16.msra.mxu1 %v5896_v32 }
 0x10c   : > { %710 = vadd.xlane.f32.xlu0 %v7157_v11  ;;  %712 = vadd.xlane.f32.xlu1 %v7159_v12  ;;  %10250 = vst [vmem:[#allocation45_spill] sm:$0xff] %v7249_v16 }
 0x10d   : > { %1322 = vmatprep.subr.bf16.mxu0 %v5894_v31 }
 0x110   : > { %714 = vadd.xlane.f32.xlu0 %v7164_v14  ;;  %716 = vadd.xlane.f32.xlu1 %v7166_v15 }
 0x114   : > { %718 = vadd.xlane.f32.xlu0 %v7171_v17  ;;  %720 = vadd.xlane.f32.xlu1 %v7173_v18 }
 0x118   : > { %722 = vadd.xlane.f32.xlu0 %v7177_v19  ;;  %724 = vadd.xlane.f32.xlu1 %v7179_v20 }
 0x11c   : > { %726 = vadd.xlane.f32.xlu0 %v7185_v23  ;;  %728 = vadd.xlane.f32.xlu1 %v7187_v24 }
 0x120   : > { %730 = vadd.xlane.f32.xlu0 %v7191_v25  ;;  %732 = vadd.xlane.f32.xlu1 %v7193_v26 }
 0x124   : > { %734 = vadd.xlane.f32.xlu0 %v7198_v28  ;;  %736 = vadd.xlane.f32.xlu1 %v7200_v29 }
 0x18d   : > { %v699_v33 = vpop.xlane.xlu0 %698  ;;  %v703_v34 = vpop.xlane.xlu1 %702 }
 0x18e   : > { %v763_v35 = vmul.f32 0.0078125, %v699_v33  ;;  %v765_v37 = vmul.f32 0.0078125, %v703_v34  ;;  %v7255_v33 = vunpack.c.h.bf16 %v5351_v1 }
 0x190   : > { %v7205_v36 = vsub.f32 %v7136_v2, %v763_v35  ;;  %v7216_v46 = vsub.f32 %v7138_v3, %v765_v37  ;;  %10251 = vst [vmem:[#allocation46_spill] sm:$0xff] %v7255_v33 }
 0x191   : > { %v701_v38 = vpop.xlane.xlu0 %700  ;;  %v705_v40 = vpop.xlane.xlu1 %704 }
 0x192   : > { %v764_v41 = vmul.f32 0.0078125, %v701_v38  ;;  %v827_v42 = vmul.f32 %v7205_v36, %v7205_v36  ;;  %v766_v45 = vmul.f32 0.0078125, %v705_v40  ;;  %v829_v49 = vmul.f32 %v7216_v46, %v7216_v46  ;;  %v5897_v38 = vld [vmem:[#allocation8 + $0x48] ss:$12 sps:$4 sm:$0xff]  }
 0x193   : > { %1323 = vmatpush1.bf16.msra.mxu0 %v5897_v38  ;;  %v5910_v38 = vld [vmem:[#allocation8 + $0xac] ss:$12 sps:$4 sm:$0xff]  }
 0x194   : > { %859 = vadd.xlane.f32.xlu0 %v827_v42  ;;  %v7213_v44 = vsub.f32 %v7141_v4, %v764_v41  ;;  %v7226_v52 = vsub.f32 %v7144_v5, %v766_v45  ;;  %v5898_v42 = vld [vmem:[#allocation8 + $0x64] ss:$12 sps:$4 sm:$0xff]  }
 0x195   : > { %v707_v47 = vpop.xlane.xlu0 %706  ;;  %v709_v54 = vpop.xlane.xlu1 %708  ;;  %v5900_v45 = vld [vmem:[#allocation8 + $0x38] ss:$12 sps:$4 sm:$0xff]   ;;  %1324 = vmatprep.subr.bf16.mxu0 %v5898_v42 }
 0x196   : > { %v828_v48 = vmul.f32 %v7213_v44, %v7213_v44  ;;  %v767_v51 = vmul.f32 0.0078125, %v707_v47  ;;  %v830_v56 = vmul.f32 %v7226_v52, %v7226_v52  ;;  %v768_v57 = vmul.f32 0.0078125, %v709_v54  ;;  %5679 = vmatprep.subr.bf16.mxu1 %v5900_v45 }
 0x197   : > { %1325 = vmatpush1.bf16.msra.mxu0 %v5901_v53  ;;  %5680 = vmatpush3.bf16.msra.mxu1 %v5900_v45 }
 0x198   : > { %738 = vadd.xlane.f32.xlu0 %v7210_v43  ;;  %861 = vadd.xlane.f32.xlu1 %v828_v48  ;;  %v7235_v58 = vsub.f32 %v7150_v8, %v767_v51  ;;  %v7243_v63 = vsub.f32 %v7152_v9, %v768_v57  ;;  %v7266_v48 = vunpack.c.l.bf16 %v5352_v39  ;;  %v5902_v57 = vld [vmem:[#allocation8 + $0x7c] ss:$12 sps:$4 sm:$0xff]  }
 0x199   : > { %v711_v59 = vpop.xlane.xlu0 %710  ;;  %v713_v6 = vpop.xlane.xlu1 %712  ;;  %1326 = vmatprep.subr.bf16.mxu0 %v5902_v57 }
 0x19a   : > { %v831_v61 = vmul.f32 %v7235_v58, %v7235_v58  ;;  %v769_v62 = vmul.f32 0.0078125, %v711_v59  ;;  %v832_v13 = vmul.f32 %v7243_v63, %v7243_v63  ;;  %v770_v21 = vmul.f32 0.0078125, %v713_v6  ;;  %10252 = vst [vmem:[#allocation47_spill] sm:$0xff] %v7266_v48  ;;  %v5904_v59 = vld [vmem:[#allocation8 + $0x50] ss:$12 sps:$4 sm:$0xff]  }
 0x19b   : > { %v5905_v6 = vld [vmem:[#allocation8 + $0x78] ss:$12 sps:$4 sm:$0xff]   ;;  %5681 = vmatprep.subr.bf16.mxu1 %v5904_v59 }
 0x19c   : > { %863 = vadd.xlane.f32.xlu0 %v829_v49  ;;  %740 = vadd.xlane.f32.xlu1 %v7223_v50  ;;  %v7252_v22 = vsub.f32 %v7157_v11, %v769_v62  ;;  %v7260_v37 = vsub.f32 %v7159_v12, %v770_v21  ;;  %v5908_v21 = vld [vmem:[#allocation8 + $0x68] ss:$12 sps:$4 sm:$0xff]  }
 0x19d   : > { %v715_v30 = vpop.xlane.xlu0 %714  ;;  %v717_v40 = vpop.xlane.xlu1 %716  ;;  %1327 = vmatpush1.bf16.msra.mxu0 %v5905_v6  ;;  %5682 = vmatpush3.bf16.msra.mxu1 %v5904_v59  ;;  %v5914_v59 = vld [vmem:[#allocation8 + $0x98] ss:$12 sps:$4 sm:$0xff]  }
 0x19e   : > { %v833_v34 = vmul.f32 %v7252_v22, %v7252_v22  ;;  %v771_v35 = vmul.f32 0.0078125, %v715_v30  ;;  %v834_v47 = vmul.f32 %v7260_v37, %v7260_v37  ;;  %v772_v49 = vmul.f32 0.0078125, %v717_v40  ;;  %5683 = vmatprep.subr.bf16.mxu1 %v5908_v21 }
 0x19f   : > { %v7283_v30 = vunpack.c.l.bf16 %v5353_v7  ;;  %v7289_v40 = vunpack.c.h.bf16 %v5353_v7  ;;  %v10098_v7 = vmov 0  }
 0x1a0   : > { %742 = vadd.xlane.f32.xlu0 %v7230_v55  ;;  %865 = vadd.xlane.f32.xlu1 %v830_v56  ;;  %v7269_v51 = vsub.f32 %v7164_v14, %v771_v35  ;;  %v7277_v1 = vsub.f32 %v7166_v15, %v772_v49  ;;  %v5354_v49 = vld [vmem:[%s7108_s25 + $0x78] sm:$0xff]   ;;  %s5275_s25 = sshll.u32 %s6857_s19, 12  ;;  %s5024_s19 = scalar_lea.sflag [#allocation4], %s7104_s9 }
 0x1a1   : > { %v719_v41 = vpop.xlane.xlu0 %718  ;;  %v721_v54 = vpop.xlane.xlu1 %720  ;;  %10254 = vst [vmem:[#allocation49_spill] sm:$0xff] %v7283_v30  ;;  %5684 = vmatpush3.bf16.msra.mxu1 %v5908_v21  ;;  %10255 = vst [vmem:[#allocation50_spill] sm:$0xff] %v7289_v40  ;;  %1348 = vmatprep.mubr.bf16.mxu0 %v10098_v7 }
 0x1a2   : > { %v835_v62 = vmul.f32 %v7269_v51, %v7269_v51  ;;  %v773_v0 = vmul.f32 0.0078125, %v719_v41  ;;  %v836_v27 = vmul.f32 %v7277_v1, %v7277_v1  ;;  %v774_v31 = vmul.f32 0.0078125, %v721_v54 }
 0x1a4   : > { %744 = vadd.xlane.f32.xlu1 %v7238_v60  ;;  %867 = vadd.xlane.f32.xlu0 %v831_v61  ;;  %v7272_v61 = vunpack.c.h.bf16 %v5352_v39  ;;  %v7286_v32 = vsub.f32 %v7171_v17, %v773_v0  ;;  %v5912_v39 = vld [vmem:[#allocation8 + $0x80] ss:$12 sps:$4 sm:$0xff]   ;;  %v7294_v45 = vsub.f32 %v7173_v18, %v774_v31  ;;  %v7310_v31 = vunpack.c.h.bf16 %v5354_v49 }
 0x1a5   : > { %v723_v56 = vpop.xlane.xlu0 %722  ;;  %v725_v10 = vpop.xlane.xlu1 %724  ;;  %5685 = vmatprep.subr.bf16.mxu1 %v5912_v39 }
 0x1a6   : > { %10253 = vst [vmem:[#allocation48_spill] sm:$0xff] %v7272_v61  ;;  %v837_v41 = vmul.f32 %v7286_v32, %v7286_v32  ;;  %v775_v42 = vmul.f32 0.0078125, %v723_v56  ;;  %5686 = vmatpush3.bf16.msra.mxu1 %v5912_v39  ;;  %v776_v54 = vmul.f32 0.0078125, %v725_v10  ;;  %v7300_v56 = vunpack.c.l.bf16 %v5354_v49  ;;  %10257 = vst [vmem:[#allocation52_spill] sm:$0xff] %v7310_v31 }
 0x1a7   : > { %5687 = vmatprep.subr.bf16.mxu1 %v5914_v59 }
 0x1a8   : > { %869 = vadd.xlane.f32.xlu1 %v832_v13  ;;  %746 = vadd.xlane.f32.xlu0 %v7249_v16  ;;  %v5906_v13 = vld [vmem:[#allocation8 + $0x94] ss:$12 sps:$4 sm:$0xff]   ;;  %10256 = vst [vmem:[#allocation51_spill] sm:$0xff] %v7300_v56  ;;  %v7303_v6 = vsub.f32 %v7177_v19, %v775_v42 }
 0x1a9   : > { %v727_v35 = vpop.xlane.xlu0 %726  ;;  %1328 = vmatprep.subr.bf16.mxu0 %v5906_v13  ;;  %v729_v53 = vpop.xlane.xlu1 %728  ;;  %v7307_v13 = vsub.f32 %v7179_v20, %v776_v54 }
 0x1aa   : > { %v777_v0 = vmul.f32 0.0078125, %v727_v35  ;;  %5688 = vmatpush3.bf16.msra.mxu1 %v5914_v59  ;;  %v778_v10 = vmul.f32 0.0078125, %v729_v53 }
 0x1ac   : > { %748 = vadd.xlane.f32.xlu1 %v7255_v33  ;;  %871 = vadd.xlane.f32.xlu0 %v833_v34  ;;  %v5909_v34 = vld [vmem:[#allocation8 + $0x90] ss:$12 sps:$4 sm:$0xff]   ;;  %v7320_v42 = vsub.f32 %v7187_v24, %v778_v10 }
 0x1ad   : > { %1329 = vmatpush1.bf16.msra.mxu0 %v5909_v34  ;;  %v731_v57 = vpop.xlane.xlu0 %730  ;;  %v733_v21 = vpop.xlane.xlu1 %732  ;;  %v839_v34 = vmul.f32 %v7303_v6, %v7303_v6 }
 0x1ae   : > { %1330 = vmatprep.subr.bf16.mxu0 %v5910_v38  ;;  %v779_v35 = vmul.f32 0.0078125, %v731_v57  ;;  %v7315_v38 = vsub.f32 %v7185_v23, %v777_v0  ;;  %v780_v49 = vmul.f32 0.0078125, %v733_v21  ;;  %v842_v59 = vmul.f32 %v7320_v42, %v7320_v42 }
 0x1b0   : > { %873 = vadd.xlane.f32.xlu1 %v834_v47  ;;  %750 = vadd.xlane.f32.xlu0 %v7266_v48  ;;  %v5913_v47 = vld [vmem:[#allocation8 + $0xa8] ss:$12 sps:$4 sm:$0xff]   ;;  %v7326_v54 = vsub.f32 %v7191_v25, %v779_v35  ;;  %v7333_v10 = vsub.f32 %v7193_v26, %v780_v49 }
 0x1b1   : > { %1331 = vmatpush1.bf16.msra.mxu0 %v5913_v47  ;;  %v735_v39 = vpop.xlane.xlu0 %734  ;;  %v841_v47 = vmul.f32 %v7315_v38, %v7315_v38  ;;  %v737_v57 = vpop.xlane.xlu1 %736 }
 0x1b2   : > { %v781_v53 = vmul.f32 0.0078125, %v735_v39  ;;  %v782_v0 = vmul.f32 0.0078125, %v737_v57  ;;  %v844_v21 = vmul.f32 %v7333_v10, %v7333_v10 }
 0x1b4   : > { %752 = vadd.xlane.f32.xlu1 %v7272_v61  ;;  %875 = vadd.xlane.f32.xlu0 %v835_v62  ;;  %v838_v62 = vmul.f32 %v7294_v45, %v7294_v45  ;;  %v7343_v35 = vsub.f32 %v7200_v29, %v782_v0 }
 0x1b6   : > { %v846_v39 = vmul.f32 %v7343_v35, %v7343_v35 }
 0x1b8   : > { %877 = vadd.xlane.f32.xlu1 %v836_v27  ;;  %754 = vadd.xlane.f32.xlu0 %v7283_v30  ;;  %v5915_v27 = vld [vmem:[#allocation8 + $0xb0] ss:$12 sps:$4 sm:$0xff]  }
 0x1b9   : > { %5689 = vmatprep.subr.bf16.mxu1 %v5915_v27 }
 0x1ba   : > { %5690 = vmatpush3.bf16.msra.mxu1 %v5915_v27  ;;  %v7336_v27 = vsub.f32 %v7198_v28, %v781_v53 }
 0x1bc   : > { %756 = vadd.xlane.f32.xlu1 %v7289_v40  ;;  %879 = vadd.xlane.f32.xlu0 %v837_v41  ;;  %v840_v41 = vmul.f32 %v7307_v13, %v7307_v13 }
 0x1c0   : > { %881 = vadd.xlane.f32.xlu1 %v838_v62  ;;  %758 = vadd.xlane.f32.xlu0 %v7300_v56  ;;  %v843_v62 = vmul.f32 %v7326_v54, %v7326_v54 }
 0x1c4   : > { %760 = vadd.xlane.f32.xlu1 %v7310_v31  ;;  %883 = vadd.xlane.f32.xlu0 %v839_v34  ;;  %v845_v34 = vmul.f32 %v7336_v27, %v7336_v27 }
 0x1c8   : > { %885 = vadd.xlane.f32.xlu1 %v840_v41  ;;  %887 = vadd.xlane.f32.xlu0 %v841_v47 }
 0x1cc   : > { %889 = vadd.xlane.f32.xlu1 %v842_v59  ;;  %891 = vadd.xlane.f32.xlu0 %v843_v62  ;;  %v624_v59 = vlaneseq }
 0x1d0   : > { %893 = vadd.xlane.f32.xlu1 %v844_v21  ;;  %895 = vadd.xlane.f32.xlu0 %v845_v34  ;;  %v7350_v34 = vshrl.u32 %v624_v59, 7 }
 0x1d2   : > { %10258 = vst [vmem:[#allocation53_spill] sm:$0xff] %v7350_v34 }
 0x1d4   : > { %897 = vadd.xlane.f32.xlu1 %v846_v39 }
 0x221   : > { %v860_v41 = vpop.xlane.xlu0 %859 }
 0x222   : > { %v923_v47 = vmul.f32 0.0078125, %v860_v41 }
 0x224   : > { %v955_v49 = vadd.f32 1e-05, %v923_v47 }
 0x225   : > { %v862_v53 = vpop.xlane.xlu1 %861  ;;  %v739_v57 = vpop.xlane.xlu0 %738 }
 0x226   : > { %5964 = vrsqrt.f32 %v955_v49  ;;  %v924_v62 = vmul.f32 0.0078125, %v862_v53  ;;  %v783_v7 = vmul.f32 0.0078125, %v739_v57 }
 0x228   : > { %v956_v28 = vadd.f32 1e-05, %v924_v62  ;;  %v7348_v26 = vsub.f32 %v7210_v43, %v783_v7  ;;  %v7358_v7 = vsub.s32 0, %v7350_v34  ;;  %v7369_v43 = vsub.s32 1, %v7350_v34 }
 0x229   : > { %v741_v0 = vpop.xlane.xlu1 %740  ;;  %v864_v21 = vpop.xlane.xlu0 %863 }
 0x22a   : > { %5966 = vrsqrt.f32 %v956_v28  ;;  %v784_v29 = vmul.f32 0.0078125, %v741_v0  ;;  %v925_v39 = vmul.f32 0.0078125, %v864_v21  ;;  %v847_v41 = vmul.f32 %v7348_v26, %v7348_v26  ;;  %10259 = vst [vmem:[#allocation54_spill] sm:$0xff] %v7358_v7  ;;  %v556_v0 = vld [vmem:[%s10083_s3] sm:$0xff]  ;;  %10260 = vst [vmem:[#allocation55_spill] sm:$0xff] %v7369_v43 }
 0x22c   : > { %v957_v47 = vadd.f32 1e-05, %v925_v39  ;;  %899 = vadd.xlane.f32.xlu0 %v847_v41  ;;  %v7355_v49 = vsub.f32 %v7223_v50, %v784_v29 }
 0x22d   : > { %v866_v53 = vpop.xlane.xlu1 %865  ;;  %v743_v57 = vpop.xlane.xlu0 %742 }
 0x22e   : > { %5968 = vrsqrt.f32 %v957_v47  ;;  %v926_v62 = vmul.f32 0.0078125, %v866_v53  ;;  %v785_v59 = vmul.f32 0.0078125, %v743_v57  ;;  %v848_v28 = vmul.f32 %v7355_v49, %v7355_v49 }
 0x22f   : > { %v7373_v53 = vrot.slane %v556_v0, %v7358_v7 }
 0x230   : > { %v5965_v21 = vpop.eup %5964  ;;  %v958_v39 = vadd.f32 1e-05, %v926_v62  ;;  %901 = vadd.xlane.f32.xlu1 %v848_v28  ;;  %v7366_v29 = vsub.f32 %v7230_v55, %v785_v59 }
 0x231   : > { %v745_v41 = vpop.xlane.xlu1 %744  ;;  %v868_v50 = vpop.xlane.xlu0 %867  ;;  %v1019_v47 = vmul.f32 %v5965_v21, %v7205_v36  ;;  %v7383_v21 = vrot.slane %v556_v0, %v7369_v43 }
 0x232   : > { %5970 = vrsqrt.f32 %v958_v39  ;;  %v786_v57 = vmul.f32 0.0078125, %v745_v41  ;;  %v927_v25 = vmul.f32 0.0078125, %v868_v50  ;;  %v849_v62 = vmul.f32 %v7366_v29, %v7366_v29 }
 0x233   : > { %v1055_v36 = vmul.f32 %v7373_v53, %v1019_v47 }
 0x234   : > { %v5967_v28 = vpop.eup %5966  ;;  %v959_v24 = vadd.f32 1e-05, %v927_v25  ;;  %903 = vadd.xlane.f32.xlu0 %v849_v62  ;;  %v7378_v59 = vsub.f32 %v7238_v60, %v786_v57 }
 0x235   : > { %v870_v55 = vpop.xlane.xlu1 %869  ;;  %v747_v23 = vpop.xlane.xlu0 %746  ;;  %v1020_v20 = vmul.f32 %v5967_v28, %v7213_v44  ;;  %v1091_v47 = vadd.f32 %v7383_v21, %v1055_v36 }
 0x236   : > { %5972 = vrsqrt.f32 %v959_v24  ;;  %v928_v50 = vmul.f32 0.0078125, %v870_v55  ;;  %v787_v39 = vmul.f32 0.0078125, %v747_v23  ;;  %v850_v41 = vmul.f32 %v7378_v59, %v7378_v59 }
 0x237   : > { %v1056_v25 = vmul.f32 %v7373_v53, %v1020_v20 }
 0x238   : > { %v5969_v62 = vpop.eup %5968  ;;  %v960_v57 = vadd.f32 1e-05, %v928_v50  ;;  %905 = vadd.xlane.f32.xlu1 %v850_v41  ;;  %v7389_v60 = vsub.f32 %v7249_v16, %v787_v39 }
 0x239   : > { %v749_v44 = vpop.xlane.xlu1 %748  ;;  %v872_v28 = vpop.xlane.xlu0 %871  ;;  %v1092_v0 = vadd.f32 %v7383_v21, %v1056_v25  ;;  %v1021_v24 = vmul.f32 %v5969_v62, %v7216_v46 }
 0x23a   : > { %5974 = vrsqrt.f32 %v960_v57  ;;  %v788_v23 = vmul.f32 0.0078125, %v749_v44  ;;  %v929_v55 = vmul.f32 0.0078125, %v872_v28  ;;  %v851_v20 = vmul.f32 %v7389_v60, %v7389_v60 }
 0x23b   : > { %v1123_v19 = vpack.c.bf16 %v1092_v0, %v1091_v47  ;;  %v1057_v46 = vmul.f32 %v7373_v53, %v1021_v24  ;;  %v10261_v28 = vmov 0  }
 0x23c   : > { %v5971_v50 = vpop.eup %5970  ;;  %v961_v41 = vadd.f32 1e-05, %v929_v55  ;;  %907 = vadd.xlane.f32.xlu0 %v851_v20  ;;  %v7397_v39 = vsub.f32 %v7255_v33, %v788_v23 }
 0x23d   : > { %v874_v16 = vpop.xlane.xlu1 %873  ;;  %1349 = vmatmul.mubr.bf16.vlgmr.msra.gmra.mrb[0].mxu0 %v1123_v19  ;;  %5691 = vmatprep.mubr.bf16.mxu1 %v1123_v19  ;;  %v751_v36 = vpop.xlane.xlu0 %750  ;;  %v1022_v25 = vmul.f32 %v5971_v50, %v7226_v52  ;;  %v1093_v24 = vadd.f32 %v7383_v21, %v1057_v46 }
 0x23e   : > { %5976 = vrsqrt.f32 %v961_v41  ;;  %v930_v62 = vmul.f32 0.0078125, %v874_v16  ;;  %v789_v57 = vmul.f32 0.0078125, %v751_v36  ;;  %v852_v44 = vmul.f32 %v7397_v39, %v7397_v39  ;;  %1358 = vmatprep.mubr.bf16.mxu0 %v10261_v28 }
 0x23f   : > { %v1058_v47 = vmul.f32 %v7373_v53, %v1022_v25 }
 0x240   : > { %v5973_v0 = vpop.eup %5972  ;;  %v962_v23 = vadd.f32 1e-05, %v930_v62  ;;  %909 = vadd.xlane.f32.xlu1 %v852_v44  ;;  %v7406_v19 = vsub.f32 %v7266_v48, %v789_v57 }
 0x241   : > { %v753_v55 = vpop.xlane.xlu1 %752  ;;  %v876_v52 = vpop.xlane.xlu0 %875  ;;  %v1094_v16 = vadd.f32 %v7383_v21, %v1058_v47  ;;  %v1023_v20 = vmul.f32 %v5973_v0, %v7235_v58 }
 0x242   : > { %5978 = vrsqrt.f32 %v962_v23  ;;  %v790_v50 = vmul.f32 0.0078125, %v753_v55  ;;  %v931_v41 = vmul.f32 0.0078125, %v876_v52  ;;  %v853_v36 = vmul.f32 %v7406_v19, %v7406_v19 }
 0x243   : > { %v1124_v25 = vpack.c.bf16 %v1094_v16, %v1093_v24  ;;  %v1059_v58 = vmul.f32 %v7373_v53, %v1023_v20 }
 0x244   : > { %v5975_v62 = vpop.eup %5974  ;;  %v963_v44 = vadd.f32 1e-05, %v931_v41  ;;  %911 = vadd.xlane.f32.xlu0 %v853_v36  ;;  %v7414_v57 = vsub.f32 %v7272_v61, %v790_v50 }
 0x245   : > { %v878_v48 = vpop.xlane.xlu1 %877  ;;  %1359 = vmatmul.mubr.bf16.gmra.mrb[4].mxu0 %v1124_v25  ;;  %5692 = vmatmul.mubr.bf16.vlgmr.msra.gmra.mrb[0].mxu1 %v1124_v25  ;;  %v755_v46 = vpop.xlane.xlu0 %754  ;;  %v1024_v47 = vmul.f32 %v5975_v62, %v7243_v63  ;;  %v1095_v20 = vadd.f32 %v7383_v21, %v1059_v58 }
 0x246   : > { %5980 = vrsqrt.f32 %v963_v44  ;;  %v932_v0 = vmul.f32 0.0078125, %v878_v48  ;;  %v791_v23 = vmul.f32 0.0078125, %v755_v46  ;;  %v854_v55 = vmul.f32 %v7414_v57, %v7414_v57  ;;  %1368 = vmatprep.mubr.bf16.mxu0 %v10261_v28 }
 0x247   : > { %v1060_v52 = vmul.f32 %v7373_v53, %v1024_v47 }
 0x248   : > { %v5977_v24 = vpop.eup %5976  ;;  %v964_v16 = vadd.f32 1e-05, %v932_v0  ;;  %913 = vadd.xlane.f32.xlu1 %v854_v55  ;;  %v7423_v50 = vsub.f32 %v7283_v30, %v791_v23 }
 0x249   : > { %v757_v41 = vpop.xlane.xlu1 %756  ;;  %v880_v63 = vpop.xlane.xlu0 %879  ;;  %v1096_v48 = vadd.f32 %v7383_v21, %v1060_v52  ;;  %v1025_v36 = vmul.f32 %v5977_v24, %v7252_v22 }
 0x24a   : > { %5982 = vrsqrt.f32 %v964_v16  ;;  %v792_v25 = vmul.f32 0.0078125, %v757_v41  ;;  %v933_v62 = vmul.f32 0.0078125, %v880_v63  ;;  %v855_v44 = vmul.f32 %v7423_v50, %v7423_v50 }
 0x24b   : > { %v1125_v46 = vpack.c.bf16 %v1096_v48, %v1095_v20  ;;  %v1061_v22 = vmul.f32 %v7373_v53, %v1025_v36 }
 0x24c   : > { %v5979_v47 = vpop.eup %5978  ;;  %v965_v0 = vadd.f32 1e-05, %v933_v62  ;;  %915 = vadd.xlane.f32.xlu0 %v855_v44  ;;  %v7431_v23 = vsub.f32 %v7289_v40, %v792_v25 }
 0x24d   : > { %v882_v55 = vpop.xlane.xlu1 %881  ;;  %1369 = vmatmul.mubr.bf16.gmra.mrb[8].mxu0 %v1125_v46  ;;  %5695 = vmatprep.mubr.bf16.mxu1 %v1125_v46  ;;  %v759_v58 = vpop.xlane.xlu0 %758  ;;  %v1026_v52 = vmul.f32 %v5979_v47, %v7260_v37  ;;  %v1097_v36 = vadd.f32 %v7383_v21, %v1061_v22 }
 0x24e   : > { %5984 = vrsqrt.f32 %v965_v0  ;;  %v934_v24 = vmul.f32 0.0078125, %v882_v55  ;;  %v793_v16 = vmul.f32 0.0078125, %v759_v58  ;;  %v856_v41 = vmul.f32 %v7431_v23, %v7431_v23  ;;  %1378 = vmatprep.mubr.bf16.mxu0 %v10261_v28 }
 0x24f   : > { %v1062_v63 = vmul.f32 %v7373_v53, %v1026_v52 }
 0x250   : > { %v5981_v20 = vpop.eup %5980  ;;  %v966_v48 = vadd.f32 1e-05, %v934_v24  ;;  %917 = vadd.xlane.f32.xlu1 %v856_v41  ;;  %v7440_v25 = vsub.f32 %v7300_v56, %v793_v16 }
 0x251   : > { %v761_v62 = vpop.xlane.xlu1 %760  ;;  %v884_v37 = vpop.xlane.xlu0 %883  ;;  %v1098_v44 = vadd.f32 %v7383_v21, %v1062_v63  ;;  %v1027_v46 = vmul.f32 %v5981_v20, %v7269_v51 }
 0x252   : > { %5986 = vrsqrt.f32 %v966_v48  ;;  %v794_v47 = vmul.f32 0.0078125, %v761_v62  ;;  %v935_v0 = vmul.f32 0.0078125, %v884_v37  ;;  %v857_v55 = vmul.f32 %v7440_v25, %v7440_v25 }
 0x253   : > { %v1126_v58 = vpack.c.bf16 %v1098_v44, %v1097_v36  ;;  %v1063_v51 = vmul.f32 %v7373_v53, %v1027_v46 }
 0x254   : > { %v5983_v52 = vpop.eup %5982  ;;  %v967_v24 = vadd.f32 1e-05, %v935_v0  ;;  %919 = vadd.xlane.f32.xlu0 %v857_v55  ;;  %v7448_v16 = vsub.f32 %v7310_v31, %v794_v47 }
 0x255   : > { %v886_v41 = vpop.xlane.xlu1 %885  ;;  %1379 = vmatmul.mubr.bf16.gmra.mrb[12].mxu0 %v1126_v58  ;;  %5696 = vmatmul.mubr.bf16.gmra.mrb[4].mxu1 %v1126_v58  ;;  %v888_v22 = vpop.xlane.xlu0 %887  ;;  %v1028_v63 = vmul.f32 %v5983_v52, %v7277_v1  ;;  %v1099_v1 = vadd.f32 %v7383_v21, %v1063_v51 }
 0x256   : > { %5988 = vrsqrt.f32 %v967_v24  ;;  %v936_v20 = vmul.f32 0.0078125, %v886_v41  ;;  %v937_v48 = vmul.f32 0.0078125, %v888_v22  ;;  %v858_v62 = vmul.f32 %v7448_v16, %v7448_v16  ;;  %1388 = vmatprep.mubr.bf16.mxu0 %v10261_v28 }
 0x257   : > { %v1064_v37 = vmul.f32 %v7373_v53, %v1028_v63 }
 0x258   : > { %v5985_v36 = vpop.eup %5984  ;;  %v968_v44 = vadd.f32 1e-05, %v936_v20  ;;  %v969_v47 = vadd.f32 1e-05, %v937_v48  ;;  %921 = vadd.xlane.f32.xlu1 %v858_v62 }
 0x259   : > { %v890_v0 = vpop.xlane.xlu1 %889  ;;  %v892_v55 = vpop.xlane.xlu0 %891  ;;  %v1100_v46 = vadd.f32 %v7383_v21, %v1064_v37  ;;  %v1029_v58 = vmul.f32 %v5985_v36, %v7286_v32 }
 0x25a   : > { %5990 = vrsqrt.f32 %v968_v44  ;;  %v938_v52 = vmul.f32 0.0078125, %v890_v0  ;;  %v939_v24 = vmul.f32 0.0078125, %v892_v55 }
 0x25b   : > { %5992 = vrsqrt.f32 %v969_v47  ;;  %v1127_v41 = vpack.c.bf16 %v1100_v46, %v1099_v1  ;;  %v1065_v51 = vmul.f32 %v7373_v53, %v1029_v58 }
 0x25c   : > { %v5987_v22 = vpop.eup %5986  ;;  %v970_v31 = vadd.f32 1e-05, %v938_v52  ;;  %v971_v63 = vadd.f32 1e-05, %v939_v24 }
 0x25d   : > { %v894_v56 = vpop.xlane.xlu1 %893  ;;  %1389 = vmatmul.mubr.bf16.gmra.mrb[16].mxu0 %v1127_v41  ;;  %5699 = vmatprep.mubr.bf16.mxu1 %v1127_v41  ;;  %v896_v20 = vpop.xlane.xlu0 %895  ;;  %v1030_v48 = vmul.f32 %v5987_v22, %v7294_v45  ;;  %v1101_v55 = vadd.f32 %v7383_v21, %v1065_v51 }
 0x25e   : > { %5994 = vrsqrt.f32 %v970_v31  ;;  %v940_v62 = vmul.f32 0.0078125, %v894_v56  ;;  %v941_v37 = vmul.f32 0.0078125, %v896_v20  ;;  %1398 = vmatprep.mubr.bf16.mxu0 %v10261_v28 }
 0x25f   : > { %5996 = vrsqrt.f32 %v971_v63  ;;  %v1066_v32 = vmul.f32 %v7373_v53, %v1030_v48 }
 0x260   : > { %v5989_v36 = vpop.eup %5988  ;;  %v972_v44 = vadd.f32 1e-05, %v940_v62  ;;  %v973_v47 = vadd.f32 1e-05, %v941_v37 }
 0x261   : > { %v898_v0 = vpop.xlane.xlu1 %897  ;;  %v1102_v1 = vadd.f32 %v7383_v21, %v1066_v32  ;;  %v1031_v45 = vmul.f32 %v5989_v36, %v7303_v6 }
 0x262   : > { %5998 = vrsqrt.f32 %v972_v44  ;;  %v942_v46 = vmul.f32 0.0078125, %v898_v0 }
 0x263   : > { %6000 = vrsqrt.f32 %v973_v47  ;;  %v1128_v56 = vpack.c.bf16 %v1102_v1, %v1101_v55  ;;  %v1067_v41 = vmul.f32 %v7373_v53, %v1031_v45 }
 0x264   : > { %v5991_v31 = vpop.eup %5990  ;;  %v974_v58 = vadd.f32 1e-05, %v942_v46 }
 0x265   : > { %v5993_v52 = vpop.eup %5992  ;;  %1399 = vmatmul.mubr.bf16.gmra.mrb[20].mxu0 %v1128_v56  ;;  %5700 = vmatmul.mubr.bf16.gmra.mrb[8].mxu1 %v1128_v56  ;;  %v1032_v24 = vmul.f32 %v5991_v31, %v7307_v13  ;;  %v1103_v51 = vadd.f32 %v7383_v21, %v1067_v41 }
 0x266   : > { %6002 = vrsqrt.f32 %v974_v58  ;;  %1408 = vmatprep.mubr.bf16.mxu0 %v10261_v28  ;;  %v1033_v22 = vmul.f32 %v5993_v52, %v7315_v38 }
 0x267   : > { %v1068_v6 = vmul.f32 %v7373_v53, %v1032_v24 }
 0x268   : > { %v5995_v63 = vpop.eup %5994  ;;  %v1069_v20 = vmul.f32 %v7373_v53, %v1033_v22 }
 0x269   : > { %v5997_v48 = vpop.eup %5996  ;;  %v1104_v62 = vadd.f32 %v7383_v21, %v1068_v6  ;;  %v1034_v37 = vmul.f32 %v5995_v63, %v7320_v42 }
 0x26a   : > { %v1035_v13 = vmul.f32 %v5997_v48, %v7326_v54  ;;  %v1105_v38 = vadd.f32 %v7383_v21, %v1069_v20 }
 0x26b   : > { %v1129_v32 = vpack.c.bf16 %v1104_v62, %v1103_v51  ;;  %v1070_v36 = vmul.f32 %v7373_v53, %v1034_v37 }
 0x26c   : > { %v5999_v44 = vpop.eup %5998  ;;  %v1071_v1 = vmul.f32 %v7373_v53, %v1035_v13 }
 0x26d   : > { %v6001_v47 = vpop.eup %6000  ;;  %1409 = vmatmul.mubr.bf16.gmra.mrb[24].mxu0 %v1129_v32  ;;  %5703 = vmatprep.mubr.bf16.mxu1 %v1129_v32  ;;  %v1106_v0 = vadd.f32 %v7383_v21, %v1070_v36  ;;  %v1036_v55 = vmul.f32 %v5999_v44, %v7333_v10 }
 0x26e   : > { %1418 = vmatprep.mubr.bf16.mxu0 %v10261_v28  ;;  %v1037_v42 = vmul.f32 %v6001_v47, %v7336_v27  ;;  %v1107_v56 = vadd.f32 %v7383_v21, %v1071_v1 }
 0x26f   : > { %v1130_v54 = vpack.c.bf16 %v1106_v0, %v1105_v38  ;;  %v1072_v45 = vmul.f32 %v7373_v53, %v1036_v55 }
 0x270   : > { %v6003_v46 = vpop.eup %6002  ;;  %v1073_v52 = vmul.f32 %v7373_v53, %v1037_v42 }
 0x271   : > { %5704 = vmatmul.mubr.bf16.gmra.mrb[12].mxu1 %v1130_v54  ;;  %v1108_v31 = vadd.f32 %v7383_v21, %v1072_v45  ;;  %v1038_v58 = vmul.f32 %v6003_v46, %v7343_v35 }
 0x272   : > { %v1109_v27 = vadd.f32 %v7383_v21, %v1073_v52 }
 0x273   : > { %v1131_v10 = vpack.c.bf16 %v1108_v31, %v1107_v56  ;;  %v1074_v24 = vmul.f32 %v7373_v53, %v1038_v58 }
 0x275   : > { %1419 = vmatmul.mubr.bf16.gmra.mrb[28].mxu0 %v1130_v54  ;;  %5707 = vmatprep.mubr.bf16.mxu1 %v1131_v10  ;;  %v1110_v41 = vadd.f32 %v7383_v21, %v1074_v24 }
 0x276   : > { %1428 = vmatprep.mubr.bf16.mxu0 %v10261_v28 }
 0x277   : > { %v1132_v22 = vpack.c.bf16 %v1110_v41, %v1109_v27 }
 0x279   : > { %5708 = vmatmul.mubr.bf16.gmra.mrb[16].mxu1 %v1132_v22 }
 0x27d   : > { %1429 = vmatmul.mubr.bf16.gmra.mrb[32].mxu0 %v1131_v10 }
 0x27e   : > { %1438 = vmatprep.mubr.bf16.mxu0 %v10261_v28 }
 0x285   : > { %1439 = vmatmul.mubr.bf16.gmra.mrb[36].mxu0 %v1132_v22 }
 0x286   : > { %1448 = vmatprep.mubr.bf16.mxu0 %v10261_v28 }
 0x2b9   : > { %v900_v35 = vpop.xlane.xlu0 %899 }
 0x2ba   : > { %v943_v6 = vmul.f32 0.0078125, %v900_v35 }
 0x2bc   : > { %v975_v63 = vadd.f32 1e-05, %v943_v6 }
 0x2bd   : > { %v902_v20 = vpop.xlane.xlu1 %901 }
 0x2be   : > { %6004 = vrsqrt.f32 %v975_v63  ;;  %v944_v48 = vmul.f32 0.0078125, %v902_v20 }
 0x2c0   : > { %v976_v51 = vadd.f32 1e-05, %v944_v48 }
 0x2c1   : > { %v904_v62 = vpop.xlane.xlu0 %903 }
 0x2c2   : > { %6006 = vrsqrt.f32 %v976_v51  ;;  %v945_v37 = vmul.f32 0.0078125, %v904_v62 }
 0x2c4   : > { %v977_v13 = vadd.f32 1e-05, %v945_v37 }
 0x2c5   : > { %v906_v32 = vpop.xlane.xlu1 %905 }
 0x2c6   : > { %6008 = vrsqrt.f32 %v977_v13  ;;  %v946_v36 = vmul.f32 0.0078125, %v906_v32 }
 0x2c8   : > { %v6005_v44 = vpop.eup %6004  ;;  %v978_v38 = vadd.f32 1e-05, %v946_v36 }
 0x2c9   : > { %v908_v47 = vpop.xlane.xlu0 %907  ;;  %v1039_v0 = vmul.f32 %v6005_v44, %v7348_v26 }
 0x2ca   : > { %6010 = vrsqrt.f32 %v978_v38  ;;  %v947_v55 = vmul.f32 0.0078125, %v908_v47 }
 0x2cb   : > { %v1075_v46 = vmul.f32 %v7373_v53, %v1039_v0 }
 0x2cc   : > { %v6007_v1 = vpop.eup %6006  ;;  %v979_v42 = vadd.f32 1e-05, %v947_v55 }
 0x2cd   : > { %v910_v54 = vpop.xlane.xlu1 %909  ;;  %v1040_v45 = vmul.f32 %v6007_v1, %v7355_v49  ;;  %v1111_v24 = vadd.f32 %v7383_v21, %v1075_v46 }
 0x2ce   : > { %6012 = vrsqrt.f32 %v979_v42  ;;  %v948_v56 = vmul.f32 0.0078125, %v910_v54 }
 0x2cf   : > { %v1076_v31 = vmul.f32 %v7373_v53, %v1040_v45 }
 0x2d0   : > { %v6009_v58 = vpop.eup %6008  ;;  %v980_v52 = vadd.f32 1e-05, %v948_v56 }
 0x2d1   : > { %v912_v10 = vpop.xlane.xlu0 %911  ;;  %v1112_v26 = vadd.f32 %v7383_v21, %v1076_v31  ;;  %v1041_v27 = vmul.f32 %v6009_v58, %v7366_v29 }
 0x2d2   : > { %6014 = vrsqrt.f32 %v980_v52  ;;  %v949_v41 = vmul.f32 0.0078125, %v912_v10 }
 0x2d3   : > { %v1133_v22 = vpack.c.bf16 %v1112_v26, %v1111_v24  ;;  %v1077_v20 = vmul.f32 %v7373_v53, %v1041_v27 }
 0x2d4   : > { %v6011_v35 = vpop.eup %6010  ;;  %v981_v49 = vadd.f32 1e-05, %v949_v41 }
 0x2d5   : > { %v914_v6 = vpop.xlane.xlu1 %913  ;;  %1449 = vmatmul.mubr.bf16.gmra.mrb[40].mxu0 %v1133_v22  ;;  %5711 = vmatprep.mubr.bf16.mxu1 %v1133_v22  ;;  %v1042_v63 = vmul.f32 %v6011_v35, %v7378_v59  ;;  %v1113_v13 = vadd.f32 %v7383_v21, %v1077_v20 }
 0x2d6   : > { %6016 = vrsqrt.f32 %v981_v49  ;;  %v950_v48 = vmul.f32 0.0078125, %v914_v6  ;;  %1458 = vmatprep.mubr.bf16.mxu0 %v10261_v28 }
 0x2d7   : > { %v1078_v51 = vmul.f32 %v7373_v53, %v1042_v63 }
 0x2d8   : > { %v6013_v62 = vpop.eup %6012  ;;  %v982_v29 = vadd.f32 1e-05, %v950_v48 }
 0x2d9   : > { %v916_v37 = vpop.xlane.xlu0 %915  ;;  %v1114_v32 = vadd.f32 %v7383_v21, %v1078_v51  ;;  %v1043_v36 = vmul.f32 %v6013_v62, %v7389_v60 }
 0x2da   : > { %6018 = vrsqrt.f32 %v982_v29  ;;  %v951_v44 = vmul.f32 0.0078125, %v916_v37 }
 0x2db   : > { %v1134_v59 = vpack.c.bf16 %v1114_v32, %v1113_v13  ;;  %v1079_v1 = vmul.f32 %v7373_v53, %v1043_v36 }
 0x2dc   : > { %v6015_v38 = vpop.eup %6014  ;;  %v983_v47 = vadd.f32 1e-05, %v951_v44 }
 0x2dd   : > { %v918_v0 = vpop.xlane.xlu1 %917  ;;  %1459 = vmatmul.mubr.bf16.gmra.mrb[44].mxu0 %v1134_v59  ;;  %5712 = vmatmul.mubr.bf16.gmra.mrb[20].mxu1 %v1134_v59  ;;  %v1044_v55 = vmul.f32 %v6015_v38, %v7397_v39  ;;  %v1115_v56 = vadd.f32 %v7383_v21, %v1079_v1 }
 0x2de   : > { %6020 = vrsqrt.f32 %v983_v47  ;;  %v952_v42 = vmul.f32 0.0078125, %v918_v0  ;;  %1468 = vmatprep.mubr.bf16.mxu0 %v10261_v28 }
 0x2df   : > { %v1080_v54 = vmul.f32 %v7373_v53, %v1044_v55 }
 0x2e0   : > { %v6017_v45 = vpop.eup %6016  ;;  %v984_v60 = vadd.f32 1e-05, %v952_v42 }
 0x2e1   : > { %v920_v46 = vpop.xlane.xlu0 %919  ;;  %v1116_v31 = vadd.f32 %v7383_v21, %v1080_v54  ;;  %v1045_v58 = vmul.f32 %v6017_v45, %v7406_v19 }
 0x2e2   : > { %6022 = vrsqrt.f32 %v984_v60  ;;  %v953_v52 = vmul.f32 0.0078125, %v920_v46  ;;  %v10116_v46 = vsub.s32 2, %v7350_v34 }
 0x2e3   : > { %v1135_v39 = vpack.c.bf16 %v1116_v31, %v1115_v56  ;;  %v1081_v41 = vmul.f32 %v7373_v53, %v1045_v58 }
 0x2e4   : > { %v6019_v10 = vpop.eup %6018  ;;  %v985_v24 = vadd.f32 1e-05, %v953_v52 }
 0x2e5   : > { %v922_v26 = vpop.xlane.xlu1 %921  ;;  %1469 = vmatmul.mubr.bf16.gmra.mrb[48].mxu0 %v1135_v39  ;;  %5715 = vmatprep.mubr.bf16.mxu1 %v1135_v39  ;;  %v1046_v27 = vmul.f32 %v6019_v10, %v7414_v57  ;;  %v1117_v6 = vadd.f32 %v7383_v21, %v1081_v41 }
 0x2e6   : > { %6024 = vrsqrt.f32 %v985_v24  ;;  %v954_v22 = vmul.f32 0.0078125, %v922_v26  ;;  %1478 = vmatprep.mubr.bf16.mxu0 %v10261_v28 }
 0x2e7   : > { %v1082_v35 = vmul.f32 %v7373_v53, %v1046_v27 }
 0x2e8   : > { %v6021_v49 = vpop.eup %6020  ;;  %v986_v19 = vadd.f32 1e-05, %v954_v22 }
 0x2e9   : > { %v1118_v63 = vadd.f32 %v7383_v21, %v1082_v35  ;;  %v1047_v20 = vmul.f32 %v6021_v49, %v7423_v50 }
 0x2ea   : > { %6026 = vrsqrt.f32 %v986_v19 }
 0x2eb   : > { %v1136_v48 = vpack.c.bf16 %v1118_v63, %v1117_v6  ;;  %v1083_v62 = vmul.f32 %v7373_v53, %v1047_v20 }
 0x2ec   : > { %v6023_v51 = vpop.eup %6022 }
 0x2ed   : > { %1479 = vmatmul.mubr.bf16.gmra.mrb[52].mxu0 %v1136_v48  ;;  %5716 = vmatmul.mubr.bf16.gmra.mrb[24].mxu1 %v1136_v48  ;;  %v1048_v57 = vmul.f32 %v6023_v51, %v7431_v23  ;;  %v1119_v13 = vadd.f32 %v7383_v21, %v1083_v62 }
 0x2ee   : > { %1488 = vmatprep.mubr.bf16.mxu0 %v10261_v28 }
 0x2ef   : > { %v1084_v29 = vmul.f32 %v7373_v53, %v1048_v57 }
 0x2f0   : > { %v6025_v37 = vpop.eup %6024 }
 0x2f1   : > { %v1120_v32 = vadd.f32 %v7383_v21, %v1084_v29  ;;  %v1049_v50 = vmul.f32 %v6025_v37, %v7440_v25  ;;  %v1171_v25 = vld [vmem:[%s10085_s5] sm:$0x7] }
 0x2f2   : > { %v7539_v1 = vrot.slane %v1171_v25, %v7358_v7  ;;  %v7542_v42 = vrot.slane %v1171_v25, %v7369_v43  ;;  %v7559_v24 = vrot.slane %v1171_v25, %v10116_v46 }
 0x2f3   : > { %v1137_v36 = vpack.c.bf16 %v1120_v32, %v1119_v13  ;;  %v1085_v23 = vmul.f32 %v7373_v53, %v1049_v50 }
 0x2f4   : > { %v6027_v44 = vpop.eup %6026 }
 0x2f5   : > { %1489 = vmatmul.mubr.bf16.gmra.mrb[56].mxu0 %v1137_v36  ;;  %5719 = vmatprep.mubr.bf16.mxu1 %v1137_v36  ;;  %v1050_v59 = vmul.f32 %v6027_v44, %v7448_v16  ;;  %v1121_v47 = vadd.f32 %v7383_v21, %v1085_v23 }
 0x2f6   : > { %1498 = vmatprep.mubr.bf16.mxu0 %v10261_v28 }
 0x2f7   : > { %v1086_v38 = vmul.f32 %v7373_v53, %v1050_v59 }
 0x2f9   : > { %v1122_v0 = vadd.f32 %v7383_v21, %v1086_v38 }
 0x2fb   : > { %v1138_v55 = vpack.c.bf16 %v1122_v0, %v1121_v47 }
 0x2fd   : > { %1499 = vmatmul.mubr.bf16.gmra.mrb[60].mxu0 %v1138_v55  ;;  %5720 = vmatmul.mubr.bf16.gmra.mrb[28].mxu1 %v1138_v55 }
 0x310   : > { %v1350_v16 = vpop.f32.mrb[0].mxu0 }
 0x311   : > { %v1351_v53 = vadd.f32 %v1350_v16, %v7539_v1  ;;  %v1352_v54 = vpop.f32.mrb[1].mxu0 }
 0x312   : > { %v1354_v45 = vpop.f32.mrb[2].mxu0  ;;  %v7548_v56 = vadd.f32 %v1352_v54, %v7542_v42 }
 0x313   : > { %v1355_v21 = vadd.f32 %v1354_v45, %v7539_v1  ;;  %v1356_v60 = vpop.f32.mrb[3].mxu0  ;;  %v1670_v58 = vmul.f32 0.088388346, %v1351_v53 }
 0x314   : > { %v7551_v31 = vadd.f32 %v1356_v60, %v7542_v42 }
 0x315   : > { %v1671_v52 = vmul.f32 0.088388346, %v1355_v21 }
 0x317   : > { %v7555_v10 = vpack.c.bf16 %v1671_v52, %v1670_v58 }
 0x318   : > { %v1360_v26 = vpop.f32.mrb[4].mxu0  ;;  %v5693_v27 = vpop.f32.mrb[0].mxu1 }
 0x319   : > { %v1361_v41 = vadd.f32 %v1360_v26, %v7539_v1  ;;  %v1362_v22 = vpop.f32.mrb[5].mxu0  ;;  %v1543_v35 = vpop.f32.mrb[1].mxu1  ;;  %5395 = vmatprep.mubr.bf16.mxu1 %v7555_v10  ;;  %v7564_v6 = vadd.f32 %v5693_v27, %v7559_v24 }
 0x31a   : > { %v1364_v49 = vpop.f32.mrb[6].mxu0  ;;  %v5694_v19 = vpop.f32.mrb[2].mxu1  ;;  %v7571_v57 = vadd.f32 %v1362_v22, %v7542_v42  ;;  %v7574_v62 = vadd.f32 %v1543_v35, %v7559_v24 }
 0x31b   : > { %v1365_v63 = vadd.f32 %v1364_v49, %v7539_v1  ;;  %v7568_v20 = vadd.f32 %v5694_v19, %v7559_v24  ;;  %v1366_v48 = vpop.f32.mrb[7].mxu0  ;;  %v1546_v51 = vpop.f32.mrb[3].mxu1  ;;  %v1672_v13 = vmul.f32 0.088388346, %v1361_v41 }
 0x31c   : > { %v7577_v29 = vadd.f32 %v1366_v48, %v7542_v42  ;;  %v7580_v37 = vadd.f32 %v1546_v51, %v7559_v24 }
 0x31d   : > { %v1673_v32 = vmul.f32 0.088388346, %v1365_v63 }
 0x31f   : > { %v7588_v59 = vpack.c.bf16 %v1673_v32, %v1672_v13 }
 0x320   : > { %v1370_v23 = vpop.f32.mrb[8].mxu0 }
 0x321   : > { %v1371_v38 = vadd.f32 %v1370_v23, %v7539_v1  ;;  %v1372_v47 = vpop.f32.mrb[9].mxu0 }
 0x322   : > { %v1374_v0 = vpop.f32.mrb[10].mxu0  ;;  %v7593_v16 = vadd.f32 %v1372_v47, %v7542_v42 }
 0x323   : > { %v1375_v55 = vadd.f32 %v1374_v0, %v7539_v1  ;;  %v1376_v25 = vpop.f32.mrb[11].mxu0  ;;  %v1674_v54 = vmul.f32 0.088388346, %v1371_v38 }
 0x324   : > { %v7596_v53 = vadd.f32 %v1376_v25, %v7542_v42 }
 0x325   : > { %v1675_v45 = vmul.f32 0.088388346, %v1375_v55 }
 0x327   : > { %v7600_v60 = vpack.c.bf16 %v1675_v45, %v1674_v54 }
 0x328   : > { %v1380_v58 = vpop.f32.mrb[12].mxu0  ;;  %v5697_v52 = vpop.f32.mrb[4].mxu1 }
 0x329   : > { %v1381_v26 = vadd.f32 %v1380_v58, %v7539_v1  ;;  %v1382_v27 = vpop.f32.mrb[13].mxu0  ;;  %v1559_v41 = vpop.f32.mrb[5].mxu1  ;;  %v7604_v49 = vadd.f32 %v5697_v52, %v7559_v24 }
 0x32a   : > { %v1384_v22 = vpop.f32.mrb[14].mxu0  ;;  %v5698_v35 = vpop.f32.mrb[6].mxu1  ;;  %v7611_v13 = vadd.f32 %v1382_v27, %v7542_v42  ;;  %v7614_v32 = vadd.f32 %v1559_v41, %v7559_v24 }
 0x32b   : > { %v1385_v19 = vadd.f32 %v1384_v22, %v7539_v1  ;;  %v7608_v63 = vadd.f32 %v5698_v35, %v7559_v24  ;;  %v1386_v48 = vpop.f32.mrb[15].mxu0  ;;  %v1562_v51 = vpop.f32.mrb[7].mxu1  ;;  %v1676_v47 = vmul.f32 0.088388346, %v1381_v26 }
 0x32c   : > { %v7617_v23 = vadd.f32 %v1386_v48, %v7542_v42  ;;  %v7620_v38 = vadd.f32 %v1562_v51, %v7559_v24 }
 0x32d   : > { %v1677_v0 = vmul.f32 0.088388346, %v1385_v19 }
 0x32f   : > { %v7628_v45 = vpack.c.bf16 %v1677_v0, %v1676_v47 }
 0x330   : > { %v1390_v58 = vpop.f32.mrb[16].mxu0 }
 0x331   : > { %v1391_v52 = vadd.f32 %v1390_v58, %v7539_v1  ;;  %v1392_v27 = vpop.f32.mrb[17].mxu0 }
 0x332   : > { %v1394_v41 = vpop.f32.mrb[18].mxu0  ;;  %v7633_v35 = vadd.f32 %v1392_v27, %v7542_v42 }
 0x333   : > { %v1395_v22 = vadd.f32 %v1394_v41, %v7539_v1  ;;  %v1396_v26 = vpop.f32.mrb[19].mxu0  ;;  %v1678_v48 = vmul.f32 0.088388346, %v1391_v52 }
 0x334   : > { %v7636_v19 = vadd.f32 %v1396_v26, %v7542_v42 }
 0x335   : > { %v1679_v51 = vmul.f32 0.088388346, %v1395_v22 }
 0x337   : > { %v7640_v0 = vpack.c.bf16 %v1679_v51, %v1678_v48 }
 0x338   : > { %v1400_v46 = vpop.f32.mrb[20].mxu0  ;;  %v5701_v58 = vpop.f32.mrb[8].mxu1 }
 0x339   : > { %v1401_v55 = vadd.f32 %v1400_v46, %v7539_v1  ;;  %v1402_v54 = vpop.f32.mrb[21].mxu0  ;;  %v1575_v41 = vpop.f32.mrb[9].mxu1  ;;  %v7644_v27 = vadd.f32 %v5701_v58, %v7559_v24 }
 0x33a   : > { %v1404_v25 = vpop.f32.mrb[22].mxu0  ;;  %v5702_v21 = vpop.f32.mrb[10].mxu1  ;;  %v7651_v48 = vadd.f32 %v1402_v54, %v7542_v42  ;;  %v7654_v51 = vadd.f32 %v1575_v41, %v7559_v24 }
 0x33b   : > { %v1405_v26 = vadd.f32 %v1404_v25, %v7539_v1  ;;  %v7648_v52 = vadd.f32 %v5702_v21, %v7559_v24  ;;  %v1406_v22 = vpop.f32.mrb[23].mxu0  ;;  %v1578_v47 = vpop.f32.mrb[11].mxu1  ;;  %v1680_v58 = vmul.f32 0.088388346, %v1401_v55 }
 0x33c   : > { %v7657_v46 = vadd.f32 %v1406_v22, %v7542_v42  ;;  %v7660_v36 = vadd.f32 %v1578_v47, %v7559_v24 }
 0x33d   : > { %v1681_v50 = vmul.f32 0.088388346, %v1405_v26 }
 0x33f   : > { %v7668_v39 = vpack.c.bf16 %v1681_v50, %v1680_v58 }
 0x340   : > { %v1410_v41 = vpop.f32.mrb[24].mxu0 }
 0x341   : > { %v1411_v22 = vadd.f32 %v1410_v41, %v7539_v1  ;;  %v1412_v44 = vpop.f32.mrb[25].mxu0 }
 0x342   : > { %v1414_v40 = vpop.f32.mrb[26].mxu0  ;;  %v7673_v26 = vadd.f32 %v1412_v44, %v7542_v42 }
 0x343   : > { %v1415_v47 = vadd.f32 %v1414_v40, %v7539_v1  ;;  %v1416_v55 = vpop.f32.mrb[27].mxu0  ;;  %v1682_v30 = vmul.f32 0.088388346, %v1411_v22 }
 0x344   : > { %v7676_v21 = vadd.f32 %v1416_v55, %v7542_v42  ;;  %v5705_v25 = vpop.f32.mrb[12].mxu1 }
 0x345   : > { %v1683_v61 = vmul.f32 0.088388346, %v1415_v47  ;;  %v1591_v54 = vpop.f32.mrb[13].mxu1  ;;  %v7683_v33 = vadd.f32 %v5705_v25, %v7559_v24 }
 0x346   : > { %v5706_v58 = vpop.f32.mrb[14].mxu1  ;;  %v7689_v55 = vadd.f32 %v1591_v54, %v7559_v24 }
 0x347   : > { %v7680_v41 = vpack.c.bf16 %v1683_v61, %v1682_v30  ;;  %v7686_v40 = vadd.f32 %v5706_v58, %v7559_v24  ;;  %v1594_v44 = vpop.f32.mrb[15].mxu1 }
 0x348   : > { %v7692_v22 = vadd.f32 %v1594_v44, %v7559_v24  ;;  %v1420_v47 = vpop.f32.mrb[28].mxu0 }
 0x349   : > { %v1421_v61 = vadd.f32 %v1420_v47, %v7539_v1  ;;  %v1422_v30 = vpop.f32.mrb[29].mxu0 }
 0x34a   : > { %v1424_v18 = vpop.f32.mrb[30].mxu0  ;;  %v7701_v54 = vadd.f32 %v1422_v30, %v7542_v42 }
 0x34b   : > { %v1425_v58 = vadd.f32 %v1424_v18, %v7539_v1  ;;  %v1426_v17 = vpop.f32.mrb[31].mxu0  ;;  %v1684_v14 = vmul.f32 0.088388346, %v1421_v61 }
 0x34c   : > { %v7704_v44 = vadd.f32 %v1426_v17, %v7542_v42  ;;  %v5709_v15 = vpop.f32.mrb[16].mxu1 }
 0x34d   : > { %v1685_v12 = vmul.f32 0.088388346, %v1425_v58  ;;  %v1607_v50 = vpop.f32.mrb[17].mxu1  ;;  %v1616_v25 = vadd.f32 %v5709_v15, %v7559_v24 }
 0x34e   : > { %v5710_v11 = vpop.f32.mrb[18].mxu1  ;;  %v1608_v30 = vadd.f32 %v1607_v50, %v7559_v24 }
 0x34f   : > { %v7708_v9 = vpack.c.bf16 %v1685_v12, %v1684_v14  ;;  %v1619_v18 = vadd.f32 %v5710_v11, %v7559_v24  ;;  %v1610_v8 = vpop.f32.mrb[19].mxu1 }
 0x350   : > { %v1611_v17 = vadd.f32 %v1610_v8, %v7559_v24  ;;  %v1430_v5 = vpop.f32.mrb[32].mxu0  ;;  %v10262_v8 = vpack.c.bf16 %v7580_v37, %v7574_v62 }
 0x351   : > { %v1743_v3 = vpack.c.bf16 %v1619_v18, %v1616_v25  ;;  %v1431_v61 = vadd.f32 %v1430_v5, %v7539_v1  ;;  %v1432_v58 = vpop.f32.mrb[33].mxu0 }
 0x352   : > { %v1742_v4 = vpack.c.bf16 %v1611_v17, %v1608_v30  ;;  %v1434_v2 = vpop.f32.mrb[34].mxu0  ;;  %v1433_v14 = vadd.f32 %v1432_v58, %v7542_v42  ;;  %v10263_v30 = vpack.c.bf16 %v7551_v31, %v7548_v56  ;;  %v10265_v56 = vpack.c.bf16 %v7577_v29, %v7571_v57 }
 0x353   : > { %v1435_v47 = vadd.f32 %v1434_v2, %v7539_v1  ;;  %v1436_v12 = vpop.f32.mrb[35].mxu0  ;;  %v1686_v11 = vmul.f32 0.088388346, %v1431_v61 }
 0x354   : > { %v1437_v15 = vadd.f32 %v1436_v12, %v7542_v42  ;;  %5427 = vmatprep.subr.bf16.mxu0 %v1742_v4  ;;  %v10264_v4 = vpack.c.bf16 %v7568_v20, %v7564_v6 }
 0x355   : > { %v1687_v34 = vmul.f32 0.088388346, %v1435_v47  ;;  %5428 = vmatpush3.bf16.msra.mxu0 %v10262_v8 }
 0x356   : > { %v1726_v50 = vpack.c.bf16 %v1437_v15, %v1433_v14  ;;  %5429 = vmatprep.subr.bf16.mxu0 %v1743_v3 }
 0x357   : > { %v7721_v5 = vpack.c.bf16 %v1687_v34, %v1686_v11 }
 0x358   : > { %v1440_v25 = vpop.f32.mrb[36].mxu0  ;;  %5379 = vmatprep.subr.bf16.mxu1 %v1726_v50 }
 0x359   : > { %v1441_v2 = vadd.f32 %v1440_v25, %v7539_v1  ;;  %v1442_v18 = vpop.f32.mrb[37].mxu0  ;;  %5380 = vmatpush3.bf16.xpose.msra.mxu1 %v10263_v30  ;;  %5430 = vmatpush3.bf16.msra.mxu0 %v10264_v4 }
 0x35a   : > { %v1444_v47 = vpop.f32.mrb[38].mxu0  ;;  %v1443_v3 = vadd.f32 %v1442_v18, %v7542_v42 }
 0x35b   : > { %v1445_v62 = vadd.f32 %v1444_v47, %v7539_v1  ;;  %v1446_v37 = vpop.f32.mrb[39].mxu0  ;;  %v1688_v17 = vmul.f32 0.088388346, %v1441_v2 }
 0x35c   : > { %v1447_v34 = vadd.f32 %v1446_v37, %v7542_v42  ;;  %v10266_v37 = vpack.c.bf16 %v7596_v53, %v7593_v16 }
 0x35d   : > { %v1689_v61 = vmul.f32 0.088388346, %v1445_v62 }
 0x35e   : > { %v1727_v58 = vpack.c.bf16 %v1447_v34, %v1443_v3 }
 0x35f   : > { %v7733_v12 = vpack.c.bf16 %v1689_v61, %v1688_v17 }
 0x360   : > { %5381 = vmatprep.subr.bf16.mxu1 %v1727_v58 }
 0x361   : > { %5382 = vmatpush3.bf16.xpose.msra.mxu1 %v10265_v56 }
 0x3a8   : > { %v1450_v31 = vpop.f32.mrb[40].mxu0 }
 0x3a9   : > { %v1451_v6 = vadd.f32 %v1450_v31, %v7539_v1  ;;  %v1452_v20 = vpop.f32.mrb[41].mxu0 }
 0x3aa   : > { %v1454_v14 = vpop.f32.mrb[42].mxu0  ;;  %v1453_v8 = vadd.f32 %v1452_v20, %v7542_v42 }
 0x3ab   : > { %v1455_v15 = vadd.f32 %v1454_v14, %v7539_v1  ;;  %v1456_v11 = vpop.f32.mrb[43].mxu0  ;;  %v1690_v25 = vmul.f32 0.088388346, %v1451_v6 }
 0x3ac   : > { %v1457_v50 = vadd.f32 %v1456_v11, %v7542_v42 }
 0x3ad   : > { %v1691_v2 = vmul.f32 0.088388346, %v1455_v15 }
 0x3ae   : > { %v1728_v18 = vpack.c.bf16 %v1457_v50, %v1453_v8 }
 0x3af   : > { %v7742_v30 = vpack.c.bf16 %v1691_v2, %v1690_v25 }
 0x3b0   : > { %v1460_v4 = vpop.f32.mrb[44].mxu0  ;;  %v5713_v57 = vpop.f32.mrb[20].mxu1  ;;  %5383 = vmatprep.subr.bf16.mxu1 %v1728_v18 }
 0x3b1   : > { %v1461_v29 = vadd.f32 %v1460_v4, %v7539_v1  ;;  %v1462_v47 = vpop.f32.mrb[45].mxu0  ;;  %v1623_v62 = vpop.f32.mrb[21].mxu1  ;;  %5384 = vmatpush3.bf16.xpose.msra.mxu1 %v10266_v37  ;;  %v1632_v17 = vadd.f32 %v5713_v57, %v7559_v24  ;;  %v10267_v57 = vpack.c.bf16 %v7617_v23, %v7611_v13 }
 0x3b2   : > { %v1464_v3 = vpop.f32.mrb[46].mxu0  ;;  %v5714_v34 = vpop.f32.mrb[22].mxu1  ;;  %v1463_v6 = vadd.f32 %v1462_v47, %v7542_v42  ;;  %v1624_v20 = vadd.f32 %v1623_v62, %v7559_v24  ;;  %v10268_v47 = vpack.c.bf16 %v7620_v38, %v7614_v32 }
 0x3b3   : > { %v1465_v61 = vadd.f32 %v1464_v3, %v7539_v1  ;;  %v1635_v58 = vadd.f32 %v5714_v34, %v7559_v24  ;;  %v1466_v56 = vpop.f32.mrb[47].mxu0  ;;  %v1626_v31 = vpop.f32.mrb[23].mxu1  ;;  %v1692_v16 = vmul.f32 0.088388346, %v1461_v29 }
 0x3b4   : > { %v1467_v14 = vadd.f32 %v1466_v56, %v7542_v42  ;;  %v1627_v15 = vadd.f32 %v1626_v31, %v7559_v24 }
 0x3b5   : > { %v1693_v53 = vmul.f32 0.088388346, %v1465_v61  ;;  %v1745_v11 = vpack.c.bf16 %v1635_v58, %v1632_v17  ;;  %v10269_v58 = vpack.c.bf16 %v7608_v63, %v7604_v49 }
 0x3b6   : > { %v1729_v8 = vpack.c.bf16 %v1467_v14, %v1463_v6  ;;  %v1744_v50 = vpack.c.bf16 %v1627_v15, %v1624_v20  ;;  %v10270_v20 = vpack.c.bf16 %v7636_v19, %v7633_v35 }
 0x3b7   : > { %v7755_v25 = vpack.c.bf16 %v1693_v53, %v1692_v16 }
 0x3b8   : > { %v1470_v2 = vpop.f32.mrb[48].mxu0  ;;  %5385 = vmatprep.subr.bf16.mxu1 %v1729_v8  ;;  %5431 = vmatprep.subr.bf16.mxu0 %v1744_v50 }
 0x3b9   : > { %v1471_v18 = vadd.f32 %v1470_v2, %v7539_v1  ;;  %v1472_v4 = vpop.f32.mrb[49].mxu0  ;;  %5386 = vmatpush3.bf16.xpose.msra.mxu1 %v10267_v57  ;;  %5432 = vmatpush3.bf16.msra.mxu0 %v10268_v47 }
 0x3ba   : > { %v1474_v29 = vpop.f32.mrb[50].mxu0  ;;  %5433 = vmatprep.subr.bf16.mxu0 %v1745_v11  ;;  %v1473_v3 = vadd.f32 %v1472_v4, %v7542_v42 }
 0x3bb   : > { %v1475_v62 = vadd.f32 %v1474_v29, %v7539_v1  ;;  %v1476_v37 = vpop.f32.mrb[51].mxu0  ;;  %v1694_v17 = vmul.f32 0.088388346, %v1471_v18 }
 0x3bc   : > { %v1477_v34 = vadd.f32 %v1476_v37, %v7542_v42 }
 0x3bd   : > { %v1695_v61 = vmul.f32 0.088388346, %v1475_v62  ;;  %5434 = vmatpush3.bf16.msra.mxu0 %v10269_v58 }
 0x3be   : > { %v1730_v13 = vpack.c.bf16 %v1477_v34, %v1473_v3  ;;  %v10271_v34 = vpack.c.bf16 %v7657_v46, %v7651_v48 }
 0x3bf   : > { %v7770_v23 = vpack.c.bf16 %v1695_v61, %v1694_v17  ;;  %v10272_v17 = vpack.c.bf16 %v7660_v36, %v7654_v51 }
 0x3c0   : > { %v1480_v32 = vpop.f32.mrb[52].mxu0  ;;  %v5717_v38 = vpop.f32.mrb[24].mxu1  ;;  %5387 = vmatprep.subr.bf16.mxu1 %v1730_v13 }
 0x3c1   : > { %v1481_v56 = vadd.f32 %v1480_v32, %v7539_v1  ;;  %v1482_v31 = vpop.f32.mrb[53].mxu0  ;;  %v1639_v6 = vpop.f32.mrb[25].mxu1  ;;  %5388 = vmatpush3.bf16.xpose.msra.mxu1 %v10270_v20  ;;  %v1648_v16 = vadd.f32 %v5717_v38, %v7559_v24 }
 0x3c2   : > { %v1484_v14 = vpop.f32.mrb[54].mxu0  ;;  %v5718_v15 = vpop.f32.mrb[26].mxu1  ;;  %v1483_v8 = vadd.f32 %v1482_v31, %v7542_v42  ;;  %v1640_v50 = vadd.f32 %v1639_v6, %v7559_v24  ;;  %v10273_v6 = vpack.c.bf16 %v7648_v52, %v7644_v27 }
 0x3c3   : > { %v1485_v49 = vadd.f32 %v1484_v14, %v7539_v1  ;;  %v1651_v63 = vadd.f32 %v5718_v15, %v7559_v24  ;;  %v1486_v53 = vpop.f32.mrb[55].mxu0  ;;  %v1642_v11 = vpop.f32.mrb[27].mxu1  ;;  %v1696_v35 = vmul.f32 0.088388346, %v1481_v56 }
 0x3c4   : > { %v1487_v2 = vadd.f32 %v1486_v53, %v7542_v42  ;;  %v1643_v18 = vadd.f32 %v1642_v11, %v7559_v24 }
 0x3c5   : > { %v1697_v19 = vmul.f32 0.088388346, %v1485_v49  ;;  %v1747_v4 = vpack.c.bf16 %v1651_v63, %v1648_v16  ;;  %v10274_v16 = vpack.c.bf16 %v7676_v21, %v7673_v26 }
 0x3c6   : > { %v1731_v57 = vpack.c.bf16 %v1487_v2, %v1483_v8  ;;  %v1746_v47 = vpack.c.bf16 %v1643_v18, %v1640_v50 }
 0x3c7   : > { %v7783_v29 = vpack.c.bf16 %v1697_v19, %v1696_v35 }
 0x3c8   : > { %v1490_v62 = vpop.f32.mrb[56].mxu0  ;;  %5389 = vmatprep.subr.bf16.mxu1 %v1731_v57  ;;  %5435 = vmatprep.subr.bf16.mxu0 %v1746_v47 }
 0x3c9   : > { %v1491_v37 = vadd.f32 %v1490_v62, %v7539_v1  ;;  %v1492_v3 = vpop.f32.mrb[57].mxu0  ;;  %5390 = vmatpush3.bf16.xpose.msra.mxu1 %v10271_v34  ;;  %5436 = vmatpush3.bf16.msra.mxu0 %v10272_v17  ;;  %v10276_v62 = vpack.c.bf16 %v7692_v22, %v7689_v55  ;;  %v563_v17 = vld [vmem:[#allocation7 + $0x30] sm:$0xff] }
 0x3ca   : > { %v1494_v61 = vpop.f32.mrb[58].mxu0  ;;  %5437 = vmatprep.subr.bf16.mxu0 %v1747_v4  ;;  %v1493_v32 = vadd.f32 %v1492_v3, %v7542_v42 }
 0x3cb   : > { %v1495_v58 = vadd.f32 %v1494_v61, %v7539_v1  ;;  %v1496_v13 = vpop.f32.mrb[59].mxu0  ;;  %v1698_v56 = vmul.f32 0.088388346, %v1491_v37  ;;  %v562_v37 = vld [vmem:[#allocation7 + $0x28] sm:$0xff] }
 0x3cc   : > { %v1497_v38 = vadd.f32 %v1496_v13, %v7542_v42 }
 0x3cd   : > { %v1699_v31 = vmul.f32 0.088388346, %v1495_v58  ;;  %5438 = vmatpush3.bf16.msra.mxu0 %v10273_v6  ;;  %v564_v58 = vld [vmem:[#allocation7 + $0x38] sm:$0xff] }
 0x3ce   : > { %v1732_v48 = vpack.c.bf16 %v1497_v38, %v1493_v32 }
 0x3cf   : > { %v1716_v46 = vpack.c.bf16 %v1699_v31, %v1698_v56 }
 0x3d0   : > { %v1500_v20 = vpop.f32.mrb[60].mxu0  ;;  %v5721_v36 = vpop.f32.mrb[28].mxu1  ;;  %5391 = vmatprep.subr.bf16.mxu1 %v1732_v48 }
 0x3d1   : > { %v1501_v51 = vadd.f32 %v1500_v20, %v7539_v1  ;;  %v1502_v14 = vpop.f32.mrb[61].mxu0  ;;  %v1655_v15 = vpop.f32.mrb[29].mxu1  ;;  %5392 = vmatpush3.bf16.xpose.msra.mxu1 %v10274_v16  ;;  %v1664_v53 = vadd.f32 %v5721_v36, %v7559_v24  ;;  %v565_v36 = vld [vmem:[#allocation7 + $0x40] sm:$0xff] }
 0x3d2   : > { %v1504_v49 = vpop.f32.mrb[62].mxu0  ;;  %v5722_v63 = vpop.f32.mrb[30].mxu1  ;;  %v1503_v50 = vadd.f32 %v1502_v14, %v7542_v42  ;;  %v1656_v2 = vadd.f32 %v1655_v15, %v7559_v24  ;;  %v566_v15 = vld [vmem:[#allocation7 + $0x48] sm:$0xff] }
 0x3d3   : > { %v1505_v27 = vadd.f32 %v1504_v49, %v7539_v1  ;;  %v1667_v52 = vadd.f32 %v5722_v63, %v7559_v24  ;;  %v1506_v11 = vpop.f32.mrb[63].mxu0  ;;  %v1658_v8 = vpop.f32.mrb[31].mxu1  ;;  %v1700_v21 = vmul.f32 0.088388346, %v1501_v51  ;;  %v10275_v1 = vpack.c.bf16 %v7704_v44, %v7701_v54  ;;  %v567_v63 = vld [vmem:[#allocation7 + $0x50] sm:$0xff] }
 0x3d4   : > { %v1507_v18 = vadd.f32 %v1506_v11, %v7542_v42  ;;  %v1659_v35 = vadd.f32 %v1658_v8, %v7559_v24  ;;  %v10277_v42 = vpack.c.bf16 %v7686_v40, %v7683_v33  ;;  %v557_v24 = vld [vmem:[#allocation7] sm:$0xff] }
 0x3d5   : > { %v1701_v26 = vmul.f32 0.088388346, %v1505_v27  ;;  %v1749_v19 = vpack.c.bf16 %v1667_v52, %v1664_v53  ;;  %v568_v27 = vld [vmem:[#allocation7 + $0x58] sm:$0xff] }
 0x3d6   : > { %v1733_v4 = vpack.c.bf16 %v1507_v18, %v1503_v50  ;;  %v1748_v57 = vpack.c.bf16 %v1659_v35, %v1656_v2 }
 0x3d7   : > { %v1717_v47 = vpack.c.bf16 %v1701_v26, %v1700_v21 }
 0x3d8   : > { %5393 = vmatprep.subr.bf16.mxu1 %v1733_v4  ;;  %5439 = vmatprep.subr.bf16.mxu0 %v1748_v57 }
 0x3d9   : > { %5394 = vmatpush3.bf16.xpose.msra.mxu1 %v10275_v1  ;;  %5440 = vmatpush3.bf16.msra.mxu0 %v10276_v62 }
 0x3da   : > { %5441 = vmatprep.subr.bf16.mxu0 %v1749_v19  ;;  %v569_v19 = vld [vmem:[#allocation7 + $0x60] sm:$0xff] }
 0x3dd   : > { %5442 = vmatpush3.bf16.msra.mxu0 %v10277_v42  ;;  %v571_v42 = vld [vmem:[#allocation7 + $0x70] sm:$0xff] }
 0x3e0   : > { %5396 = vmatmul.mubr.bf16.vlgmr.msra.gmra.mrb[32].mxu1 %v7555_v10 }
 0x3e1   : > { %5397 = vmatprep.mubr.bf16.mxu1 %v7588_v59 }
 0x3e8   : > { %5398 = vmatmul.mubr.bf16.gmra.mrb[36].mxu1 %v7588_v59 }
 0x3e9   : > { %5399 = vmatprep.mubr.bf16.mxu1 %v7600_v60 }
 0x3f0   : > { %5400 = vmatmul.mubr.bf16.gmra.mrb[40].mxu1 %v7600_v60  ;;  %v558_v60 = vld [vmem:[#allocation7 + $0x8] sm:$0xff] }
 0x3f1   : > { %5401 = vmatprep.mubr.bf16.mxu1 %v7628_v45 }
 0x3f8   : > { %5402 = vmatmul.mubr.bf16.gmra.mrb[44].mxu1 %v7628_v45  ;;  %v559_v45 = vld [vmem:[#allocation7 + $0x10] sm:$0xff] }
 0x3f9   : > { %5403 = vmatprep.mubr.bf16.mxu1 %v7640_v0 }
 0x400   : > { %5404 = vmatmul.mubr.bf16.gmra.mrb[48].mxu1 %v7640_v0 }
 0x401   : > { %5405 = vmatprep.mubr.bf16.mxu1 %v7668_v39 }
 0x408   : > { %5406 = vmatmul.mubr.bf16.gmra.mrb[52].mxu1 %v7668_v39 }
 0x409   : > { %5407 = vmatprep.mubr.bf16.mxu1 %v7680_v41 }
 0x410   : > { %5408 = vmatmul.mubr.bf16.gmra.mrb[56].mxu1 %v7680_v41  ;;  %v560_v41 = vld [vmem:[#allocation7 + $0x18] sm:$0xff] }
 0x411   : > { %5409 = vmatprep.mubr.bf16.mxu1 %v7708_v9 }
 0x418   : > { %5410 = vmatmul.mubr.bf16.gmra.mrb[60].mxu1 %v7708_v9  ;;  %v555_v9 = vld [vmem:[%s7116_s29] sm:$0x3]  ;;  %s10427_s29 = sld [smem:[#allocation78_spill]] }
 0x419   : > { %5411 = vmatprep.mubr.bf16.mxu1 %v7721_v5  ;;  %v5203_v33 = vadd.f32 -1.0, %v555_v9 }
 0x41b   : > { %v622_v39 = vmul.f32 1e+09, %v5203_v33  ;;  %v572_v33 = vld [vmem:[#allocation7 + $0x78] sm:$0xff] }
 0x41d   : > { %v7847_v10 = vrot.slane %v622_v39, %v7358_v7  ;;  %v7850_v59 = vrot.slane %v622_v39, %v7369_v43 }
 0x41e   : > { %s10031_s28 = scalar_lea.hbm %s10427_s29, %s5275_s25 }
 0x41f   : > { %v634_v0 = vadd.f32 %v7847_v10, %v557_v24  ;;  %v635_v40 = vadd.f32 %v7850_v59, %v558_v60  ;;  %v636_v55 = vadd.f32 %v7847_v10, %v559_v45  ;;  %v637_v54 = vadd.f32 %v7850_v59, %v560_v41 }
 0x420   : > { %5412 = vmatmul.mubr.bf16.gmra.mrb[64].mxu1 %v7721_v5  ;;  %v639_v32 = vadd.f32 %v7850_v59, %v562_v37  ;;  %v640_v38 = vadd.f32 %v7847_v10, %v563_v17  ;;  %v641_v31 = vadd.f32 %v7850_v59, %v564_v58  ;;  %v642_v53 = vadd.f32 %v7847_v10, %v565_v36 }
 0x421   : > { %5413 = vmatprep.mubr.bf16.mxu1 %v7733_v12  ;;  %v643_v11 = vadd.f32 %v7850_v59, %v566_v15  ;;  %v644_v8 = vadd.f32 %v7847_v10, %v567_v63  ;;  %v645_v2 = vadd.f32 %v7850_v59, %v568_v27  ;;  %v646_v9 = vadd.f32 %v7847_v10, %v569_v19  ;;  %v578_v63 = vld [vmem:[#allocation7 + $0xa8] sm:$0xff] }
 0x422   : > { %v648_v60 = vadd.f32 %v7847_v10, %v571_v42 }
 0x428   : > { %5414 = vmatmul.mubr.bf16.gmra.mrb[68].mxu1 %v7733_v12 }
 0x429   : > { %5415 = vmatprep.mubr.bf16.mxu1 %v7742_v30 }
 0x430   : > { %5416 = vmatmul.mubr.bf16.gmra.mrb[72].mxu1 %v7742_v30 }
 0x431   : > { %5417 = vmatprep.mubr.bf16.mxu1 %v7755_v25 }
 0x438   : > { %5418 = vmatmul.mubr.bf16.gmra.mrb[76].mxu1 %v7755_v25  ;;  %v561_v25 = vld [vmem:[#allocation7 + $0x20] sm:$0xff] }
 0x439   : > { %5419 = vmatprep.mubr.bf16.mxu1 %v7770_v23  ;;  %v638_v61 = vadd.f32 %v7847_v10, %v561_v25  ;;  %v574_v25 = vld [vmem:[#allocation7 + $0x88] sm:$0xff] }
 0x440   : > { %5420 = vmatmul.mubr.bf16.gmra.mrb[80].mxu1 %v7770_v23 }
 0x441   : > { %5421 = vmatprep.mubr.bf16.mxu1 %v7783_v29 }
 0x448   : > { %5422 = vmatmul.mubr.bf16.gmra.mrb[84].mxu1 %v7783_v29 }
 0x449   : > { %5423 = vmatprep.mubr.bf16.mxu1 %v1716_v46 }
 0x450   : > { %5424 = vmatmul.mubr.bf16.gmra.mrb[88].mxu1 %v1716_v46 }
 0x451   : > { %5425 = vmatprep.mubr.bf16.mxu1 %v1717_v47 }
 0x458   : > { %5426 = vmatmul.mubr.bf16.gmra.mrb[92].mxu1 %v1717_v47  ;;  %v570_v47 = vld [vmem:[#allocation7 + $0x68] sm:$0xff] }
 0x459   : > { %v647_v24 = vadd.f32 %v7850_v59, %v570_v47 }
 0x4b3   : > { %v1784_v22 = vpop.f32.mrb[32].mxu1 }
 0x4b4   : > { %v7856_v44 = vadd.f32 %v1784_v22, %v634_v0  ;;  %v1786_v5 = vpop.f32.mrb[33].mxu1  ;;  %v649_v0 = vadd.f32 %v7850_v59, %v572_v33 }
 0x4b5   : > { %v7858_v12 = vadd.f32 %v1786_v5, %v635_v40  ;;  %v1788_v30 = vpop.f32.mrb[34].mxu1 }
 0x4b6   : > { %v7860_v23 = vadd.f32 %v1788_v30, %v636_v55  ;;  %v1790_v29 = vpop.f32.mrb[35].mxu1 }
 0x4b7   : > { %v7862_v3 = vadd.f32 %v1790_v29, %v637_v54  ;;  %v1943_v34 = vmax.f32 %v7856_v44, %v7858_v12  ;;  %v573_v54 = vld [vmem:[#allocation7 + $0x80] sm:$0xff] }
 0x4b8   : > { %v650_v17 = vadd.f32 %v7847_v10, %v573_v54 }
 0x4b9   : > { %1944 = vmax.xlane.f32.xlu0 %v1943_v34  ;;  %v1946_v13 = vmax.f32 %v7860_v23, %v7862_v3  ;;  %v575_v34 = vld [vmem:[#allocation7 + $0x90] sm:$0xff] }
 0x4bb   : > { %v1794_v56 = vpop.f32.mrb[36].mxu1  ;;  %1947 = vmax.xlane.f32.xlu1 %v1946_v13  ;;  %v651_v13 = vadd.f32 %v7850_v59, %v574_v25 }
 0x4bc   : > { %v7872_v6 = vadd.f32 %v1794_v56, %v638_v61  ;;  %v1796_v48 = vpop.f32.mrb[37].mxu1  ;;  %v576_v61 = vld [vmem:[#allocation7 + $0x98] sm:$0xff] }
 0x4bd   : > { %v7874_v46 = vadd.f32 %v1796_v48, %v639_v32  ;;  %v1798_v20 = vpop.f32.mrb[38].mxu1  ;;  %v652_v32 = vadd.f32 %v7847_v10, %v575_v34  ;;  %v653_v56 = vadd.f32 %v7850_v59, %v576_v61 }
 0x4be   : > { %v7876_v51 = vadd.f32 %v1798_v20, %v640_v38  ;;  %v1800_v14 = vpop.f32.mrb[39].mxu1 }
 0x4bf   : > { %v7878_v16 = vadd.f32 %v1800_v14, %v641_v31  ;;  %v1949_v49 = vmax.f32 %v7872_v6, %v7874_v46  ;;  %v577_v14 = vld [vmem:[#allocation7 + $0xa0] sm:$0xff] }
 0x4c1   : > { %1950 = vmax.xlane.f32.xlu0 %v1949_v49  ;;  %v1952_v52 = vmax.f32 %v7876_v51, %v7878_v16 }
 0x4c3   : > { %v1804_v50 = vpop.f32.mrb[40].mxu1  ;;  %1953 = vmax.xlane.f32.xlu1 %v1952_v52  ;;  %v579_v52 = vld [vmem:[#allocation7 + $0xb0] sm:$0xff] }
 0x4c4   : > { %v7888_v18 = vadd.f32 %v1804_v50, %v642_v53  ;;  %v1806_v35 = vpop.f32.mrb[41].mxu1 }
 0x4c5   : > { %v7890_v21 = vadd.f32 %v1806_v35, %v643_v11  ;;  %v1808_v26 = vpop.f32.mrb[42].mxu1  ;;  %v654_v11 = vadd.f32 %v7847_v10, %v577_v14  ;;  %v656_v35 = vadd.f32 %v7847_v10, %v579_v52 }
 0x4c6   : > { %v7892_v4 = vadd.f32 %v1808_v26, %v644_v8  ;;  %v1810_v57 = vpop.f32.mrb[43].mxu1  ;;  %v580_v8 = vld [vmem:[#allocation7 + $0xb8] sm:$0xff] }
 0x4c7   : > { %v7894_v1 = vadd.f32 %v1810_v57, %v645_v2  ;;  %v1955_v62 = vmax.f32 %v7888_v18, %v7890_v21  ;;  %v655_v2 = vadd.f32 %v7850_v59, %v578_v63  ;;  %v657_v19 = vadd.f32 %v7850_v59, %v580_v8 }
 0x4c9   : > { %1956 = vmax.xlane.f32.xlu0 %v1955_v62  ;;  %v1958_v39 = vmax.f32 %v7892_v4, %v7894_v1 }
 0x4cb   : > { %v1814_v45 = vpop.f32.mrb[44].mxu1  ;;  %1959 = vmax.xlane.f32.xlu1 %v1958_v39 }
 0x4cc   : > { %v7904_v41 = vadd.f32 %v1814_v45, %v646_v9  ;;  %v1816_v40 = vpop.f32.mrb[45].mxu1  ;;  %v581_v9 = vld [vmem:[#allocation7 + $0xc0] sm:$0xff] }
 0x4cd   : > { %v7906_v55 = vadd.f32 %v1816_v40, %v647_v24  ;;  %v1818_v22 = vpop.f32.mrb[46].mxu1  ;;  %v582_v24 = vld [vmem:[#allocation7 + $0xc8] sm:$0xff]  ;;  %v658_v40 = vadd.f32 %v7847_v10, %v581_v9 }
 0x4ce   : > { %v7908_v5 = vadd.f32 %v1818_v22, %v648_v60  ;;  %v1820_v30 = vpop.f32.mrb[47].mxu1  ;;  %v584_v22 = vld [vmem:[#allocation7 + $0xd8] sm:$0xff] }
 0x4cf   : > { %v7910_v29 = vadd.f32 %v1820_v30, %v649_v0  ;;  %v1961_v37 = vmax.f32 %v7904_v41, %v7906_v55  ;;  %v583_v0 = vld [vmem:[#allocation7 + $0xd0] sm:$0xff]  ;;  %v659_v30 = vadd.f32 %v7850_v59, %v582_v24  ;;  %v661_v34 = vadd.f32 %v7850_v59, %v584_v22  ;;  %v590_v24 = vld [vmem:[#allocation7 + $0x108] sm:$0xff] }
 0x4d0   : > { %v660_v25 = vadd.f32 %v7847_v10, %v583_v0 }
 0x4d1   : > { %1962 = vmax.xlane.f32.xlu0 %v1961_v37  ;;  %v1964_v58 = vmax.f32 %v7908_v5, %v7910_v29 }
 0x4d3   : > { %v1824_v38 = vpop.f32.mrb[48].mxu1  ;;  %1965 = vmax.xlane.f32.xlu1 %v1964_v58 }
 0x4d4   : > { %v7920_v31 = vadd.f32 %v1824_v38, %v650_v17  ;;  %v1826_v48 = vpop.f32.mrb[49].mxu1 }
 0x4d5   : > { %v7922_v20 = vadd.f32 %v1826_v48, %v651_v13  ;;  %v1828_v36 = vpop.f32.mrb[50].mxu1  ;;  %v586_v48 = vld [vmem:[#allocation7 + $0xe8] sm:$0xff] }
 0x4d6   : > { %v7924_v15 = vadd.f32 %v1828_v36, %v652_v32  ;;  %v1830_v49 = vpop.f32.mrb[51].mxu1  ;;  %v585_v32 = vld [vmem:[#allocation7 + $0xe0] sm:$0xff] }
 0x4d7   : > { %v7926_v53 = vadd.f32 %v1830_v49, %v653_v56  ;;  %v1967_v27 = vmax.f32 %v7920_v31, %v7922_v20  ;;  %v587_v49 = vld [vmem:[#allocation7 + $0xf0] sm:$0xff]  ;;  %v662_v63 = vadd.f32 %v7847_v10, %v585_v32 }
 0x4d8   : > { %v664_v8 = vadd.f32 %v7847_v10, %v587_v49 }
 0x4d9   : > { %1968 = vmax.xlane.f32.xlu0 %v1967_v27  ;;  %v1970_v50 = vmax.f32 %v7924_v15, %v7926_v53  ;;  %v588_v27 = vld [vmem:[#allocation7 + $0xf8] sm:$0xff] }
 0x4db   : > { %v1834_v26 = vpop.f32.mrb[52].mxu1  ;;  %1971 = vmax.xlane.f32.xlu1 %v1970_v50 }
 0x4dc   : > { %v7936_v57 = vadd.f32 %v1834_v26, %v654_v11  ;;  %v1836_v47 = vpop.f32.mrb[53].mxu1  ;;  %v663_v11 = vadd.f32 %v7850_v59, %v586_v48 }
 0x4dd   : > { %v7938_v62 = vadd.f32 %v1836_v47, %v655_v2  ;;  %v1838_v42 = vpop.f32.mrb[54].mxu1  ;;  %v665_v2 = vadd.f32 %v7850_v59, %v588_v27  ;;  %v594_v27 = vld [vmem:[#allocation7 + $0x128] sm:$0xff] }
 0x4de   : > { %v7940_v33 = vadd.f32 %v1838_v42, %v656_v35  ;;  %v1840_v39 = vpop.f32.mrb[55].mxu1  ;;  %v589_v42 = vld [vmem:[#allocation7 + $0x100] sm:$0xff] }
 0x4df   : > { %v7942_v60 = vadd.f32 %v1840_v39, %v657_v19  ;;  %v1973_v45 = vmax.f32 %v7936_v57, %v7938_v62  ;;  %v666_v22 = vadd.f32 %v7847_v10, %v589_v42 }
 0x4e1   : > { %1974 = vmax.xlane.f32.xlu0 %v1973_v45  ;;  %v1976_v54 = vmax.f32 %v7940_v33, %v7942_v60 }
 0x4e3   : > { %v1844_v37 = vpop.f32.mrb[56].mxu1  ;;  %1977 = vmax.xlane.f32.xlu1 %v1976_v54  ;;  %v592_v54 = vld [vmem:[#allocation7 + $0x118] sm:$0xff] }
 0x4e4   : > { %v7952_v17 = vadd.f32 %v1844_v37, %v658_v40  ;;  %v1846_v61 = vpop.f32.mrb[57].mxu1  ;;  %v591_v40 = vld [vmem:[#allocation7 + $0x110] sm:$0xff] }
 0x4e5   : > { %v7954_v58 = vadd.f32 %v1846_v61, %v659_v30  ;;  %v1848_v13 = vpop.f32.mrb[58].mxu1  ;;  %v668_v37 = vadd.f32 %v7847_v10, %v591_v40  ;;  %v669_v61 = vadd.f32 %v7850_v59, %v592_v54 }
 0x4e6   : > { %v7956_v38 = vadd.f32 %v1848_v13, %v660_v25  ;;  %v1850_v56 = vpop.f32.mrb[59].mxu1  ;;  %v667_v25 = vadd.f32 %v7850_v59, %v590_v24 }
 0x4e7   : > { %v7958_v36 = vadd.f32 %v1850_v56, %v661_v34  ;;  %v1979_v14 = vmax.f32 %v7952_v17, %v7954_v58 }
 0x4e9   : > { %1980 = vmax.xlane.f32.xlu0 %v1979_v14  ;;  %v1982_v52 = vmax.f32 %v7956_v38, %v7958_v36  ;;  %v593_v14 = vld [vmem:[#allocation7 + $0x120] sm:$0xff] }
 0x4eb   : > { %v1854_v50 = vpop.f32.mrb[60].mxu1  ;;  %1983 = vmax.xlane.f32.xlu1 %v1982_v52 }
 0x4ec   : > { %v7968_v35 = vadd.f32 %v1854_v50, %v662_v63  ;;  %v1856_v26 = vpop.f32.mrb[61].mxu1  ;;  %v670_v50 = vadd.f32 %v7847_v10, %v593_v14 }
 0x4ed   : > { %v7970_v19 = vadd.f32 %v1856_v26, %v663_v11  ;;  %v1858_v47 = vpop.f32.mrb[62].mxu1 }
 0x4ee   : > { %v7972_v9 = vadd.f32 %v1858_v47, %v664_v8  ;;  %v1860_v39 = vpop.f32.mrb[63].mxu1  ;;  %v595_v8 = vld [vmem:[#allocation7 + $0x130] sm:$0xff]  ;;  %v671_v47 = vadd.f32 %v7850_v59, %v594_v27 }
 0x4ef   : > { %v7974_v45 = vadd.f32 %v1860_v39, %v665_v2  ;;  %v1985_v0 = vmax.f32 %v7968_v35, %v7970_v19  ;;  %v596_v2 = vld [vmem:[#allocation7 + $0x138] sm:$0xff]  ;;  %v672_v42 = vadd.f32 %v7847_v10, %v595_v8 }
 0x4f0   : > { %v673_v24 = vadd.f32 %v7850_v59, %v596_v2 }
 0x4f1   : > { %1986 = vmax.xlane.f32.xlu0 %v1985_v0  ;;  %v1988_v30 = vmax.f32 %v7972_v9, %v7974_v45 }
 0x4f3   : > { %v1864_v34 = vpop.f32.mrb[64].mxu1  ;;  %1989 = vmax.xlane.f32.xlu1 %v1988_v30  ;;  %v597_v30 = vld [vmem:[#allocation7 + $0x140] sm:$0xff] }
 0x4f4   : > { %v7984_v13 = vadd.f32 %v1864_v34, %v666_v22  ;;  %v1866_v32 = vpop.f32.mrb[65].mxu1  ;;  %v598_v34 = vld [vmem:[#allocation7 + $0x148] sm:$0xff]  ;;  %v674_v14 = vadd.f32 %v7847_v10, %v597_v30 }
 0x4f5   : > { %v7986_v56 = vadd.f32 %v1866_v32, %v667_v25  ;;  %v1868_v48 = vpop.f32.mrb[66].mxu1  ;;  %v602_v30 = vld [vmem:[#allocation7 + $0x168] sm:$0xff] }
 0x4f6   : > { %v7988_v49 = vadd.f32 %v1868_v48, %v668_v37  ;;  %v1870_v63 = vpop.f32.mrb[67].mxu1  ;;  %v599_v48 = vld [vmem:[#allocation7 + $0x150] sm:$0xff] }
 0x4f7   : > { %10278 = vst [vmem:[#allocation56_spill] sm:$0xff] %v7986_v56  ;;  %v7990_v52 = vadd.f32 %v1870_v63, %v669_v61  ;;  %v1991_v11 = vmax.f32 %v7984_v13, %v7986_v56  ;;  %v600_v63 = vld [vmem:[#allocation7 + $0x158] sm:$0xff]  ;;  %v676_v8 = vadd.f32 %v7847_v10, %v599_v48 }
 0x4f8   : > { %10279 = vst [vmem:[#allocation57_spill] sm:$0xff] %v7988_v49  ;;  %v677_v2 = vadd.f32 %v7850_v59, %v600_v63  ;;  %v604_v63 = vld [vmem:[#allocation7 + $0x178] sm:$0xff] }
 0x4f9   : > { %10280 = vst [vmem:[#allocation58_spill] sm:$0xff] %v7990_v52  ;;  %1992 = vmax.xlane.f32.xlu0 %v1991_v11  ;;  %v1994_v26 = vmax.f32 %v7988_v49, %v7990_v52  ;;  %v675_v11 = vadd.f32 %v7850_v59, %v598_v34  ;;  %v605_v49 = vld [vmem:[#allocation7 + $0x180] sm:$0xff] }
 0x4fb   : > { %v1874_v39 = vpop.f32.mrb[68].mxu1  ;;  %1995 = vmax.xlane.f32.xlu1 %v1994_v26 }
 0x4fc   : > { %v8000_v0 = vadd.f32 %v1874_v39, %v670_v50  ;;  %v1876_v40 = vpop.f32.mrb[69].mxu1 }
 0x4fd   : > { %v8002_v22 = vadd.f32 %v1876_v40, %v671_v47  ;;  %v1878_v54 = vpop.f32.mrb[70].mxu1 }
 0x4fe   : > { %10281 = vst [vmem:[#allocation59_spill] sm:$0xff] %v8000_v0  ;;  %v8004_v25 = vadd.f32 %v1878_v54, %v672_v42  ;;  %v1880_v37 = vpop.f32.mrb[71].mxu1 }
 0x4ff   : > { %10282 = vst [vmem:[#allocation60_spill] sm:$0xff] %v8002_v22  ;;  %v8006_v61 = vadd.f32 %v1880_v37, %v673_v24  ;;  %v1997_v32 = vmax.f32 %v8000_v0, %v8002_v22  ;;  %v601_v24 = vld [vmem:[#allocation7 + $0x160] sm:$0xff] }
 0x500   : > { %10283 = vst [vmem:[#allocation61_spill] sm:$0xff] %v8004_v25  ;;  %v678_v48 = vadd.f32 %v7847_v10, %v601_v24 }
 0x501   : > { %10284 = vst [vmem:[#allocation62_spill] sm:$0xff] %v8006_v61  ;;  %1998 = vmax.xlane.f32.xlu0 %v1997_v32  ;;  %v2000_v27 = vmax.f32 %v8004_v25, %v8006_v61  ;;  %v603_v32 = vld [vmem:[#allocation7 + $0x170] sm:$0xff] }
 0x503   : > { %v1884_v50 = vpop.f32.mrb[72].mxu1  ;;  %2001 = vmax.xlane.f32.xlu1 %v2000_v27  ;;  %v679_v27 = vadd.f32 %v7850_v59, %v602_v30 }
 0x504   : > { %v8016_v26 = vadd.f32 %v1884_v50, %v674_v14  ;;  %v1886_v47 = vpop.f32.mrb[73].mxu1  ;;  %v681_v50 = vadd.f32 %v7850_v59, %v604_v63 }
 0x505   : > { %v8018_v42 = vadd.f32 %v1886_v47, %v675_v11  ;;  %v1888_v39 = vpop.f32.mrb[74].mxu1  ;;  %v680_v11 = vadd.f32 %v7847_v10, %v603_v32 }
 0x506   : > { %10285 = vst [vmem:[#allocation63_spill] sm:$0xff] %v8016_v26  ;;  %v8020_v40 = vadd.f32 %v1888_v39, %v676_v8  ;;  %v1890_v54 = vpop.f32.mrb[75].mxu1 }
 0x507   : > { %10286 = vst [vmem:[#allocation64_spill] sm:$0xff] %v8018_v42  ;;  %v8022_v37 = vadd.f32 %v1890_v54, %v677_v2  ;;  %v2003_v34 = vmax.f32 %v8016_v26, %v8018_v42 }
 0x508   : > { %10287 = vst [vmem:[#allocation65_spill] sm:$0xff] %v8020_v40 }
 0x509   : > { %10288 = vst [vmem:[#allocation66_spill] sm:$0xff] %v8022_v37  ;;  %2004 = vmax.xlane.f32.xlu0 %v2003_v34  ;;  %v2006_v14 = vmax.f32 %v8020_v40, %v8022_v37 }
 0x50b   : > { %v1894_v8 = vpop.f32.mrb[76].mxu1  ;;  %2007 = vmax.xlane.f32.xlu1 %v2006_v14 }
 0x50c   : > { %v8032_v2 = vadd.f32 %v1894_v8, %v678_v48  ;;  %v1896_v47 = vpop.f32.mrb[77].mxu1 }
 0x50d   : > { %v8034_v39 = vadd.f32 %v1896_v47, %v679_v27  ;;  %v1898_v54 = vpop.f32.mrb[78].mxu1 }
 0x50e   : > { %10289 = vst [vmem:[#allocation67_spill] sm:$0xff] %v8032_v2  ;;  %v8036_v24 = vadd.f32 %v1898_v54, %v680_v11  ;;  %v1900_v34 = vpop.f32.mrb[79].mxu1 }
 0x50f   : > { %10290 = vst [vmem:[#allocation68_spill] sm:$0xff] %v8034_v39  ;;  %v8038_v43 = vadd.f32 %v1900_v34, %v681_v50  ;;  %v2009_v30 = vmax.f32 %v8032_v2, %v8034_v39 }
 0x510   : > { %10291 = vst [vmem:[#allocation69_spill] sm:$0xff] %v8036_v24 }
 0x511   : > { %10292 = vst [vmem:[#allocation70_spill] sm:$0xff] %v8038_v43  ;;  %2010 = vmax.xlane.f32.xlu0 %v2009_v30  ;;  %v2012_v32 = vmax.f32 %v8036_v24, %v8038_v43 }
 0x513   : > { %v1904_v14 = vpop.f32.mrb[80].mxu1  ;;  %2013 = vmax.xlane.f32.xlu1 %v2012_v32 }
 0x514   : > { %v1906_v48 = vpop.f32.mrb[81].mxu1 }
 0x515   : > { %v8044_v63 = vpop.f32.mrb[82].mxu1 }
 0x516   : > { %v8046_v27 = vpop.f32.mrb[83].mxu1 }
 0x51b   : > { %v8048_v8 = vpop.f32.mrb[84].mxu1 }
 0x51c   : > { %v8050_v11 = vpop.f32.mrb[85].mxu1 }
 0x51d   : > { %v8052_v50 = vpop.f32.mrb[86].mxu1 }
 0x51e   : > { %v8054_v47 = vpop.f32.mrb[87].mxu1 }
 0x523   : > { %v8056_v54 = vpop.f32.mrb[88].mxu1 }
 0x524   : > { %v8058_v34 = vpop.f32.mrb[89].mxu1 }
 0x525   : > { %v8060_v30 = vpop.f32.mrb[90].mxu1 }
 0x526   : > { %v8062_v32 = vpop.f32.mrb[91].mxu1 }
 0x52b   : > { %v8064_v7 = vpop.f32.mrb[92].mxu1 }
 0x52c   : > { %v8066_v28 = vpop.f32.mrb[93].mxu1 }
 0x52d   : > { %v8068_v43 = vpop.f32.mrb[94].mxu1 }
 0x52e   : > { %v8070_v24 = vpop.f32.mrb[95].mxu1 }
 0x546   : > { %v1945_v39 = vpop.xlane.xlu0 %1944 }
 0x547   : > { %v2039_v2 = vsub.f32 %v7856_v44, %v1945_v39  ;;  %v2040_v37 = vsub.f32 %v7858_v12, %v1945_v39  ;;  %v606_v12 = vld [vmem:[#allocation7 + $0x188] sm:$0xff] }
 0x548   : > { %v1948_v40 = vpop.xlane.xlu1 %1947 }
 0x549   : > { %v2103_v42 = vmul.f32 1.442695, %v2039_v2  ;;  %v2105_v26 = vmul.f32 1.442695, %v2040_v37  ;;  %v2041_v61 = vsub.f32 %v7860_v23, %v1948_v40  ;;  %v2042_v25 = vsub.f32 %v7862_v3, %v1948_v40 }
 0x54b   : > { %6028 = vpow2.f32 %v2103_v42  ;;  %v2107_v22 = vmul.f32 1.442695, %v2041_v61  ;;  %v2109_v0 = vmul.f32 1.442695, %v2042_v25  ;;  %v682_v61 = vadd.f32 %v7847_v10, %v605_v49 }
 0x54c   : > { %6030 = vpow2.f32 %v2105_v26  ;;  %v683_v25 = vadd.f32 %v7850_v59, %v606_v12  ;;  %v610_v12 = vld [vmem:[#allocation7 + $0x1a8] sm:$0xff] }
 0x54d   : > { %6032 = vpow2.f32 %v2107_v22  ;;  %v607_v22 = vld [vmem:[#allocation7 + $0x190] sm:$0xff] }
 0x54e   : > { %6034 = vpow2.f32 %v2109_v0  ;;  %v1951_v52 = vpop.xlane.xlu0 %1950  ;;  %v608_v0 = vld [vmem:[#allocation7 + $0x198] sm:$0xff] }
 0x54f   : > { %v2043_v56 = vsub.f32 %v7872_v6, %v1951_v52  ;;  %v2044_v44 = vsub.f32 %v7874_v46, %v1951_v52  ;;  %v609_v46 = vld [vmem:[#allocation7 + $0x1a0] sm:$0xff]  ;;  %v8086_v52 = vadd.f32 %v1904_v14, %v682_v61 }
 0x550   : > { %v1954_v39 = vpop.xlane.xlu1 %1953 }
 0x551   : > { %v2111_v2 = vmul.f32 1.442695, %v2043_v56  ;;  %v2113_v37 = vmul.f32 1.442695, %v2044_v44  ;;  %v2045_v23 = vsub.f32 %v7876_v51, %v1954_v39  ;;  %v2046_v3 = vsub.f32 %v7878_v16, %v1954_v39 }
 0x552   : > { %v684_v51 = vadd.f32 %v7847_v10, %v607_v22  ;;  %v685_v16 = vadd.f32 %v7850_v59, %v608_v0  ;;  %v8092_v44 = vadd.f32 %v1906_v48, %v683_v25 }
 0x553   : > { %6036 = vpow2.f32 %v2111_v2  ;;  %v2115_v26 = vmul.f32 1.442695, %v2045_v23  ;;  %v2117_v42 = vmul.f32 1.442695, %v2046_v3  ;;  %v686_v23 = vadd.f32 %v7847_v10, %v609_v46  ;;  %v612_v46 = vld [vmem:[#allocation7 + $0x1b8] sm:$0xff] }
 0x554   : > { %6038 = vpow2.f32 %v2113_v37  ;;  %v8104_v25 = vadd.f32 %v8044_v63, %v684_v51 }
 0x555   : > { %v8082_v6 = vpop.eup %6028  ;;  %6040 = vpow2.f32 %v2115_v26  ;;  %v611_v26 = vld [vmem:[#allocation7 + $0x1b0] sm:$0xff] }
 0x556   : > { %v8084_v56 = vpop.eup %6030  ;;  %6042 = vpow2.f32 %v2117_v42  ;;  %v1957_v49 = vpop.xlane.xlu0 %1956  ;;  %v688_v63 = vadd.f32 %v7847_v10, %v611_v26 }
 0x557   : > { %v8090_v40 = vpop.eup %6032  ;;  %v2047_v39 = vsub.f32 %v7888_v18, %v1957_v49  ;;  %v2048_v2 = vsub.f32 %v7890_v21, %v1957_v49  ;;  %v2231_v37 = vadd.f32 %v8084_v56, %v8082_v6  ;;  %v8107_v18 = vadd.f32 %v8046_v27, %v685_v16  ;;  %v613_v27 = vld [vmem:[#allocation7 + $0x1c0] sm:$0xff] }
 0x558   : > { %v8098_v14 = vpop.eup %6034  ;;  %v1960_v3 = vpop.xlane.xlu1 %1959  ;;  %v687_v21 = vadd.f32 %v7850_v59, %v610_v12  ;;  %v8120_v16 = vadd.f32 %v8048_v8, %v686_v23  ;;  %v689_v12 = vadd.f32 %v7850_v59, %v612_v46  ;;  %v690_v26 = vadd.f32 %v7847_v10, %v613_v27 }
 0x559   : > { %v2119_v61 = vmul.f32 1.442695, %v2047_v39  ;;  %v2121_v22 = vmul.f32 1.442695, %v2048_v2  ;;  %v2049_v0 = vsub.f32 %v7892_v4, %v1960_v3  ;;  %v2050_v48 = vsub.f32 %v7894_v1, %v1960_v3  ;;  %2232 = vadd.xlane.f32.xlu0 %v2231_v37 }
 0x55a   : > { %v2234_v42 = vadd.f32 %v8098_v14, %v8090_v40  ;;  %v2015_v4 = vmax.f32 %v8086_v52, %v8092_v44  ;;  %v2018_v2 = vmax.f32 %v8104_v25, %v8107_v18 }
 0x55b   : > { %6044 = vpow2.f32 %v2119_v61  ;;  %v2123_v49 = vmul.f32 1.442695, %v2049_v0  ;;  %v2125_v39 = vmul.f32 1.442695, %v2050_v48  ;;  %v8128_v61 = vadd.f32 %v8050_v11, %v687_v21 }
 0x55c   : > { %6046 = vpow2.f32 %v2121_v22  ;;  %2235 = vadd.xlane.f32.xlu1 %v2234_v42  ;;  %v614_v22 = vld [vmem:[#allocation7 + $0x1c8] sm:$0xff] }
 0x55d   : > { %v8114_v1 = vpop.eup %6036  ;;  %6048 = vpow2.f32 %v2123_v49  ;;  %2016 = vmax.xlane.f32.xlu0 %v2015_v4  ;;  %v691_v21 = vadd.f32 %v7850_v59, %v614_v22  ;;  %v615_v4 = vld [vmem:[#allocation7 + $0x1d0] sm:$0xff] }
 0x55e   : > { %v8117_v51 = vpop.eup %6038  ;;  %6050 = vpow2.f32 %v2125_v39  ;;  %v1963_v37 = vpop.xlane.xlu0 %1962 }
 0x55f   : > { %v8125_v3 = vpop.eup %6040  ;;  %v2051_v0 = vsub.f32 %v7904_v41, %v1963_v37  ;;  %v2052_v48 = vsub.f32 %v7906_v55, %v1963_v37  ;;  %v2237_v8 = vadd.f32 %v8117_v51, %v8114_v1  ;;  %v8140_v41 = vadd.f32 %v8052_v50, %v688_v63 }
 0x560   : > { %v8134_v23 = vpop.eup %6042  ;;  %2019 = vmax.xlane.f32.xlu1 %v2018_v2  ;;  %v1966_v42 = vpop.xlane.xlu1 %1965  ;;  %v8143_v55 = vadd.f32 %v8054_v47, %v689_v12  ;;  %v616_v2 = vld [vmem:[#allocation7 + $0x1d8] sm:$0xff]  ;;  %v692_v50 = vadd.f32 %v7847_v10, %v615_v4  ;;  %v617_v47 = vld [vmem:[#allocation7 + $0x1e0] sm:$0xff]  ;;  %v8156_v12 = vadd.f32 %v8056_v54, %v690_v26 }
 0x561   : > { %v2127_v46 = vmul.f32 1.442695, %v2051_v0  ;;  %v2129_v49 = vmul.f32 1.442695, %v2052_v48  ;;  %v2053_v39 = vsub.f32 %v7908_v5, %v1966_v42  ;;  %v2054_v11 = vsub.f32 %v7910_v29, %v1966_v42  ;;  %2238 = vadd.xlane.f32.xlu0 %v2237_v8 }
 0x562   : > { %v2240_v27 = vadd.f32 %v8134_v23, %v8125_v3  ;;  %v2021_v5 = vmax.f32 %v8120_v16, %v8128_v61  ;;  %v693_v22 = vadd.f32 %v7850_v59, %v616_v2  ;;  %v2024_v48 = vmax.f32 %v8140_v41, %v8143_v55 }
 0x563   : > { %6052 = vpow2.f32 %v2127_v46  ;;  %v2131_v37 = vmul.f32 1.442695, %v2053_v39  ;;  %v2133_v0 = vmul.f32 1.442695, %v2054_v11  ;;  %v8164_v46 = vadd.f32 %v8058_v34, %v691_v21 }
 0x564   : > { %6054 = vpow2.f32 %v2129_v49  ;;  %2241 = vadd.xlane.f32.xlu1 %v2240_v27  ;;  %v618_v49 = vld [vmem:[#allocation7 + $0x1e8] sm:$0xff]  ;;  %v694_v4 = vadd.f32 %v7847_v10, %v617_v47 }
 0x565   : > { %v8150_v29 = vpop.eup %6044  ;;  %6056 = vpow2.f32 %v2131_v37  ;;  %2022 = vmax.xlane.f32.xlu0 %v2021_v5  ;;  %v695_v21 = vadd.f32 %v7850_v59, %v618_v49  ;;  %v619_v5 = vld [vmem:[#allocation7 + $0x1f0] sm:$0xff] }
 0x566   : > { %v8153_v63 = vpop.eup %6046  ;;  %6058 = vpow2.f32 %v2133_v0  ;;  %v1969_v8 = vpop.xlane.xlu0 %1968  ;;  %v8194_v49 = vadd.f32 %v8064_v7, %v694_v4 }
 0x567   : > { %v8161_v42 = vpop.eup %6048  ;;  %v2055_v39 = vsub.f32 %v7920_v31, %v1969_v8  ;;  %v2056_v11 = vsub.f32 %v7922_v20, %v1969_v8  ;;  %v2243_v54 = vadd.f32 %v8153_v63, %v8150_v29  ;;  %v8176_v31 = vadd.f32 %v8060_v30, %v692_v50  ;;  %v620_v8 = vld [vmem:[#allocation7 + $0x1f8] sm:$0xff] }
 0x568   : > { %v8170_v26 = vpop.eup %6050  ;;  %2025 = vmax.xlane.f32.xlu1 %v2024_v48  ;;  %v1972_v27 = vpop.xlane.xlu1 %1971  ;;  %v8179_v20 = vadd.f32 %v8062_v32, %v693_v22  ;;  %v2027_v48 = vmax.f32 %v8156_v12, %v8164_v46  ;;  %v696_v32 = vadd.f32 %v7847_v10, %v619_v5 }
 0x569   : > { %v2135_v2 = vmul.f32 1.442695, %v2055_v39  ;;  %v2137_v37 = vmul.f32 1.442695, %v2056_v11  ;;  %v2057_v0 = vsub.f32 %v7924_v15, %v1972_v27  ;;  %v2058_v34 = vsub.f32 %v7926_v53, %v1972_v27  ;;  %2244 = vadd.xlane.f32.xlu0 %v2243_v54 }
 0x56a   : > { %v2246_v47 = vadd.f32 %v8170_v26, %v8161_v42  ;;  %v2030_v22 = vmax.f32 %v8176_v31, %v8179_v20  ;;  %v697_v39 = vadd.f32 %v7850_v59, %v620_v8  ;;  %v8200_v27 = vadd.f32 %v8066_v28, %v695_v21 }
 0x56b   : > { %6060 = vpow2.f32 %v2135_v2  ;;  %v2139_v15 = vmul.f32 1.442695, %v2057_v0  ;;  %v2141_v53 = vmul.f32 1.442695, %v2058_v34  ;;  %v8211_v28 = vadd.f32 %v8068_v43, %v696_v32 }
 0x56c   : > { %6062 = vpow2.f32 %v2137_v37  ;;  %2247 = vadd.xlane.f32.xlu1 %v2246_v47  ;;  %v2033_v21 = vmax.f32 %v8194_v49, %v8200_v27 }
 0x56d   : > { %v8186_v30 = vpop.eup %6052  ;;  %6064 = vpow2.f32 %v2139_v15  ;;  %2028 = vmax.xlane.f32.xlu0 %v2027_v48 }
 0x56e   : > { %v8189_v50 = vpop.eup %6054  ;;  %6066 = vpow2.f32 %v2141_v53  ;;  %v1975_v11 = vpop.xlane.xlu0 %1974 }
 0x56f   : > { %v8197_v54 = vpop.eup %6056  ;;  %v2059_v10 = vsub.f32 %v7936_v57, %v1975_v11  ;;  %v2060_v2 = vsub.f32 %v7938_v62, %v1975_v11  ;;  %v2249_v37 = vadd.f32 %v8189_v50, %v8186_v30  ;;  %v8214_v57 = vadd.f32 %v8070_v24, %v697_v39 }
 0x570   : > { %v8206_v0 = vpop.eup %6058  ;;  %2031 = vmax.xlane.f32.xlu1 %v2030_v22  ;;  %v1978_v7 = vpop.xlane.xlu1 %1977 }
 0x571   : > { %v2143_v4 = vmul.f32 1.442695, %v2059_v10  ;;  %v2145_v59 = vmul.f32 1.442695, %v2060_v2  ;;  %v2061_v34 = vsub.f32 %v7940_v33, %v1978_v7  ;;  %v2062_v5 = vsub.f32 %v7942_v60, %v1978_v7  ;;  %2250 = vadd.xlane.f32.xlu0 %v2249_v37 }
 0x572   : > { %v2252_v62 = vadd.f32 %v8206_v0, %v8197_v54  ;;  %v2036_v60 = vmax.f32 %v8211_v28, %v8214_v57 }
 0x573   : > { %6068 = vpow2.f32 %v2143_v4  ;;  %v2147_v47 = vmul.f32 1.442695, %v2061_v34  ;;  %v2149_v48 = vmul.f32 1.442695, %v2062_v5 }
 0x574   : > { %6070 = vpow2.f32 %v2145_v59  ;;  %2253 = vadd.xlane.f32.xlu1 %v2252_v62 }
 0x575   : > { %v8220_v33 = vpop.eup %6060  ;;  %6072 = vpow2.f32 %v2147_v47  ;;  %2034 = vmax.xlane.f32.xlu0 %v2033_v21 }
 0x576   : > { %v8222_v43 = vpop.eup %6062  ;;  %6074 = vpow2.f32 %v2149_v48  ;;  %v1981_v24 = vpop.xlane.xlu0 %1980 }
 0x577   : > { %v8226_v8 = vpop.eup %6064  ;;  %v2063_v15 = vsub.f32 %v7952_v17, %v1981_v24  ;;  %v2064_v53 = vsub.f32 %v7954_v58, %v1981_v24  ;;  %v2255_v32 = vadd.f32 %v8222_v43, %v8220_v33 }
 0x578   : > { %v8232_v22 = vpop.eup %6066  ;;  %2037 = vmax.xlane.f32.xlu1 %v2036_v60  ;;  %v1984_v39 = vpop.xlane.xlu1 %1983 }
 0x579   : > { %v2151_v11 = vmul.f32 1.442695, %v2063_v15  ;;  %v2153_v10 = vmul.f32 1.442695, %v2064_v53  ;;  %v2065_v2 = vsub.f32 %v7956_v38, %v1984_v39  ;;  %v2066_v37 = vsub.f32 %v7958_v36, %v1984_v39  ;;  %2256 = vadd.xlane.f32.xlu0 %v2255_v32 }
 0x57a   : > { %v2258_v7 = vadd.f32 %v8232_v22, %v8226_v8 }
 0x57b   : > { %6076 = vpow2.f32 %v2151_v11  ;;  %v2155_v17 = vmul.f32 1.442695, %v2065_v2  ;;  %v2157_v58 = vmul.f32 1.442695, %v2066_v37 }
 0x57c   : > { %6078 = vpow2.f32 %v2153_v10  ;;  %2259 = vadd.xlane.f32.xlu1 %v2258_v7 }
 0x57d   : > { %v8238_v4 = vpop.eup %6068  ;;  %6080 = vpow2.f32 %v2155_v17 }
 0x57e   : > { %v8240_v59 = vpop.eup %6070  ;;  %6082 = vpow2.f32 %v2157_v58  ;;  %v1987_v34 = vpop.xlane.xlu0 %1986 }
 0x57f   : > { %v8242_v5 = vpop.eup %6072  ;;  %v2067_v38 = vsub.f32 %v7968_v35, %v1987_v34  ;;  %v2068_v36 = vsub.f32 %v7970_v19, %v1987_v34  ;;  %v2261_v62 = vadd.f32 %v8240_v59, %v8238_v4 }
 0x580   : > { %v8248_v21 = vpop.eup %6074  ;;  %v1990_v47 = vpop.xlane.xlu1 %1989 }
 0x581   : > { %v2159_v48 = vmul.f32 1.442695, %v2067_v38  ;;  %v2161_v60 = vmul.f32 1.442695, %v2068_v36  ;;  %v2069_v24 = vsub.f32 %v7972_v9, %v1990_v47  ;;  %v2070_v15 = vsub.f32 %v7974_v45, %v1990_v47  ;;  %2262 = vadd.xlane.f32.xlu0 %v2261_v62  ;;  %v10293_v45 = vld [vmem:[#allocation56_spill] sm:$0xff]  ;;  %v10294_v38 = vld [vmem:[#allocation57_spill] sm:$0xff] }
 0x582   : > { %v2264_v53 = vadd.f32 %v8248_v21, %v8242_v5  ;;  %v10295_v62 = vld [vmem:[#allocation58_spill] sm:$0xff] }
 0x583   : > { %6084 = vpow2.f32 %v2159_v48  ;;  %v2163_v35 = vmul.f32 1.442695, %v2069_v24  ;;  %v2165_v32 = vmul.f32 1.442695, %v2070_v15 }
 0x584   : > { %6086 = vpow2.f32 %v2161_v60  ;;  %2265 = vadd.xlane.f32.xlu1 %v2264_v53 }
 0x585   : > { %v8254_v19 = vpop.eup %6076  ;;  %6088 = vpow2.f32 %v2163_v35 }
 0x586   : > { %v8256_v39 = vpop.eup %6078  ;;  %6090 = vpow2.f32 %v2165_v32  ;;  %v1993_v11 = vpop.xlane.xlu0 %1992  ;;  %v10298_v32 = vld [vmem:[#allocation59_spill] sm:$0xff] }
 0x587   : > { %v8258_v10 = vpop.eup %6080  ;;  %v2071_v9 = vsub.f32 %v7984_v13, %v1993_v11  ;;  %v2072_v2 = vsub.f32 %v10293_v45, %v1993_v11  ;;  %v2267_v37 = vadd.f32 %v8256_v39, %v8254_v19 }
 0x588   : > { %v8264_v7 = vpop.eup %6082  ;;  %v1996_v17 = vpop.xlane.xlu1 %1995 }
 0x589   : > { %v2167_v58 = vmul.f32 1.442695, %v2071_v9  ;;  %v2169_v34 = vmul.f32 1.442695, %v2072_v2  ;;  %v2073_v36 = vsub.f32 %v10294_v38, %v1996_v17  ;;  %v2074_v47 = vsub.f32 %v10295_v62, %v1996_v17  ;;  %2268 = vadd.xlane.f32.xlu0 %v2267_v37  ;;  %v10299_v9 = vld [vmem:[#allocation60_spill] sm:$0xff]  ;;  %v10301_v38 = vld [vmem:[#allocation61_spill] sm:$0xff] }
 0x58a   : > { %v2270_v48 = vadd.f32 %v8264_v7, %v8258_v10  ;;  %v10302_v62 = vld [vmem:[#allocation62_spill] sm:$0xff] }
 0x58b   : > { %6092 = vpow2.f32 %v2167_v58  ;;  %v2171_v13 = vmul.f32 1.442695, %v2073_v36  ;;  %v2173_v60 = vmul.f32 1.442695, %v2074_v47 }
 0x58c   : > { %6094 = vpow2.f32 %v2169_v34  ;;  %2271 = vadd.xlane.f32.xlu1 %v2270_v48 }
 0x58d   : > { %v8270_v24 = vpop.eup %6084  ;;  %6096 = vpow2.f32 %v2171_v13 }
 0x58e   : > { %10296 = vst [vmem:[#allocation56_spill] sm:$0xff] %v8270_v24  ;;  %v8272_v15 = vpop.eup %6086  ;;  %6098 = vpow2.f32 %v2173_v60  ;;  %v1999_v53 = vpop.xlane.xlu0 %1998 }
 0x58f   : > { %v8274_v35 = vpop.eup %6088  ;;  %v2075_v11 = vsub.f32 %v10298_v32, %v1999_v53  ;;  %v2076_v45 = vsub.f32 %v10299_v9, %v1999_v53  ;;  %v2273_v2 = vadd.f32 %v8272_v15, %v8270_v24  ;;  %v10310_v24 = vld [vmem:[#allocation66_spill] sm:$0xff] }
 0x590   : > { %10297 = vst [vmem:[#allocation57_spill] sm:$0xff] %v8274_v35  ;;  %v8280_v37 = vpop.eup %6090  ;;  %v2002_v17 = vpop.xlane.xlu1 %2001 }
 0x591   : > { %10300 = vst [vmem:[#allocation58_spill] sm:$0xff] %v8280_v37  ;;  %v2175_v58 = vmul.f32 1.442695, %v2075_v11  ;;  %v2177_v34 = vmul.f32 1.442695, %v2076_v45  ;;  %v2077_v36 = vsub.f32 %v10301_v38, %v2002_v17  ;;  %v2078_v47 = vsub.f32 %v10302_v62, %v2002_v17  ;;  %2274 = vadd.xlane.f32.xlu0 %v2273_v2  ;;  %v10306_v45 = vld [vmem:[#allocation63_spill] sm:$0xff] }
 0x592   : > { %v2276_v48 = vadd.f32 %v8280_v37, %v8274_v35  ;;  %v10307_v2 = vld [vmem:[#allocation64_spill] sm:$0xff] }
 0x593   : > { %6100 = vpow2.f32 %v2175_v58  ;;  %v2179_v13 = vmul.f32 1.442695, %v2077_v36  ;;  %v2181_v60 = vmul.f32 1.442695, %v2078_v47 }
 0x594   : > { %6102 = vpow2.f32 %v2177_v34  ;;  %2277 = vadd.xlane.f32.xlu1 %v2276_v48  ;;  %v10309_v48 = vld [vmem:[#allocation65_spill] sm:$0xff] }
 0x595   : > { %v8286_v53 = vpop.eup %6092  ;;  %6104 = vpow2.f32 %v2179_v13 }
 0x596   : > { %10303 = vst [vmem:[#allocation59_spill] sm:$0xff] %v8286_v53  ;;  %v8288_v32 = vpop.eup %6094  ;;  %6106 = vpow2.f32 %v2181_v60  ;;  %v2005_v11 = vpop.xlane.xlu0 %2004 }
 0x597   : > { %10304 = vst [vmem:[#allocation60_spill] sm:$0xff] %v8288_v32  ;;  %v8290_v9 = vpop.eup %6096  ;;  %v2079_v17 = vsub.f32 %v10306_v45, %v2005_v11  ;;  %v2080_v38 = vsub.f32 %v10307_v2, %v2005_v11  ;;  %v2279_v58 = vadd.f32 %v8288_v32, %v8286_v53  ;;  %v10313_v53 = vld [vmem:[#allocation69_spill] sm:$0xff] }
 0x598   : > { %10305 = vst [vmem:[#allocation61_spill] sm:$0xff] %v8290_v9  ;;  %v8296_v36 = vpop.eup %6098  ;;  %v2008_v34 = vpop.xlane.xlu1 %2007 }
 0x599   : > { %10308 = vst [vmem:[#allocation62_spill] sm:$0xff] %v8296_v36  ;;  %v2183_v62 = vmul.f32 1.442695, %v2079_v17  ;;  %v2185_v47 = vmul.f32 1.442695, %v2080_v38  ;;  %v2081_v13 = vsub.f32 %v10309_v48, %v2008_v34  ;;  %v2082_v35 = vsub.f32 %v10310_v24, %v2008_v34  ;;  %2280 = vadd.xlane.f32.xlu0 %v2279_v58  ;;  %v10311_v48 = vld [vmem:[#allocation67_spill] sm:$0xff] }
 0x59a   : > { %v2282_v60 = vadd.f32 %v8296_v36, %v8290_v9  ;;  %v10312_v58 = vld [vmem:[#allocation68_spill] sm:$0xff]  ;;  %v10314_v9 = vld [vmem:[#allocation70_spill] sm:$0xff] }
 0x59b   : > { %6108 = vpow2.f32 %v2183_v62  ;;  %v2187_v45 = vmul.f32 1.442695, %v2081_v13  ;;  %v2189_v37 = vmul.f32 1.442695, %v2082_v35 }
 0x59c   : > { %6110 = vpow2.f32 %v2185_v47  ;;  %2283 = vadd.xlane.f32.xlu1 %v2282_v60 }
 0x59d   : > { %v8302_v11 = vpop.eup %6100  ;;  %6112 = vpow2.f32 %v2187_v45 }
 0x59e   : > { %v8304_v2 = vpop.eup %6102  ;;  %6114 = vpow2.f32 %v2189_v37  ;;  %v2011_v17 = vpop.xlane.xlu0 %2010 }
 0x59f   : > { %v8306_v38 = vpop.eup %6104  ;;  %v2083_v24 = vsub.f32 %v10311_v48, %v2011_v17  ;;  %v2084_v34 = vsub.f32 %v10312_v58, %v2011_v17  ;;  %v2285_v62 = vadd.f32 %v8304_v2, %v8302_v11 }
 0x5a0   : > { %v8312_v13 = vpop.eup %6106  ;;  %v2014_v35 = vpop.xlane.xlu1 %2013 }
 0x5a1   : > { %v2191_v47 = vmul.f32 1.442695, %v2083_v24  ;;  %v2193_v60 = vmul.f32 1.442695, %v2084_v34  ;;  %v2085_v45 = vsub.f32 %v10313_v53, %v2014_v35  ;;  %v2086_v36 = vsub.f32 %v10314_v9, %v2014_v35  ;;  %2286 = vadd.xlane.f32.xlu0 %v2285_v62 }
 0x5a2   : > { %v2288_v37 = vadd.f32 %v8312_v13, %v8306_v38 }
 0x5a3   : > { %6116 = vpow2.f32 %v2191_v47  ;;  %v2195_v48 = vmul.f32 1.442695, %v2085_v45  ;;  %v2197_v32 = vmul.f32 1.442695, %v2086_v36  ;;  %v5916_v45 = vld [vmem:[#allocation10] sm:$0xff]  }
 0x5a4   : > { %6118 = vpow2.f32 %v2193_v60  ;;  %2289 = vadd.xlane.f32.xlu1 %v2288_v37  ;;  %v5917_v37 = vld [vmem:[#allocation10 + $0x8] sm:$0xff]   ;;  %5723 = vmatprep.subr.bf16.mxu1 %v5916_v45 }
 0x5a5   : > { %v8318_v17 = vpop.eup %6108  ;;  %6120 = vpow2.f32 %v2195_v48  ;;  %5724 = vmatpush3.bf16.msra.mxu1 %v5916_v45  ;;  %v5918_v48 = vld [vmem:[#allocation10 + $0x10] sm:$0xff]  }
 0x5a6   : > { %10315 = vst [vmem:[#allocation63_spill] sm:$0xff] %v8318_v17  ;;  %v8320_v58 = vpop.eup %6110  ;;  %6122 = vpow2.f32 %v2197_v32  ;;  %5725 = vmatprep.subr.bf16.mxu1 %v5917_v37 }
 0x5a7   : > { %v8322_v24 = vpop.eup %6112  ;;  %v2291_v53 = vadd.f32 %v8320_v58, %v8318_v17 }
 0x5a8   : > { %10316 = vst [vmem:[#allocation64_spill] sm:$0xff] %v8322_v24  ;;  %v8326_v9 = vpop.eup %6114 }
 0x5a9   : > { %10317 = vst [vmem:[#allocation65_spill] sm:$0xff] %v8326_v9  ;;  %2292 = vadd.xlane.f32.xlu0 %v2291_v53  ;;  %v2294_v34 = vadd.f32 %v8326_v9, %v8322_v24  ;;  %5726 = vmatpush3.bf16.msra.mxu1 %v5917_v37 }
 0x5aa   : > { %5727 = vmatprep.subr.bf16.mxu1 %v5918_v48 }
 0x5ab   : > { %2295 = vadd.xlane.f32.xlu1 %v2294_v34 }
 0x5ad   : > { %v8330_v36 = vpop.eup %6116  ;;  %5728 = vmatpush3.bf16.msra.mxu1 %v5918_v48 }
 0x5ae   : > { %10318 = vst [vmem:[#allocation66_spill] sm:$0xff] %v8330_v36  ;;  %v8332_v62 = vpop.eup %6118 }
 0x5af   : > { %10319 = vst [vmem:[#allocation67_spill] sm:$0xff] %v8332_v62  ;;  %v8334_v35 = vpop.eup %6120  ;;  %v2297_v32 = vadd.f32 %v8332_v62, %v8330_v36 }
 0x5b0   : > { %10320 = vst [vmem:[#allocation68_spill] sm:$0xff] %v8334_v35  ;;  %v8338_v47 = vpop.eup %6122 }
 0x5b1   : > { %10321 = vst [vmem:[#allocation69_spill] sm:$0xff] %v8338_v47  ;;  %2298 = vadd.xlane.f32.xlu0 %v2297_v32  ;;  %v2300_v60 = vadd.f32 %v8338_v47, %v8334_v35 }
 0x5b3   : > { %2301 = vadd.xlane.f32.xlu1 %v2300_v60 }
 0x5e6   : > { %v2233_v53 = vpop.xlane.xlu0 %2232 }
 0x5e7   : > { %6124 = vrcp.f32 %v2233_v53 }
 0x5e9   : > { %v2236_v34 = vpop.xlane.xlu1 %2235 }
 0x5ea   : > { %6126 = vrcp.f32 %v2236_v34  ;;  %v2017_v36 = vpop.xlane.xlu0 %2016 }
 0x5eb   : > { %v2087_v32 = vsub.f32 %v8086_v52, %v2017_v36  ;;  %v2088_v62 = vsub.f32 %v8092_v44, %v2017_v36 }
 0x5ed   : > { %v2199_v35 = vmul.f32 1.442695, %v2087_v32  ;;  %v2201_v60 = vmul.f32 1.442695, %v2088_v62  ;;  %v2020_v47 = vpop.xlane.xlu1 %2019 }
 0x5ee   : > { %v2089_v17 = vsub.f32 %v8104_v25, %v2020_v47  ;;  %v2090_v45 = vsub.f32 %v8107_v18, %v2020_v47  ;;  %v2239_v24 = vpop.xlane.xlu0 %2238 }
 0x5ef   : > { %6128 = vpow2.f32 %v2199_v35 }
 0x5f0   : > { %6130 = vpow2.f32 %v2201_v60  ;;  %v2203_v37 = vmul.f32 1.442695, %v2089_v17  ;;  %v2205_v48 = vmul.f32 1.442695, %v2090_v45 }
 0x5f1   : > { %v6125_v53 = vpop.eup %6124  ;;  %6132 = vrcp.f32 %v2239_v24  ;;  %v2242_v34 = vpop.xlane.xlu1 %2241 }
 0x5f2   : > { %6134 = vpow2.f32 %v2203_v37  ;;  %v2023_v9 = vpop.xlane.xlu0 %2022  ;;  %v2359_v25 = vmul.f32 %v6125_v53, %v8082_v6  ;;  %v2360_v18 = vmul.f32 %v6125_v53, %v8084_v56 }
 0x5f3   : > { %6136 = vpow2.f32 %v2205_v48  ;;  %v2091_v52 = vsub.f32 %v8120_v16, %v2023_v9  ;;  %v2092_v44 = vsub.f32 %v8128_v61, %v2023_v9 }
 0x5f4   : > { %v6127_v36 = vpop.eup %6126  ;;  %6138 = vrcp.f32 %v2242_v34 }
 0x5f5   : > { %v2361_v62 = vmul.f32 %v6127_v36, %v8090_v40  ;;  %v2207_v17 = vmul.f32 1.442695, %v2091_v52  ;;  %v2209_v35 = vmul.f32 1.442695, %v2092_v44  ;;  %v2026_v47 = vpop.xlane.xlu1 %2025  ;;  %v2362_v24 = vmul.f32 %v6127_v36, %v8098_v14 }
 0x5f6   : > { %v2093_v32 = vsub.f32 %v8140_v41, %v2026_v47  ;;  %v2094_v60 = vsub.f32 %v8143_v55, %v2026_v47  ;;  %v2245_v16 = vpop.xlane.xlu0 %2244 }
 0x5f7   : > { %6140 = vpow2.f32 %v2207_v17  ;;  %v2424_v61 = vpack.c.bf16 %v2362_v24, %v2360_v18  ;;  %v2423_v9 = vpack.c.bf16 %v2361_v62, %v2359_v25 }
 0x5f8   : > { %6142 = vpow2.f32 %v2209_v35  ;;  %v2211_v6 = vmul.f32 1.442695, %v2093_v32  ;;  %v2213_v45 = vmul.f32 1.442695, %v2094_v60 }
 0x5f9   : > { %v8354_v37 = vpop.eup %6128  ;;  %6144 = vrcp.f32 %v2245_v16  ;;  %v2248_v56 = vpop.xlane.xlu1 %2247  ;;  %2487 = vmatprep.mubr.bf16.mxu0 %v2424_v61 }
 0x5fa   : > { %v8356_v40 = vpop.eup %6130  ;;  %6146 = vpow2.f32 %v2211_v6  ;;  %2488 = vmatmul.mubr.bf16.vlgmr.msra.gmra.mrb[64].mxu0 %v2423_v9  ;;  %v2029_v14 = vpop.xlane.xlu0 %2028 }
 0x5fb   : > { %v6133_v41 = vpop.eup %6132  ;;  %6148 = vpow2.f32 %v2213_v45  ;;  %v2095_v55 = vsub.f32 %v8156_v12, %v2029_v14  ;;  %v2096_v48 = vsub.f32 %v8164_v46, %v2029_v14  ;;  %v2303_v53 = vadd.f32 %v8356_v40, %v8354_v37 }
 0x5fc   : > { %v8362_v34 = vpop.eup %6134  ;;  %6150 = vrcp.f32 %v2248_v56  ;;  %v2364_v35 = vmul.f32 %v6133_v41, %v8117_v51  ;;  %v2363_v24 = vmul.f32 %v6133_v41, %v8114_v1 }
 0x5fd   : > { %v8364_v52 = vpop.eup %6136  ;;  %v2215_v44 = vmul.f32 1.442695, %v2095_v55  ;;  %v2217_v36 = vmul.f32 1.442695, %v2096_v48  ;;  %v2032_v25 = vpop.xlane.xlu1 %2031  ;;  %2304 = vadd.xlane.f32.xlu0 %v2303_v53 }
 0x5fe   : > { %v6139_v18 = vpop.eup %6138  ;;  %v2097_v62 = vsub.f32 %v8176_v31, %v2032_v25  ;;  %v2098_v17 = vsub.f32 %v8179_v20, %v2032_v25  ;;  %v2251_v12 = vpop.xlane.xlu0 %2250  ;;  %v2306_v46 = vadd.f32 %v8364_v52, %v8362_v34 }
 0x5ff   : > { %6152 = vpow2.f32 %v2215_v44  ;;  %v2366_v47 = vmul.f32 %v6139_v18, %v8134_v23  ;;  %v2365_v32 = vmul.f32 %v6139_v18, %v8125_v3 }
 0x600   : > { %6154 = vpow2.f32 %v2217_v36  ;;  %v2219_v60 = vmul.f32 1.442695, %v2097_v62  ;;  %v2221_v16 = vmul.f32 1.442695, %v2098_v17  ;;  %2307 = vadd.xlane.f32.xlu1 %v2306_v46 }
 0x601   : > { %v8374_v31 = vpop.eup %6140  ;;  %6156 = vrcp.f32 %v2251_v12  ;;  %v2254_v20 = vpop.xlane.xlu1 %2253  ;;  %v2426_v61 = vpack.c.bf16 %v2366_v47, %v2364_v35  ;;  %v2425_v9 = vpack.c.bf16 %v2365_v32, %v2363_v24 }
 0x602   : > { %v8376_v6 = vpop.eup %6142  ;;  %6158 = vpow2.f32 %v2219_v60  ;;  %v2035_v51 = vpop.xlane.xlu0 %2034 }
 0x603   : > { %v6145_v45 = vpop.eup %6144  ;;  %6160 = vpow2.f32 %v2221_v16  ;;  %2495 = vmatprep.mubr.bf16.mxu0 %v2426_v61  ;;  %v2099_v1 = vsub.f32 %v8194_v49, %v2035_v51  ;;  %v2100_v3 = vsub.f32 %v8200_v27, %v2035_v51  ;;  %v2309_v23 = vadd.f32 %v8376_v6, %v8374_v31 }
 0x604   : > { %v8382_v56 = vpop.eup %6146  ;;  %6162 = vrcp.f32 %v2254_v20  ;;  %2496 = vmatmul.mubr.bf16.gmra.mrb[68].mxu0 %v2425_v9  ;;  %v2368_v25 = vmul.f32 %v6145_v45, %v8153_v63  ;;  %v2367_v62 = vmul.f32 %v6145_v45, %v8150_v29  ;;  %v5919_v20 = vld [vmem:[#allocation10 + $0x18] sm:$0xff]  }
 0x605   : > { %v8384_v14 = vpop.eup %6148  ;;  %v2223_v41 = vmul.f32 1.442695, %v2099_v1  ;;  %v2225_v55 = vmul.f32 1.442695, %v2100_v3  ;;  %v2038_v48 = vpop.xlane.xlu1 %2037  ;;  %2310 = vadd.xlane.f32.xlu0 %v2309_v23  ;;  %5729 = vmatprep.subr.bf16.mxu1 %v5919_v20 }
 0x606   : > { %v6151_v53 = vpop.eup %6150  ;;  %v2101_v44 = vsub.f32 %v8211_v28, %v2038_v48  ;;  %v2102_v49 = vsub.f32 %v8214_v57, %v2038_v48  ;;  %v2312_v27 = vadd.f32 %v8384_v14, %v8382_v56  ;;  %v2257_v36 = vpop.xlane.xlu0 %2256  ;;  %5730 = vmatpush3.bf16.msra.mxu1 %v5919_v20 }
 0x607   : > { %6164 = vpow2.f32 %v2223_v41  ;;  %v2370_v18 = vmul.f32 %v6151_v53, %v8170_v26  ;;  %v2369_v17 = vmul.f32 %v6151_v53, %v8161_v42 }
 0x608   : > { %6166 = vpow2.f32 %v2225_v55  ;;  %v2227_v12 = vmul.f32 1.442695, %v2101_v44  ;;  %v2229_v46 = vmul.f32 1.442695, %v2102_v49  ;;  %2313 = vadd.xlane.f32.xlu1 %v2312_v27 }
 0x609   : > { %v8394_v28 = vpop.eup %6152  ;;  %6168 = vrcp.f32 %v2257_v36  ;;  %v2428_v57 = vpack.c.bf16 %v2370_v18, %v2368_v25  ;;  %v2260_v35 = vpop.xlane.xlu1 %2259  ;;  %v2427_v47 = vpack.c.bf16 %v2369_v17, %v2367_v62 }
 0x60a   : > { %v8396_v24 = vpop.eup %6154  ;;  %6170 = vpow2.f32 %v2227_v12 }
 0x60b   : > { %v6157_v63 = vpop.eup %6156  ;;  %6172 = vpow2.f32 %v2229_v46  ;;  %2503 = vmatprep.mubr.bf16.mxu0 %v2428_v57  ;;  %v2315_v29 = vadd.f32 %v8396_v24, %v8394_v28 }
 0x60c   : > { %v8400_v42 = vpop.eup %6158  ;;  %6174 = vrcp.f32 %v2260_v35  ;;  %2504 = vmatmul.mubr.bf16.gmra.mrb[72].mxu0 %v2427_v47  ;;  %v2372_v61 = vmul.f32 %v6157_v63, %v8189_v50  ;;  %v2371_v51 = vmul.f32 %v6157_v63, %v8186_v30 }
 0x60d   : > { %v8402_v26 = vpop.eup %6160  ;;  %2316 = vadd.xlane.f32.xlu0 %v2315_v29 }
 0x60e   : > { %v6163_v32 = vpop.eup %6162  ;;  %v2318_v60 = vadd.f32 %v8402_v26, %v8400_v42  ;;  %v2263_v16 = vpop.xlane.xlu0 %2262 }
 0x60f   : > { %v2374_v9 = vmul.f32 %v6163_v32, %v8206_v0  ;;  %v2373_v45 = vmul.f32 %v6163_v32, %v8197_v54  ;;  %6176 = vrcp.f32 %v2263_v16 }
 0x610   : > { %2319 = vadd.xlane.f32.xlu1 %v2318_v60 }
 0x611   : > { %v8410_v1 = vpop.eup %6164  ;;  %v2430_v3 = vpack.c.bf16 %v2374_v9, %v2372_v61  ;;  %v2266_v23 = vpop.xlane.xlu1 %2265  ;;  %v2429_v41 = vpack.c.bf16 %v2373_v45, %v2371_v51 }
 0x612   : > { %v8412_v55 = vpop.eup %6166  ;;  %6178 = vrcp.f32 %v2266_v23  ;;  %v10322_v23 = vld [vmem:[#allocation58_spill] sm:$0xff] }
 0x613   : > { %v6169_v48 = vpop.eup %6168  ;;  %2511 = vmatprep.mubr.bf16.mxu0 %v2430_v3  ;;  %v2321_v50 = vadd.f32 %v8412_v55, %v8410_v1 }
 0x614   : > { %v8416_v30 = vpop.eup %6170  ;;  %2512 = vmatmul.mubr.bf16.gmra.mrb[76].mxu0 %v2429_v41  ;;  %v2376_v49 = vmul.f32 %v6169_v48, %v8222_v43  ;;  %v2375_v36 = vmul.f32 %v6169_v48, %v8220_v33  ;;  %v10323_v41 = vld [vmem:[#allocation57_spill] sm:$0xff] }
 0x615   : > { %v8418_v54 = vpop.eup %6172  ;;  %2322 = vadd.xlane.f32.xlu0 %v2321_v50 }
 0x616   : > { %v6175_v0 = vpop.eup %6174  ;;  %v2324_v53 = vadd.f32 %v8418_v54, %v8416_v30  ;;  %v2269_v44 = vpop.xlane.xlu0 %2268 }
 0x617   : > { %v2378_v27 = vmul.f32 %v6175_v0, %v8232_v22  ;;  %v2377_v25 = vmul.f32 %v6175_v0, %v8226_v8  ;;  %6180 = vrcp.f32 %v2269_v44  ;;  %v5920_v8 = vld [vmem:[#allocation10 + $0x20] sm:$0xff]   ;;  %v5921_v0 = vld [vmem:[#allocation10 + $0x28] sm:$0xff]  }
 0x618   : > { %2325 = vadd.xlane.f32.xlu1 %v2324_v53  ;;  %5731 = vmatprep.subr.bf16.mxu1 %v5920_v8 }
 0x619   : > { %v2272_v18 = vpop.xlane.xlu1 %2271  ;;  %v2432_v62 = vpack.c.bf16 %v2378_v27, %v2376_v49  ;;  %v2431_v17 = vpack.c.bf16 %v2377_v25, %v2375_v36  ;;  %v6177_v12 = vpop.eup %6176  ;;  %5732 = vmatpush3.bf16.msra.mxu1 %v5920_v8  ;;  %v10326_v25 = vld [vmem:[#allocation62_spill] sm:$0xff] }
 0x61a   : > { %6182 = vrcp.f32 %v2272_v18  ;;  %v2380_v57 = vmul.f32 %v6177_v12, %v8240_v59  ;;  %v2379_v33 = vmul.f32 %v6177_v12, %v8238_v4  ;;  %5733 = vmatprep.subr.bf16.mxu1 %v5921_v0 }
 0x61b   : > { %2519 = vmatprep.mubr.bf16.mxu0 %v2432_v62  ;;  %v10327_v62 = vld [vmem:[#allocation61_spill] sm:$0xff] }
 0x61c   : > { %v6179_v46 = vpop.eup %6178  ;;  %2520 = vmatmul.mubr.bf16.gmra.mrb[80].mxu0 %v2431_v17 }
 0x61d   : > { %v2382_v43 = vmul.f32 %v6179_v46, %v8248_v21  ;;  %v2381_v22 = vmul.f32 %v6179_v46, %v8242_v5  ;;  %5734 = vmatpush3.bf16.msra.mxu1 %v5921_v0  ;;  %v10328_v46 = vld [vmem:[#allocation59_spill] sm:$0xff] }
 0x61e   : > { %v2275_v35 = vpop.xlane.xlu0 %2274 }
 0x61f   : > { %v2434_v47 = vpack.c.bf16 %v2382_v43, %v2380_v57  ;;  %6184 = vrcp.f32 %v2275_v35  ;;  %v2433_v63 = vpack.c.bf16 %v2381_v22, %v2379_v33  ;;  %v5922_v43 = vld [vmem:[#allocation10 + $0x30] sm:$0xff]  }
 0x620   : > { %5735 = vmatprep.subr.bf16.mxu1 %v5922_v43 }
 0x621   : > { %v2278_v29 = vpop.xlane.xlu1 %2277  ;;  %2527 = vmatprep.mubr.bf16.mxu0 %v2434_v47  ;;  %v6181_v32 = vpop.eup %6180  ;;  %5736 = vmatpush3.bf16.msra.mxu1 %v5922_v43 }
 0x622   : > { %6186 = vrcp.f32 %v2278_v29  ;;  %v2384_v59 = vmul.f32 %v6181_v32, %v8256_v39  ;;  %v2383_v4 = vmul.f32 %v6181_v32, %v8254_v19 }
 0x624   : > { %v6183_v60 = vpop.eup %6182  ;;  %2528 = vmatmul.mubr.bf16.gmra.mrb[84].mxu0 %v2433_v63 }
 0x625   : > { %v2386_v21 = vmul.f32 %v6183_v60, %v8264_v7  ;;  %v2385_v5 = vmul.f32 %v6183_v60, %v8258_v10  ;;  %v10324_v10 = vld [vmem:[#allocation56_spill] sm:$0xff] }
 0x626   : > { %v2281_v16 = vpop.xlane.xlu0 %2280 }
 0x627   : > { %v2436_v20 = vpack.c.bf16 %v2386_v21, %v2384_v59  ;;  %6188 = vrcp.f32 %v2281_v16  ;;  %v2435_v61 = vpack.c.bf16 %v2385_v5, %v2383_v4 }
 0x629   : > { %v2284_v9 = vpop.xlane.xlu1 %2283  ;;  %2535 = vmatprep.mubr.bf16.mxu0 %v2436_v20  ;;  %v6185_v51 = vpop.eup %6184 }
 0x62a   : > { %6190 = vrcp.f32 %v2284_v9  ;;  %v2388_v3 = vmul.f32 %v6185_v51, %v8272_v15  ;;  %v2387_v50 = vmul.f32 %v6185_v51, %v10324_v10  ;;  %v10325_v15 = vld [vmem:[#allocation60_spill] sm:$0xff]  ;;  %v10329_v9 = vld [vmem:[#allocation65_spill] sm:$0xff] }
 0x62b   : > { %v10330_v51 = vld [vmem:[#allocation64_spill] sm:$0xff] }
 0x62c   : > { %v6187_v45 = vpop.eup %6186  ;;  %2536 = vmatmul.mubr.bf16.gmra.mrb[88].mxu0 %v2435_v61 }
 0x62d   : > { %v2390_v39 = vmul.f32 %v6187_v45, %v10322_v23  ;;  %v2389_v7 = vmul.f32 %v6187_v45, %v10323_v41  ;;  %v10332_v41 = vld [vmem:[#allocation67_spill] sm:$0xff] }
 0x62e   : > { %v2287_v48 = vpop.xlane.xlu0 %2286 }
 0x62f   : > { %v2438_v19 = vpack.c.bf16 %v2390_v39, %v2388_v3  ;;  %6192 = vrcp.f32 %v2287_v48  ;;  %v2437_v53 = vpack.c.bf16 %v2389_v7, %v2387_v50  ;;  %v10333_v48 = vld [vmem:[#allocation69_spill] sm:$0xff]  ;;  %v10334_v50 = vld [vmem:[#allocation68_spill] sm:$0xff] }
 0x631   : > { %v2290_v44 = vpop.xlane.xlu1 %2289  ;;  %2543 = vmatprep.mubr.bf16.mxu0 %v2438_v19  ;;  %v6189_v49 = vpop.eup %6188  ;;  %v5923_v19 = vld [vmem:[#allocation10 + $0x38] sm:$0xff]  }
 0x632   : > { %6194 = vrcp.f32 %v2290_v44  ;;  %v2392_v36 = vmul.f32 %v6189_v49, %v10325_v15  ;;  %v2391_v57 = vmul.f32 %v6189_v49, %v10328_v46  ;;  %5737 = vmatprep.subr.bf16.mxu1 %v5923_v19 }
 0x633   : > { %5738 = vmatpush3.bf16.msra.mxu1 %v5923_v19 }
 0x634   : > { %v6191_v27 = vpop.eup %6190  ;;  %2544 = vmatmul.mubr.bf16.gmra.mrb[92].mxu0 %v2437_v53  ;;  %v10335_v53 = vld [vmem:[#allocation66_spill] sm:$0xff] }
 0x635   : > { %v2394_v18 = vmul.f32 %v6191_v27, %v10326_v25  ;;  %v2393_v17 = vmul.f32 %v6191_v27, %v10327_v62 }
 0x636   : > { %v2293_v12 = vpop.xlane.xlu0 %2292 }
 0x637   : > { %6196 = vrcp.f32 %v2293_v12  ;;  %v2440_v22 = vpack.c.bf16 %v2394_v18, %v2392_v36  ;;  %v2439_v33 = vpack.c.bf16 %v2393_v17, %v2391_v57 }
 0x638   : > { %v2296_v35 = vpop.xlane.xlu1 %2295 }
 0x639   : > { %6198 = vrcp.f32 %v2296_v35  ;;  %2551 = vmatprep.mubr.bf16.mxu0 %v2440_v22  ;;  %v6193_v8 = vpop.eup %6192 }
 0x63a   : > { %v2396_v63 = vmul.f32 %v6193_v8, %v8304_v2  ;;  %v2395_v59 = vmul.f32 %v6193_v8, %v8302_v11 }
 0x63c   : > { %v6195_v47 = vpop.eup %6194  ;;  %2552 = vmatmul.mubr.bf16.gmra.mrb[96].mxu0 %v2439_v33 }
 0x63d   : > { %v2398_v29 = vmul.f32 %v6195_v47, %v8312_v13  ;;  %v2397_v32 = vmul.f32 %v6195_v47, %v8306_v38  ;;  %v10331_v38 = vld [vmem:[#allocation63_spill] sm:$0xff] }
 0x63e   : > { %v2299_v60 = vpop.xlane.xlu0 %2298 }
 0x63f   : > { %6200 = vrcp.f32 %v2299_v60  ;;  %v2442_v21 = vpack.c.bf16 %v2398_v29, %v2396_v63  ;;  %v2441_v16 = vpack.c.bf16 %v2397_v32, %v2395_v59 }
 0x640   : > { %v2302_v5 = vpop.xlane.xlu1 %2301 }
 0x641   : > { %v6197_v4 = vpop.eup %6196  ;;  %6202 = vrcp.f32 %v2302_v5  ;;  %2559 = vmatprep.mubr.bf16.mxu0 %v2442_v21 }
 0x642   : > { %v2400_v61 = vmul.f32 %v6197_v4, %v8320_v58  ;;  %v2399_v3 = vmul.f32 %v6197_v4, %v10331_v38 }
 0x643   : > { %v6199_v20 = vpop.eup %6198 }
 0x644   : > { %2560 = vmatmul.mubr.bf16.gmra.mrb[100].mxu0 %v2441_v16  ;;  %v2402_v2 = vmul.f32 %v6199_v20, %v10329_v9  ;;  %v2401_v13 = vmul.f32 %v6199_v20, %v10330_v51 }
 0x646   : > { %v2444_v45 = vpack.c.bf16 %v2402_v2, %v2400_v61  ;;  %v2443_v11 = vpack.c.bf16 %v2401_v13, %v2399_v3 }
 0x648   : > { %2567 = vmatprep.mubr.bf16.mxu0 %v2444_v45 }
 0x649   : > { %v6201_v23 = vpop.eup %6200 }
 0x64a   : > { %v2404_v7 = vmul.f32 %v6201_v23, %v10332_v41  ;;  %v2403_v44 = vmul.f32 %v6201_v23, %v10335_v53 }
 0x64b   : > { %v6203_v39 = vpop.eup %6202 }
 0x64c   : > { %2568 = vmatmul.mubr.bf16.gmra.mrb[104].mxu0 %v2443_v11  ;;  %v2406_v10 = vmul.f32 %v6203_v39, %v10333_v48  ;;  %v2405_v0 = vmul.f32 %v6203_v39, %v10334_v50 }
 0x64e   : > { %v2446_v58 = vpack.c.bf16 %v2406_v10, %v2404_v7  ;;  %v2445_v49 = vpack.c.bf16 %v2405_v0, %v2403_v44 }
 0x650   : > { %2575 = vmatprep.mubr.bf16.mxu0 %v2446_v58 }
 0x654   : > { %2576 = vmatmul.mubr.bf16.gmra.mrb[108].mxu0 %v2445_v49 }
 0x68a   : > { %v2305_v27 = vpop.xlane.xlu0 %2304 }
 0x68b   : > { %6204 = vrcp.f32 %v2305_v27 }
 0x68d   : > { %v2308_v15 = vpop.xlane.xlu1 %2307 }
 0x68e   : > { %6206 = vrcp.f32 %v2308_v15 }
 0x692   : > { %v2311_v36 = vpop.xlane.xlu0 %2310 }
 0x693   : > { %6208 = vrcp.f32 %v2311_v36 }
 0x695   : > { %v2314_v25 = vpop.xlane.xlu1 %2313  ;;  %v6205_v18 = vpop.eup %6204 }
 0x696   : > { %6210 = vrcp.f32 %v2314_v25  ;;  %v2408_v17 = vmul.f32 %v6205_v18, %v8356_v40  ;;  %v2407_v46 = vmul.f32 %v6205_v18, %v8354_v37 }
 0x698   : > { %v6207_v62 = vpop.eup %6206 }
 0x699   : > { %v2410_v12 = vmul.f32 %v6207_v62, %v8364_v52  ;;  %v2409_v57 = vmul.f32 %v6207_v62, %v8362_v34 }
 0x69a   : > { %v2317_v43 = vpop.xlane.xlu0 %2316 }
 0x69b   : > { %v2448_v22 = vpack.c.bf16 %v2410_v12, %v2408_v17  ;;  %v2447_v35 = vpack.c.bf16 %v2409_v57, %v2407_v46  ;;  %6212 = vrcp.f32 %v2317_v43 }
 0x69d   : > { %v2320_v33 = vpop.xlane.xlu1 %2319  ;;  %2583 = vmatprep.mubr.bf16.mxu0 %v2448_v22  ;;  %v6209_v8 = vpop.eup %6208 }
 0x69e   : > { %6214 = vrcp.f32 %v2320_v33  ;;  %2584 = vmatmul.mubr.bf16.gmra.mrb[112].mxu0 %v2447_v35  ;;  %v2412_v63 = vmul.f32 %v6209_v8, %v8376_v6  ;;  %v2411_v52 = vmul.f32 %v6209_v8, %v8374_v31 }
 0x6a0   : > { %v6211_v47 = vpop.eup %6210 }
 0x6a1   : > { %v2414_v40 = vmul.f32 %v6211_v47, %v8384_v14  ;;  %v2413_v37 = vmul.f32 %v6211_v47, %v8382_v56 }
 0x6a2   : > { %v2323_v29 = vpop.xlane.xlu0 %2322 }
 0x6a3   : > { %v2450_v34 = vpack.c.bf16 %v2414_v40, %v2412_v63  ;;  %v2449_v32 = vpack.c.bf16 %v2413_v37, %v2411_v52  ;;  %6216 = vrcp.f32 %v2323_v29 }
 0x6a5   : > { %v2326_v60 = vpop.xlane.xlu1 %2325  ;;  %2591 = vmatprep.mubr.bf16.mxu0 %v2450_v34  ;;  %v6213_v59 = vpop.eup %6212 }
 0x6a6   : > { %6218 = vrcp.f32 %v2326_v60  ;;  %2592 = vmatmul.mubr.bf16.gmra.mrb[116].mxu0 %v2449_v32  ;;  %v2416_v5 = vmul.f32 %v6213_v59, %v8396_v24  ;;  %v2415_v14 = vmul.f32 %v6213_v59, %v8394_v28  ;;  %v10336_v28 = vmov 0  }
 0x6a8   : > { %v6215_v21 = vpop.eup %6214 }
 0x6a9   : > { %v2418_v6 = vmul.f32 %v6215_v21, %v8402_v26  ;;  %v2417_v31 = vmul.f32 %v6215_v21, %v8400_v42 }
 0x6ab   : > { %v2452_v16 = vpack.c.bf16 %v2418_v6, %v2416_v5  ;;  %v2451_v56 = vpack.c.bf16 %v2417_v31, %v2415_v14 }
 0x6ad   : > { %2599 = vmatprep.mubr.bf16.mxu0 %v2452_v16  ;;  %v6217_v4 = vpop.eup %6216 }
 0x6ae   : > { %2600 = vmatmul.mubr.bf16.gmra.mrb[120].mxu0 %v2451_v56  ;;  %v2420_v61 = vmul.f32 %v6217_v4, %v8412_v55  ;;  %v2419_v2 = vmul.f32 %v6217_v4, %v8410_v1 }
 0x6b0   : > { %v6219_v20 = vpop.eup %6218 }
 0x6b1   : > { %v2422_v9 = vmul.f32 %v6219_v20, %v8418_v54  ;;  %v2421_v24 = vmul.f32 %v6219_v20, %v8416_v30 }
 0x6b3   : > { %v2454_v51 = vpack.c.bf16 %v2422_v9, %v2420_v61  ;;  %v2453_v26 = vpack.c.bf16 %v2421_v24, %v2419_v2 }
 0x6b5   : > { %2607 = vmatprep.mubr.bf16.mxu0 %v2454_v51 }
 0x6b6   : > { %2608 = vmatmul.mubr.bf16.gmra.mrb[124].mxu0 %v2453_v26 }
 0x6b7   : > { %3473 = vmatprep.mubr.bf16.mxu0 %v10336_v28 }
 0x6cd   : > { %v5443_v42 = vpop.f32.mrb[64].mxu0 }
 0x6ce   : > { %v5444_v13 = vpop.f32.mrb[65].mxu0 }
 0x6cf   : > { %v5445_v45 = vadd.f32 %v5444_v13, %v5443_v42  ;;  %v5446_v38 = vpop.f32.mrb[66].mxu0 }
 0x6d0   : > { %v5447_v3 = vpop.f32.mrb[67].mxu0 }
 0x6d1   : > { %v5448_v11 = vadd.f32 %v5447_v3, %v5446_v38 }
 0x6d3   : > { %v2616_v23 = vpack.c.bf16 %v5448_v11, %v5445_v45 }
 0x6d5   : > { %5739 = vmatprep.mubr.bf16.mxu1 %v2616_v23 }
 0x6d7   : > { %v5449_v55 = vpop.f32.mrb[68].mxu0 }
 0x6d8   : > { %v5450_v54 = vpop.f32.mrb[69].mxu0 }
 0x6d9   : > { %v5451_v39 = vadd.f32 %v5450_v54, %v5449_v55  ;;  %v5452_v1 = vpop.f32.mrb[70].mxu0 }
 0x6da   : > { %v5453_v41 = vpop.f32.mrb[71].mxu0 }
 0x6db   : > { %v5454_v30 = vadd.f32 %v5453_v41, %v5452_v1 }
 0x6dd   : > { %v2617_v7 = vpack.c.bf16 %v5454_v30, %v5451_v39 }
 0x6df   : > { %v5455_v48 = vpop.f32.mrb[72].mxu0  ;;  %5740 = vmatmul.mubr.bf16.vlgmr.msra.gmra.mrb[96].mxu1 %v2617_v7 }
 0x6e0   : > { %v5456_v10 = vpop.f32.mrb[73].mxu0 }
 0x6e1   : > { %v5457_v50 = vadd.f32 %v5456_v10, %v5455_v48  ;;  %v5458_v0 = vpop.f32.mrb[74].mxu0 }
 0x6e2   : > { %v5459_v19 = vpop.f32.mrb[75].mxu0 }
 0x6e3   : > { %v5460_v58 = vadd.f32 %v5459_v19, %v5458_v0 }
 0x6e5   : > { %v2618_v53 = vpack.c.bf16 %v5460_v58, %v5457_v50 }
 0x6e7   : > { %v5461_v44 = vpop.f32.mrb[76].mxu0  ;;  %5743 = vmatprep.mubr.bf16.mxu1 %v2618_v53 }
 0x6e8   : > { %v5462_v49 = vpop.f32.mrb[77].mxu0 }
 0x6e9   : > { %v5463_v27 = vadd.f32 %v5462_v49, %v5461_v44  ;;  %v5464_v15 = vpop.f32.mrb[78].mxu0 }
 0x6ea   : > { %v5465_v36 = vpop.f32.mrb[79].mxu0 }
 0x6eb   : > { %v5466_v25 = vadd.f32 %v5465_v36, %v5464_v15 }
 0x6ed   : > { %v2619_v18 = vpack.c.bf16 %v5466_v25, %v5463_v27 }
 0x6ef   : > { %v5467_v62 = vpop.f32.mrb[80].mxu0  ;;  %5744 = vmatmul.mubr.bf16.gmra.mrb[100].mxu1 %v2619_v18 }
 0x6f0   : > { %v5468_v17 = vpop.f32.mrb[81].mxu0 }
 0x6f1   : > { %v5469_v12 = vadd.f32 %v5468_v17, %v5467_v62  ;;  %v5470_v46 = vpop.f32.mrb[82].mxu0 }
 0x6f2   : > { %v5471_v57 = vpop.f32.mrb[83].mxu0 }
 0x6f3   : > { %v5472_v43 = vadd.f32 %v5471_v57, %v5470_v46 }
 0x6f5   : > { %v2620_v22 = vpack.c.bf16 %v5472_v43, %v5469_v12 }
 0x6f7   : > { %v5473_v35 = vpop.f32.mrb[84].mxu0  ;;  %5747 = vmatprep.mubr.bf16.mxu1 %v2620_v22 }
 0x6f8   : > { %v5474_v33 = vpop.f32.mrb[85].mxu0 }
 0x6f9   : > { %v5475_v8 = vadd.f32 %v5474_v33, %v5473_v35  ;;  %v5476_v47 = vpop.f32.mrb[86].mxu0 }
 0x6fa   : > { %v5477_v63 = vpop.f32.mrb[87].mxu0 }
 0x6fb   : > { %v5478_v40 = vadd.f32 %v5477_v63, %v5476_v47 }
 0x6fd   : > { %v2621_v52 = vpack.c.bf16 %v5478_v40, %v5475_v8 }
 0x6ff   : > { %v5479_v37 = vpop.f32.mrb[88].mxu0  ;;  %5748 = vmatmul.mubr.bf16.gmra.mrb[104].mxu1 %v2621_v52 }
 0x700   : > { %v5480_v29 = vpop.f32.mrb[89].mxu0 }
 0x701   : > { %v5481_v34 = vadd.f32 %v5480_v29, %v5479_v37  ;;  %v5482_v32 = vpop.f32.mrb[90].mxu0 }
 0x702   : > { %v5483_v60 = vpop.f32.mrb[91].mxu0 }
 0x703   : > { %v5484_v59 = vadd.f32 %v5483_v60, %v5482_v32 }
 0x705   : > { %v2622_v21 = vpack.c.bf16 %v5484_v59, %v5481_v34 }
 0x707   : > { %v5485_v5 = vpop.f32.mrb[92].mxu0  ;;  %5751 = vmatprep.mubr.bf16.mxu1 %v2622_v21 }
 0x708   : > { %v5486_v6 = vpop.f32.mrb[93].mxu0 }
 0x709   : > { %v5487_v14 = vadd.f32 %v5486_v6, %v5485_v5  ;;  %v5488_v31 = vpop.f32.mrb[94].mxu0  ;;  %v10337_v5 = vld [vmem:[#allocation53_spill] sm:$0xff] }
 0x70a   : > { %v5489_v16 = vpop.f32.mrb[95].mxu0  ;;  %v2650_v6 = vsub.s32 6, %v10337_v5 }
 0x70b   : > { %v5490_v56 = vadd.f32 %v5489_v16, %v5488_v31 }
 0x70d   : > { %v2623_v4 = vpack.c.bf16 %v5490_v56, %v5487_v14  ;;  %v8475_v14 = vld [vmem:[%s10083_s3] sm:$0xff] }
 0x70e   : > { %v8478_v31 = vrot.slane %v8475_v14, %v2650_v6 }
 0x70f   : > { %v5491_v20 = vpop.f32.mrb[96].mxu0  ;;  %5752 = vmatmul.mubr.bf16.gmra.mrb[108].mxu1 %v2623_v4 }
 0x710   : > { %v5492_v61 = vpop.f32.mrb[97].mxu0 }
 0x711   : > { %v5493_v9 = vadd.f32 %v5492_v61, %v5491_v20  ;;  %v5494_v2 = vpop.f32.mrb[98].mxu0 }
 0x712   : > { %v5495_v24 = vpop.f32.mrb[99].mxu0 }
 0x713   : > { %v5496_v51 = vadd.f32 %v5495_v24, %v5494_v2  ;;  %v10338_v2 = vld [vmem:[#allocation21_spill] sm:$0xff] }
 0x715   : > { %v2624_v26 = vpack.c.bf16 %v5496_v51, %v5493_v9 }
 0x717   : > { %v5497_v42 = vpop.f32.mrb[100].mxu0  ;;  %5755 = vmatprep.mubr.bf16.mxu1 %v2624_v26 }
 0x718   : > { %v5498_v13 = vpop.f32.mrb[101].mxu0 }
 0x719   : > { %v5499_v45 = vadd.f32 %v5498_v13, %v5497_v42  ;;  %v5500_v38 = vpop.f32.mrb[102].mxu0  ;;  %v10339_v42 = vld [vmem:[#allocation23_spill] sm:$0xff] }
 0x71a   : > { %v5501_v3 = vpop.f32.mrb[103].mxu0 }
 0x71b   : > { %v5502_v11 = vadd.f32 %v5501_v3, %v5500_v38  ;;  %v10341_v3 = vld [vmem:[#allocation24_spill] sm:$0xff] }
 0x71d   : > { %v2625_v23 = vpack.c.bf16 %v5502_v11, %v5499_v45  ;;  %v10340_v45 = vld [vmem:[#allocation22_spill] sm:$0xff] }
 0x71f   : > { %v5503_v55 = vpop.f32.mrb[104].mxu0  ;;  %5756 = vmatmul.mubr.bf16.gmra.mrb[112].mxu1 %v2625_v23 }
 0x720   : > { %v5504_v54 = vpop.f32.mrb[105].mxu0 }
 0x721   : > { %v5505_v39 = vadd.f32 %v5504_v54, %v5503_v55  ;;  %v5506_v1 = vpop.f32.mrb[106].mxu0 }
 0x722   : > { %v5507_v41 = vpop.f32.mrb[107].mxu0 }
 0x723   : > { %v5508_v30 = vadd.f32 %v5507_v41, %v5506_v1 }
 0x725   : > { %v2626_v7 = vpack.c.bf16 %v5508_v30, %v5505_v39  ;;  %v10342_v30 = vld [vmem:[#allocation25_spill] sm:$0xff] }
 0x727   : > { %v5509_v48 = vpop.f32.mrb[108].mxu0  ;;  %5759 = vmatprep.mubr.bf16.mxu1 %v2626_v7 }
 0x728   : > { %v5510_v10 = vpop.f32.mrb[109].mxu0 }
 0x729   : > { %v5511_v50 = vadd.f32 %v5510_v10, %v5509_v48  ;;  %v5512_v0 = vpop.f32.mrb[110].mxu0 }
 0x72a   : > { %v5513_v19 = vpop.f32.mrb[111].mxu0 }
 0x72b   : > { %v5514_v58 = vadd.f32 %v5513_v19, %v5512_v0  ;;  %v10344_v19 = vld [vmem:[#allocation27_spill] sm:$0xff] }
 0x72d   : > { %v2627_v53 = vpack.c.bf16 %v5514_v58, %v5511_v50  ;;  %v10343_v50 = vld [vmem:[#allocation26_spill] sm:$0xff] }
 0x72f   : > { %5760 = vmatmul.mubr.bf16.gmra.mrb[116].mxu1 %v2627_v53  ;;  %v10346_v53 = vld [vmem:[#allocation28_spill] sm:$0xff] }
 0x771   : > { %v5515_v44 = vpop.f32.mrb[112].mxu0 }
 0x772   : > { %v5516_v49 = vpop.f32.mrb[113].mxu0 }
 0x773   : > { %v5517_v27 = vadd.f32 %v5516_v49, %v5515_v44  ;;  %v5518_v15 = vpop.f32.mrb[114].mxu0 }
 0x774   : > { %v5519_v36 = vpop.f32.mrb[115].mxu0 }
 0x775   : > { %v5520_v25 = vadd.f32 %v5519_v36, %v5518_v15 }
 0x777   : > { %v2628_v18 = vpack.c.bf16 %v5520_v25, %v5517_v27 }
 0x779   : > { %v5521_v62 = vpop.f32.mrb[116].mxu0  ;;  %5763 = vmatprep.mubr.bf16.mxu1 %v2628_v18 }
 0x77a   : > { %v5522_v17 = vpop.f32.mrb[117].mxu0 }
 0x77b   : > { %v5523_v12 = vadd.f32 %v5522_v17, %v5521_v62  ;;  %v5524_v46 = vpop.f32.mrb[118].mxu0  ;;  %v10348_v62 = vld [vmem:[#allocation29_spill] sm:$0xff] }
 0x77c   : > { %v5525_v57 = vpop.f32.mrb[119].mxu0 }
 0x77d   : > { %v5526_v43 = vadd.f32 %v5525_v57, %v5524_v46  ;;  %v10350_v57 = vld [vmem:[#allocation30_spill] sm:$0xff] }
 0x77f   : > { %v2629_v22 = vpack.c.bf16 %v5526_v43, %v5523_v12 }
 0x781   : > { %v5527_v35 = vpop.f32.mrb[120].mxu0  ;;  %5764 = vmatmul.mubr.bf16.gmra.mrb[120].mxu1 %v2629_v22  ;;  %v10352_v22 = vld [vmem:[#allocation31_spill] sm:$0xff] }
 0x782   : > { %v5528_v33 = vpop.f32.mrb[121].mxu0 }
 0x783   : > { %v5529_v8 = vadd.f32 %v5528_v33, %v5527_v35  ;;  %v5530_v47 = vpop.f32.mrb[122].mxu0  ;;  %v10354_v33 = vld [vmem:[#allocation32_spill] sm:$0xff] }
 0x784   : > { %v5531_v63 = vpop.f32.mrb[123].mxu0 }
 0x785   : > { %v5532_v40 = vadd.f32 %v5531_v63, %v5530_v47 }
 0x787   : > { %v2630_v52 = vpack.c.bf16 %v5532_v40, %v5529_v8 }
 0x789   : > { %v5533_v37 = vpop.f32.mrb[124].mxu0  ;;  %5767 = vmatprep.mubr.bf16.mxu1 %v2630_v52 }
 0x78a   : > { %v5534_v29 = vpop.f32.mrb[125].mxu0 }
 0x78b   : > { %v5535_v34 = vadd.f32 %v5534_v29, %v5533_v37  ;;  %v5536_v32 = vpop.f32.mrb[126].mxu0 }
 0x78c   : > { %v5537_v60 = vpop.f32.mrb[127].mxu0 }
 0x78d   : > { %v5538_v59 = vadd.f32 %v5537_v60, %v5536_v32 }
 0x78f   : > { %v2631_v21 = vpack.c.bf16 %v5538_v59, %v5535_v34  ;;  %v10356_v34 = vld [vmem:[#allocation33_spill] sm:$0xff] }
 0x791   : > { %5768 = vmatmul.mubr.bf16.gmra.mrb[124].mxu1 %v2631_v21  ;;  %v10358_v21 = vld [vmem:[#allocation34_spill] sm:$0xff] }
 0x7b2   : > { %v5741_v16 = vpop.f32.mrb[96].mxu1 }
 0x7b3   : > { %v2734_v56 = vpop.f32.mrb[97].mxu1  ;;  %v2743_v9 = vadd.f32 %v5741_v16, %v8478_v31  ;;  %v10360_v16 = vld [vmem:[#allocation35_spill] sm:$0xff] }
 0x7b4   : > { %v2735_v4 = vadd.f32 %v2734_v56, %v8478_v31  ;;  %v5742_v20 = vpop.f32.mrb[98].mxu1 }
 0x7b5   : > { %v2737_v61 = vpop.f32.mrb[99].mxu1  ;;  %v2746_v26 = vadd.f32 %v5742_v20, %v8478_v31  ;;  %v8492_v38 = vadd.f32 %v10340_v45, %v2743_v9  ;;  %v10364_v45 = vld [vmem:[#allocation37_spill] sm:$0xff] }
 0x7b6   : > { %v8483_v24 = vadd.f32 %v10338_v2, %v2735_v4  ;;  %v2738_v51 = vadd.f32 %v2737_v61, %v8478_v31  ;;  %v10362_v4 = vld [vmem:[#allocation36_spill] sm:$0xff] }
 0x7b7   : > { %v8496_v11 = vadd.f32 %v10341_v3, %v2746_v26 }
 0x7b8   : > { %v8488_v13 = vadd.f32 %v10339_v42, %v2738_v51  ;;  %2893 = vadd.xlane.f32.xlu0 %v8483_v24 }
 0x7ba   : > { %2895 = vadd.xlane.f32.xlu1 %v8488_v13 }
 0x7bc   : > { %2897 = vadd.xlane.f32.xlu0 %v8492_v38 }
 0x7be   : > { %2899 = vadd.xlane.f32.xlu1 %v8496_v11 }
 0x7c2   : > { %v5745_v23 = vpop.f32.mrb[100].mxu1 }
 0x7c3   : > { %v2750_v55 = vpop.f32.mrb[101].mxu1  ;;  %v2759_v41 = vadd.f32 %v5745_v23, %v8478_v31 }
 0x7c4   : > { %v2751_v54 = vadd.f32 %v2750_v55, %v8478_v31  ;;  %v5746_v39 = vpop.f32.mrb[102].mxu1 }
 0x7c5   : > { %v2753_v1 = vpop.f32.mrb[103].mxu1  ;;  %v2762_v10 = vadd.f32 %v5746_v39, %v8478_v31  ;;  %v8512_v58 = vadd.f32 %v10344_v19, %v2759_v41 }
 0x7c6   : > { %v8503_v7 = vadd.f32 %v10342_v30, %v2751_v54  ;;  %v2754_v48 = vadd.f32 %v2753_v1, %v8478_v31  ;;  %v10366_v54 = vld [vmem:[#allocation38_spill] sm:$0xff]  ;;  %v10368_v1 = vld [vmem:[#allocation39_spill] sm:$0xff]  ;;  %v10370_v30 = vld [vmem:[#allocation40_spill] sm:$0xff] }
 0x7c7   : > { %10345 = vst [vmem:[#allocation70_spill] sm:$0xff] %v8512_v58  ;;  %v8516_v44 = vadd.f32 %v10346_v53, %v2762_v10 }
 0x7c8   : > { %v8508_v0 = vadd.f32 %v10343_v50, %v2754_v48  ;;  %2901 = vadd.xlane.f32.xlu0 %v8503_v7 }
 0x7c9   : > { %10347 = vst [vmem:[#allocation58_spill] sm:$0xff] %v8516_v44 }
 0x7ca   : > { %2903 = vadd.xlane.f32.xlu1 %v8508_v0 }
 0x7cc   : > { %2905 = vadd.xlane.f32.xlu0 %v8512_v58 }
 0x7ce   : > { %2907 = vadd.xlane.f32.xlu1 %v8516_v44 }
 0x7d2   : > { %v5749_v49 = vpop.f32.mrb[104].mxu1 }
 0x7d3   : > { %v2766_v27 = vpop.f32.mrb[105].mxu1  ;;  %v2775_v18 = vadd.f32 %v5749_v49, %v8478_v31  ;;  %v5924_v49 = vld [vmem:[#allocation11] ss:$8 sps:$4 sm:$0xff]  }
 0x7d4   : > { %v2767_v15 = vadd.f32 %v2766_v27, %v8478_v31  ;;  %v5750_v36 = vpop.f32.mrb[106].mxu1  ;;  %v5926_v27 = vld [vmem:[#allocation11 + $0x4] ss:$8 sps:$4 sm:$0xff]  }
 0x7d5   : > { %v2769_v25 = vpop.f32.mrb[107].mxu1  ;;  %v2778_v46 = vadd.f32 %v5750_v36, %v8478_v31  ;;  %v8532_v35 = vadd.f32 %v10352_v22, %v2775_v18  ;;  %3441 = vmatprep.subr.bf16.mxu0 %v5926_v27  ;;  %v5927_v36 = vld [vmem:[#allocation11 + $0x10] ss:$8 sps:$4 sm:$0xff]  }
 0x7d6   : > { %v8523_v17 = vadd.f32 %v10348_v62, %v2767_v15  ;;  %v2770_v12 = vadd.f32 %v2769_v25, %v8478_v31  ;;  %v5929_v15 = vld [vmem:[#allocation11 + $0x14] ss:$8 sps:$4 sm:$0xff]   ;;  %3442 = vmatpush1.bf16.msra.mxu0 %v5924_v49 }
 0x7d7   : > { %10353 = vst [vmem:[#allocation60_spill] sm:$0xff] %v8532_v35  ;;  %v8536_v8 = vadd.f32 %v10354_v33, %v2778_v46  ;;  %3443 = vmatprep.subr.bf16.mxu0 %v5929_v15  ;;  %v5932_v15 = vld [vmem:[#allocation11 + $0x24] ss:$8 sps:$4 sm:$0xff]  }
 0x7d8   : > { %10349 = vst [vmem:[#allocation57_spill] sm:$0xff] %v8523_v17  ;;  %v8528_v43 = vadd.f32 %v10350_v57, %v2770_v12  ;;  %2909 = vadd.xlane.f32.xlu0 %v8523_v17 }
 0x7d9   : > { %10355 = vst [vmem:[#allocation62_spill] sm:$0xff] %v8536_v8 }
 0x7da   : > { %10351 = vst [vmem:[#allocation56_spill] sm:$0xff] %v8528_v43  ;;  %2911 = vadd.xlane.f32.xlu1 %v8528_v43  ;;  %3444 = vmatpush1.bf16.msra.mxu0 %v5927_v36 }
 0x7db   : > { %3445 = vmatprep.subr.bf16.mxu0 %v5932_v15 }
 0x7dc   : > { %2913 = vadd.xlane.f32.xlu0 %v8532_v35 }
 0x7de   : > { %2915 = vadd.xlane.f32.xlu1 %v8536_v8 }
 0x7e2   : > { %v5753_v47 = vpop.f32.mrb[108].mxu1 }
 0x7e3   : > { %v2782_v63 = vpop.f32.mrb[109].mxu1  ;;  %v2791_v29 = vadd.f32 %v5753_v47, %v8478_v31 }
 0x7e4   : > { %v2783_v40 = vadd.f32 %v2782_v63, %v8478_v31  ;;  %v5754_v52 = vpop.f32.mrb[110].mxu1 }
 0x7e5   : > { %v2785_v37 = vpop.f32.mrb[111].mxu1  ;;  %v2794_v59 = vadd.f32 %v5754_v52, %v8478_v31  ;;  %v8552_v56 = vadd.f32 %v10360_v16, %v2791_v29 }
 0x7e6   : > { %v8543_v32 = vadd.f32 %v10356_v34, %v2783_v40  ;;  %v2786_v60 = vadd.f32 %v2785_v37, %v8478_v31  ;;  %v10372_v34 = vld [vmem:[#allocation41_spill] sm:$0xff] }
 0x7e7   : > { %10361 = vst [vmem:[#allocation65_spill] sm:$0xff] %v8552_v56  ;;  %v8556_v20 = vadd.f32 %v10362_v4, %v2794_v59 }
 0x7e8   : > { %10357 = vst [vmem:[#allocation61_spill] sm:$0xff] %v8543_v32  ;;  %v8548_v6 = vadd.f32 %v10358_v21, %v2786_v60  ;;  %2917 = vadd.xlane.f32.xlu0 %v8543_v32  ;;  %v10374_v21 = vld [vmem:[#allocation42_spill] sm:$0xff] }
 0x7e9   : > { %10363 = vst [vmem:[#allocation64_spill] sm:$0xff] %v8556_v20 }
 0x7ea   : > { %10359 = vst [vmem:[#allocation59_spill] sm:$0xff] %v8548_v6  ;;  %2919 = vadd.xlane.f32.xlu1 %v8548_v6 }
 0x7ec   : > { %2921 = vadd.xlane.f32.xlu0 %v8552_v56 }
 0x7ee   : > { %2923 = vadd.xlane.f32.xlu1 %v8556_v20 }
 0x7f2   : > { %v5757_v61 = vpop.f32.mrb[112].mxu1 }
 0x7f3   : > { %v2798_v9 = vpop.f32.mrb[113].mxu1  ;;  %v2807_v42 = vadd.f32 %v5757_v61, %v8478_v31 }
 0x7f4   : > { %v2799_v2 = vadd.f32 %v2798_v9, %v8478_v31  ;;  %v5758_v51 = vpop.f32.mrb[114].mxu1 }
 0x7f5   : > { %v2801_v26 = vpop.f32.mrb[115].mxu1  ;;  %v2810_v55 = vadd.f32 %v5758_v51, %v8478_v31  ;;  %v8572_v41 = vadd.f32 %v10368_v1, %v2807_v42 }
 0x7f6   : > { %v8563_v3 = vadd.f32 %v10364_v45, %v2799_v2  ;;  %v2802_v23 = vadd.f32 %v2801_v26, %v8478_v31 }
 0x7f7   : > { %10369 = vst [vmem:[#allocation69_spill] sm:$0xff] %v8572_v41  ;;  %v8576_v48 = vadd.f32 %v10370_v30, %v2810_v55 }
 0x7f8   : > { %10365 = vst [vmem:[#allocation63_spill] sm:$0xff] %v8563_v3  ;;  %v8568_v39 = vadd.f32 %v10366_v54, %v2802_v23  ;;  %2925 = vadd.xlane.f32.xlu0 %v8563_v3  ;;  %v10376_v23 = vld [vmem:[#allocation43_spill] sm:$0xff] }
 0x7f9   : > { %10371 = vst [vmem:[#allocation68_spill] sm:$0xff] %v8576_v48 }
 0x7fa   : > { %10367 = vst [vmem:[#allocation67_spill] sm:$0xff] %v8568_v39  ;;  %2927 = vadd.xlane.f32.xlu1 %v8568_v39 }
 0x7fc   : > { %2929 = vadd.xlane.f32.xlu0 %v8572_v41 }
 0x7fe   : > { %2931 = vadd.xlane.f32.xlu1 %v8576_v48 }
 0x802   : > { %v5761_v10 = vpop.f32.mrb[116].mxu1 }
 0x803   : > { %v2814_v50 = vpop.f32.mrb[117].mxu1  ;;  %v2823_v61 = vadd.f32 %v5761_v10, %v8478_v31 }
 0x804   : > { %v5762_v19 = vpop.f32.mrb[118].mxu1  ;;  %v2815_v22 = vadd.f32 %v2814_v50, %v8478_v31  ;;  %v10378_v50 = vld [vmem:[#allocation44_spill] sm:$0xff] }
 0x805   : > { %v2817_v53 = vpop.f32.mrb[119].mxu1  ;;  %v2826_v2 = vadd.f32 %v5762_v19, %v8478_v31  ;;  %v8613_v55 = vadd.f32 %v10376_v23, %v2823_v61 }
 0x806   : > { %v2818_v52 = vadd.f32 %v2817_v53, %v8478_v31  ;;  %v8593_v60 = vadd.f32 %v10372_v34, %v2815_v22  ;;  %v5933_v34 = vld [vmem:[#allocation11 + $0x30] ss:$8 sps:$4 sm:$0xff]  }
 0x807   : > { %10377 = vst [vmem:[#allocation21_spill] sm:$0xff] %v8613_v55  ;;  %v8616_v53 = vadd.f32 %v10378_v50, %v2826_v2  ;;  %v5938_v2 = vld [vmem:[#allocation11 + $0x44] ss:$8 sps:$4 sm:$0xff]  }
 0x808   : > { %10373 = vst [vmem:[#allocation66_spill] sm:$0xff] %v8593_v60  ;;  %v8599_v16 = vadd.f32 %v10374_v21, %v2818_v52  ;;  %v10380_v52 = vld [vmem:[#allocation45_spill] sm:$0xff]  ;;  %v10382_v21 = vld [vmem:[#allocation46_spill] sm:$0xff] }
 0x809   : > { %10379 = vst [vmem:[#allocation23_spill] sm:$0xff] %v8616_v53 }
 0x80a   : > { %10375 = vst [vmem:[#allocation53_spill] sm:$0xff] %v8599_v16 }
 0x845   : > { %v2894_v25 = vpop.xlane.xlu0 %2893 }
 0x846   : > { %v2957_v18 = vmul.f32 0.0078125, %v2894_v25 }
 0x847   : > { %v2896_v62 = vpop.xlane.xlu1 %2895 }
 0x848   : > { %v8581_v12 = vsub.f32 %v8483_v24, %v2957_v18  ;;  %v2958_v46 = vmul.f32 0.0078125, %v2896_v62 }
 0x849   : > { %v2898_v57 = vpop.xlane.xlu0 %2897 }
 0x84a   : > { %v8585_v33 = vsub.f32 %v8488_v13, %v2958_v46  ;;  %v2959_v47 = vmul.f32 0.0078125, %v2898_v57  ;;  %v3021_v63 = vmul.f32 %v8581_v12, %v8581_v12  ;;  %v5930_v46 = vld [vmem:[#allocation11 + $0x20] ss:$8 sps:$4 sm:$0xff]  }
 0x84b   : > { %v2900_v40 = vpop.xlane.xlu1 %2899  ;;  %3446 = vmatpush1.bf16.msra.mxu0 %v5930_v46 }
 0x84c   : > { %v2960_v37 = vmul.f32 0.0078125, %v2900_v40  ;;  %3053 = vadd.xlane.f32.xlu0 %v3021_v63  ;;  %v3022_v29 = vmul.f32 %v8585_v33, %v8585_v33  ;;  %v8596_v59 = vsub.f32 %v8492_v38, %v2959_v47  ;;  %v5935_v40 = vld [vmem:[#allocation11 + $0x34] ss:$8 sps:$4 sm:$0xff]  }
 0x84d   : > { %3447 = vmatprep.subr.bf16.mxu0 %v5935_v40  ;;  %v5944_v40 = vld [vmem:[#allocation11 + $0x64] ss:$8 sps:$4 sm:$0xff]  }
 0x84e   : > { %3055 = vadd.xlane.f32.xlu1 %v3022_v29  ;;  %v8602_v4 = vsub.f32 %v8496_v11, %v2960_v37  ;;  %v3023_v9 = vmul.f32 %v8596_v59, %v8596_v59 }
 0x84f   : > { %3448 = vmatpush1.bf16.msra.mxu0 %v5933_v34 }
 0x850   : > { %2933 = vadd.xlane.f32.xlu0 %v8593_v60  ;;  %v3024_v26 = vmul.f32 %v8602_v4, %v8602_v4  ;;  %3449 = vmatprep.subr.bf16.mxu0 %v5938_v2 }
 0x852   : > { %2935 = vadd.xlane.f32.xlu1 %v8599_v16 }
 0x854   : > { %3057 = vadd.xlane.f32.xlu0 %v3023_v9  ;;  %v5765_v51 = vpop.f32.mrb[120].mxu1 }
 0x855   : > { %v2902_v42 = vpop.xlane.xlu0 %2901  ;;  %v2830_v45 = vpop.f32.mrb[121].mxu1 }
 0x856   : > { %v2961_v54 = vmul.f32 0.0078125, %v2902_v42  ;;  %3059 = vadd.xlane.f32.xlu1 %v3024_v26  ;;  %v5766_v1 = vpop.f32.mrb[122].mxu1  ;;  %v2831_v36 = vadd.f32 %v2830_v45, %v8478_v31  ;;  %v2839_v26 = vadd.f32 %v5765_v51, %v8478_v31  ;;  %v5936_v45 = vld [vmem:[#allocation11 + $0x40] ss:$8 sps:$4 sm:$0xff]  }
 0x857   : > { %v2904_v30 = vpop.xlane.xlu1 %2903  ;;  %v2833_v10 = vpop.f32.mrb[123].mxu1  ;;  %v2842_v23 = vadd.f32 %v5766_v1, %v8478_v31  ;;  %3450 = vmatpush1.bf16.msra.mxu0 %v5936_v45  ;;  %v10386_v1 = vld [vmem:[#allocation48_spill] sm:$0xff] }
 0x858   : > { %v8619_v19 = vsub.f32 %v8503_v7, %v2961_v54  ;;  %v2962_v49 = vmul.f32 0.0078125, %v2904_v30  ;;  %2937 = vadd.xlane.f32.xlu0 %v8613_v55  ;;  %v2834_v22 = vadd.f32 %v2833_v10, %v8478_v31  ;;  %v8633_v37 = vadd.f32 %v10380_v52, %v2831_v36 }
 0x859   : > { %v2906_v27 = vpop.xlane.xlu0 %2905 }
 0x85a   : > { %v8624_v25 = vsub.f32 %v8508_v0, %v2962_v49  ;;  %v2963_v18 = vmul.f32 0.0078125, %v2906_v27  ;;  %2939 = vadd.xlane.f32.xlu1 %v8616_v53  ;;  %v3025_v62 = vmul.f32 %v8619_v19, %v8619_v19  ;;  %10381 = vst [vmem:[#allocation22_spill] sm:$0xff] %v8633_v37  ;;  %v8639_v61 = vadd.f32 %v10382_v21, %v2834_v22  ;;  %v5941_v49 = vld [vmem:[#allocation11 + $0x54] ss:$8 sps:$4 sm:$0xff]  }
 0x85b   : > { %v2908_v57 = vpop.xlane.xlu1 %2907  ;;  %v10384_v27 = vld [vmem:[#allocation47_spill] sm:$0xff]  ;;  %3451 = vmatprep.subr.bf16.mxu0 %v5941_v49 }
 0x85c   : > { %v2964_v47 = vmul.f32 0.0078125, %v2908_v57  ;;  %3061 = vadd.xlane.f32.xlu0 %v3025_v62  ;;  %v3026_v63 = vmul.f32 %v8624_v25, %v8624_v25  ;;  %v8636_v29 = vsub.f32 %v8512_v58, %v2963_v18  ;;  %10383 = vst [vmem:[#allocation24_spill] sm:$0xff] %v8639_v61  ;;  %v8653_v51 = vadd.f32 %v10384_v27, %v2839_v26  ;;  %v5939_v18 = vld [vmem:[#allocation11 + $0x50] ss:$8 sps:$4 sm:$0xff]   ;;  %v5942_v26 = vld [vmem:[#allocation11 + $0x60] ss:$8 sps:$4 sm:$0xff]  }
 0x85d   : > { %v8656_v57 = vadd.f32 %v10386_v1, %v2842_v23  ;;  %3452 = vmatpush1.bf16.msra.mxu0 %v5939_v18  ;;  %v10390_v18 = vld [vmem:[#allocation50_spill] sm:$0xff] }
 0x85e   : > { %3063 = vadd.xlane.f32.xlu1 %v3026_v63  ;;  %v8642_v9 = vsub.f32 %v8516_v44, %v2964_v47  ;;  %v3027_v42 = vmul.f32 %v8636_v29, %v8636_v29  ;;  %10385 = vst [vmem:[#allocation25_spill] sm:$0xff] %v8653_v51  ;;  %3453 = vmatprep.subr.bf16.mxu0 %v5944_v40 }
 0x85f   : > { %10387 = vst [vmem:[#allocation26_spill] sm:$0xff] %v8656_v57 }
 0x860   : > { %2941 = vadd.xlane.f32.xlu0 %v8633_v37  ;;  %v3028_v30 = vmul.f32 %v8642_v9, %v8642_v9 }
 0x861   : > { %3454 = vmatpush1.bf16.msra.mxu0 %v5942_v26 }
 0x862   : > { %2943 = vadd.xlane.f32.xlu1 %v8639_v61 }
 0x864   : > { %3065 = vadd.xlane.f32.xlu0 %v3027_v42  ;;  %v5769_v54 = vpop.f32.mrb[124].mxu1 }
 0x865   : > { %v2910_v10 = vpop.xlane.xlu0 %2909  ;;  %v2846_v50 = vpop.f32.mrb[125].mxu1  ;;  %v2855_v1 = vadd.f32 %v5769_v54, %v8478_v31 }
 0x866   : > { %v2965_v15 = vmul.f32 0.0078125, %v2910_v10  ;;  %3067 = vadd.xlane.f32.xlu1 %v3028_v30  ;;  %v5770_v36 = vpop.f32.mrb[126].mxu1  ;;  %v2847_v52 = vadd.f32 %v2846_v50, %v8478_v31  ;;  %v5947_v10 = vld [vmem:[#allocation11 + $0x74] ss:$8 sps:$4 sm:$0xff]   ;;  %v10388_v50 = vld [vmem:[#allocation49_spill] sm:$0xff] }
 0x867   : > { %v2912_v62 = vpop.xlane.xlu1 %2911  ;;  %v2849_v46 = vpop.f32.mrb[127].mxu1  ;;  %3455 = vmatprep.subr.bf16.mxu0 %v5947_v10 }
 0x868   : > { %v8659_v22 = vsub.f32 %v8523_v17, %v2965_v15  ;;  %v2966_v47 = vmul.f32 0.0078125, %v2912_v62  ;;  %2945 = vadd.xlane.f32.xlu0 %v8653_v51  ;;  %v2850_v45 = vadd.f32 %v2849_v46, %v8478_v31  ;;  %v8673_v49 = vadd.f32 %v10388_v50, %v2847_v52  ;;  %v5945_v15 = vld [vmem:[#allocation11 + $0x70] ss:$8 sps:$4 sm:$0xff]  }
 0x869   : > { %v2914_v63 = vpop.xlane.xlu0 %2913  ;;  %3456 = vmatpush1.bf16.msra.mxu0 %v5945_v15 }
 0x86a   : > { %v8664_v34 = vsub.f32 %v8528_v43, %v2966_v47  ;;  %v2967_v21 = vmul.f32 0.0078125, %v2914_v63  ;;  %2947 = vadd.xlane.f32.xlu1 %v8656_v57  ;;  %v3029_v2 = vmul.f32 %v8659_v22, %v8659_v22  ;;  %10389 = vst [vmem:[#allocation27_spill] sm:$0xff] %v8673_v49  ;;  %v8679_v62 = vadd.f32 %v10390_v18, %v2850_v45  ;;  %v10394_v45 = vld [vmem:[#allocation52_spill] sm:$0xff] }
 0x86b   : > { %v2916_v42 = vpop.xlane.xlu1 %2915  ;;  %v2858_v63 = vadd.f32 %v5770_v36, %v8478_v31 }
 0x86c   : > { %v2968_v23 = vmul.f32 0.0078125, %v2916_v42  ;;  %3069 = vadd.xlane.f32.xlu0 %v3029_v2  ;;  %v3030_v30 = vmul.f32 %v8664_v34, %v8664_v34  ;;  %v8676_v27 = vsub.f32 %v8532_v35, %v2967_v21  ;;  %10391 = vst [vmem:[#allocation28_spill] sm:$0xff] %v8679_v62  ;;  %v10392_v21 = vld [vmem:[#allocation51_spill] sm:$0xff] }
 0x86d   : > { %v8693_v2 = vadd.f32 %v10392_v21, %v2855_v1  ;;  %v8696_v54 = vadd.f32 %v10394_v45, %v2858_v63 }
 0x86e   : > { %3071 = vadd.xlane.f32.xlu1 %v3030_v30  ;;  %v8682_v46 = vsub.f32 %v8536_v8, %v2968_v23  ;;  %v3031_v47 = vmul.f32 %v8676_v27, %v8676_v27 }
 0x86f   : > { %10393 = vst [vmem:[#allocation29_spill] sm:$0xff] %v8693_v2  ;;  %10395 = vst [vmem:[#allocation30_spill] sm:$0xff] %v8696_v54 }
 0x870   : > { %2949 = vadd.xlane.f32.xlu0 %v8673_v49  ;;  %v3032_v40 = vmul.f32 %v8682_v46, %v8682_v46 }
 0x872   : > { %2951 = vadd.xlane.f32.xlu1 %v8679_v62 }
 0x874   : > { %3073 = vadd.xlane.f32.xlu0 %v3031_v47 }
 0x875   : > { %v2918_v52 = vpop.xlane.xlu0 %2917 }
 0x876   : > { %v2969_v26 = vmul.f32 0.0078125, %v2918_v52  ;;  %3075 = vadd.xlane.f32.xlu1 %v3032_v40 }
 0x877   : > { %v2920_v42 = vpop.xlane.xlu1 %2919 }
 0x878   : > { %v8699_v23 = vsub.f32 %v8543_v32, %v2969_v26  ;;  %v2970_v30 = vmul.f32 0.0078125, %v2920_v42  ;;  %2953 = vadd.xlane.f32.xlu0 %v8693_v2 }
 0x879   : > { %v2922_v31 = vpop.xlane.xlu0 %2921 }
 0x87a   : > { %v8703_v36 = vsub.f32 %v8548_v6, %v2970_v30  ;;  %v2971_v10 = vmul.f32 0.0078125, %v2922_v31  ;;  %2955 = vadd.xlane.f32.xlu1 %v8696_v54  ;;  %v3033_v50 = vmul.f32 %v8699_v23, %v8699_v23 }
 0x87b   : > { %v2924_v15 = vpop.xlane.xlu1 %2923 }
 0x87c   : > { %v8709_v18 = vsub.f32 %v8552_v56, %v2971_v10  ;;  %v2972_v1 = vmul.f32 0.0078125, %v2924_v15  ;;  %3077 = vadd.xlane.f32.xlu0 %v3033_v50  ;;  %v3034_v47 = vmul.f32 %v8703_v36, %v8703_v36 }
 0x87e   : > { %v8714_v63 = vsub.f32 %v8556_v20, %v2972_v1  ;;  %3079 = vadd.xlane.f32.xlu1 %v3034_v47  ;;  %v3035_v40 = vmul.f32 %v8709_v18, %v8709_v18 }
 0x880   : > { %3081 = vadd.xlane.f32.xlu0 %v3035_v40  ;;  %v3036_v52 = vmul.f32 %v8714_v63, %v8714_v63 }
 0x882   : > { %3083 = vadd.xlane.f32.xlu1 %v3036_v52 }
 0x885   : > { %v2926_v21 = vpop.xlane.xlu0 %2925 }
 0x886   : > { %v2973_v26 = vmul.f32 0.0078125, %v2926_v21 }
 0x887   : > { %v2928_v42 = vpop.xlane.xlu1 %2927 }
 0x888   : > { %v8721_v45 = vsub.f32 %v8563_v3, %v2973_v26  ;;  %v2974_v30 = vmul.f32 0.0078125, %v2928_v42 }
 0x889   : > { %v2930_v31 = vpop.xlane.xlu0 %2929 }
 0x88a   : > { %v8724_v10 = vsub.f32 %v8568_v39, %v2974_v30  ;;  %v2975_v50 = vmul.f32 0.0078125, %v2930_v31  ;;  %v3037_v15 = vmul.f32 %v8721_v45, %v8721_v45 }
 0x88b   : > { %v2932_v1 = vpop.xlane.xlu1 %2931 }
 0x88c   : > { %v8729_v47 = vsub.f32 %v8572_v41, %v2975_v50  ;;  %v2976_v40 = vmul.f32 0.0078125, %v2932_v1  ;;  %3085 = vadd.xlane.f32.xlu0 %v3037_v15  ;;  %v3038_v52 = vmul.f32 %v8724_v10, %v8724_v10 }
 0x88e   : > { %v8734_v21 = vsub.f32 %v8576_v48, %v2976_v40  ;;  %3087 = vadd.xlane.f32.xlu1 %v3038_v52  ;;  %v3039_v26 = vmul.f32 %v8729_v47, %v8729_v47 }
 0x890   : > { %3089 = vadd.xlane.f32.xlu0 %v3039_v26  ;;  %v3040_v42 = vmul.f32 %v8734_v21, %v8734_v21 }
 0x892   : > { %3091 = vadd.xlane.f32.xlu1 %v3040_v42 }
 0x8d9   : > { %v3054_v30 = vpop.xlane.xlu0 %3053 }
 0x8da   : > { %v3117_v31 = vmul.f32 0.0078125, %v3054_v30 }
 0x8db   : > { %v3056_v50 = vpop.xlane.xlu1 %3055 }
 0x8dc   : > { %v3149_v1 = vadd.f32 1e-05, %v3117_v31  ;;  %v3118_v15 = vmul.f32 0.0078125, %v3056_v50 }
 0x8dd   : > { %v2934_v41 = vpop.xlane.xlu0 %2933 }
 0x8de   : > { %6220 = vrsqrt.f32 %v3149_v1  ;;  %v3150_v39 = vadd.f32 1e-05, %v3118_v15  ;;  %v2977_v3 = vmul.f32 0.0078125, %v2934_v41  ;;  %v10396_v15 = vsub.s32 2, %v10337_v5 }
 0x8df   : > { %v2936_v40 = vpop.xlane.xlu1 %2935 }
 0x8e0   : > { %6222 = vrsqrt.f32 %v3150_v39  ;;  %v8741_v52 = vsub.f32 %v8593_v60, %v2977_v3  ;;  %v2978_v48 = vmul.f32 0.0078125, %v2936_v40 }
 0x8e1   : > { %v3058_v26 = vpop.xlane.xlu0 %3057 }
 0x8e2   : > { %v8744_v20 = vsub.f32 %v8599_v16, %v2978_v48  ;;  %v3119_v42 = vmul.f32 0.0078125, %v3058_v26  ;;  %v3041_v30 = vmul.f32 %v8741_v52, %v8741_v52  ;;  %v8753_v48 = vrot.slane %v8475_v14, %v10396_v15 }
 0x8e3   : > { %v3060_v31 = vpop.xlane.xlu1 %3059  ;;  %v3283_v26 = vsub.s32 3, %v10337_v5 }
 0x8e4   : > { %v3151_v50 = vadd.f32 1e-05, %v3119_v42  ;;  %v3120_v56 = vmul.f32 0.0078125, %v3060_v31  ;;  %3093 = vadd.xlane.f32.xlu0 %v3041_v30  ;;  %v3042_v41 = vmul.f32 %v8744_v20, %v8744_v20 }
 0x8e5   : > { %v2938_v39 = vpop.xlane.xlu0 %2937 }
 0x8e6   : > { %6224 = vrsqrt.f32 %v3151_v50  ;;  %v3152_v3 = vadd.f32 1e-05, %v3120_v56  ;;  %v2979_v1 = vmul.f32 0.0078125, %v2938_v39  ;;  %3095 = vadd.xlane.f32.xlu1 %v3042_v41 }
 0x8e7   : > { %v2940_v40 = vpop.xlane.xlu1 %2939 }
 0x8e8   : > { %v6221_v16 = vpop.eup %6220  ;;  %6226 = vrsqrt.f32 %v3152_v3  ;;  %v8757_v42 = vsub.f32 %v8613_v55, %v2979_v1  ;;  %v2980_v30 = vmul.f32 0.0078125, %v2940_v40  ;;  %v8768_v1 = vrot.slane %v8475_v14, %v3283_v26 }
 0x8e9   : > { %v3213_v31 = vmul.f32 %v6221_v16, %v8581_v12  ;;  %v3062_v50 = vpop.xlane.xlu0 %3061 }
 0x8ea   : > { %v6223_v56 = vpop.eup %6222  ;;  %v8761_v41 = vsub.f32 %v8616_v53, %v2980_v30  ;;  %v3121_v39 = vmul.f32 0.0078125, %v3062_v50  ;;  %v3043_v15 = vmul.f32 %v8757_v42, %v8757_v42 }
 0x8eb   : > { %v3249_v60 = vmul.f32 %v8753_v48, %v3213_v31  ;;  %v3214_v6 = vmul.f32 %v6223_v56, %v8585_v33  ;;  %v3064_v3 = vpop.xlane.xlu1 %3063 }
 0x8ec   : > { %v3153_v40 = vadd.f32 1e-05, %v3121_v39  ;;  %v3122_v55 = vmul.f32 0.0078125, %v3064_v3  ;;  %3097 = vadd.xlane.f32.xlu0 %v3043_v15  ;;  %v3044_v12 = vmul.f32 %v8761_v41, %v8761_v41 }
 0x8ed   : > { %v3250_v16 = vmul.f32 %v8753_v48, %v3214_v6  ;;  %v2942_v30 = vpop.xlane.xlu0 %2941  ;;  %v3285_v33 = vadd.f32 %v8768_v1, %v3249_v60 }
 0x8ee   : > { %6228 = vrsqrt.f32 %v3153_v40  ;;  %v3154_v50 = vadd.f32 1e-05, %v3122_v55  ;;  %v2981_v53 = vmul.f32 0.0078125, %v2942_v30  ;;  %3099 = vadd.xlane.f32.xlu1 %v3044_v12 }
 0x8ef   : > { %v2944_v31 = vpop.xlane.xlu1 %2943  ;;  %v3286_v56 = vadd.f32 %v8768_v1, %v3250_v16 }
 0x8f0   : > { %v6225_v14 = vpop.eup %6224  ;;  %6230 = vrsqrt.f32 %v3154_v50  ;;  %v8776_v26 = vsub.f32 %v8633_v37, %v2981_v53  ;;  %v2982_v39 = vmul.f32 0.0078125, %v2944_v31 }
 0x8f1   : > { %v3066_v15 = vpop.xlane.xlu0 %3065  ;;  %v3317_v3 = vpack.c.bf16 %v3286_v56, %v3285_v33  ;;  %v3215_v6 = vmul.f32 %v6225_v14, %v8596_v59 }
 0x8f2   : > { %v6227_v32 = vpop.eup %6226  ;;  %v8780_v55 = vsub.f32 %v8639_v61, %v2982_v39  ;;  %v3123_v40 = vmul.f32 0.0078125, %v3066_v15  ;;  %v3045_v60 = vmul.f32 %v8776_v26, %v8776_v26 }
 0x8f3   : > { %v3068_v12 = vpop.xlane.xlu1 %3067  ;;  %3474 = vmatmul.mubr.bf16.vlgmr.msra.gmra.mrb[128].mxu0 %v3317_v3  ;;  %v3216_v16 = vmul.f32 %v6227_v32, %v8602_v4  ;;  %v3251_v53 = vmul.f32 %v8753_v48, %v3215_v6 }
 0x8f4   : > { %v3155_v30 = vadd.f32 1e-05, %v3123_v40  ;;  %v3124_v50 = vmul.f32 0.0078125, %v3068_v12  ;;  %3101 = vadd.xlane.f32.xlu0 %v3045_v60  ;;  %v3046_v59 = vmul.f32 %v8780_v55, %v8780_v55  ;;  %3483 = vmatprep.mubr.bf16.mxu0 %v10336_v28 }
 0x8f5   : > { %v2946_v31 = vpop.xlane.xlu0 %2945  ;;  %v3252_v33 = vmul.f32 %v8753_v48, %v3216_v16  ;;  %v3287_v32 = vadd.f32 %v8768_v1, %v3251_v53 }
 0x8f6   : > { %6232 = vrsqrt.f32 %v3155_v30  ;;  %v3156_v56 = vadd.f32 1e-05, %v3124_v50  ;;  %v2983_v14 = vmul.f32 0.0078125, %v2946_v31  ;;  %3103 = vadd.xlane.f32.xlu1 %v3046_v59 }
 0x8f7   : > { %v2948_v39 = vpop.xlane.xlu1 %2947  ;;  %v3288_v4 = vadd.f32 %v8768_v1, %v3252_v33 }
 0x8f8   : > { %v6229_v15 = vpop.eup %6228  ;;  %6234 = vrsqrt.f32 %v3156_v56  ;;  %v8793_v3 = vsub.f32 %v8653_v51, %v2983_v14  ;;  %v2984_v6 = vmul.f32 0.0078125, %v2948_v39 }
 0x8f9   : > { %v3070_v40 = vpop.xlane.xlu0 %3069  ;;  %v3318_v60 = vpack.c.bf16 %v3288_v4, %v3287_v32  ;;  %v3217_v12 = vmul.f32 %v6229_v15, %v8619_v19 }
 0x8fa   : > { %v6231_v16 = vpop.eup %6230  ;;  %v8797_v30 = vsub.f32 %v8656_v57, %v2984_v6  ;;  %v3125_v50 = vmul.f32 0.0078125, %v3070_v40  ;;  %v3047_v53 = vmul.f32 %v8793_v3, %v8793_v3 }
 0x8fb   : > { %v3072_v59 = vpop.xlane.xlu1 %3071  ;;  %3484 = vmatmul.mubr.bf16.gmra.mrb[132].mxu0 %v3318_v60  ;;  %v3218_v31 = vmul.f32 %v6231_v16, %v8624_v25  ;;  %v3253_v33 = vmul.f32 %v8753_v48, %v3217_v12 }
 0x8fc   : > { %v3157_v56 = vadd.f32 1e-05, %v3125_v50  ;;  %v3126_v14 = vmul.f32 0.0078125, %v3072_v59  ;;  %3105 = vadd.xlane.f32.xlu0 %v3047_v53  ;;  %v3048_v19 = vmul.f32 %v8797_v30, %v8797_v30  ;;  %3493 = vmatprep.mubr.bf16.mxu0 %v10336_v28 }
 0x8fd   : > { %v2950_v39 = vpop.xlane.xlu0 %2949  ;;  %v3254_v32 = vmul.f32 %v8753_v48, %v3218_v31  ;;  %v3289_v25 = vadd.f32 %v8768_v1, %v3253_v33 }
 0x8fe   : > { %6236 = vrsqrt.f32 %v3157_v56  ;;  %v3158_v4 = vadd.f32 1e-05, %v3126_v14  ;;  %v2985_v15 = vmul.f32 0.0078125, %v2950_v39  ;;  %3107 = vadd.xlane.f32.xlu1 %v3048_v19 }
 0x8ff   : > { %v2952_v6 = vpop.xlane.xlu1 %2951  ;;  %v3290_v40 = vadd.f32 %v8768_v1, %v3254_v32 }
 0x900   : > { %v6233_v60 = vpop.eup %6232  ;;  %6238 = vrsqrt.f32 %v3158_v4  ;;  %v8810_v12 = vsub.f32 %v8673_v49, %v2985_v15  ;;  %v2986_v16 = vmul.f32 0.0078125, %v2952_v6 }
 0x901   : > { %v3074_v50 = vpop.xlane.xlu0 %3073  ;;  %v3319_v53 = vpack.c.bf16 %v3290_v40, %v3289_v25  ;;  %v3219_v59 = vmul.f32 %v6233_v60, %v8636_v29 }
 0x902   : > { %v6235_v31 = vpop.eup %6234  ;;  %v8814_v56 = vsub.f32 %v8679_v62, %v2986_v16  ;;  %v3127_v14 = vmul.f32 0.0078125, %v3074_v50  ;;  %v3049_v33 = vmul.f32 %v8810_v12, %v8810_v12 }
 0x903   : > { %v3076_v19 = vpop.xlane.xlu1 %3075  ;;  %3494 = vmatmul.mubr.bf16.gmra.mrb[136].mxu0 %v3319_v53  ;;  %v3220_v39 = vmul.f32 %v6235_v31, %v8642_v9  ;;  %v3255_v32 = vmul.f32 %v8753_v48, %v3219_v59 }
 0x904   : > { %v3159_v4 = vadd.f32 1e-05, %v3127_v14  ;;  %v3128_v15 = vmul.f32 0.0078125, %v3076_v19  ;;  %3109 = vadd.xlane.f32.xlu0 %v3049_v33  ;;  %v3050_v29 = vmul.f32 %v8814_v56, %v8814_v56  ;;  %3503 = vmatprep.mubr.bf16.mxu0 %v10336_v28 }
 0x905   : > { %v2954_v6 = vpop.xlane.xlu0 %2953  ;;  %v3256_v25 = vmul.f32 %v8753_v48, %v3220_v39  ;;  %v3291_v9 = vadd.f32 %v8768_v1, %v3255_v32 }
 0x906   : > { %6240 = vrsqrt.f32 %v3159_v4  ;;  %v3160_v40 = vadd.f32 1e-05, %v3128_v15  ;;  %v2987_v60 = vmul.f32 0.0078125, %v2954_v6  ;;  %3111 = vadd.xlane.f32.xlu1 %v3050_v29 }
 0x907   : > { %v2956_v16 = vpop.xlane.xlu1 %2955  ;;  %v3292_v50 = vadd.f32 %v8768_v1, %v3256_v25 }
 0x908   : > { %v6237_v53 = vpop.eup %6236  ;;  %6242 = vrsqrt.f32 %v3160_v40  ;;  %v8827_v59 = vsub.f32 %v8693_v2, %v2987_v60  ;;  %v2988_v31 = vmul.f32 0.0078125, %v2956_v16 }
 0x909   : > { %v3078_v14 = vpop.xlane.xlu0 %3077  ;;  %v3320_v33 = vpack.c.bf16 %v3292_v50, %v3291_v9  ;;  %v3221_v19 = vmul.f32 %v6237_v53, %v8659_v22 }
 0x90a   : > { %v6239_v39 = vpop.eup %6238  ;;  %v8831_v4 = vsub.f32 %v8696_v54, %v2988_v31  ;;  %v3129_v15 = vmul.f32 0.0078125, %v3078_v14  ;;  %v3051_v32 = vmul.f32 %v8827_v59, %v8827_v59 }
 0x90b   : > { %v3080_v29 = vpop.xlane.xlu1 %3079  ;;  %3504 = vmatmul.mubr.bf16.gmra.mrb[140].mxu0 %v3320_v33  ;;  %v3222_v6 = vmul.f32 %v6239_v39, %v8664_v34  ;;  %v3257_v25 = vmul.f32 %v8753_v48, %v3221_v19 }
 0x90c   : > { %v3161_v40 = vadd.f32 1e-05, %v3129_v15  ;;  %v3130_v60 = vmul.f32 0.0078125, %v3080_v29  ;;  %3113 = vadd.xlane.f32.xlu0 %v3051_v32  ;;  %v3052_v22 = vmul.f32 %v8831_v4, %v8831_v4  ;;  %3513 = vmatprep.mubr.bf16.mxu0 %v10336_v28 }
 0x90d   : > { %v3082_v16 = vpop.xlane.xlu0 %3081  ;;  %v3258_v9 = vmul.f32 %v8753_v48, %v3222_v6  ;;  %v3293_v34 = vadd.f32 %v8768_v1, %v3257_v25 }
 0x90e   : > { %6244 = vrsqrt.f32 %v3161_v40  ;;  %v3162_v50 = vadd.f32 1e-05, %v3130_v60  ;;  %v3131_v53 = vmul.f32 0.0078125, %v3082_v16  ;;  %3115 = vadd.xlane.f32.xlu1 %v3052_v22 }
 0x90f   : > { %v3084_v31 = vpop.xlane.xlu1 %3083  ;;  %v3294_v14 = vadd.f32 %v8768_v1, %v3258_v9 }
 0x910   : > { %v6241_v33 = vpop.eup %6240  ;;  %6246 = vrsqrt.f32 %v3162_v50  ;;  %v3163_v19 = vadd.f32 1e-05, %v3131_v53  ;;  %v3132_v39 = vmul.f32 0.0078125, %v3084_v31 }
 0x911   : > { %v3321_v15 = vpack.c.bf16 %v3294_v14, %v3293_v34  ;;  %v3223_v32 = vmul.f32 %v6241_v33, %v8676_v27 }
 0x912   : > { %v6243_v29 = vpop.eup %6242  ;;  %6248 = vrsqrt.f32 %v3163_v19  ;;  %v3164_v54 = vadd.f32 1e-05, %v3132_v39 }
 0x913   : > { %3514 = vmatmul.mubr.bf16.gmra.mrb[144].mxu0 %v3321_v15  ;;  %v3224_v6 = vmul.f32 %v6243_v29, %v8682_v46  ;;  %v3259_v40 = vmul.f32 %v8753_v48, %v3223_v32 }
 0x914   : > { %6250 = vrsqrt.f32 %v3164_v54  ;;  %3523 = vmatprep.mubr.bf16.mxu0 %v10336_v28 }
 0x915   : > { %v3260_v25 = vmul.f32 %v8753_v48, %v3224_v6  ;;  %v3295_v60 = vadd.f32 %v8768_v1, %v3259_v40 }
 0x917   : > { %v3296_v22 = vadd.f32 %v8768_v1, %v3260_v25 }
 0x918   : > { %v6245_v16 = vpop.eup %6244 }
 0x919   : > { %v3086_v9 = vpop.xlane.xlu0 %3085  ;;  %v3322_v27 = vpack.c.bf16 %v3296_v22, %v3295_v60  ;;  %v3225_v50 = vmul.f32 %v6245_v16, %v8699_v23 }
 0x91a   : > { %v6247_v53 = vpop.eup %6246  ;;  %v3133_v31 = vmul.f32 0.0078125, %v3086_v9 }
 0x91b   : > { %v3088_v34 = vpop.xlane.xlu1 %3087  ;;  %3524 = vmatmul.mubr.bf16.gmra.mrb[148].mxu0 %v3322_v27  ;;  %v3226_v46 = vmul.f32 %v6247_v53, %v8703_v36  ;;  %v3261_v54 = vmul.f32 %v8753_v48, %v3225_v50 }
 0x91c   : > { %v6249_v14 = vpop.eup %6248  ;;  %v3165_v33 = vadd.f32 1e-05, %v3133_v31  ;;  %v3134_v19 = vmul.f32 0.0078125, %v3088_v34  ;;  %3533 = vmatprep.mubr.bf16.mxu0 %v10336_v28 }
 0x91d   : > { %v3090_v39 = vpop.xlane.xlu0 %3089  ;;  %v3262_v15 = vmul.f32 %v8753_v48, %v3226_v46  ;;  %v3297_v40 = vadd.f32 %v8768_v1, %v3261_v54  ;;  %v3227_v36 = vmul.f32 %v6249_v14, %v8709_v18 }
 0x91e   : > { %v6251_v32 = vpop.eup %6250  ;;  %6252 = vrsqrt.f32 %v3165_v33  ;;  %v3166_v29 = vadd.f32 1e-05, %v3134_v19  ;;  %v3135_v23 = vmul.f32 0.0078125, %v3090_v39 }
 0x91f   : > { %v3092_v6 = vpop.xlane.xlu1 %3091  ;;  %v3298_v25 = vadd.f32 %v8768_v1, %v3262_v15  ;;  %v3228_v60 = vmul.f32 %v6251_v32, %v8714_v63  ;;  %v3263_v53 = vmul.f32 %v8753_v48, %v3227_v36 }
 0x920   : > { %6254 = vrsqrt.f32 %v3166_v29  ;;  %v3167_v22 = vadd.f32 1e-05, %v3135_v23  ;;  %v3136_v16 = vmul.f32 0.0078125, %v3092_v6 }
 0x921   : > { %v3323_v9 = vpack.c.bf16 %v3298_v25, %v3297_v40  ;;  %v3264_v27 = vmul.f32 %v8753_v48, %v3228_v60  ;;  %v3299_v18 = vadd.f32 %v8768_v1, %v3263_v53  ;;  %v5955_v53 = vld [vmem:[#allocation13 + $0x18] sm:$0xff]  }
 0x922   : > { %6256 = vrsqrt.f32 %v3167_v22  ;;  %v3168_v50 = vadd.f32 1e-05, %v3136_v16  ;;  %v5948_v22 = vld [vmem:[#allocation13 + $0x40] sm:$0xff]   ;;  %v5951_v16 = vld [vmem:[#allocation13 + $0x8] sm:$0xff]  }
 0x923   : > { %3534 = vmatmul.mubr.bf16.gmra.mrb[152].mxu0 %v3323_v9  ;;  %v3300_v31 = vadd.f32 %v8768_v1, %v3264_v27  ;;  %5563 = vmatprep.subr.bf16.mxu1 %v5948_v22  ;;  %v5952_v9 = vld [vmem:[#allocation13 + $0x50] sm:$0xff]  }
 0x924   : > { %6258 = vrsqrt.f32 %v3168_v50  ;;  %3543 = vmatprep.mubr.bf16.mxu0 %v10336_v28  ;;  %v5953_v27 = vld [vmem:[#allocation13 + $0x10] sm:$0xff]   ;;  %v5954_v50 = vld [vmem:[#allocation13 + $0x58] sm:$0xff]  }
 0x925   : > { %v3324_v63 = vpack.c.bf16 %v3300_v31, %v3299_v18  ;;  %v5956_v31 = vld [vmem:[#allocation13 + $0x60] sm:$0xff]  }
 0x926   : > { %v5957_v18 = vld [vmem:[#allocation13 + $0x20] sm:$0xff]  }
 0x928   : > { %v6253_v34 = vpop.eup %6252 }
 0x929   : > { %v3229_v46 = vmul.f32 %v6253_v34, %v8721_v45  ;;  %v5958_v34 = vld [vmem:[#allocation13 + $0x68] sm:$0xff]  }
 0x92a   : > { %v6255_v54 = vpop.eup %6254 }
 0x92b   : > { %3544 = vmatmul.mubr.bf16.gmra.mrb[156].mxu0 %v3324_v63  ;;  %v3230_v14 = vmul.f32 %v6255_v54, %v8724_v10  ;;  %v3265_v33 = vmul.f32 %v8753_v48, %v3229_v46  ;;  %v5959_v63 = vld [vmem:[#allocation13 + $0x28] sm:$0xff]   ;;  %v5960_v46 = vld [vmem:[#allocation13 + $0x70] sm:$0xff]  }
 0x92c   : > { %v6257_v19 = vpop.eup %6256  ;;  %3553 = vmatprep.mubr.bf16.mxu0 %v10336_v28  ;;  %v5961_v54 = vld [vmem:[#allocation13 + $0x30] sm:$0xff]  }
 0x92d   : > { %v3266_v39 = vmul.f32 %v8753_v48, %v3230_v14  ;;  %v3301_v32 = vadd.f32 %v8768_v1, %v3265_v33  ;;  %v3231_v23 = vmul.f32 %v6257_v19, %v8729_v47  ;;  %v5949_v47 = vld [vmem:[#allocation13] sm:$0xff]   ;;  %v5962_v14 = vld [vmem:[#allocation13 + $0x78] sm:$0xff]  }
 0x92e   : > { %v6259_v15 = vpop.eup %6258  ;;  %5564 = vmatpush3.bf16.msra.mxu1 %v5949_v47  ;;  %v5963_v33 = vld [vmem:[#allocation13 + $0x38] sm:$0xff]  }
 0x92f   : > { %v3302_v29 = vadd.f32 %v8768_v1, %v3266_v39  ;;  %v3232_v45 = vmul.f32 %v6259_v15, %v8734_v21  ;;  %v3267_v10 = vmul.f32 %v8753_v48, %v3231_v23  ;;  %v5950_v21 = vld [vmem:[#allocation13 + $0x48] sm:$0xff]  }
 0x930   : > { %5565 = vmatprep.subr.bf16.mxu1 %v5950_v21 }
 0x931   : > { %v3325_v6 = vpack.c.bf16 %v3302_v29, %v3301_v32  ;;  %v3268_v40 = vmul.f32 %v8753_v48, %v3232_v45  ;;  %v3303_v36 = vadd.f32 %v8768_v1, %v3267_v10 }
 0x932   : > { %5566 = vmatpush3.bf16.msra.mxu1 %v5951_v16 }
 0x933   : > { %3554 = vmatmul.mubr.bf16.gmra.mrb[160].mxu0 %v3325_v6  ;;  %v3304_v25 = vadd.f32 %v8768_v1, %v3268_v40  ;;  %5567 = vmatprep.subr.bf16.mxu1 %v5952_v9 }
 0x934   : > { %3563 = vmatprep.mubr.bf16.mxu0 %v10336_v28 }
 0x935   : > { %v3326_v60 = vpack.c.bf16 %v3304_v25, %v3303_v36 }
 0x936   : > { %5568 = vmatpush3.bf16.msra.mxu1 %v5953_v27 }
 0x937   : > { %5569 = vmatprep.subr.bf16.mxu1 %v5954_v50 }
 0x93a   : > { %5570 = vmatpush3.bf16.msra.mxu1 %v5955_v53 }
 0x93b   : > { %3564 = vmatmul.mubr.bf16.gmra.mrb[164].mxu0 %v3326_v60  ;;  %5571 = vmatprep.subr.bf16.mxu1 %v5956_v31 }
 0x93c   : > { %3573 = vmatprep.mubr.bf16.mxu0 %v10336_v28 }
 0x93e   : > { %5572 = vmatpush3.bf16.msra.mxu1 %v5957_v18 }
 0x93f   : > { %5573 = vmatprep.subr.bf16.mxu1 %v5958_v34 }
 0x942   : > { %5574 = vmatpush3.bf16.msra.mxu1 %v5959_v63 }
 0x943   : > { %5575 = vmatprep.subr.bf16.mxu1 %v5960_v46 }
 0x946   : > { %5576 = vmatpush3.bf16.msra.mxu1 %v5961_v54 }
 0x947   : > { %5577 = vmatprep.subr.bf16.mxu1 %v5962_v14 }
 0x94a   : > { %5578 = vmatpush3.bf16.msra.mxu1 %v5963_v33 }
 0x971   : > { %v3094_v19 = vpop.xlane.xlu0 %3093 }
 0x972   : > { %v3137_v39 = vmul.f32 0.0078125, %v3094_v19 }
 0x973   : > { %v3096_v15 = vpop.xlane.xlu1 %3095 }
 0x974   : > { %v3169_v32 = vadd.f32 1e-05, %v3137_v39  ;;  %v3138_v29 = vmul.f32 0.0078125, %v3096_v15 }
 0x976   : > { %6260 = vrsqrt.f32 %v3169_v32  ;;  %v3170_v23 = vadd.f32 1e-05, %v3138_v29 }
 0x978   : > { %6262 = vrsqrt.f32 %v3170_v23 }
 0x979   : > { %v3098_v45 = vpop.xlane.xlu0 %3097 }
 0x97a   : > { %v3139_v6 = vmul.f32 0.0078125, %v3098_v45 }
 0x97b   : > { %v3100_v40 = vpop.xlane.xlu1 %3099 }
 0x97c   : > { %v3171_v10 = vadd.f32 1e-05, %v3139_v6  ;;  %v3140_v25 = vmul.f32 0.0078125, %v3100_v40 }
 0x97e   : > { %6264 = vrsqrt.f32 %v3171_v10  ;;  %v3172_v36 = vadd.f32 1e-05, %v3140_v25 }
 0x980   : > { %v6261_v60 = vpop.eup %6260  ;;  %6266 = vrsqrt.f32 %v3172_v36 }
 0x981   : > { %v3102_v22 = vpop.xlane.xlu0 %3101  ;;  %v3233_v47 = vmul.f32 %v6261_v60, %v8741_v52 }
 0x982   : > { %v6263_v21 = vpop.eup %6262  ;;  %v3141_v16 = vmul.f32 0.0078125, %v3102_v22 }
 0x983   : > { %v3104_v9 = vpop.xlane.xlu1 %3103  ;;  %v3234_v27 = vmul.f32 %v6263_v21, %v8744_v20  ;;  %v3269_v50 = vmul.f32 %v8753_v48, %v3233_v47 }
 0x984   : > { %v3173_v53 = vadd.f32 1e-05, %v3141_v16  ;;  %v3142_v31 = vmul.f32 0.0078125, %v3104_v9 }
 0x985   : > { %v3270_v18 = vmul.f32 %v8753_v48, %v3234_v27  ;;  %v3305_v63 = vadd.f32 %v8768_v1, %v3269_v50 }
 0x986   : > { %6268 = vrsqrt.f32 %v3173_v53  ;;  %v3174_v34 = vadd.f32 1e-05, %v3142_v31 }
 0x987   : > { %v3306_v46 = vadd.f32 %v8768_v1, %v3270_v18 }
 0x988   : > { %v6265_v54 = vpop.eup %6264  ;;  %6270 = vrsqrt.f32 %v3174_v34 }
 0x989   : > { %v3106_v52 = vpop.xlane.xlu0 %3105  ;;  %v3327_v14 = vpack.c.bf16 %v3306_v46, %v3305_v63  ;;  %v3235_v33 = vmul.f32 %v6265_v54, %v8757_v42 }
 0x98a   : > { %v6267_v19 = vpop.eup %6266  ;;  %v3143_v20 = vmul.f32 0.0078125, %v3106_v52 }
 0x98b   : > { %v3108_v39 = vpop.xlane.xlu1 %3107  ;;  %3574 = vmatmul.mubr.bf16.gmra.mrb[168].mxu0 %v3327_v14  ;;  %v3236_v15 = vmul.f32 %v6267_v19, %v8761_v41  ;;  %v3271_v32 = vmul.f32 %v8753_v48, %v3235_v33 }
 0x98c   : > { %v3175_v29 = vadd.f32 1e-05, %v3143_v20  ;;  %v3144_v23 = vmul.f32 0.0078125, %v3108_v39  ;;  %3583 = vmatprep.mubr.bf16.mxu0 %v10336_v28 }
 0x98d   : > { %v3272_v45 = vmul.f32 %v8753_v48, %v3236_v15  ;;  %v3307_v40 = vadd.f32 %v8768_v1, %v3271_v32 }
 0x98e   : > { %6272 = vrsqrt.f32 %v3175_v29  ;;  %v3176_v6 = vadd.f32 1e-05, %v3144_v23 }
 0x98f   : > { %v3308_v42 = vadd.f32 %v8768_v1, %v3272_v45 }
 0x990   : > { %v6269_v10 = vpop.eup %6268  ;;  %6274 = vrsqrt.f32 %v3176_v6 }
 0x991   : > { %v3110_v25 = vpop.xlane.xlu0 %3109  ;;  %v3328_v36 = vpack.c.bf16 %v3308_v42, %v3307_v40  ;;  %v3237_v41 = vmul.f32 %v6269_v10, %v8776_v26 }
 0x992   : > { %v6271_v60 = vpop.eup %6270  ;;  %v3145_v22 = vmul.f32 0.0078125, %v3110_v25 }
 0x993   : > { %v3112_v47 = vpop.xlane.xlu1 %3111  ;;  %3584 = vmatmul.mubr.bf16.gmra.mrb[172].mxu0 %v3328_v36  ;;  %v3238_v21 = vmul.f32 %v6271_v60, %v8780_v55  ;;  %v3273_v16 = vmul.f32 %v8753_v48, %v3237_v41 }
 0x994   : > { %v3177_v9 = vadd.f32 1e-05, %v3145_v22  ;;  %v3146_v27 = vmul.f32 0.0078125, %v3112_v47  ;;  %3593 = vmatprep.mubr.bf16.mxu0 %v10336_v28 }
 0x995   : > { %v3274_v50 = vmul.f32 %v8753_v48, %v3238_v21  ;;  %v3309_v31 = vadd.f32 %v8768_v1, %v3273_v16 }
 0x996   : > { %6276 = vrsqrt.f32 %v3177_v9  ;;  %v3178_v53 = vadd.f32 1e-05, %v3146_v27  ;;  %v10398_v27 = vld [vmem:[#allocation54_spill] sm:$0xff] }
 0x997   : > { %v3310_v26 = vadd.f32 %v8768_v1, %v3274_v50 }
 0x998   : > { %v6273_v18 = vpop.eup %6272  ;;  %6278 = vrsqrt.f32 %v3178_v53 }
 0x999   : > { %v3114_v34 = vpop.xlane.xlu0 %3113  ;;  %v3329_v63 = vpack.c.bf16 %v3310_v26, %v3309_v31  ;;  %v3239_v55 = vmul.f32 %v6273_v18, %v8793_v3 }
 0x99a   : > { %v6275_v46 = vpop.eup %6274  ;;  %v3147_v54 = vmul.f32 0.0078125, %v3114_v34 }
 0x99b   : > { %v3116_v52 = vpop.xlane.xlu1 %3115  ;;  %3594 = vmatmul.mubr.bf16.gmra.mrb[176].mxu0 %v3329_v63  ;;  %v3240_v14 = vmul.f32 %v6275_v46, %v8797_v30  ;;  %v3275_v33 = vmul.f32 %v8753_v48, %v3239_v55 }
 0x99c   : > { %v3179_v19 = vadd.f32 1e-05, %v3147_v54  ;;  %v3148_v20 = vmul.f32 0.0078125, %v3116_v52  ;;  %3603 = vmatprep.mubr.bf16.mxu0 %v10336_v28 }
 0x99d   : > { %v3276_v39 = vmul.f32 %v8753_v48, %v3240_v14  ;;  %v3311_v32 = vadd.f32 %v8768_v1, %v3275_v33 }
 0x99e   : > { %6280 = vrsqrt.f32 %v3179_v19  ;;  %v3180_v15 = vadd.f32 1e-05, %v3148_v20 }
 0x99f   : > { %v3312_v3 = vadd.f32 %v8768_v1, %v3276_v39 }
 0x9a0   : > { %v6277_v29 = vpop.eup %6276  ;;  %6282 = vrsqrt.f32 %v3180_v15 }
 0x9a1   : > { %v3330_v23 = vpack.c.bf16 %v3312_v3, %v3311_v32  ;;  %v3241_v45 = vmul.f32 %v6277_v29, %v8810_v12 }
 0x9a2   : > { %v6279_v30 = vpop.eup %6278 }
 0x9a3   : > { %3604 = vmatmul.mubr.bf16.gmra.mrb[180].mxu0 %v3330_v23  ;;  %v3242_v6 = vmul.f32 %v6279_v30, %v8814_v56  ;;  %v3277_v40 = vmul.f32 %v8753_v48, %v3241_v45 }
 0x9a4   : > { %3613 = vmatprep.mubr.bf16.mxu0 %v10336_v28 }
 0x9a5   : > { %v3278_v42 = vmul.f32 %v8753_v48, %v3242_v6  ;;  %v3313_v10 = vadd.f32 %v8768_v1, %v3277_v40 }
 0x9a7   : > { %v3314_v25 = vadd.f32 %v8768_v1, %v3278_v42 }
 0x9a8   : > { %v6281_v36 = vpop.eup %6280 }
 0x9a9   : > { %v3331_v41 = vpack.c.bf16 %v3314_v25, %v3313_v10  ;;  %v3243_v60 = vmul.f32 %v6281_v36, %v8827_v59  ;;  %v3349_v59 = vld [vmem:[%s10397_s6] sm:$0x3] }
 0x9aa   : > { %v6283_v22 = vpop.eup %6282  ;;  %v8924_v50 = vrot.slane %v3349_v59, %v10398_v27 }
 0x9ab   : > { %3614 = vmatmul.mubr.bf16.gmra.mrb[184].mxu0 %v3331_v41  ;;  %v3244_v12 = vmul.f32 %v6283_v22, %v8831_v4  ;;  %v3279_v56 = vmul.f32 %v8753_v48, %v3243_v60  ;;  %v10399_v4 = vld [vmem:[#allocation55_spill] sm:$0xff] }
 0x9ac   : > { %3623 = vmatprep.mubr.bf16.mxu0 %v10336_v28  ;;  %v8927_v53 = vrot.slane %v3349_v59, %v10399_v4 }
 0x9ad   : > { %v3280_v47 = vmul.f32 %v8753_v48, %v3244_v12  ;;  %v3315_v21 = vadd.f32 %v8768_v1, %v3279_v56 }
 0x9af   : > { %v3316_v16 = vadd.f32 %v8768_v1, %v3280_v47 }
 0x9b1   : > { %v3332_v9 = vpack.c.bf16 %v3316_v16, %v3315_v21 }
 0x9b3   : > { %3624 = vmatmul.mubr.bf16.gmra.mrb[188].mxu0 %v3332_v9 }
 0x9c6   : > { %v3475_v31 = vpop.f32.mrb[128].mxu0 }
 0x9c7   : > { %v8930_v28 = vadd.f32 %v3475_v31, %v8924_v50  ;;  %v3477_v48 = vpop.f32.mrb[129].mxu0 }
 0x9c8   : > { %v8933_v26 = vadd.f32 %v3477_v48, %v8927_v53  ;;  %v3479_v1 = vpop.f32.mrb[130].mxu0 }
 0x9c9   : > { %v3634_v18 = vmul.f32 %v8930_v28, %v8930_v28  ;;  %v8938_v34 = vadd.f32 %v3479_v1, %v8924_v50  ;;  %v3481_v63 = vpop.f32.mrb[131].mxu0 }
 0x9ca   : > { %v3635_v55 = vmul.f32 %v8933_v26, %v8933_v26  ;;  %v8943_v46 = vadd.f32 %v3481_v63, %v8927_v53 }
 0x9cb   : > { %v3698_v54 = vmul.f32 %v3634_v18, %v8930_v28  ;;  %v3636_v52 = vmul.f32 %v8938_v34, %v8938_v34 }
 0x9cc   : > { %v3699_v14 = vmul.f32 %v3635_v55, %v8933_v26  ;;  %v3637_v33 = vmul.f32 %v8943_v46, %v8943_v46 }
 0x9cd   : > { %v3762_v19 = vmul.f32 0.044715, %v3698_v54  ;;  %v3700_v20 = vmul.f32 %v3636_v52, %v8938_v34 }
 0x9ce   : > { %v3763_v39 = vmul.f32 0.044715, %v3699_v14  ;;  %v3701_v15 = vmul.f32 %v3637_v33, %v8943_v46  ;;  %v3485_v32 = vpop.f32.mrb[132].mxu0 }
 0x9cf   : > { %v3826_v3 = vadd.f32 %v3762_v19, %v8930_v28  ;;  %v3764_v29 = vmul.f32 0.044715, %v3700_v20  ;;  %v8955_v23 = vadd.f32 %v3485_v32, %v8924_v50  ;;  %v3487_v45 = vpop.f32.mrb[133].mxu0 }
 0x9d0   : > { %v3827_v30 = vadd.f32 %v3763_v39, %v8933_v26  ;;  %v3765_v6 = vmul.f32 0.044715, %v3701_v15  ;;  %v8959_v40 = vadd.f32 %v3487_v45, %v8927_v53  ;;  %v3489_v42 = vpop.f32.mrb[134].mxu0 }
 0x9d1   : > { %v3890_v10 = vmul.f32 0.7978846, %v3826_v3  ;;  %v3828_v25 = vadd.f32 %v3764_v29, %v8938_v34  ;;  %v3638_v36 = vmul.f32 %v8955_v23, %v8955_v23  ;;  %v8965_v41 = vadd.f32 %v3489_v42, %v8924_v50  ;;  %v3491_v60 = vpop.f32.mrb[135].mxu0 }
 0x9d2   : > { %v3891_v22 = vmul.f32 0.7978846, %v3827_v30  ;;  %v3829_v12 = vadd.f32 %v3765_v6, %v8943_v46  ;;  %v3639_v56 = vmul.f32 %v8959_v40, %v8959_v40  ;;  %v8971_v47 = vadd.f32 %v3491_v60, %v8927_v53 }
 0x9d3   : > { %6284 = vtanh.f32 %v3890_v10  ;;  %v3892_v21 = vmul.f32 0.7978846, %v3828_v25  ;;  %v3702_v16 = vmul.f32 %v3638_v36, %v8955_v23  ;;  %v3640_v9 = vmul.f32 %v8965_v41, %v8965_v41 }
 0x9d4   : > { %6286 = vtanh.f32 %v3891_v22  ;;  %v3893_v59 = vmul.f32 0.7978846, %v3829_v12  ;;  %v3703_v27 = vmul.f32 %v3639_v56, %v8959_v40  ;;  %v3641_v4 = vmul.f32 %v8971_v47, %v8971_v47 }
 0x9d5   : > { %6288 = vtanh.f32 %v3892_v21  ;;  %v3766_v31 = vmul.f32 0.044715, %v3702_v16  ;;  %v3704_v48 = vmul.f32 %v3640_v9, %v8965_v41 }
 0x9d6   : > { %v3767_v1 = vmul.f32 0.044715, %v3703_v27  ;;  %v3705_v18 = vmul.f32 %v3641_v4, %v8971_v47  ;;  %v3495_v63 = vpop.f32.mrb[136].mxu0  ;;  %6290 = vtanh.f32 %v3893_v59 }
 0x9d7   : > { %v3830_v55 = vadd.f32 %v3766_v31, %v8955_v23  ;;  %v3768_v54 = vmul.f32 0.044715, %v3704_v48  ;;  %v8983_v52 = vadd.f32 %v3495_v63, %v8924_v50  ;;  %v3497_v14 = vpop.f32.mrb[137].mxu0 }
 0x9d8   : > { %v3831_v33 = vadd.f32 %v3767_v1, %v8959_v40  ;;  %v3769_v19 = vmul.f32 0.044715, %v3705_v18  ;;  %v8987_v20 = vadd.f32 %v3497_v14, %v8927_v53  ;;  %v3499_v39 = vpop.f32.mrb[138].mxu0 }
 0x9d9   : > { %v3894_v15 = vmul.f32 0.7978846, %v3830_v55  ;;  %v3832_v32 = vadd.f32 %v3768_v54, %v8965_v41  ;;  %v3642_v3 = vmul.f32 %v8983_v52, %v8983_v52  ;;  %v8993_v29 = vadd.f32 %v3499_v39, %v8924_v50  ;;  %v3501_v45 = vpop.f32.mrb[139].mxu0 }
 0x9da   : > { %v3895_v30 = vmul.f32 0.7978846, %v3831_v33  ;;  %v3833_v6 = vadd.f32 %v3769_v19, %v8971_v47  ;;  %v3643_v42 = vmul.f32 %v8987_v20, %v8987_v20  ;;  %v8999_v10 = vadd.f32 %v3501_v45, %v8927_v53 }
 0x9db   : > { %6292 = vtanh.f32 %v3894_v15  ;;  %v3896_v25 = vmul.f32 0.7978846, %v3832_v32  ;;  %v3706_v36 = vmul.f32 %v3642_v3, %v8983_v52  ;;  %v3644_v60 = vmul.f32 %v8993_v29, %v8993_v29 }
 0x9dc   : > { %6294 = vtanh.f32 %v3895_v30  ;;  %v3897_v22 = vmul.f32 0.7978846, %v3833_v6  ;;  %v3707_v12 = vmul.f32 %v3643_v42, %v8987_v20  ;;  %v3645_v56 = vmul.f32 %v8999_v10, %v8999_v10 }
 0x9dd   : > { %v6285_v21 = vpop.eup %6284  ;;  %6296 = vtanh.f32 %v3896_v25  ;;  %v3770_v16 = vmul.f32 0.044715, %v3706_v36  ;;  %v3708_v9 = vmul.f32 %v3644_v60, %v8993_v29 }
 0x9de   : > { %v6287_v59 = vpop.eup %6286  ;;  %v4018_v27 = vadd.f32 1.0, %v6285_v21  ;;  %6298 = vtanh.f32 %v3897_v22  ;;  %v3771_v4 = vmul.f32 0.044715, %v3707_v12  ;;  %v3709_v31 = vmul.f32 %v3645_v56, %v8999_v10  ;;  %v3505_v48 = vpop.f32.mrb[140].mxu0 }
 0x9df   : > { %v6289_v1 = vpop.eup %6288  ;;  %v3834_v18 = vadd.f32 %v3770_v16, %v8983_v52  ;;  %v3772_v63 = vmul.f32 0.044715, %v3708_v9  ;;  %v9011_v55 = vadd.f32 %v3505_v48, %v8924_v50  ;;  %v3507_v54 = vpop.f32.mrb[141].mxu0  ;;  %v4019_v14 = vadd.f32 1.0, %v6287_v59 }
 0x9e0   : > { %v4082_v33 = vmul.f32 0.5, %v4018_v27  ;;  %v4020_v19 = vadd.f32 1.0, %v6289_v1  ;;  %v3835_v39 = vadd.f32 %v3771_v4, %v8987_v20  ;;  %v3773_v15 = vmul.f32 0.044715, %v3709_v31  ;;  %v3509_v32 = vpop.f32.mrb[142].mxu0  ;;  %v6291_v25 = vpop.eup %6290 }
 0x9e1   : > { %v3898_v3 = vmul.f32 0.7978846, %v3834_v18  ;;  %v3836_v45 = vadd.f32 %v3772_v63, %v8993_v29  ;;  %v3646_v30 = vmul.f32 %v9011_v55, %v9011_v55  ;;  %v9018_v6 = vadd.f32 %v3507_v54, %v8927_v53  ;;  %v3511_v42 = vpop.f32.mrb[143].mxu0 }
 0x9e2   : > { %v9021_v36 = vmul.f32 %v4082_v33, %v8930_v28  ;;  %v4084_v60 = vmul.f32 0.5, %v4020_v19  ;;  %v3899_v22 = vmul.f32 0.7978846, %v3835_v39  ;;  %v3837_v12 = vadd.f32 %v3773_v15, %v8999_v10 }
 0x9e3   : > { %6300 = vtanh.f32 %v3898_v3  ;;  %v3900_v56 = vmul.f32 0.7978846, %v3836_v45  ;;  %v3710_v21 = vmul.f32 %v3646_v30, %v9011_v55  ;;  %v3647_v16 = vmul.f32 %v9018_v6, %v9018_v6 }
 0x9e4   : > { %v9028_v9 = vmul.f32 %v4084_v60, %v8938_v34  ;;  %6302 = vtanh.f32 %v3899_v22  ;;  %v3901_v59 = vmul.f32 0.7978846, %v3837_v12  ;;  %v9031_v27 = vadd.f32 %v3509_v32, %v8924_v50 }
 0x9e5   : > { %v9033_v28 = vpop.eup %6292  ;;  %6304 = vtanh.f32 %v3900_v56  ;;  %v3774_v4 = vmul.f32 0.044715, %v3710_v21  ;;  %v3711_v31 = vmul.f32 %v3647_v16, %v9018_v6  ;;  %v9037_v48 = vadd.f32 %v3511_v42, %v8927_v53 }
 0x9e6   : > { %v9039_v1 = vpop.eup %6294  ;;  %6306 = vtanh.f32 %v3901_v59  ;;  %v3648_v18 = vmul.f32 %v9031_v27, %v9031_v27  ;;  %v3515_v63 = vpop.f32.mrb[144].mxu0  ;;  %v4021_v54 = vadd.f32 1.0, %v6291_v25  ;;  %v4083_v60 = vmul.f32 0.5, %v4019_v14 }
 0x9e7   : > { %v9045_v33 = vpop.eup %6296  ;;  %v3838_v19 = vadd.f32 %v3774_v4, %v9011_v55  ;;  %v3775_v39 = vmul.f32 0.044715, %v3711_v31  ;;  %v3649_v15 = vmul.f32 %v9037_v48, %v9037_v48  ;;  %v9051_v32 = vadd.f32 %v3515_v63, %v8924_v50  ;;  %v3517_v3 = vpop.f32.mrb[145].mxu0 }
 0x9e8   : > { %v9053_v45 = vpop.eup %6298  ;;  %v3712_v30 = vmul.f32 %v3648_v18, %v9031_v27  ;;  %v9057_v42 = vadd.f32 %v3517_v3, %v8927_v53  ;;  %v3519_v25 = vpop.f32.mrb[146].mxu0  ;;  %v4085_v22 = vmul.f32 0.5, %v4021_v54 }
 0x9e9   : > { %v3902_v12 = vmul.f32 0.7978846, %v3838_v19  ;;  %v3839_v56 = vadd.f32 %v3775_v39, %v9018_v6  ;;  %v3713_v21 = vmul.f32 %v3649_v15, %v9037_v48  ;;  %v3650_v16 = vmul.f32 %v9051_v32, %v9051_v32  ;;  %v3521_v59 = vpop.f32.mrb[147].mxu0 }
 0x9ea   : > { %v3776_v4 = vmul.f32 0.044715, %v3712_v30  ;;  %v3651_v31 = vmul.f32 %v9057_v42, %v9057_v42  ;;  %v9066_v18 = vadd.f32 %v3519_v25, %v8924_v50  ;;  %v9069_v63 = vadd.f32 %v3521_v59, %v8927_v53 }
 0x9eb   : > { %6308 = vtanh.f32 %v3902_v12  ;;  %v3903_v14 = vmul.f32 0.7978846, %v3839_v56  ;;  %v3777_v54 = vmul.f32 0.044715, %v3713_v21  ;;  %v3714_v19 = vmul.f32 %v3650_v16, %v9051_v32 }
 0x9ec   : > { %v3840_v39 = vadd.f32 %v3776_v4, %v9031_v27  ;;  %v3715_v15 = vmul.f32 %v3651_v31, %v9057_v42  ;;  %v3652_v3 = vmul.f32 %v9066_v18, %v9066_v18  ;;  %v3653_v30 = vmul.f32 %v9069_v63, %v9069_v63 }
 0x9ed   : > { %v9078_v25 = vpop.eup %6300  ;;  %6310 = vtanh.f32 %v3903_v14  ;;  %v3841_v59 = vadd.f32 %v3777_v54, %v9037_v48  ;;  %v3778_v12 = vmul.f32 0.044715, %v3714_v19  ;;  %v4147_v56 = vmul.f32 %v4083_v60, %v8933_v26 }
 0x9ee   : > { %v9082_v21 = vpop.eup %6302  ;;  %v3904_v16 = vmul.f32 0.7978846, %v3840_v39  ;;  %v3779_v4 = vmul.f32 0.044715, %v3715_v15  ;;  %v3716_v31 = vmul.f32 %v3652_v3, %v9066_v18  ;;  %v3717_v34 = vmul.f32 %v3653_v30, %v9069_v63  ;;  %v3525_v2 = vpop.f32.mrb[148].mxu0 }
 0x9ef   : > { %v9086_v62 = vpop.eup %6304  ;;  %v3905_v49 = vmul.f32 0.7978846, %v3841_v59  ;;  %v3842_v57 = vadd.f32 %v3778_v12, %v9051_v32  ;;  %v4149_v14 = vmul.f32 %v4085_v22, %v8943_v46  ;;  %v9091_v54 = vadd.f32 %v3525_v2, %v8924_v50  ;;  %v3527_v26 = vpop.f32.mrb[149].mxu0 }
 0x9f0   : > { %v9093_v60 = vpop.eup %6306  ;;  %6312 = vtanh.f32 %v3904_v16  ;;  %v3843_v19 = vadd.f32 %v3779_v4, %v9057_v42  ;;  %v3780_v39 = vmul.f32 0.044715, %v3716_v31  ;;  %v3781_v15 = vmul.f32 0.044715, %v3717_v34  ;;  %v3529_v3 = vpop.f32.mrb[150].mxu0 }
 0x9f1   : > { %6314 = vtanh.f32 %v3905_v49  ;;  %v3906_v30 = vmul.f32 0.7978846, %v3842_v57  ;;  %v4211_v51 = vpack.c.bf16 %v4149_v14, %v4147_v56  ;;  %v3654_v59 = vmul.f32 %v9091_v54, %v9091_v54  ;;  %v3531_v12 = vpop.f32.mrb[151].mxu0 }
 0x9f2   : > { %v3907_v46 = vmul.f32 0.7978846, %v3843_v19  ;;  %v3844_v2 = vadd.f32 %v3780_v39, %v9066_v18  ;;  %v3845_v22 = vadd.f32 %v3781_v15, %v9069_v63  ;;  %v9101_v61 = vadd.f32 %v3527_v26, %v8927_v53 }
 0x9f3   : > { %6316 = vtanh.f32 %v3906_v30  ;;  %4406 = vmatprep.mubr.bf16.mxu1 %v4211_v51  ;;  %v3718_v34 = vmul.f32 %v3654_v59, %v9091_v54  ;;  %v9105_v49 = vadd.f32 %v3529_v3, %v8924_v50  ;;  %v9108_v57 = vadd.f32 %v3531_v12, %v8927_v53 }
 0x9f4   : > { %6318 = vtanh.f32 %v3907_v46  ;;  %v3908_v56 = vmul.f32 0.7978846, %v3844_v2  ;;  %v3909_v16 = vmul.f32 0.7978846, %v3845_v22  ;;  %v10400_v4 = vpack.c.bf16 %v9028_v9, %v9021_v36 }
 0x9f5   : > { %v3655_v31 = vmul.f32 %v9101_v61, %v9101_v61  ;;  %v9115_v14 = vpop.eup %6308  ;;  %v3782_v51 = vmul.f32 0.044715, %v3718_v34  ;;  %v3656_v26 = vmul.f32 %v9105_v49, %v9105_v49  ;;  %v3657_v19 = vmul.f32 %v9108_v57, %v9108_v57 }
 0x9f6   : > { %4407 = vmatmul.mubr.bf16.vlgmr.msra.gmra.mrb[128].mxu1 %v10400_v4  ;;  %v4023_v39 = vadd.f32 1.0, %v9039_v1  ;;  %6320 = vtanh.f32 %v3908_v56  ;;  %v4025_v36 = vadd.f32 1.0, %v9053_v45  ;;  %v4022_v9 = vadd.f32 1.0, %v9033_v28  ;;  %v3535_v3 = vpop.f32.mrb[152].mxu0 }
 0x9f7   : > { %v3719_v15 = vmul.f32 %v3655_v31, %v9101_v61  ;;  %v9125_v30 = vpop.eup %6310  ;;  %6322 = vtanh.f32 %v3909_v16  ;;  %v3846_v59 = vadd.f32 %v3782_v51, %v9091_v54  ;;  %v3720_v12 = vmul.f32 %v3656_v26, %v9105_v49  ;;  %v3537_v2 = vpop.f32.mrb[153].mxu0 }
 0x9f8   : > { %v3721_v46 = vmul.f32 %v3657_v19, %v9108_v57  ;;  %v4087_v1 = vmul.f32 0.5, %v4023_v39  ;;  %v4089_v34 = vmul.f32 0.5, %v4025_v36  ;;  %v4024_v56 = vadd.f32 1.0, %v9045_v33  ;;  %v3539_v4 = vpop.f32.mrb[154].mxu0 }
 0x9f9   : > { %v3783_v22 = vmul.f32 0.044715, %v3719_v15  ;;  %v3910_v45 = vmul.f32 0.7978846, %v3846_v59  ;;  %v3784_v31 = vmul.f32 0.044715, %v3720_v12  ;;  %v9132_v37 = vadd.f32 %v3535_v3, %v8924_v50 }
 0x9fa   : > { %v3785_v28 = vmul.f32 0.044715, %v3721_v46  ;;  %v9134_v16 = vpop.eup %6312  ;;  %v4151_v26 = vmul.f32 %v4087_v1, %v8959_v40  ;;  %v4153_v19 = vmul.f32 %v4089_v34, %v8971_v47  ;;  %v4086_v15 = vmul.f32 0.5, %v4022_v9  ;;  %v3541_v39 = vpop.f32.mrb[155].mxu0 }
 0x9fb   : > { %v3847_v51 = vadd.f32 %v3783_v22, %v9101_v61  ;;  %v9139_v36 = vpop.eup %6314  ;;  %6324 = vtanh.f32 %v3910_v45  ;;  %v3848_v33 = vadd.f32 %v3784_v31, %v9105_v49  ;;  %v4088_v12 = vmul.f32 0.5, %v4024_v56 }
 0x9fc   : > { %v3849_v59 = vadd.f32 %v3785_v28, %v9108_v57  ;;  %v4213_v46 = vpack.c.bf16 %v4153_v19, %v4151_v26  ;;  %v4150_v8 = vmul.f32 %v4086_v15, %v8955_v23  ;;  %v3658_v22 = vmul.f32 %v9132_v37, %v9132_v37 }
 0x9fd   : > { %v3911_v3 = vmul.f32 0.7978846, %v3847_v51  ;;  %v9146_v40 = vpop.eup %6316  ;;  %v3912_v47 = vmul.f32 0.7978846, %v3848_v33  ;;  %v4152_v1 = vmul.f32 %v4088_v12, %v8965_v41  ;;  %v9150_v34 = vadd.f32 %v3537_v2, %v8927_v53 }
 0x9fe   : > { %v3913_v9 = vmul.f32 0.7978846, %v3849_v59  ;;  %v9152_v45 = vpop.eup %6318  ;;  %4414 = vmatprep.mubr.bf16.mxu1 %v4213_v46  ;;  %v3722_v56 = vmul.f32 %v3658_v22, %v9132_v37  ;;  %v9156_v23 = vadd.f32 %v3539_v4, %v8924_v50  ;;  %v9159_v31 = vadd.f32 %v3541_v39, %v8927_v53  ;;  %v3545_v28 = vpop.f32.mrb[156].mxu0 }
 0x9ff   : > { %6326 = vtanh.f32 %v3911_v3  ;;  %v4212_v51 = vpack.c.bf16 %v4152_v1, %v4150_v8  ;;  %v3659_v41 = vmul.f32 %v9150_v34, %v9150_v34  ;;  %v4027_v2 = vadd.f32 1.0, %v9082_v21  ;;  %v3547_v26 = vpop.f32.mrb[157].mxu0 }
 0xa00   : > { %6328 = vtanh.f32 %v3912_v47  ;;  %v9164_v19 = vpop.eup %6320  ;;  %v3786_v15 = vmul.f32 0.044715, %v3722_v56  ;;  %v3660_v4 = vmul.f32 %v9156_v23, %v9156_v23  ;;  %v3661_v39 = vmul.f32 %v9159_v31, %v9159_v31  ;;  %v3549_v33 = vpop.f32.mrb[158].mxu0 }
 0xa01   : > { %6330 = vtanh.f32 %v3913_v9  ;;  %v9170_v59 = vpop.eup %6322  ;;  %4415 = vmatmul.mubr.bf16.gmra.mrb[132].mxu1 %v4212_v51  ;;  %v3723_v8 = vmul.f32 %v3659_v41, %v9150_v34  ;;  %v4029_v12 = vadd.f32 1.0, %v9093_v60  ;;  %v4091_v21 = vmul.f32 0.5, %v4027_v2  ;;  %v3551_v46 = vpop.f32.mrb[159].mxu0 }
 0xa02   : > { %v4026_v3 = vadd.f32 1.0, %v9078_v25  ;;  %v3850_v22 = vadd.f32 %v3786_v15, %v9132_v37  ;;  %v3724_v47 = vmul.f32 %v3660_v4, %v9156_v23  ;;  %v3725_v9 = vmul.f32 %v3661_v39, %v9159_v31 }
 0xa03   : > { %v4028_v1 = vadd.f32 1.0, %v9086_v62  ;;  %v3787_v56 = vmul.f32 0.044715, %v3723_v8  ;;  %v4093_v35 = vmul.f32 0.5, %v4029_v12  ;;  %v4155_v51 = vmul.f32 %v4091_v21, %v8987_v20 }
 0xa04   : > { %v4090_v43 = vmul.f32 0.5, %v4026_v3  ;;  %v3914_v41 = vmul.f32 0.7978846, %v3850_v22  ;;  %v3788_v17 = vmul.f32 0.044715, %v3724_v47  ;;  %v9181_v2 = vadd.f32 %v3545_v28, %v8924_v50 }
 0xa05   : > { %v3789_v60 = vmul.f32 0.044715, %v3725_v9  ;;  %v9183_v25 = vpop.eup %6324  ;;  %v3851_v15 = vadd.f32 %v3787_v56, %v9150_v34  ;;  %v4157_v4 = vmul.f32 %v4093_v35, %v8999_v10  ;;  %v4092_v39 = vmul.f32 0.5, %v4028_v1 }
 0xa06   : > { %v4154_v62 = vmul.f32 %v4090_v43, %v8983_v52  ;;  %6332 = vtanh.f32 %v3914_v41  ;;  %v3852_v8 = vadd.f32 %v3788_v17, %v9156_v23  ;;  %v3662_v12 = vmul.f32 %v9181_v2, %v9181_v2  ;;  %v3555_v21 = vpop.f32.mrb[160].mxu0 }
 0xa07   : > { %v3853_v20 = vadd.f32 %v3789_v60, %v9159_v31  ;;  %v3915_v28 = vmul.f32 0.7978846, %v3851_v15  ;;  %v4215_v3 = vpack.c.bf16 %v4157_v4, %v4155_v51  ;;  %v4156_v22 = vmul.f32 %v4092_v39, %v8993_v29  ;;  %v3557_v35 = vpop.f32.mrb[161].mxu0 }
 0xa08   : > { %v9194_v47 = vadd.f32 %v3547_v26, %v8927_v53  ;;  %v3916_v43 = vmul.f32 0.7978846, %v3852_v8  ;;  %v3726_v17 = vmul.f32 %v3662_v12, %v9181_v2  ;;  %v9200_v9 = vadd.f32 %v3549_v33, %v8924_v50  ;;  %v3559_v1 = vpop.f32.mrb[162].mxu0 }
 0xa09   : > { %v9196_v10 = vpop.eup %6326  ;;  %v3917_v52 = vmul.f32 0.7978846, %v3853_v20  ;;  %6334 = vtanh.f32 %v3915_v28  ;;  %4422 = vmatprep.mubr.bf16.mxu1 %v4215_v3  ;;  %v4214_v51 = vpack.c.bf16 %v4156_v22, %v4154_v62  ;;  %v9207_v26 = vadd.f32 %v3551_v46, %v8927_v53  ;;  %v3561_v41 = vpop.f32.mrb[163].mxu0 }
 0xa0a   : > { %v9202_v56 = vpop.eup %6328  ;;  %v3663_v29 = vmul.f32 %v9194_v47, %v9194_v47  ;;  %6336 = vtanh.f32 %v3916_v43  ;;  %v3790_v15 = vmul.f32 0.044715, %v3726_v17  ;;  %v3664_v33 = vmul.f32 %v9200_v9, %v9200_v9 }
 0xa0b   : > { %v9209_v60 = vpop.eup %6330  ;;  %v4031_v4 = vadd.f32 1.0, %v9125_v30  ;;  %6338 = vtanh.f32 %v3917_v52  ;;  %4423 = vmatmul.mubr.bf16.gmra.mrb[136].mxu1 %v4214_v51  ;;  %v3665_v62 = vmul.f32 %v9207_v26, %v9207_v26  ;;  %v4033_v46 = vadd.f32 1.0, %v9139_v36 }
 0xa0c   : > { %v3727_v39 = vmul.f32 %v3663_v29, %v9194_v47  ;;  %v3854_v8 = vadd.f32 %v3790_v15, %v9181_v2  ;;  %v3728_v20 = vmul.f32 %v3664_v33, %v9200_v9  ;;  %v4030_v28 = vadd.f32 1.0, %v9115_v14 }
 0xa0d   : > { %v4095_v12 = vmul.f32 0.5, %v4031_v4  ;;  %v3729_v22 = vmul.f32 %v3665_v62, %v9207_v26  ;;  %v4097_v30 = vmul.f32 0.5, %v4033_v46  ;;  %v4032_v43 = vadd.f32 1.0, %v9134_v16 }
 0xa0e   : > { %v3791_v3 = vmul.f32 0.044715, %v3727_v39  ;;  %v3918_v52 = vmul.f32 0.7978846, %v3854_v8  ;;  %v3792_v17 = vmul.f32 0.044715, %v3728_v20  ;;  %v9231_v62 = vadd.f32 %v3555_v21, %v8924_v50 }
 0xa0f   : > { %v4159_v51 = vmul.f32 %v4095_v12, %v9018_v6  ;;  %v4094_v29 = vmul.f32 0.5, %v4030_v28  ;;  %v3565_v44 = vpop.f32.mrb[164].mxu0  ;;  %v3793_v15 = vmul.f32 0.044715, %v3729_v22  ;;  %v4161_v33 = vmul.f32 %v4097_v30, %v9037_v48 }
 0xa10   : > { %v3855_v36 = vadd.f32 %v3791_v3, %v9194_v47  ;;  %v4096_v4 = vmul.f32 0.5, %v4032_v43  ;;  %v3567_v58 = vpop.f32.mrb[165].mxu0  ;;  %v9226_v14 = vpop.eup %6332  ;;  %6340 = vtanh.f32 %v3918_v52  ;;  %v3856_v39 = vadd.f32 %v3792_v17, %v9200_v9 }
 0xa11   : > { %v4158_v16 = vmul.f32 %v4094_v29, %v9011_v55  ;;  %v3569_v6 = vpop.f32.mrb[166].mxu0  ;;  %v3857_v8 = vadd.f32 %v3793_v15, %v9207_v26  ;;  %v4217_v20 = vpack.c.bf16 %v4161_v33, %v4159_v51  ;;  %v3666_v3 = vmul.f32 %v9231_v62, %v9231_v62 }
 0xa12   : > { %v3919_v46 = vmul.f32 0.7978846, %v3855_v36  ;;  %v4160_v12 = vmul.f32 %v4096_v4, %v9031_v27  ;;  %v3571_v48 = vpop.f32.mrb[167].mxu0  ;;  %v3920_v28 = vmul.f32 0.7978846, %v3856_v39  ;;  %v9238_v22 = vadd.f32 %v3557_v35, %v8927_v53 }
 0xa13   : > { %v9241_v55 = vadd.f32 %v3559_v1, %v8924_v50  ;;  %v9243_v21 = vpop.eup %6334  ;;  %v3921_v30 = vmul.f32 0.7978846, %v3857_v8  ;;  %4430 = vmatprep.mubr.bf16.mxu1 %v4217_v20  ;;  %v9246_v52 = vadd.f32 %v3561_v41, %v8927_v53  ;;  %v3730_v17 = vmul.f32 %v3666_v3, %v9231_v62 }
 0xa14   : > { %6342 = vtanh.f32 %v3919_v46  ;;  %v4216_v43 = vpack.c.bf16 %v4160_v12, %v4158_v16  ;;  %v9248_v27 = vpop.eup %6336  ;;  %v3667_v35 = vmul.f32 %v9238_v22, %v9238_v22  ;;  %v4035_v41 = vadd.f32 1.0, %v9152_v45 }
 0xa15   : > { %6344 = vtanh.f32 %v3920_v28  ;;  %v3668_v1 = vmul.f32 %v9241_v55, %v9241_v55  ;;  %v9255_v51 = vpop.eup %6338  ;;  %v3669_v29 = vmul.f32 %v9246_v52, %v9246_v52  ;;  %v4037_v36 = vadd.f32 1.0, %v9170_v59 }
 0xa16   : > { %6346 = vtanh.f32 %v3921_v30  ;;  %4431 = vmatmul.mubr.bf16.gmra.mrb[140].mxu1 %v4216_v43  ;;  %v3794_v15 = vmul.f32 0.044715, %v3730_v17  ;;  %v3731_v33 = vmul.f32 %v3667_v35, %v9238_v22  ;;  %v4034_v39 = vadd.f32 1.0, %v9146_v40 }
 0xa17   : > { %v3732_v4 = vmul.f32 %v3668_v1, %v9241_v55  ;;  %v3733_v16 = vmul.f32 %v3669_v29, %v9246_v52  ;;  %v4099_v46 = vmul.f32 0.5, %v4035_v41  ;;  %v4101_v8 = vmul.f32 0.5, %v4037_v36 }
 0xa18   : > { %v4036_v20 = vadd.f32 1.0, %v9164_v19  ;;  %v3858_v12 = vadd.f32 %v3794_v15, %v9231_v62  ;;  %v3795_v28 = vmul.f32 0.044715, %v3731_v33  ;;  %v4098_v45 = vmul.f32 0.5, %v4034_v39 }
 0xa19   : > { %v3796_v3 = vmul.f32 0.044715, %v3732_v4  ;;  %v3797_v30 = vmul.f32 0.044715, %v3733_v16  ;;  %v4163_v59 = vmul.f32 %v4099_v46, %v9057_v42  ;;  %v4165_v43 = vmul.f32 %v4101_v8, %v9069_v63 }
 0xa1a   : > { %v4100_v17 = vmul.f32 0.5, %v4036_v20  ;;  %v9269_v35 = vpop.eup %6340  ;;  %v3922_v40 = vmul.f32 0.7978846, %v3858_v12  ;;  %v3859_v1 = vadd.f32 %v3795_v28, %v9238_v22  ;;  %v4162_v19 = vmul.f32 %v4098_v45, %v9051_v32 }
 0xa1b   : > { %v3860_v29 = vadd.f32 %v3796_v3, %v9241_v55  ;;  %v3861_v41 = vadd.f32 %v3797_v30, %v9246_v52  ;;  %v4219_v36 = vpack.c.bf16 %v4165_v43, %v4163_v59  ;;  %v9277_v33 = vadd.f32 %v3565_v44, %v8924_v50 }
 0xa1c   : > { %v4164_v15 = vmul.f32 %v4100_v17, %v9066_v18  ;;  %6348 = vtanh.f32 %v3922_v40  ;;  %v3923_v42 = vmul.f32 0.7978846, %v3859_v1  ;;  %v9280_v4 = vadd.f32 %v3567_v58, %v8927_v53 }
 0xa1d   : > { %v3924_v63 = vmul.f32 0.7978846, %v3860_v29  ;;  %v3925_v16 = vmul.f32 0.7978846, %v3861_v41  ;;  %4438 = vmatprep.mubr.bf16.mxu1 %v4219_v36  ;;  %v3670_v32 = vmul.f32 %v9277_v33, %v9277_v33  ;;  %v9287_v8 = vadd.f32 %v3569_v6, %v8924_v50 }
 0xa1e   : > { %v9282_v39 = vpop.eup %6342  ;;  %v4218_v46 = vpack.c.bf16 %v4164_v15, %v4162_v19  ;;  %6350 = vtanh.f32 %v3923_v42  ;;  %v3671_v44 = vmul.f32 %v9280_v4, %v9280_v4  ;;  %v9294_v58 = vadd.f32 %v3571_v48, %v8927_v53 }
 0xa1f   : > { %v9289_v18 = vpop.eup %6344  ;;  %v4039_v20 = vadd.f32 1.0, %v9196_v10  ;;  %6352 = vtanh.f32 %v3924_v63  ;;  %v3734_v28 = vmul.f32 %v3670_v32, %v9277_v33  ;;  %v3672_v6 = vmul.f32 %v9287_v8, %v9287_v8 }
 0xa20   : > { %v6347_v12 = vpop.eup %6346  ;;  %4439 = vmatmul.mubr.bf16.gmra.mrb[144].mxu1 %v4218_v46  ;;  %v4041_v3 = vadd.f32 1.0, %v9209_v60  ;;  %6354 = vtanh.f32 %v3925_v16  ;;  %v3735_v45 = vmul.f32 %v3671_v44, %v9280_v4  ;;  %v3673_v30 = vmul.f32 %v9294_v58, %v9294_v58 }
 0xa21   : > { %v4103_v48 = vmul.f32 0.5, %v4039_v20  ;;  %v3798_v59 = vmul.f32 0.044715, %v3734_v28  ;;  %v3736_v10 = vmul.f32 %v3672_v6, %v9287_v8  ;;  %v4038_v17 = vadd.f32 1.0, %v9183_v25 }
 0xa22   : > { %v4105_v43 = vmul.f32 0.5, %v4041_v3  ;;  %v3799_v40 = vmul.f32 0.044715, %v3735_v45  ;;  %v3737_v1 = vmul.f32 %v3673_v30, %v9294_v58  ;;  %v4040_v60 = vadd.f32 1.0, %v9202_v56 }
 0xa23   : > { %v4167_v29 = vmul.f32 %v4103_v48, %v9101_v61  ;;  %v3862_v19 = vadd.f32 %v3798_v59, %v9277_v33  ;;  %v3800_v41 = vmul.f32 0.044715, %v3736_v10  ;;  %v4102_v15 = vmul.f32 0.5, %v4038_v17 }
 0xa24   : > { %v4169_v36 = vmul.f32 %v4105_v43, %v9108_v57  ;;  %v3863_v42 = vadd.f32 %v3799_v40, %v9280_v4  ;;  %v3801_v63 = vmul.f32 0.044715, %v3737_v1  ;;  %v4104_v16 = vmul.f32 0.5, %v4040_v60 }
 0xa25   : > { %v4043_v46 = vadd.f32 1.0, %v9243_v21  ;;  %v3926_v25 = vmul.f32 0.7978846, %v3862_v19  ;;  %v3864_v32 = vadd.f32 %v3800_v41, %v9287_v8  ;;  %v4166_v61 = vmul.f32 %v4102_v15, %v9091_v54 }
 0xa26   : > { %v4221_v44 = vpack.c.bf16 %v4169_v36, %v4167_v29  ;;  %v6349_v20 = vpop.eup %6348  ;;  %v3927_v56 = vmul.f32 0.7978846, %v3863_v42  ;;  %v3865_v28 = vadd.f32 %v3801_v63, %v9294_v58  ;;  %v4168_v6 = vmul.f32 %v4104_v16, %v9105_v49 }
 0xa27   : > { %v4045_v57 = vadd.f32 1.0, %v9255_v51  ;;  %6356 = vtanh.f32 %v3926_v25  ;;  %v3928_v3 = vmul.f32 0.7978846, %v3864_v32  ;;  %v4107_v45 = vmul.f32 0.5, %v4043_v46 }
 0xa28   : > { %4446 = vmatprep.mubr.bf16.mxu1 %v4221_v44  ;;  %v4042_v21 = vadd.f32 1.0, %v9226_v14  ;;  %v6351_v30 = vpop.eup %6350  ;;  %6358 = vtanh.f32 %v3927_v56  ;;  %v3929_v48 = vmul.f32 0.7978846, %v3865_v28  ;;  %v4220_v59 = vpack.c.bf16 %v4168_v6, %v4166_v61 }
 0xa29   : > { %v4109_v10 = vmul.f32 0.5, %v4045_v57  ;;  %v6353_v54 = vpop.eup %6352  ;;  %6360 = vtanh.f32 %v3928_v3  ;;  %v4171_v43 = vmul.f32 %v4107_v45, %v9150_v34  ;;  %v4044_v17 = vadd.f32 1.0, %v9248_v27 }
 0xa2a   : > { %v4106_v49 = vmul.f32 0.5, %v4042_v21  ;;  %v6355_v40 = vpop.eup %6354  ;;  %6362 = vtanh.f32 %v3929_v48  ;;  %4447 = vmatmul.mubr.bf16.gmra.mrb[148].mxu1 %v4220_v59  ;;  %v4047_v1 = vadd.f32 1.0, %v9282_v39  ;;  %v4049_v14 = vadd.f32 1.0, %v6347_v12 }
 0xa2b   : > { %v4173_v51 = vmul.f32 %v4109_v10, %v9159_v31  ;;  %v4108_v29 = vmul.f32 0.5, %v4044_v17  ;;  %v4046_v19 = vadd.f32 1.0, %v9269_v35  ;;  %v4048_v41 = vadd.f32 1.0, %v9289_v18 }
 0xa2c   : > { %v4170_v60 = vmul.f32 %v4106_v49, %v9132_v37  ;;  %v4111_v34 = vmul.f32 0.5, %v4047_v1  ;;  %v4113_v15 = vmul.f32 0.5, %v4049_v14  ;;  %v4051_v27 = vadd.f32 1.0, %v6351_v30 }
 0xa2d   : > { %v4223_v36 = vpack.c.bf16 %v4173_v51, %v4171_v43  ;;  %v4172_v42 = vmul.f32 %v4108_v29, %v9156_v23  ;;  %v4110_v63 = vmul.f32 0.5, %v4046_v19  ;;  %v4112_v16 = vmul.f32 0.5, %v4048_v41 }
 0xa2e   : > { %v4053_v46 = vadd.f32 1.0, %v6355_v40  ;;  %v4175_v31 = vmul.f32 %v4111_v34, %v9194_v47  ;;  %v4177_v39 = vmul.f32 %v4113_v15, %v9207_v26  ;;  %v4115_v12 = vmul.f32 0.5, %v4051_v27 }
 0xa2f   : > { %4454 = vmatprep.mubr.bf16.mxu1 %v4223_v36  ;;  %v4050_v37 = vadd.f32 1.0, %v6349_v20  ;;  %v4222_v25 = vpack.c.bf16 %v4172_v42, %v4170_v60  ;;  %v4174_v35 = vmul.f32 %v4110_v63, %v9181_v2  ;;  %v4176_v18 = vmul.f32 %v4112_v16, %v9200_v9 }
 0xa30   : > { %v4117_v32 = vmul.f32 0.5, %v4053_v46  ;;  %v4225_v44 = vpack.c.bf16 %v4177_v39, %v4175_v31  ;;  %v4052_v61 = vadd.f32 1.0, %v6353_v54  ;;  %v4179_v6 = vmul.f32 %v4115_v12, %v9238_v22 }
 0xa31   : > { %v4114_v56 = vmul.f32 0.5, %v4050_v37  ;;  %v6357_v23 = vpop.eup %6356  ;;  %v4224_v28 = vpack.c.bf16 %v4176_v18, %v4174_v35 }
 0xa32   : > { %v4181_v57 = vmul.f32 %v4117_v32, %v9246_v52  ;;  %v6359_v47 = vpop.eup %6358  ;;  %4455 = vmatmul.mubr.bf16.gmra.mrb[152].mxu1 %v4222_v25  ;;  %v4116_v26 = vmul.f32 0.5, %v4052_v61  ;;  %v4054_v3 = vadd.f32 1.0, %v6357_v23 }
 0xa33   : > { %v6361_v20 = vpop.eup %6360  ;;  %4462 = vmatprep.mubr.bf16.mxu1 %v4225_v44  ;;  %v4055_v2 = vadd.f32 1.0, %v6359_v47  ;;  %v4178_v9 = vmul.f32 %v4114_v56, %v9231_v62 }
 0xa34   : > { %v4227_v45 = vpack.c.bf16 %v4181_v57, %v4179_v6  ;;  %v6363_v21 = vpop.eup %6362  ;;  %v4180_v30 = vmul.f32 %v4116_v26, %v9241_v55  ;;  %v4056_v48 = vadd.f32 1.0, %v6361_v20  ;;  %v4118_v59 = vmul.f32 0.5, %v4054_v3 }
 0xa35   : > { %v4057_v10 = vadd.f32 1.0, %v6363_v21  ;;  %v4119_v54 = vmul.f32 0.5, %v4055_v2 }
 0xa36   : > { %v4226_v22 = vpack.c.bf16 %v4180_v30, %v4178_v9  ;;  %v4120_v43 = vmul.f32 0.5, %v4056_v48  ;;  %v4182_v17 = vmul.f32 %v4118_v59, %v9277_v33 }
 0xa37   : > { %v4121_v52 = vmul.f32 0.5, %v4057_v10  ;;  %v4183_v40 = vmul.f32 %v4119_v54, %v9280_v4 }
 0xa38   : > { %v4184_v49 = vmul.f32 %v4120_v43, %v9287_v8 }
 0xa39   : > { %v4185_v51 = vmul.f32 %v4121_v52, %v9294_v58 }
 0xa3a   : > { %4463 = vmatmul.mubr.bf16.gmra.mrb[156].mxu1 %v4224_v28  ;;  %v4228_v1 = vpack.c.bf16 %v4184_v49, %v4182_v17 }
 0xa3b   : > { %4470 = vmatprep.mubr.bf16.mxu1 %v4227_v45  ;;  %v4229_v62 = vpack.c.bf16 %v4185_v51, %v4183_v40 }
 0xa42   : > { %4471 = vmatmul.mubr.bf16.gmra.mrb[160].mxu1 %v4226_v22 }
 0xa43   : > { %4478 = vmatprep.mubr.bf16.mxu1 %v4229_v62 }
 0xa4a   : > { %4479 = vmatmul.mubr.bf16.gmra.mrb[164].mxu1 %v4228_v1 }
 0xa5e   : > { %v3575_v55 = vpop.f32.mrb[168].mxu0 }
 0xa5f   : > { %v9340_v14 = vadd.f32 %v3575_v55, %v8924_v50  ;;  %v3577_v29 = vpop.f32.mrb[169].mxu0 }
 0xa60   : > { %v9343_v33 = vadd.f32 %v3577_v29, %v8927_v53  ;;  %v3579_v8 = vpop.f32.mrb[170].mxu0 }
 0xa61   : > { %v3674_v4 = vmul.f32 %v9340_v14, %v9340_v14  ;;  %v9348_v58 = vadd.f32 %v3579_v8, %v8924_v50  ;;  %v3581_v60 = vpop.f32.mrb[171].mxu0 }
 0xa62   : > { %v3675_v19 = vmul.f32 %v9343_v33, %v9343_v33  ;;  %v9353_v41 = vadd.f32 %v3581_v60, %v8927_v53 }
 0xa63   : > { %v3738_v36 = vmul.f32 %v3674_v4, %v9340_v14  ;;  %v3676_v34 = vmul.f32 %v9348_v58, %v9348_v58 }
 0xa64   : > { %v3739_v15 = vmul.f32 %v3675_v19, %v9343_v33  ;;  %v3677_v27 = vmul.f32 %v9353_v41, %v9353_v41 }
 0xa65   : > { %v3802_v42 = vmul.f32 0.044715, %v3738_v36  ;;  %v3740_v63 = vmul.f32 %v3676_v34, %v9348_v58 }
 0xa66   : > { %v3803_v16 = vmul.f32 0.044715, %v3739_v15  ;;  %v3741_v46 = vmul.f32 %v3677_v27, %v9353_v41  ;;  %v3585_v31 = vpop.f32.mrb[172].mxu0 }
 0xa67   : > { %v3866_v39 = vadd.f32 %v3802_v42, %v9340_v14  ;;  %v3804_v12 = vmul.f32 0.044715, %v3740_v63  ;;  %v9365_v37 = vadd.f32 %v3585_v31, %v8924_v50  ;;  %v3587_v25 = vpop.f32.mrb[173].mxu0 }
 0xa68   : > { %v3867_v35 = vadd.f32 %v3803_v16, %v9343_v33  ;;  %v3805_v18 = vmul.f32 0.044715, %v3741_v46  ;;  %v9369_v32 = vadd.f32 %v3587_v25, %v8927_v53  ;;  %v3589_v44 = vpop.f32.mrb[174].mxu0 }
 0xa69   : > { %v3930_v61 = vmul.f32 0.7978846, %v3866_v39  ;;  %v3868_v56 = vadd.f32 %v3804_v12, %v9348_v58  ;;  %v3678_v23 = vmul.f32 %v9365_v37, %v9365_v37  ;;  %v9375_v28 = vadd.f32 %v3589_v44, %v8924_v50  ;;  %v3591_v6 = vpop.f32.mrb[175].mxu0 }
 0xa6a   : > { %v3931_v57 = vmul.f32 0.7978846, %v3867_v35  ;;  %v3869_v47 = vadd.f32 %v3805_v18, %v9353_v41  ;;  %v3679_v26 = vmul.f32 %v9369_v32, %v9369_v32  ;;  %v9381_v3 = vadd.f32 %v3591_v6, %v8927_v53 }
 0xa6b   : > { %6364 = vtanh.f32 %v3930_v61  ;;  %v3932_v20 = vmul.f32 0.7978846, %v3868_v56  ;;  %v3742_v45 = vmul.f32 %v3678_v23, %v9365_v37  ;;  %v3680_v2 = vmul.f32 %v9375_v28, %v9375_v28 }
 0xa6c   : > { %6366 = vtanh.f32 %v3931_v57  ;;  %v3933_v21 = vmul.f32 0.7978846, %v3869_v47  ;;  %v3743_v9 = vmul.f32 %v3679_v26, %v9369_v32  ;;  %v3681_v30 = vmul.f32 %v9381_v3, %v9381_v3 }
 0xa6d   : > { %6368 = vtanh.f32 %v3932_v20  ;;  %v3806_v48 = vmul.f32 0.044715, %v3742_v45  ;;  %v3744_v59 = vmul.f32 %v3680_v2, %v9375_v28 }
 0xa6e   : > { %v3807_v10 = vmul.f32 0.044715, %v3743_v9  ;;  %v3745_v54 = vmul.f32 %v3681_v30, %v9381_v3  ;;  %v3595_v22 = vpop.f32.mrb[176].mxu0  ;;  %6370 = vtanh.f32 %v3933_v21 }
 0xa6f   : > { %v3870_v43 = vadd.f32 %v3806_v48, %v9365_v37  ;;  %v3808_v52 = vmul.f32 0.044715, %v3744_v59  ;;  %v9393_v17 = vadd.f32 %v3595_v22, %v8924_v50  ;;  %v3597_v49 = vpop.f32.mrb[177].mxu0 }
 0xa70   : > { %v3871_v40 = vadd.f32 %v3807_v10, %v9369_v32  ;;  %v3809_v51 = vmul.f32 0.044715, %v3745_v54  ;;  %v9397_v1 = vadd.f32 %v3597_v49, %v8927_v53  ;;  %v3599_v62 = vpop.f32.mrb[178].mxu0 }
 0xa71   : > { %v3934_v55 = vmul.f32 0.7978846, %v3870_v43  ;;  %v3872_v29 = vadd.f32 %v3808_v52, %v9375_v28  ;;  %v3682_v8 = vmul.f32 %v9393_v17, %v9393_v17  ;;  %v9403_v4 = vadd.f32 %v3599_v62, %v8924_v50  ;;  %v3601_v60 = vpop.f32.mrb[179].mxu0 }
 0xa72   : > { %v3935_v19 = vmul.f32 0.7978846, %v3871_v40  ;;  %v3873_v36 = vadd.f32 %v3809_v51, %v9381_v3  ;;  %v3683_v34 = vmul.f32 %v9397_v1, %v9397_v1  ;;  %v9409_v15 = vadd.f32 %v3601_v60, %v8927_v53 }
 0xa73   : > { %6372 = vtanh.f32 %v3934_v55  ;;  %v3936_v27 = vmul.f32 0.7978846, %v3872_v29  ;;  %v3746_v42 = vmul.f32 %v3682_v8, %v9393_v17  ;;  %v3684_v63 = vmul.f32 %v9403_v4, %v9403_v4 }
 0xa74   : > { %6374 = vtanh.f32 %v3935_v19  ;;  %v3937_v16 = vmul.f32 0.7978846, %v3873_v36  ;;  %v3747_v46 = vmul.f32 %v3683_v34, %v9397_v1  ;;  %v3685_v31 = vmul.f32 %v9409_v15, %v9409_v15 }
 0xa75   : > { %v6365_v39 = vpop.eup %6364  ;;  %6376 = vtanh.f32 %v3936_v27  ;;  %v3810_v12 = vmul.f32 0.044715, %v3746_v42  ;;  %v3748_v25 = vmul.f32 %v3684_v63, %v9403_v4 }
 0xa76   : > { %v6367_v35 = vpop.eup %6366  ;;  %6378 = vtanh.f32 %v3937_v16  ;;  %v3811_v18 = vmul.f32 0.044715, %v3747_v46  ;;  %v3749_v44 = vmul.f32 %v3685_v31, %v9409_v15  ;;  %v3605_v61 = vpop.f32.mrb[180].mxu0  ;;  %v9419_v56 = vadd.f32 1.0, %v6365_v39 }
 0xa77   : > { %v6369_v23 = vpop.eup %6368  ;;  %v3874_v6 = vadd.f32 %v3810_v12, %v9393_v17  ;;  %v3812_v57 = vmul.f32 0.044715, %v3748_v25  ;;  %v9423_v47 = vadd.f32 %v3605_v61, %v8924_v50  ;;  %v3607_v26 = vpop.f32.mrb[181].mxu0  ;;  %v4059_v20 = vadd.f32 1.0, %v6367_v35 }
 0xa78   : > { %v3875_v45 = vadd.f32 %v3811_v18, %v9397_v1  ;;  %v3813_v2 = vmul.f32 0.044715, %v3749_v44  ;;  %v9427_v21 = vadd.f32 %v3607_v26, %v8927_v53  ;;  %v3609_v9 = vpop.f32.mrb[182].mxu0  ;;  %v9429_v30 = vadd.f32 1.0, %v6369_v23  ;;  %v6371_v43 = vpop.eup %6370 }
 0xa79   : > { %v3938_v48 = vmul.f32 0.7978846, %v3874_v6  ;;  %v3876_v59 = vadd.f32 %v3812_v57, %v9403_v4  ;;  %v3686_v10 = vmul.f32 %v9423_v47, %v9423_v47  ;;  %v9435_v54 = vadd.f32 %v3609_v9, %v8924_v50  ;;  %v3611_v22 = vpop.f32.mrb[183].mxu0 }
 0xa7a   : > { %v3939_v52 = vmul.f32 0.7978846, %v3875_v45  ;;  %v3877_v49 = vadd.f32 %v3813_v2, %v9409_v15  ;;  %v3687_v40 = vmul.f32 %v9427_v21, %v9427_v21  ;;  %v9441_v51 = vadd.f32 %v3611_v22, %v8927_v53 }
 0xa7b   : > { %6380 = vtanh.f32 %v3938_v48  ;;  %v3940_v62 = vmul.f32 0.7978846, %v3876_v59  ;;  %v3750_v55 = vmul.f32 %v3686_v10, %v9423_v47  ;;  %v3688_v29 = vmul.f32 %v9435_v54, %v9435_v54 }
 0xa7c   : > { %6382 = vtanh.f32 %v3939_v52  ;;  %v3941_v8 = vmul.f32 0.7978846, %v3877_v49  ;;  %v3751_v60 = vmul.f32 %v3687_v40, %v9427_v21  ;;  %v3689_v19 = vmul.f32 %v9441_v51, %v9441_v51 }
 0xa7d   : > { %v9449_v36 = vpop.eup %6372  ;;  %6384 = vtanh.f32 %v3940_v62  ;;  %v3814_v34 = vmul.f32 0.044715, %v3750_v55  ;;  %v3752_v27 = vmul.f32 %v3688_v29, %v9435_v54  ;;  %v4061_v42 = vadd.f32 1.0, %v6371_v43 }
 0xa7e   : > { %v9452_v63 = vpop.eup %6374  ;;  %6386 = vtanh.f32 %v3941_v8  ;;  %v3815_v16 = vmul.f32 0.044715, %v3751_v60  ;;  %v3753_v46 = vmul.f32 %v3689_v19, %v9441_v51  ;;  %v3615_v31 = vpop.f32.mrb[184].mxu0  ;;  %v4123_v39 = vmul.f32 0.5, %v4059_v20 }
 0xa7f   : > { %v9455_v12 = vpop.eup %6376  ;;  %v3878_v25 = vadd.f32 %v3814_v34, %v9423_v47  ;;  %v3816_v35 = vmul.f32 0.044715, %v3752_v27  ;;  %v9459_v18 = vadd.f32 %v3615_v31, %v8924_v50  ;;  %v3617_v44 = vpop.f32.mrb[185].mxu0  ;;  %v4125_v61 = vmul.f32 0.5, %v4061_v42 }
 0xa80   : > { %v9461_v23 = vpop.eup %6378  ;;  %v3879_v6 = vadd.f32 %v3815_v16, %v9427_v21  ;;  %v3817_v57 = vmul.f32 0.044715, %v3753_v46  ;;  %v9465_v26 = vadd.f32 %v3617_v44, %v8927_v53  ;;  %v3619_v45 = vpop.f32.mrb[186].mxu0  ;;  %v4187_v20 = vmul.f32 %v4123_v39, %v9343_v33 }
 0xa81   : > { %v3942_v2 = vmul.f32 0.7978846, %v3878_v25  ;;  %v3880_v9 = vadd.f32 %v3816_v35, %v9435_v54  ;;  %v3690_v48 = vmul.f32 %v9459_v18, %v9459_v18  ;;  %v9472_v59 = vadd.f32 %v3619_v45, %v8924_v50  ;;  %v3621_v10 = vpop.f32.mrb[187].mxu0 }
 0xa82   : > { %v3943_v22 = vmul.f32 0.7978846, %v3879_v6  ;;  %v3881_v43 = vadd.f32 %v3817_v57, %v9441_v51  ;;  %v3691_v52 = vmul.f32 %v9465_v26, %v9465_v26  ;;  %v9478_v49 = vadd.f32 %v3621_v10, %v8927_v53 }
 0xa83   : > { %6388 = vtanh.f32 %v3942_v2  ;;  %v3944_v33 = vmul.f32 0.7978846, %v3880_v9  ;;  %v3754_v40 = vmul.f32 %v3690_v48, %v9459_v18  ;;  %v3692_v62 = vmul.f32 %v9472_v59, %v9472_v59 }
 0xa84   : > { %6390 = vtanh.f32 %v3943_v22  ;;  %v3945_v55 = vmul.f32 0.7978846, %v3881_v43  ;;  %v3755_v29 = vmul.f32 %v3691_v52, %v9465_v26  ;;  %v3693_v8 = vmul.f32 %v9478_v49, %v9478_v49 }
 0xa85   : > { %v9486_v60 = vpop.eup %6380  ;;  %6392 = vtanh.f32 %v3944_v33  ;;  %v3818_v19 = vmul.f32 0.044715, %v3754_v40  ;;  %v3756_v34 = vmul.f32 %v3692_v62, %v9472_v59  ;;  %v4189_v27 = vmul.f32 %v4125_v61, %v9353_v41 }
 0xa86   : > { %v9490_v42 = vpop.eup %6382  ;;  %6394 = vtanh.f32 %v3945_v55  ;;  %v3819_v16 = vmul.f32 0.044715, %v3755_v29  ;;  %v3757_v46 = vmul.f32 %v3693_v8, %v9478_v49  ;;  %v4122_v31 = vmul.f32 0.5, %v9419_v56  ;;  %v3625_v39 = vpop.f32.mrb[188].mxu0 }
 0xa87   : > { %v9494_v25 = vpop.eup %6384  ;;  %v3882_v35 = vadd.f32 %v3818_v19, %v9459_v18  ;;  %v3820_v44 = vmul.f32 0.044715, %v3756_v34  ;;  %v4231_v6 = vpack.c.bf16 %v4189_v27, %v4187_v20  ;;  %v4124_v57 = vmul.f32 0.5, %v9429_v30  ;;  %v3627_v45 = vpop.f32.mrb[189].mxu0 }
 0xa88   : > { %v9498_v2 = vpop.eup %6386  ;;  %v3883_v41 = vadd.f32 %v3819_v16, %v9465_v26  ;;  %v3821_v61 = vmul.f32 0.044715, %v3757_v46  ;;  %v4186_v9 = vmul.f32 %v4122_v31, %v9340_v14  ;;  %v9503_v48 = vadd.f32 %v3625_v39, %v8924_v50  ;;  %v3629_v56 = vpop.f32.mrb[190].mxu0 }
 0xa89   : > { %v3946_v10 = vmul.f32 0.7978846, %v3882_v35  ;;  %v3884_v22 = vadd.f32 %v3820_v44, %v9472_v59  ;;  %4486 = vmatprep.mubr.bf16.mxu1 %v4231_v6  ;;  %v4188_v20 = vmul.f32 %v4124_v57, %v9348_v58  ;;  %v9508_v30 = vadd.f32 %v3627_v45, %v8927_v53  ;;  %v3631_v43 = vpop.f32.mrb[191].mxu0 }
 0xa8a   : > { %v3947_v52 = vmul.f32 0.7978846, %v3883_v41  ;;  %v3885_v33 = vadd.f32 %v3821_v61, %v9478_v49  ;;  %v3694_v14 = vmul.f32 %v9503_v48, %v9503_v48  ;;  %v9514_v40 = vadd.f32 %v3629_v56, %v8924_v50 }
 0xa8b   : > { %6396 = vtanh.f32 %v3946_v10  ;;  %v3948_v62 = vmul.f32 0.7978846, %v3884_v22  ;;  %v4230_v55 = vpack.c.bf16 %v4188_v20, %v4186_v9  ;;  %v3695_v29 = vmul.f32 %v9508_v30, %v9508_v30 }
 0xa8c   : > { %6398 = vtanh.f32 %v3947_v52  ;;  %v3949_v58 = vmul.f32 0.7978846, %v3885_v33  ;;  %v3758_v8 = vmul.f32 %v3694_v14, %v9503_v48  ;;  %v3696_v19 = vmul.f32 %v9514_v40, %v9514_v40 }
 0xa8d   : > { %v6389_v34 = vpop.eup %6388  ;;  %6400 = vtanh.f32 %v3948_v62  ;;  %4487 = vmatmul.mubr.bf16.gmra.mrb[168].mxu1 %v4230_v55  ;;  %v3759_v27 = vmul.f32 %v3695_v29, %v9508_v30  ;;  %v9523_v50 = vadd.f32 %v3631_v43, %v8927_v53  ;;  %v4063_v16 = vadd.f32 1.0, %v9452_v63 }
 0xa8e   : > { %v6391_v46 = vpop.eup %6390  ;;  %6402 = vtanh.f32 %v3949_v58  ;;  %v3822_v31 = vmul.f32 0.044715, %v3758_v8  ;;  %v3760_v39 = vmul.f32 %v3696_v19, %v9514_v40  ;;  %v4065_v35 = vadd.f32 1.0, %v9461_v23 }
 0xa8f   : > { %v6393_v44 = vpop.eup %6392  ;;  %v3823_v6 = vmul.f32 0.044715, %v3759_v27  ;;  %v3697_v57 = vmul.f32 %v9523_v50, %v9523_v50  ;;  %v4127_v45 = vmul.f32 0.5, %v4063_v16  ;;  %v4062_v41 = vadd.f32 1.0, %v9449_v36 }
 0xa90   : > { %v6395_v61 = vpop.eup %6394  ;;  %v3886_v53 = vadd.f32 %v3822_v31, %v9503_v48  ;;  %v3824_v9 = vmul.f32 0.044715, %v3760_v39  ;;  %v4129_v63 = vmul.f32 0.5, %v4065_v35  ;;  %v4064_v56 = vadd.f32 1.0, %v9455_v12 }
 0xa91   : > { %v3887_v10 = vadd.f32 %v3823_v6, %v9508_v30  ;;  %v3761_v22 = vmul.f32 %v3697_v57, %v9523_v50  ;;  %v4191_v23 = vmul.f32 %v4127_v45, %v9369_v32  ;;  %v4126_v20 = vmul.f32 0.5, %v4062_v41 }
 0xa92   : > { %v3950_v43 = vmul.f32 0.7978846, %v3886_v53  ;;  %v3888_v52 = vadd.f32 %v3824_v9, %v9514_v40  ;;  %v4193_v33 = vmul.f32 %v4129_v63, %v9381_v3  ;;  %v4128_v36 = vmul.f32 0.5, %v4064_v56 }
 0xa93   : > { %v3951_v14 = vmul.f32 0.7978846, %v3887_v10  ;;  %v3825_v62 = vmul.f32 0.044715, %v3761_v22  ;;  %v4190_v55 = vmul.f32 %v4126_v20, %v9365_v37  ;;  %v4067_v29 = vadd.f32 1.0, %v9490_v42 }
 0xa94   : > { %6404 = vtanh.f32 %v3950_v43  ;;  %v3952_v12 = vmul.f32 0.7978846, %v3888_v52  ;;  %v4233_v58 = vpack.c.bf16 %v4193_v33, %v4191_v23  ;;  %v4192_v8 = vmul.f32 %v4128_v36, %v9375_v28 }
 0xa95   : > { %v6397_v19 = vpop.eup %6396  ;;  %6406 = vtanh.f32 %v3951_v14  ;;  %v3889_v32 = vadd.f32 %v3825_v62, %v9523_v50  ;;  %v4069_v27 = vadd.f32 1.0, %v9498_v2  ;;  %v4131_v16 = vmul.f32 0.5, %v4067_v29 }
 0xa96   : > { %v6399_v3 = vpop.eup %6398  ;;  %6408 = vtanh.f32 %v3952_v12  ;;  %4494 = vmatprep.mubr.bf16.mxu1 %v4233_v58  ;;  %v4232_v31 = vpack.c.bf16 %v4192_v8, %v4190_v55  ;;  %v4066_v37 = vadd.f32 1.0, %v9486_v60  ;;  %v4068_v42 = vadd.f32 1.0, %v9494_v25 }
 0xa97   : > { %v6401_v39 = vpop.eup %6400  ;;  %v3953_v35 = vmul.f32 0.7978846, %v3889_v32  ;;  %v4133_v6 = vmul.f32 0.5, %v4069_v27  ;;  %v4195_v28 = vmul.f32 %v4131_v16, %v9397_v1  ;;  %v4071_v57 = vadd.f32 1.0, %v6391_v46 }
 0xa98   : > { %v6403_v45 = vpop.eup %6402  ;;  %4495 = vmatmul.mubr.bf16.gmra.mrb[172].mxu1 %v4232_v31  ;;  %v4130_v41 = vmul.f32 0.5, %v4066_v37  ;;  %v4132_v53 = vmul.f32 0.5, %v4068_v42  ;;  %v4073_v2 = vadd.f32 1.0, %v6395_v61  ;;  %v4070_v9 = vadd.f32 1.0, %v6389_v34 }
 0xa99   : > { %6410 = vtanh.f32 %v3953_v35  ;;  %v4197_v63 = vmul.f32 %v4133_v6, %v9409_v15  ;;  %v4135_v56 = vmul.f32 0.5, %v4071_v57  ;;  %v4072_v10 = vadd.f32 1.0, %v6393_v44 }
 0xa9a   : > { %v4194_v60 = vmul.f32 %v4130_v41, %v9393_v17  ;;  %v4196_v25 = vmul.f32 %v4132_v53, %v9403_v4  ;;  %v4137_v22 = vmul.f32 0.5, %v4073_v2  ;;  %v4134_v23 = vmul.f32 0.5, %v4070_v9 }
 0xa9b   : > { %v4235_v20 = vpack.c.bf16 %v4197_v63, %v4195_v28  ;;  %v4199_v1 = vmul.f32 %v4135_v56, %v9427_v21  ;;  %v4136_v46 = vmul.f32 0.5, %v4072_v10  ;;  %v4075_v43 = vadd.f32 1.0, %v6399_v3 }
 0xa9c   : > { %v4234_v52 = vpack.c.bf16 %v4196_v25, %v4194_v60  ;;  %v4201_v61 = vmul.f32 %v4137_v22, %v9441_v51  ;;  %v4198_v34 = vmul.f32 %v4134_v23, %v9423_v47  ;;  %v4077_v33 = vadd.f32 1.0, %v6403_v45 }
 0xa9d   : > { %4502 = vmatprep.mubr.bf16.mxu1 %v4235_v20  ;;  %v4200_v15 = vmul.f32 %v4136_v46, %v9435_v54  ;;  %v4139_v44 = vmul.f32 0.5, %v4075_v43  ;;  %v4074_v17 = vadd.f32 1.0, %v6397_v19  ;;  %v4076_v36 = vadd.f32 1.0, %v6401_v39 }
 0xa9e   : > { %v6405_v4 = vpop.eup %6404  ;;  %v4237_v14 = vpack.c.bf16 %v4201_v61, %v4199_v1  ;;  %v4141_v62 = vmul.f32 0.5, %v4077_v33  ;;  %v4276_v45 = vsub.s32 7, %v10337_v5 }
 0xa9f   : > { %v6407_v55 = vpop.eup %6406  ;;  %v4236_v29 = vpack.c.bf16 %v4200_v15, %v4198_v34  ;;  %v4138_v21 = vmul.f32 0.5, %v4074_v17  ;;  %v4140_v12 = vmul.f32 0.5, %v4076_v36  ;;  %v4203_v51 = vmul.f32 %v4139_v44, %v9465_v26 }
 0xaa0   : > { %v6409_v58 = vpop.eup %6408  ;;  %4503 = vmatmul.mubr.bf16.gmra.mrb[176].mxu1 %v4234_v52  ;;  %v4205_v47 = vmul.f32 %v4141_v62, %v9478_v49  ;;  %v4079_v8 = vadd.f32 1.0, %v6407_v55  ;;  %v4078_v32 = vadd.f32 1.0, %v6405_v4 }
 0xaa1   : > { %4510 = vmatprep.mubr.bf16.mxu1 %v4237_v14  ;;  %v4202_v54 = vmul.f32 %v4138_v21, %v9459_v18  ;;  %v4204_v19 = vmul.f32 %v4140_v12, %v9472_v59  ;;  %v4080_v27 = vadd.f32 1.0, %v6409_v58 }
 0xaa2   : > { %v4239_v16 = vpack.c.bf16 %v4205_v47, %v4203_v51  ;;  %v4142_v3 = vmul.f32 0.5, %v4078_v32  ;;  %v4143_v35 = vmul.f32 0.5, %v4079_v8  ;;  %v10401_v47 = vld [vmem:[#allocation70_spill] sm:$0xff] }
 0xaa3   : > { %v6411_v31 = vpop.eup %6410  ;;  %v4238_v37 = vpack.c.bf16 %v4204_v19, %v4202_v54  ;;  %v4144_v42 = vmul.f32 0.5, %v4080_v27  ;;  %v10402_v8 = vld [vmem:[#allocation58_spill] sm:$0xff] }
 0xaa4   : > { %v4081_v39 = vadd.f32 1.0, %v6411_v31  ;;  %v4206_v6 = vmul.f32 %v4142_v3, %v9503_v48  ;;  %v4207_v57 = vmul.f32 %v4143_v35, %v9508_v30  ;;  %v9565_v48 = vld [vmem:[%s10083_s3] sm:$0xff] }
 0xaa5   : > { %v4208_v26 = vmul.f32 %v4144_v42, %v9514_v40  ;;  %v9568_v40 = vrot.slane %v9565_v48, %v4276_v45  ;;  %v10403_v42 = vld [vmem:[#allocation57_spill] sm:$0xff]  ;;  %v10404_v35 = vld [vmem:[#allocation56_spill] sm:$0xff] }
 0xaa6   : > { %v4145_v49 = vmul.f32 0.5, %v4081_v39 }
 0xaa7   : > { %v4240_v28 = vpack.c.bf16 %v4208_v26, %v4206_v6 }
 0xaa8   : > { %4511 = vmatmul.mubr.bf16.gmra.mrb[180].mxu1 %v4236_v29  ;;  %v4209_v18 = vmul.f32 %v4145_v49, %v9523_v50 }
 0xaa9   : > { %4518 = vmatprep.mubr.bf16.mxu1 %v4239_v16 }
 0xaaa   : > { %v4241_v59 = vpack.c.bf16 %v4209_v18, %v4207_v57 }
 0xab0   : > { %4519 = vmatmul.mubr.bf16.gmra.mrb[184].mxu1 %v4238_v37 }
 0xab1   : > { %4526 = vmatprep.mubr.bf16.mxu1 %v4241_v59 }
 0xab8   : > { %4527 = vmatmul.mubr.bf16.gmra.mrb[188].mxu1 %v4240_v28 }
 0xac9   : > { %v5579_v41 = vpop.f32.mrb[128].mxu1 }
 0xaca   : > { %v5580_v53 = vpop.f32.mrb[129].mxu1 }
 0xacb   : > { %v5581_v30 = vadd.f32 %v5580_v53, %v5579_v41  ;;  %v5582_v2 = vpop.f32.mrb[130].mxu1  ;;  %v10405_v53 = vld [vmem:[#allocation60_spill] sm:$0xff] }
 0xacc   : > { %v5583_v50 = vpop.f32.mrb[131].mxu1 }
 0xacd   : > { %v4409_v9 = vadd.f32 %v5581_v30, %v9568_v40  ;;  %v5584_v63 = vadd.f32 %v5583_v50, %v5582_v2  ;;  %v10406_v50 = vld [vmem:[#allocation62_spill] sm:$0xff] }
 0xacf   : > { %v4412_v56 = vadd.f32 %v5584_v63, %v9568_v40  ;;  %v9573_v10 = vadd.f32 %v4409_v9, %v8483_v24 }
 0xad1   : > { %4567 = vadd.xlane.f32.xlu0 %v9573_v10  ;;  %v9577_v60 = vadd.f32 %v4412_v56, %v8488_v13 }
 0xad3   : > { %4569 = vadd.xlane.f32.xlu1 %v9577_v60 }
 0xad4   : > { %v5585_v25 = vpop.f32.mrb[132].mxu1 }
 0xad5   : > { %v5586_v22 = vpop.f32.mrb[133].mxu1 }
 0xad6   : > { %v5587_v23 = vadd.f32 %v5586_v22, %v5585_v25  ;;  %v5588_v20 = vpop.f32.mrb[134].mxu1 }
 0xad7   : > { %v5589_v1 = vpop.f32.mrb[135].mxu1 }
 0xad8   : > { %v4417_v46 = vadd.f32 %v5587_v23, %v9568_v40  ;;  %v5590_v43 = vadd.f32 %v5589_v1, %v5588_v20 }
 0xada   : > { %v4420_v52 = vadd.f32 %v5590_v43, %v9568_v40  ;;  %v9583_v24 = vadd.f32 %v4417_v46, %v8492_v38  ;;  %v10407_v46 = vld [vmem:[#allocation61_spill] sm:$0xff] }
 0xadc   : > { %4571 = vadd.xlane.f32.xlu0 %v9583_v24  ;;  %v9587_v13 = vadd.f32 %v4420_v52, %v8496_v11 }
 0xade   : > { %v5591_v61 = vpop.f32.mrb[136].mxu1  ;;  %4573 = vadd.xlane.f32.xlu1 %v9587_v13 }
 0xadf   : > { %v5592_v34 = vpop.f32.mrb[137].mxu1 }
 0xae0   : > { %v5593_v33 = vadd.f32 %v5592_v34, %v5591_v61  ;;  %v5594_v15 = vpop.f32.mrb[138].mxu1  ;;  %v10408_v61 = vld [vmem:[#allocation59_spill] sm:$0xff] }
 0xae1   : > { %v5595_v44 = vpop.f32.mrb[139].mxu1 }
 0xae2   : > { %v4425_v17 = vadd.f32 %v5593_v33, %v9568_v40  ;;  %v5596_v36 = vadd.f32 %v5595_v44, %v5594_v15 }
 0xae4   : > { %v4428_v4 = vadd.f32 %v5596_v36, %v9568_v40  ;;  %v9593_v38 = vadd.f32 %v4425_v17, %v8503_v7 }
 0xae6   : > { %4575 = vadd.xlane.f32.xlu0 %v9593_v38  ;;  %v9597_v11 = vadd.f32 %v4428_v4, %v8508_v0 }
 0xae8   : > { %4577 = vadd.xlane.f32.xlu1 %v9597_v11 }
 0xae9   : > { %v5597_v14 = vpop.f32.mrb[140].mxu1 }
 0xaea   : > { %v5598_v62 = vpop.f32.mrb[141].mxu1 }
 0xaeb   : > { %v5599_v55 = vadd.f32 %v5598_v62, %v5597_v14  ;;  %v5600_v29 = vpop.f32.mrb[142].mxu1  ;;  %v10409_v62 = vld [vmem:[#allocation65_spill] sm:$0xff] }
 0xaec   : > { %v5601_v21 = vpop.f32.mrb[143].mxu1 }
 0xaed   : > { %v4433_v12 = vadd.f32 %v5599_v55, %v9568_v40  ;;  %v5602_v58 = vadd.f32 %v5601_v21, %v5600_v29  ;;  %v10410_v21 = vld [vmem:[#allocation64_spill] sm:$0xff] }
 0xaef   : > { %v4436_v51 = vadd.f32 %v5602_v58, %v9568_v40  ;;  %v9603_v7 = vadd.f32 %v4433_v12, %v10401_v47 }
 0xaf1   : > { %4579 = vadd.xlane.f32.xlu0 %v9603_v7  ;;  %v9607_v0 = vadd.f32 %v4436_v51, %v10402_v8 }
 0xaf3   : > { %v5603_v32 = vpop.f32.mrb[144].mxu1  ;;  %4581 = vadd.xlane.f32.xlu1 %v9607_v0 }
 0xaf4   : > { %v5604_v54 = vpop.f32.mrb[145].mxu1 }
 0xaf5   : > { %v5605_v19 = vadd.f32 %v5604_v54, %v5603_v32  ;;  %v5606_v27 = vpop.f32.mrb[146].mxu1 }
 0xaf6   : > { %v5607_v16 = vpop.f32.mrb[147].mxu1 }
 0xaf7   : > { %v4441_v3 = vadd.f32 %v5605_v19, %v9568_v40  ;;  %v5608_v31 = vadd.f32 %v5607_v16, %v5606_v27  ;;  %v10411_v27 = vld [vmem:[#allocation63_spill] sm:$0xff] }
 0xaf9   : > { %v4444_v37 = vadd.f32 %v5608_v31, %v9568_v40  ;;  %v9613_v39 = vadd.f32 %v4441_v3, %v10403_v42  ;;  %v10412_v31 = vld [vmem:[#allocation67_spill] sm:$0xff] }
 0xafb   : > { %4583 = vadd.xlane.f32.xlu0 %v9613_v39  ;;  %v9617_v6 = vadd.f32 %v4444_v37, %v10404_v35 }
 0xafd   : > { %4585 = vadd.xlane.f32.xlu1 %v9617_v6  ;;  %v5609_v26 = vpop.f32.mrb[148].mxu1 }
 0xafe   : > { %v5610_v49 = vpop.f32.mrb[149].mxu1 }
 0xaff   : > { %v5611_v28 = vadd.f32 %v5610_v49, %v5609_v26  ;;  %v5612_v57 = vpop.f32.mrb[150].mxu1 }
 0xb00   : > { %v5613_v18 = vpop.f32.mrb[151].mxu1 }
 0xb01   : > { %v4449_v59 = vadd.f32 %v5611_v28, %v9568_v40  ;;  %v5614_v45 = vadd.f32 %v5613_v18, %v5612_v57 }
 0xb03   : > { %v4452_v41 = vadd.f32 %v5614_v45, %v9568_v40  ;;  %v9623_v30 = vadd.f32 %v4449_v59, %v10405_v53  ;;  %v10413_v59 = vld [vmem:[#allocation69_spill] sm:$0xff] }
 0xb05   : > { %4587 = vadd.xlane.f32.xlu0 %v9623_v30  ;;  %v5615_v2 = vpop.f32.mrb[152].mxu1  ;;  %v9627_v9 = vadd.f32 %v4452_v41, %v10406_v50  ;;  %v10414_v41 = vld [vmem:[#allocation68_spill] sm:$0xff] }
 0xb06   : > { %v5616_v63 = vpop.f32.mrb[153].mxu1 }
 0xb07   : > { %v5617_v56 = vadd.f32 %v5616_v63, %v5615_v2  ;;  %4589 = vadd.xlane.f32.xlu1 %v9627_v9  ;;  %v5618_v25 = vpop.f32.mrb[154].mxu1 }
 0xb08   : > { %v5619_v22 = vpop.f32.mrb[155].mxu1 }
 0xb09   : > { %v4457_v23 = vadd.f32 %v5617_v56, %v9568_v40  ;;  %v5620_v20 = vadd.f32 %v5619_v22, %v5618_v25 }
 0xb0b   : > { %v4460_v1 = vadd.f32 %v5620_v20, %v9568_v40  ;;  %v9633_v43 = vadd.f32 %v4457_v23, %v10407_v46 }
 0xb0d   : > { %4591 = vadd.xlane.f32.xlu0 %v9633_v43  ;;  %v5621_v52 = vpop.f32.mrb[156].mxu1  ;;  %v9637_v34 = vadd.f32 %v4460_v1, %v10408_v61  ;;  %v10415_v1 = vld [vmem:[#allocation66_spill] sm:$0xff] }
 0xb0e   : > { %v5622_v33 = vpop.f32.mrb[157].mxu1 }
 0xb0f   : > { %v5623_v15 = vadd.f32 %v5622_v33, %v5621_v52  ;;  %4593 = vadd.xlane.f32.xlu1 %v9637_v34  ;;  %v5624_v44 = vpop.f32.mrb[158].mxu1  ;;  %v10416_v52 = vld [vmem:[#allocation53_spill] sm:$0xff] }
 0xb10   : > { %v5625_v17 = vpop.f32.mrb[159].mxu1 }
 0xb11   : > { %v4465_v36 = vadd.f32 %v5623_v15, %v9568_v40  ;;  %v5626_v4 = vadd.f32 %v5625_v17, %v5624_v44 }
 0xb13   : > { %v4468_v14 = vadd.f32 %v5626_v4, %v9568_v40  ;;  %v9643_v55 = vadd.f32 %v4465_v36, %v10409_v62 }
 0xb15   : > { %4595 = vadd.xlane.f32.xlu0 %v9643_v55  ;;  %v5627_v29 = vpop.f32.mrb[160].mxu1  ;;  %v9647_v12 = vadd.f32 %v4468_v14, %v10410_v21 }
 0xb16   : > { %v5628_v58 = vpop.f32.mrb[161].mxu1 }
 0xb17   : > { %v5629_v51 = vadd.f32 %v5628_v58, %v5627_v29  ;;  %4597 = vadd.xlane.f32.xlu1 %v9647_v12  ;;  %v5630_v47 = vpop.f32.mrb[162].mxu1  ;;  %v10417_v29 = vld [vmem:[#allocation21_spill] sm:$0xff] }
 0xb18   : > { %v5631_v8 = vpop.f32.mrb[163].mxu1 }
 0xb19   : > { %v4473_v32 = vadd.f32 %v5629_v51, %v9568_v40  ;;  %v5632_v54 = vadd.f32 %v5631_v8, %v5630_v47  ;;  %v10418_v51 = vld [vmem:[#allocation23_spill] sm:$0xff] }
 0xb1b   : > { %v4476_v19 = vadd.f32 %v5632_v54, %v9568_v40  ;;  %v9653_v16 = vadd.f32 %v4473_v32, %v10411_v27 }
 0xb1d   : > { %4599 = vadd.xlane.f32.xlu0 %v9653_v16  ;;  %v5633_v3 = vpop.f32.mrb[164].mxu1  ;;  %v9657_v37 = vadd.f32 %v4476_v19, %v10412_v31 }
 0xb1e   : > { %v5634_v42 = vpop.f32.mrb[165].mxu1 }
 0xb1f   : > { %v5635_v35 = vadd.f32 %v5634_v42, %v5633_v3  ;;  %4601 = vadd.xlane.f32.xlu1 %v9657_v37  ;;  %v5636_v26 = vpop.f32.mrb[166].mxu1  ;;  %v10419_v42 = vld [vmem:[#allocation22_spill] sm:$0xff] }
 0xb20   : > { %v5637_v49 = vpop.f32.mrb[167].mxu1 }
 0xb21   : > { %v4481_v28 = vadd.f32 %v5635_v35, %v9568_v40  ;;  %v5638_v57 = vadd.f32 %v5637_v49, %v5636_v26  ;;  %v10420_v49 = vld [vmem:[#allocation24_spill] sm:$0xff] }
 0xb23   : > { %v4484_v18 = vadd.f32 %v5638_v57, %v9568_v40  ;;  %v9663_v45 = vadd.f32 %v4481_v28, %v10413_v59 }
 0xb25   : > { %4603 = vadd.xlane.f32.xlu0 %v9663_v45  ;;  %v9667_v53 = vadd.f32 %v4484_v18, %v10414_v41 }
 0xb27   : > { %4605 = vadd.xlane.f32.xlu1 %v9667_v53 }
 0xb60   : > { %v5639_v2 = vpop.f32.mrb[168].mxu1 }
 0xb61   : > { %v5640_v50 = vpop.f32.mrb[169].mxu1 }
 0xb62   : > { %v5641_v63 = vadd.f32 %v5640_v50, %v5639_v2  ;;  %v5642_v56 = vpop.f32.mrb[170].mxu1 }
 0xb63   : > { %v5643_v25 = vpop.f32.mrb[171].mxu1 }
 0xb64   : > { %v4489_v22 = vadd.f32 %v5641_v63, %v9568_v40  ;;  %v5644_v23 = vadd.f32 %v5643_v25, %v5642_v56  ;;  %v10421_v56 = vld [vmem:[#allocation25_spill] sm:$0xff] }
 0xb66   : > { %v4492_v20 = vadd.f32 %v5644_v23, %v9568_v40  ;;  %v9673_v46 = vadd.f32 %v4489_v22, %v10415_v1  ;;  %v10422_v23 = vld [vmem:[#allocation26_spill] sm:$0xff] }
 0xb68   : > { %4607 = vadd.xlane.f32.xlu0 %v9673_v46  ;;  %v9677_v61 = vadd.f32 %v4492_v20, %v10416_v52 }
 0xb6a   : > { %4609 = vadd.xlane.f32.xlu1 %v9677_v61 }
 0xb6b   : > { %v5645_v33 = vpop.f32.mrb[172].mxu1 }
 0xb6c   : > { %v5646_v15 = vpop.f32.mrb[173].mxu1 }
 0xb6d   : > { %v5647_v44 = vadd.f32 %v5646_v15, %v5645_v33  ;;  %v5648_v17 = vpop.f32.mrb[174].mxu1 }
 0xb6e   : > { %v5649_v36 = vpop.f32.mrb[175].mxu1 }
 0xb6f   : > { %v4497_v4 = vadd.f32 %v5647_v44, %v9568_v40  ;;  %v5650_v14 = vadd.f32 %v5649_v36, %v5648_v17 }
 0xb71   : > { %v4500_v62 = vadd.f32 %v5650_v14, %v9568_v40  ;;  %v9683_v21 = vadd.f32 %v4497_v4, %v10417_v29  ;;  %v10423_v4 = vld [vmem:[#allocation27_spill] sm:$0xff] }
 0xb73   : > { %4611 = vadd.xlane.f32.xlu0 %v9683_v21  ;;  %v5651_v58 = vpop.f32.mrb[176].mxu1  ;;  %v9687_v47 = vadd.f32 %v4500_v62, %v10418_v51  ;;  %v4568_v62 = vpop.xlane.xlu0 %4567 }
 0xb74   : > { %v5652_v8 = vpop.f32.mrb[177].mxu1 }
 0xb75   : > { %v5653_v32 = vadd.f32 %v5652_v8, %v5651_v58  ;;  %4613 = vadd.xlane.f32.xlu1 %v9687_v47  ;;  %v5654_v54 = vpop.f32.mrb[178].mxu1  ;;  %v10424_v58 = vld [vmem:[#allocation28_spill] sm:$0xff]  ;;  %v4570_v8 = vpop.xlane.xlu1 %4569 }
 0xb76   : > { %v5655_v19 = vpop.f32.mrb[179].mxu1 }
 0xb77   : > { %v4505_v27 = vadd.f32 %v5653_v32, %v9568_v40  ;;  %v5656_v3 = vadd.f32 %v5655_v19, %v5654_v54  ;;  %v4631_v54 = vmul.f32 0.0078125, %v4568_v62 }
 0xb79   : > { %v4508_v31 = vadd.f32 %v5656_v3, %v9568_v40  ;;  %v9693_v35 = vadd.f32 %v4505_v27, %v10419_v42  ;;  %v4572_v3 = vpop.xlane.xlu0 %4571  ;;  %v4632_v42 = vmul.f32 0.0078125, %v4570_v8 }
 0xb7b   : > { %4615 = vadd.xlane.f32.xlu0 %v9693_v35  ;;  %v5657_v26 = vpop.f32.mrb[180].mxu1  ;;  %v9697_v28 = vadd.f32 %v4508_v31, %v10420_v49 }
 0xb7c   : > { %v5658_v57 = vpop.f32.mrb[181].mxu1 }
 0xb7d   : > { %v5659_v18 = vadd.f32 %v5658_v57, %v5657_v26  ;;  %4617 = vadd.xlane.f32.xlu1 %v9697_v28  ;;  %v5660_v59 = vpop.f32.mrb[182].mxu1  ;;  %v4574_v57 = vpop.xlane.xlu1 %4573 }
 0xb7e   : > { %v5661_v41 = vpop.f32.mrb[183].mxu1 }
 0xb7f   : > { %v4513_v2 = vadd.f32 %v5659_v18, %v9568_v40  ;;  %v5662_v50 = vadd.f32 %v5661_v41, %v5660_v59  ;;  %v9722_v18 = vsub.f32 %v9573_v10, %v4631_v54  ;;  %v4633_v59 = vmul.f32 0.0078125, %v4572_v3 }
 0xb81   : > { %v4516_v63 = vadd.f32 %v5662_v50, %v9568_v40  ;;  %v9703_v25 = vadd.f32 %v4513_v2, %v10421_v56  ;;  %v10425_v2 = vld [vmem:[#allocation29_spill] sm:$0xff]  ;;  %v9729_v56 = vsub.f32 %v9577_v60, %v4632_v42  ;;  %v9736_v10 = vsub.f32 %v9583_v24, %v4633_v59 }
 0xb83   : > { %4619 = vadd.xlane.f32.xlu0 %v9703_v25  ;;  %v5663_v22 = vpop.f32.mrb[184].mxu1  ;;  %v9707_v20 = vadd.f32 %v4516_v63, %v10422_v23  ;;  %v4576_v63 = vpop.xlane.xlu0 %4575  ;;  %v10426_v23 = vld [vmem:[#allocation30_spill] sm:$0xff]  ;;  %v4697_v62 = vmul.f32 %v9736_v10, %v9736_v10 }
 0xb84   : > { %v5664_v1 = vpop.f32.mrb[185].mxu1 }
 0xb85   : > { %v5665_v52 = vadd.f32 %v5664_v1, %v5663_v22  ;;  %4621 = vadd.xlane.f32.xlu1 %v9707_v20  ;;  %v5666_v33 = vpop.f32.mrb[186].mxu1  ;;  %v4634_v22 = vmul.f32 0.0078125, %v4574_v57 }
 0xb86   : > { %v5667_v15 = vpop.f32.mrb[187].mxu1 }
 0xb87   : > { %v4521_v44 = vadd.f32 %v5665_v52, %v9568_v40  ;;  %v5668_v17 = vadd.f32 %v5667_v15, %v5666_v33  ;;  %v4578_v52 = vpop.xlane.xlu1 %4577  ;;  %v4635_v33 = vmul.f32 0.0078125, %v4576_v63  ;;  %v4580_v15 = vpop.xlane.xlu0 %4579  ;;  %v9742_v60 = vsub.f32 %v9587_v13, %v4634_v22 }
 0xb88   : > { %v4637_v24 = vmul.f32 0.0078125, %v4580_v15 }
 0xb89   : > { %v4524_v36 = vadd.f32 %v5668_v17, %v9568_v40  ;;  %v9713_v14 = vadd.f32 %v4521_v44, %v10423_v4  ;;  %v4636_v44 = vmul.f32 0.0078125, %v4578_v52  ;;  %v4696_v17 = vmul.f32 %v9729_v56, %v9729_v56 }
 0xb8a   : > { %v9747_v4 = vsub.f32 %v9593_v38, %v4635_v33  ;;  %v4698_v8 = vmul.f32 %v9742_v60, %v9742_v60  ;;  %v9757_v54 = vsub.f32 %v9603_v7, %v4637_v24 }
 0xb8b   : > { %4623 = vadd.xlane.f32.xlu0 %v9713_v14  ;;  %v5669_v29 = vpop.f32.mrb[188].mxu1  ;;  %v9717_v51 = vadd.f32 %v4524_v36, %v10424_v58  ;;  %v4582_v36 = vpop.xlane.xlu1 %4581  ;;  %v9752_v58 = vsub.f32 %v9597_v11, %v4636_v44 }
 0xb8c   : > { %v5670_v32 = vpop.f32.mrb[189].mxu1  ;;  %v4638_v13 = vmul.f32 0.0078125, %v4582_v36 }
 0xb8d   : > { %v5671_v19 = vadd.f32 %v5670_v32, %v5669_v29  ;;  %4625 = vadd.xlane.f32.xlu1 %v9717_v51  ;;  %v5672_v27 = vpop.f32.mrb[190].mxu1  ;;  %v4584_v29 = vpop.xlane.xlu0 %4583 }
 0xb8e   : > { %v5673_v31 = vpop.f32.mrb[191].mxu1  ;;  %v4639_v38 = vmul.f32 0.0078125, %v4584_v29  ;;  %v9762_v3 = vsub.f32 %v9607_v0, %v4638_v13 }
 0xb8f   : > { %v4529_v26 = vadd.f32 %v5671_v19, %v9568_v40  ;;  %v5674_v49 = vadd.f32 %v5673_v31, %v5672_v27  ;;  %v4586_v32 = vpop.xlane.xlu1 %4585  ;;  %v4699_v19 = vmul.f32 %v9747_v4, %v9747_v4  ;;  %v4700_v31 = vmul.f32 %v9752_v58, %v9752_v58 }
 0xb90   : > { %v4640_v11 = vmul.f32 0.0078125, %v4586_v32 }
 0xb91   : > { %v4532_v41 = vadd.f32 %v5674_v49, %v9568_v40  ;;  %v9726_v50 = vadd.f32 %v4529_v26, %v10425_v2  ;;  %v4695_v40 = vmul.f32 %v9722_v18, %v9722_v18  ;;  %v9767_v26 = vsub.f32 %v9613_v39, %v4639_v38 }
 0xb92   : > { %v4588_v27 = vpop.xlane.xlu0 %4587  ;;  %v4701_v49 = vmul.f32 %v9757_v54, %v9757_v54  ;;  %v9772_v59 = vsub.f32 %v9617_v6, %v4640_v11 }
 0xb93   : > { %4627 = vadd.xlane.f32.xlu0 %v9726_v50  ;;  %v9733_v1 = vadd.f32 %v4532_v41, %v10426_v23  ;;  %v4641_v7 = vmul.f32 0.0078125, %v4588_v27  ;;  %v4702_v41 = vmul.f32 %v9762_v3, %v9762_v3  ;;  %v4703_v22 = vmul.f32 %v9767_v26, %v9767_v26 }
 0xb94   : > { %v4590_v42 = vpop.xlane.xlu1 %4589  ;;  %v4704_v33 = vmul.f32 %v9772_v59, %v9772_v59 }
 0xb95   : > { %4629 = vadd.xlane.f32.xlu1 %v9733_v1  ;;  %v4642_v0 = vmul.f32 0.0078125, %v4590_v42  ;;  %v9777_v63 = vsub.f32 %v9623_v30, %v4641_v7 }
 0xb97   : > { %4727 = vadd.xlane.f32.xlu0 %v4695_v40  ;;  %v9782_v52 = vsub.f32 %v9627_v9, %v4642_v0  ;;  %v4705_v44 = vmul.f32 %v9777_v63, %v9777_v63 }
 0xb99   : > { %4729 = vadd.xlane.f32.xlu1 %v4696_v17  ;;  %v4706_v24 = vmul.f32 %v9782_v52, %v9782_v52 }
 0xb9a   : > { %v4592_v57 = vpop.xlane.xlu0 %4591 }
 0xb9b   : > { %4731 = vadd.xlane.f32.xlu0 %v4697_v62  ;;  %v4643_v39 = vmul.f32 0.0078125, %v4592_v57 }
 0xb9c   : > { %v4594_v2 = vpop.xlane.xlu1 %4593 }
 0xb9d   : > { %4733 = vadd.xlane.f32.xlu1 %v4698_v8  ;;  %v4644_v6 = vmul.f32 0.0078125, %v4594_v2  ;;  %v9787_v15 = vsub.f32 %v9633_v43, %v4643_v39 }
 0xb9f   : > { %4735 = vadd.xlane.f32.xlu0 %v4699_v19  ;;  %v9792_v36 = vsub.f32 %v9637_v34, %v4644_v6  ;;  %v4707_v13 = vmul.f32 %v9787_v15, %v9787_v15 }
 0xba1   : > { %4737 = vadd.xlane.f32.xlu1 %v4700_v31  ;;  %v4708_v34 = vmul.f32 %v9792_v36, %v9792_v36 }
 0xba2   : > { %v4596_v23 = vpop.xlane.xlu0 %4595 }
 0xba3   : > { %4739 = vadd.xlane.f32.xlu0 %v4701_v49  ;;  %v4645_v30 = vmul.f32 0.0078125, %v4596_v23 }
 0xba4   : > { %v4598_v40 = vpop.xlane.xlu1 %4597 }
 0xba5   : > { %4741 = vadd.xlane.f32.xlu1 %v4702_v41  ;;  %v4646_v9 = vmul.f32 0.0078125, %v4598_v40  ;;  %v9797_v29 = vsub.f32 %v9643_v55, %v4645_v30 }
 0xba7   : > { %4743 = vadd.xlane.f32.xlu0 %v4703_v22  ;;  %v9802_v8 = vsub.f32 %v9647_v12, %v4646_v9  ;;  %v4709_v55 = vmul.f32 %v9797_v29, %v9797_v29 }
 0xba9   : > { %4745 = vadd.xlane.f32.xlu1 %v4704_v33  ;;  %v4710_v12 = vmul.f32 %v9802_v8, %v9802_v8 }
 0xbaa   : > { %v4600_v17 = vpop.xlane.xlu0 %4599 }
 0xbab   : > { %4747 = vadd.xlane.f32.xlu0 %v4705_v44  ;;  %v4647_v43 = vmul.f32 0.0078125, %v4600_v17 }
 0xbac   : > { %v4602_v62 = vpop.xlane.xlu1 %4601 }
 0xbad   : > { %4749 = vadd.xlane.f32.xlu1 %v4706_v24  ;;  %v4648_v32 = vmul.f32 0.0078125, %v4602_v62  ;;  %v9807_v38 = vsub.f32 %v9653_v16, %v4647_v43 }
 0xbaf   : > { %4751 = vadd.xlane.f32.xlu0 %v4707_v13  ;;  %v9812_v27 = vsub.f32 %v9657_v37, %v4648_v32  ;;  %v4711_v16 = vmul.f32 %v9807_v38, %v9807_v38 }
 0xbb1   : > { %4753 = vadd.xlane.f32.xlu1 %v4708_v34  ;;  %v4712_v37 = vmul.f32 %v9812_v27, %v9812_v27 }
 0xbb2   : > { %v4604_v19 = vpop.xlane.xlu0 %4603 }
 0xbb3   : > { %v4649_v11 = vmul.f32 0.0078125, %v4604_v19  ;;  %4755 = vadd.xlane.f32.xlu0 %v4709_v55 }
 0xbb4   : > { %v4606_v31 = vpop.xlane.xlu1 %4605 }
 0xbb5   : > { %v9817_v42 = vsub.f32 %v9663_v45, %v4649_v11  ;;  %v4650_v7 = vmul.f32 0.0078125, %v4606_v31  ;;  %4757 = vadd.xlane.f32.xlu1 %v4710_v12 }
 0xbb7   : > { %v9822_v49 = vsub.f32 %v9667_v53, %v4650_v7  ;;  %4759 = vadd.xlane.f32.xlu0 %v4711_v16  ;;  %v4713_v57 = vmul.f32 %v9817_v42, %v9817_v42 }
 0xbb9   : > { %4761 = vadd.xlane.f32.xlu1 %v4712_v37  ;;  %v4714_v45 = vmul.f32 %v9822_v49, %v9822_v49 }
 0xbbb   : > { %4763 = vadd.xlane.f32.xlu0 %v4713_v57 }
 0xbbd   : > { %4765 = vadd.xlane.f32.xlu1 %v4714_v45 }
 0xbf5   : > { %v4608_v0 = vpop.xlane.xlu0 %4607 }
 0xbf6   : > { %v4651_v41 = vmul.f32 0.0078125, %v4608_v0 }
 0xbf7   : > { %v4610_v2 = vpop.xlane.xlu1 %4609 }
 0xbf8   : > { %v9831_v39 = vsub.f32 %v9673_v46, %v4651_v41  ;;  %v4652_v53 = vmul.f32 0.0078125, %v4610_v2 }
 0xbfa   : > { %v9834_v22 = vsub.f32 %v9677_v61, %v4652_v53  ;;  %v4715_v23 = vmul.f32 %v9831_v39, %v9831_v39 }
 0xbfc   : > { %4767 = vadd.xlane.f32.xlu0 %v4715_v23  ;;  %v4716_v6 = vmul.f32 %v9834_v22, %v9834_v22 }
 0xbfe   : > { %4769 = vadd.xlane.f32.xlu1 %v4716_v6 }
 0xc00   : > { %v4612_v33 = vpop.xlane.xlu0 %4611 }
 0xc01   : > { %v4653_v40 = vmul.f32 0.0078125, %v4612_v33 }
 0xc02   : > { %v4614_v30 = vpop.xlane.xlu1 %4613 }
 0xc03   : > { %v9841_v44 = vsub.f32 %v9683_v21, %v4653_v40  ;;  %v4654_v46 = vmul.f32 0.0078125, %v4614_v30 }
 0xc05   : > { %v9844_v17 = vsub.f32 %v9687_v47, %v4654_v46  ;;  %v4717_v61 = vmul.f32 %v9841_v44, %v9841_v44 }
 0xc07   : > { %4771 = vadd.xlane.f32.xlu0 %v4717_v61  ;;  %v4718_v9 = vmul.f32 %v9844_v17, %v9844_v17 }
 0xc08   : > { %v4616_v24 = vpop.xlane.xlu0 %4615 }
 0xc09   : > { %v4655_v62 = vmul.f32 0.0078125, %v4616_v24  ;;  %4773 = vadd.xlane.f32.xlu1 %v4718_v9 }
 0xc0a   : > { %v4618_v43 = vpop.xlane.xlu1 %4617 }
 0xc0b   : > { %v9851_v13 = vsub.f32 %v9693_v35, %v4655_v62  ;;  %v4656_v21 = vmul.f32 0.0078125, %v4618_v43 }
 0xc0d   : > { %v9854_v32 = vsub.f32 %v9697_v28, %v4656_v21  ;;  %v4719_v47 = vmul.f32 %v9851_v13, %v9851_v13 }
 0xc0f   : > { %4775 = vadd.xlane.f32.xlu0 %v4719_v47  ;;  %v4720_v34 = vmul.f32 %v9854_v32, %v9854_v32 }
 0xc10   : > { %v4620_v55 = vpop.xlane.xlu0 %4619 }
 0xc11   : > { %v4657_v19 = vmul.f32 0.0078125, %v4620_v55  ;;  %4777 = vadd.xlane.f32.xlu1 %v4720_v34 }
 0xc12   : > { %v4622_v11 = vpop.xlane.xlu1 %4621 }
 0xc13   : > { %v9861_v12 = vsub.f32 %v9703_v25, %v4657_v19  ;;  %v4658_v35 = vmul.f32 0.0078125, %v4622_v11  ;;  %v4921_v11 = vsub.s32 4, %v10337_v5 }
 0xc15   : > { %v9864_v31 = vsub.f32 %v9707_v20, %v4658_v35  ;;  %v4721_v28 = vmul.f32 %v9861_v12, %v9861_v12 }
 0xc17   : > { %4779 = vadd.xlane.f32.xlu0 %v4721_v28  ;;  %v4722_v7 = vmul.f32 %v9864_v31, %v9864_v31 }
 0xc18   : > { %v4624_v16 = vpop.xlane.xlu0 %4623 }
 0xc19   : > { %v4659_v37 = vmul.f32 0.0078125, %v4624_v16  ;;  %4781 = vadd.xlane.f32.xlu1 %v4722_v7  ;;  %v4957_v16 = vsub.s32 5, %v10337_v5 }
 0xc1a   : > { %v4626_v57 = vpop.xlane.xlu1 %4625 }
 0xc1b   : > { %v9871_v45 = vsub.f32 %v9713_v14, %v4659_v37  ;;  %v4660_v25 = vmul.f32 0.0078125, %v4626_v57 }
 0xc1d   : > { %v9874_v0 = vsub.f32 %v9717_v51, %v4660_v25  ;;  %v4723_v20 = vmul.f32 %v9871_v45, %v9871_v45 }
 0xc1f   : > { %4783 = vadd.xlane.f32.xlu0 %v4723_v20  ;;  %v4724_v41 = vmul.f32 %v9874_v0, %v9874_v0  ;;  %v9893_v20 = vrot.slane %v9565_v48, %v4921_v11 }
 0xc20   : > { %v4628_v2 = vpop.xlane.xlu0 %4627 }
 0xc21   : > { %v4661_v53 = vmul.f32 0.0078125, %v4628_v2  ;;  %4785 = vadd.xlane.f32.xlu1 %v4724_v41 }
 0xc22   : > { %v4630_v23 = vpop.xlane.xlu1 %4629 }
 0xc23   : > { %v9881_v6 = vsub.f32 %v9726_v50, %v4661_v53  ;;  %v4662_v14 = vmul.f32 0.0078125, %v4630_v23 }
 0xc24   : > { %v4728_v33 = vpop.xlane.xlu0 %4727 }
 0xc25   : > { %v9884_v40 = vsub.f32 %v9733_v1, %v4662_v14  ;;  %v4791_v51 = vmul.f32 0.0078125, %v4728_v33  ;;  %v4725_v30 = vmul.f32 %v9881_v6, %v9881_v6  ;;  %v9897_v14 = vrot.slane %v9565_v48, %v4957_v16 }
 0xc26   : > { %v4730_v46 = vpop.xlane.xlu1 %4729 }
 0xc27   : > { %v4823_v61 = vadd.f32 1e-05, %v4791_v51  ;;  %v4792_v9 = vmul.f32 0.0078125, %v4730_v46  ;;  %4787 = vadd.xlane.f32.xlu0 %v4725_v30  ;;  %v4726_v24 = vmul.f32 %v9884_v40, %v9884_v40 }
 0xc28   : > { %v4732_v62 = vpop.xlane.xlu0 %4731 }
 0xc29   : > { %6412 = vrsqrt.f32 %v4823_v61  ;;  %v4824_v50 = vadd.f32 1e-05, %v4792_v9  ;;  %v4793_v43 = vmul.f32 0.0078125, %v4732_v62  ;;  %4789 = vadd.xlane.f32.xlu1 %v4726_v24 }
 0xc2a   : > { %v4734_v21 = vpop.xlane.xlu1 %4733 }
 0xc2b   : > { %6414 = vrsqrt.f32 %v4824_v50  ;;  %v4825_v1 = vadd.f32 1e-05, %v4793_v43  ;;  %v4794_v47 = vmul.f32 0.0078125, %v4734_v21 }
 0xc2c   : > { %v4736_v34 = vpop.xlane.xlu0 %4735 }
 0xc2d   : > { %6416 = vrsqrt.f32 %v4825_v1  ;;  %v4826_v55 = vadd.f32 1e-05, %v4794_v47  ;;  %v4795_v19 = vmul.f32 0.0078125, %v4736_v34 }
 0xc2e   : > { %v4738_v35 = vpop.xlane.xlu1 %4737 }
 0xc2f   : > { %6418 = vrsqrt.f32 %v4826_v55  ;;  %v4827_v28 = vadd.f32 1e-05, %v4795_v19  ;;  %v4796_v7 = vmul.f32 0.0078125, %v4738_v35 }
 0xc30   : > { %v4740_v37 = vpop.xlane.xlu0 %4739 }
 0xc31   : > { %6420 = vrsqrt.f32 %v4827_v28  ;;  %v4828_v57 = vadd.f32 1e-05, %v4796_v7  ;;  %v4797_v25 = vmul.f32 0.0078125, %v4740_v37 }
 0xc32   : > { %v4742_v41 = vpop.xlane.xlu1 %4741 }
 0xc33   : > { %v6413_v2 = vpop.eup %6412  ;;  %6422 = vrsqrt.f32 %v4828_v57  ;;  %v4829_v53 = vadd.f32 1e-05, %v4797_v25  ;;  %v4798_v23 = vmul.f32 0.0078125, %v4742_v41 }
 0xc34   : > { %v4887_v33 = vmul.f32 %v6413_v2, %v9722_v18  ;;  %v4744_v51 = vpop.xlane.xlu0 %4743 }
 0xc35   : > { %v6415_v5 = vpop.eup %6414  ;;  %6424 = vrsqrt.f32 %v4829_v53  ;;  %v4830_v30 = vadd.f32 1e-05, %v4798_v23  ;;  %v4799_v46 = vmul.f32 0.0078125, %v4744_v51 }
 0xc36   : > { %v4923_v61 = vmul.f32 %v9893_v20, %v4887_v33  ;;  %v4888_v9 = vmul.f32 %v6415_v5, %v9729_v56  ;;  %v4746_v24 = vpop.xlane.xlu1 %4745 }
 0xc37   : > { %v6417_v62 = vpop.eup %6416  ;;  %6426 = vrsqrt.f32 %v4830_v30  ;;  %v4831_v50 = vadd.f32 1e-05, %v4799_v46  ;;  %v4800_v43 = vmul.f32 0.0078125, %v4746_v24 }
 0xc38   : > { %v4959_v21 = vadd.f32 %v9897_v14, %v4923_v61  ;;  %v4924_v48 = vmul.f32 %v9893_v20, %v4888_v9  ;;  %v4889_v18 = vmul.f32 %v6417_v62, %v9736_v10  ;;  %v4748_v1 = vpop.xlane.xlu0 %4747 }
 0xc39   : > { %v6419_v47 = vpop.eup %6418  ;;  %6428 = vrsqrt.f32 %v4831_v50  ;;  %v4832_v34 = vadd.f32 1e-05, %v4800_v43  ;;  %v4801_v55 = vmul.f32 0.0078125, %v4748_v1 }
 0xc3a   : > { %4991 = vst [vmem:[%s9905_s22] sm:$0xff] %v4959_v21  ;;  %v4960_v56 = vadd.f32 %v9897_v14, %v4924_v48  ;;  %v4925_v19 = vmul.f32 %v9893_v20, %v4889_v18  ;;  %v4890_v11 = vmul.f32 %v6419_v47, %v9742_v60  ;;  %v4750_v35 = vpop.xlane.xlu1 %4749 }
 0xc3b   : > { %v6421_v28 = vpop.eup %6420  ;;  %6430 = vrsqrt.f32 %v4832_v34  ;;  %v4833_v10 = vadd.f32 1e-05, %v4801_v55  ;;  %v4802_v7 = vmul.f32 0.0078125, %v4750_v35 }
 0xc3c   : > { %4992 = vst [vmem:[%s9905_s22 + $0x8] sm:$0xff] %v4960_v56  ;;  %v4961_v16 = vadd.f32 %v9897_v14, %v4925_v19  ;;  %v4926_v37 = vmul.f32 %v9893_v20, %v4890_v11  ;;  %v4891_v57 = vmul.f32 %v6421_v28, %v9747_v4  ;;  %v4752_v25 = vpop.xlane.xlu0 %4751 }
 0xc3d   : > { %v6423_v41 = vpop.eup %6422  ;;  %6432 = vrsqrt.f32 %v4833_v10  ;;  %v4834_v2 = vadd.f32 1e-05, %v4802_v7  ;;  %v4803_v53 = vmul.f32 0.0078125, %v4752_v25 }
 0xc3e   : > { %4993 = vst [vmem:[%s9905_s22 + $0x10] sm:$0xff] %v4961_v16  ;;  %v4962_v60 = vadd.f32 %v9897_v14, %v4926_v37  ;;  %v4927_v23 = vmul.f32 %v9893_v20, %v4891_v57  ;;  %v4892_v33 = vmul.f32 %v6423_v41, %v9752_v58  ;;  %v4754_v51 = vpop.xlane.xlu1 %4753 }
 0xc3f   : > { %v6425_v5 = vpop.eup %6424  ;;  %6434 = vrsqrt.f32 %v4834_v2  ;;  %v4835_v30 = vadd.f32 1e-05, %v4803_v53  ;;  %v4804_v46 = vmul.f32 0.0078125, %v4754_v51 }
 0xc40   : > { %4994 = vst [vmem:[%s9905_s22 + $0x18] sm:$0xff] %v4962_v60  ;;  %v4963_v4 = vadd.f32 %v9897_v14, %v4927_v23  ;;  %v4928_v61 = vmul.f32 %v9893_v20, %v4892_v33  ;;  %v4893_v9 = vmul.f32 %v6425_v5, %v9757_v54  ;;  %v4756_v24 = vpop.xlane.xlu0 %4755 }
 0xc41   : > { %v6427_v62 = vpop.eup %6426  ;;  %6436 = vrsqrt.f32 %v4835_v30  ;;  %v4836_v50 = vadd.f32 1e-05, %v4804_v46  ;;  %v4805_v43 = vmul.f32 0.0078125, %v4756_v24 }
 0xc42   : > { %4995 = vst [vmem:[%s9905_s22 + $0x20] sm:$0xff] %v4963_v4  ;;  %v4964_v58 = vadd.f32 %v9897_v14, %v4928_v61  ;;  %v4929_v21 = vmul.f32 %v9893_v20, %v4893_v9  ;;  %v4894_v48 = vmul.f32 %v6427_v62, %v9762_v3  ;;  %v4758_v18 = vpop.xlane.xlu1 %4757 }
 0xc43   : > { %v6429_v1 = vpop.eup %6428  ;;  %6438 = vrsqrt.f32 %v4836_v50  ;;  %v4837_v47 = vadd.f32 1e-05, %v4805_v43  ;;  %v4806_v34 = vmul.f32 0.0078125, %v4758_v18 }
 0xc44   : > { %4996 = vst [vmem:[%s9905_s22 + $0x28] sm:$0xff] %v4964_v58  ;;  %v4965_v54 = vadd.f32 %v9897_v14, %v4929_v21  ;;  %v4930_v55 = vmul.f32 %v9893_v20, %v4894_v48  ;;  %v4895_v56 = vmul.f32 %v6429_v1, %v9767_v26  ;;  %v4760_v19 = vpop.xlane.xlu0 %4759 }
 0xc45   : > { %v6431_v11 = vpop.eup %6430  ;;  %6440 = vrsqrt.f32 %v4837_v47  ;;  %v4838_v35 = vadd.f32 1e-05, %v4806_v34  ;;  %v4807_v28 = vmul.f32 0.0078125, %v4760_v19 }
 0xc46   : > { %4997 = vst [vmem:[%s9905_s22 + $0x30] sm:$0xff] %v4965_v54  ;;  %v4966_v3 = vadd.f32 %v9897_v14, %v4930_v55  ;;  %v4931_v10 = vmul.f32 %v9893_v20, %v4895_v56  ;;  %v4896_v7 = vmul.f32 %v6431_v11, %v9772_v59  ;;  %v4762_v16 = vpop.xlane.xlu1 %4761 }
 0xc47   : > { %v6433_v37 = vpop.eup %6432  ;;  %6442 = vrsqrt.f32 %v4838_v35  ;;  %v4839_v57 = vadd.f32 1e-05, %v4807_v28  ;;  %v4808_v25 = vmul.f32 0.0078125, %v4762_v16 }
 0xc48   : > { %4998 = vst [vmem:[%s9905_s22 + $0x38] sm:$0xff] %v4966_v3  ;;  %v4967_v26 = vadd.f32 %v9897_v14, %v4931_v10  ;;  %v4932_v41 = vmul.f32 %v9893_v20, %v4896_v7  ;;  %v4897_v2 = vmul.f32 %v6433_v37, %v9777_v63  ;;  %v4764_v53 = vpop.xlane.xlu0 %4763 }
 0xc49   : > { %v6435_v60 = vpop.eup %6434  ;;  %6444 = vrsqrt.f32 %v4839_v57  ;;  %v4840_v23 = vadd.f32 1e-05, %v4808_v25  ;;  %v4809_v33 = vmul.f32 0.0078125, %v4764_v53 }
 0xc4a   : > { %4999 = vst [vmem:[%s9905_s22 + $0x40] sm:$0xff] %v4967_v26  ;;  %v4968_v59 = vadd.f32 %v9897_v14, %v4932_v41  ;;  %v4933_v51 = vmul.f32 %v9893_v20, %v4897_v2  ;;  %v4898_v5 = vmul.f32 %v6435_v60, %v9782_v52  ;;  %v4766_v30 = vpop.xlane.xlu1 %4765 }
 0xc4b   : > { %v6437_v46 = vpop.eup %6436  ;;  %6446 = vrsqrt.f32 %v4840_v23  ;;  %v4841_v4 = vadd.f32 1e-05, %v4809_v33  ;;  %v4810_v61 = vmul.f32 0.0078125, %v4766_v30 }
 0xc4c   : > { %5000 = vst [vmem:[%s9905_s22 + $0x48] sm:$0xff] %v4968_v59  ;;  %v4969_v63 = vadd.f32 %v9897_v14, %v4933_v51  ;;  %v4934_v9 = vmul.f32 %v9893_v20, %v4898_v5  ;;  %v4899_v24 = vmul.f32 %v6437_v46, %v9787_v15 }
 0xc4d   : > { %v6439_v62 = vpop.eup %6438  ;;  %6448 = vrsqrt.f32 %v4841_v4  ;;  %v4842_v50 = vadd.f32 1e-05, %v4810_v61 }
 0xc4e   : > { %5001 = vst [vmem:[%s9905_s22 + $0x50] sm:$0xff] %v4969_v63  ;;  %v4970_v52 = vadd.f32 %v9897_v14, %v4934_v9  ;;  %v4935_v43 = vmul.f32 %v9893_v20, %v4899_v24  ;;  %v4900_v58 = vmul.f32 %v6439_v62, %v9792_v36 }
 0xc4f   : > { %v6441_v21 = vpop.eup %6440  ;;  %6450 = vrsqrt.f32 %v4842_v50 }
 0xc50   : > { %5002 = vst [vmem:[%s9905_s22 + $0x58] sm:$0xff] %v4970_v52  ;;  %v4971_v48 = vadd.f32 %v9897_v14, %v4935_v43  ;;  %v4936_v18 = vmul.f32 %v9893_v20, %v4900_v58  ;;  %v4901_v15 = vmul.f32 %v6441_v21, %v9797_v29 }
 0xc51   : > { %v6443_v1 = vpop.eup %6442 }
 0xc52   : > { %5003 = vst [vmem:[%s9905_s22 + $0x60] sm:$0xff] %v4971_v48  ;;  %v4972_v47 = vadd.f32 %v9897_v14, %v4936_v18  ;;  %v4937_v34 = vmul.f32 %v9893_v20, %v4901_v15  ;;  %v4902_v54 = vmul.f32 %v6443_v1, %v9802_v8 }
 0xc53   : > { %v6445_v36 = vpop.eup %6444 }
 0xc54   : > { %5004 = vst [vmem:[%s9905_s22 + $0x68] sm:$0xff] %v4972_v47  ;;  %v4973_v55 = vadd.f32 %v9897_v14, %v4937_v34  ;;  %v4938_v56 = vmul.f32 %v9893_v20, %v4902_v54  ;;  %v4903_v19 = vmul.f32 %v6445_v36, %v9807_v38 }
 0xc55   : > { %v6447_v29 = vpop.eup %6446 }
 0xc56   : > { %5005 = vst [vmem:[%s9905_s22 + $0x70] sm:$0xff] %v4973_v55  ;;  %v4974_v11 = vadd.f32 %v9897_v14, %v4938_v56  ;;  %v4939_v35 = vmul.f32 %v9893_v20, %v4903_v19  ;;  %v4904_v28 = vmul.f32 %v6447_v29, %v9812_v27 }
 0xc57   : > { %v6449_v8 = vpop.eup %6448 }
 0xc58   : > { %5006 = vst [vmem:[%s9905_s22 + $0x78] sm:$0xff] %v4974_v11  ;;  %v4975_v3 = vadd.f32 %v9897_v14, %v4939_v35  ;;  %v4940_v10 = vmul.f32 %v9893_v20, %v4904_v28  ;;  %v4905_v7 = vmul.f32 %v6449_v8, %v9817_v42 }
 0xc59   : > { %v6451_v38 = vpop.eup %6450 }
 0xc5a   : > { %5007 = vst [vmem:[%s9905_s22 + $0x80] sm:$0xff] %v4975_v3  ;;  %v4976_v16 = vadd.f32 %v9897_v14, %v4940_v10  ;;  %v4941_v37 = vmul.f32 %v9893_v20, %v4905_v7  ;;  %v4906_v57 = vmul.f32 %v6451_v38, %v9822_v49 }
 0xc5c   : > { %5008 = vst [vmem:[%s9905_s22 + $0x88] sm:$0xff] %v4976_v16  ;;  %v4977_v27 = vadd.f32 %v9897_v14, %v4941_v37  ;;  %v4942_v25 = vmul.f32 %v9893_v20, %v4906_v57 }
 0xc5e   : > { %5009 = vst [vmem:[%s9905_s22 + $0x90] sm:$0xff] %v4977_v27  ;;  %v4978_v26 = vadd.f32 %v9897_v14, %v4942_v25 }
 0xc60   : > { %5010 = vst [vmem:[%s9905_s22 + $0x98] sm:$0xff] %v4978_v26 }
 0xc89   : > { %v4768_v41 = vpop.xlane.xlu0 %4767 }
 0xc8a   : > { %v4811_v2 = vmul.f32 0.0078125, %v4768_v41 }
 0xc8b   : > { %v4770_v42 = vpop.xlane.xlu1 %4769 }
 0xc8c   : > { %v4843_v53 = vadd.f32 1e-05, %v4811_v2  ;;  %v4812_v60 = vmul.f32 0.0078125, %v4770_v42 }
 0xc8e   : > { %6452 = vrsqrt.f32 %v4843_v53  ;;  %v4844_v23 = vadd.f32 1e-05, %v4812_v60 }
 0xc90   : > { %6454 = vrsqrt.f32 %v4844_v23 }
 0xc94   : > { %v4772_v33 = vpop.xlane.xlu0 %4771 }
 0xc95   : > { %v4813_v59 = vmul.f32 0.0078125, %v4772_v33 }
 0xc96   : > { %v4774_v49 = vpop.xlane.xlu1 %4773 }
 0xc97   : > { %v4845_v51 = vadd.f32 1e-05, %v4813_v59  ;;  %v4814_v5 = vmul.f32 0.0078125, %v4774_v49 }
 0xc98   : > { %v6453_v30 = vpop.eup %6452 }
 0xc99   : > { %v4907_v46 = vmul.f32 %v6453_v30, %v9831_v39  ;;  %6456 = vrsqrt.f32 %v4845_v51  ;;  %v4846_v4 = vadd.f32 1e-05, %v4814_v5 }
 0xc9a   : > { %v6455_v61 = vpop.eup %6454 }
 0xc9b   : > { %v4943_v63 = vmul.f32 %v9893_v20, %v4907_v46  ;;  %v4908_v9 = vmul.f32 %v6455_v61, %v9834_v22  ;;  %6458 = vrsqrt.f32 %v4846_v4 }
 0xc9c   : > { %v4776_v24 = vpop.xlane.xlu0 %4775 }
 0xc9d   : > { %v4979_v62 = vadd.f32 %v9897_v14, %v4943_v63  ;;  %v4944_v50 = vmul.f32 %v9893_v20, %v4908_v9  ;;  %v4815_v52 = vmul.f32 0.0078125, %v4776_v24 }
 0xc9e   : > { %v4778_v43 = vpop.xlane.xlu1 %4777 }
 0xc9f   : > { %5011 = vst [vmem:[%s9905_s22 + $0xa0] sm:$0xff] %v4979_v62  ;;  %v4980_v58 = vadd.f32 %v9897_v14, %v4944_v50  ;;  %v4847_v39 = vadd.f32 1e-05, %v4815_v52  ;;  %v4816_v21 = vmul.f32 0.0078125, %v4778_v43 }
 0xca1   : > { %5012 = vst [vmem:[%s9905_s22 + $0xa8] sm:$0xff] %v4980_v58  ;;  %6460 = vrsqrt.f32 %v4847_v39  ;;  %v4848_v48 = vadd.f32 1e-05, %v4816_v21 }
 0xca3   : > { %v6457_v18 = vpop.eup %6456  ;;  %6462 = vrsqrt.f32 %v4848_v48 }
 0xca4   : > { %v4909_v22 = vmul.f32 %v6457_v18, %v9841_v44  ;;  %v4780_v15 = vpop.xlane.xlu0 %4779 }
 0xca5   : > { %v6459_v1 = vpop.eup %6458  ;;  %v4817_v47 = vmul.f32 0.0078125, %v4780_v15 }
 0xca6   : > { %v4945_v34 = vmul.f32 %v9893_v20, %v4909_v22  ;;  %v4910_v54 = vmul.f32 %v6459_v1, %v9844_v17  ;;  %v4782_v36 = vpop.xlane.xlu1 %4781 }
 0xca7   : > { %v4849_v55 = vadd.f32 1e-05, %v4817_v47  ;;  %v4818_v56 = vmul.f32 0.0078125, %v4782_v36 }
 0xca8   : > { %v4981_v19 = vadd.f32 %v9897_v14, %v4945_v34  ;;  %v4946_v29 = vmul.f32 %v9893_v20, %v4910_v54 }
 0xca9   : > { %6464 = vrsqrt.f32 %v4849_v55  ;;  %v4850_v11 = vadd.f32 1e-05, %v4818_v56 }
 0xcaa   : > { %5013 = vst [vmem:[%s9905_s22 + $0xb0] sm:$0xff] %v4981_v19  ;;  %v4982_v44 = vadd.f32 %v9897_v14, %v4946_v29 }
 0xcab   : > { %v6461_v35 = vpop.eup %6460  ;;  %6466 = vrsqrt.f32 %v4850_v11 }
 0xcac   : > { %5014 = vst [vmem:[%s9905_s22 + $0xb8] sm:$0xff] %v4982_v44  ;;  %v4911_v28 = vmul.f32 %v6461_v35, %v9851_v13  ;;  %v4784_v8 = vpop.xlane.xlu0 %4783 }
 0xcad   : > { %v6463_v17 = vpop.eup %6462  ;;  %v4819_v3 = vmul.f32 0.0078125, %v4784_v8 }
 0xcae   : > { %v4947_v10 = vmul.f32 %v9893_v20, %v4911_v28  ;;  %v4912_v7 = vmul.f32 %v6463_v17, %v9854_v32  ;;  %v4786_v38 = vpop.xlane.xlu1 %4785 }
 0xcaf   : > { %v4851_v16 = vadd.f32 1e-05, %v4819_v3  ;;  %v4820_v37 = vmul.f32 0.0078125, %v4786_v38 }
 0xcb0   : > { %v4983_v57 = vadd.f32 %v9897_v14, %v4947_v10  ;;  %v4948_v27 = vmul.f32 %v9893_v20, %v4912_v7 }
 0xcb1   : > { %6468 = vrsqrt.f32 %v4851_v16  ;;  %v4852_v25 = vadd.f32 1e-05, %v4820_v37 }
 0xcb2   : > { %5015 = vst [vmem:[%s9905_s22 + $0xc0] sm:$0xff] %v4983_v57  ;;  %v4984_v13 = vadd.f32 %v9897_v14, %v4948_v27 }
 0xcb3   : > { %v6465_v26 = vpop.eup %6464  ;;  %6470 = vrsqrt.f32 %v4852_v25 }
 0xcb4   : > { %5016 = vst [vmem:[%s9905_s22 + $0xc8] sm:$0xff] %v4984_v13  ;;  %v4913_v41 = vmul.f32 %v6465_v26, %v9861_v12  ;;  %v4788_v2 = vpop.xlane.xlu0 %4787 }
 0xcb5   : > { %v6467_v32 = vpop.eup %6466  ;;  %v4821_v42 = vmul.f32 0.0078125, %v4788_v2 }
 0xcb6   : > { %v4949_v53 = vmul.f32 %v9893_v20, %v4913_v41  ;;  %v4914_v60 = vmul.f32 %v6467_v32, %v9864_v31  ;;  %v4790_v23 = vpop.xlane.xlu1 %4789 }
 0xcb7   : > { %v4853_v33 = vadd.f32 1e-05, %v4821_v42  ;;  %v4822_v59 = vmul.f32 0.0078125, %v4790_v23 }
 0xcb8   : > { %v4985_v49 = vadd.f32 %v9897_v14, %v4949_v53  ;;  %v4950_v51 = vmul.f32 %v9893_v20, %v4914_v60 }
 0xcb9   : > { %6472 = vrsqrt.f32 %v4853_v33  ;;  %v4854_v5 = vadd.f32 1e-05, %v4822_v59 }
 0xcba   : > { %5017 = vst [vmem:[%s9905_s22 + $0xd0] sm:$0xff] %v4985_v49  ;;  %v4986_v12 = vadd.f32 %v9897_v14, %v4950_v51 }
 0xcbb   : > { %v6469_v30 = vpop.eup %6468  ;;  %6474 = vrsqrt.f32 %v4854_v5 }
 0xcbc   : > { %5018 = vst [vmem:[%s9905_s22 + $0xd8] sm:$0xff] %v4986_v12  ;;  %v4915_v31 = vmul.f32 %v6469_v30, %v9871_v45 }
 0xcbd   : > { %v6471_v46 = vpop.eup %6470 }
 0xcbe   : > { %v4951_v4 = vmul.f32 %v9893_v20, %v4915_v31  ;;  %v4916_v61 = vmul.f32 %v6471_v46, %v9874_v0 }
 0xcc0   : > { %v4987_v63 = vadd.f32 %v9897_v14, %v4951_v4  ;;  %v4952_v9 = vmul.f32 %v9893_v20, %v4916_v61 }
 0xcc2   : > { %5019 = vst [vmem:[%s9905_s22 + $0xe0] sm:$0xff] %v4987_v63  ;;  %v4988_v24 = vadd.f32 %v9897_v14, %v4952_v9 }
 0xcc3   : > { %v6473_v62 = vpop.eup %6472 }
 0xcc4   : > { %5020 = vst [vmem:[%s9905_s22 + $0xe8] sm:$0xff] %v4988_v24  ;;  %v4917_v50 = vmul.f32 %v6473_v62, %v9881_v6 }
 0xcc5   : > { %v6475_v45 = vpop.eup %6474 }
 0xcc6   : > { %v4953_v52 = vmul.f32 %v9893_v20, %v4917_v50  ;;  %v4918_v0 = vmul.f32 %v6475_v45, %v9884_v40 }
 0xcc8   : > { %v4989_v43 = vadd.f32 %v9897_v14, %v4953_v52  ;;  %v4954_v58 = vmul.f32 %v9893_v20, %v4918_v0 }
 0xcca   : > { %5021 = vst [vmem:[%s9905_s22 + $0xf0] sm:$0xff] %v4989_v43  ;;  %v4990_v6 = vadd.f32 %v9897_v14, %v4954_v58 }
 0xccc   : > { %5022 = vst [vmem:[%s9905_s22 + $0xf8] sm:$0xff] %v4990_v6 }
 0xccd   : > { %6691 = shalt.err (!%p6688_p2)
}
 0xcce   : > { %s6692_s26 = scalar_lea.hbm %s10031_s28, 4096  ;;  %s6696_s6 = scalar_lea.hbm %s10427_s29, 8192 }
 0xccf   : > { %p6693_p4 = scmp.ne.s32.totalorder %s10031_s28, %s6692_s26  ;;  %p6697_p10 = scmp.lt.u32.totalorder %s10031_s28, %s10427_s29 }
 0xcd0   : > { %p6698_p1 = scmp.lt.u32.totalorder %s6696_s6, %s6692_s26  ;;  %p6700_p12 = scmp.lt.u32.totalorder %s6692_s26, %s10031_s28 }
 0xcd1   : > { %p6694_p8 = pnand %p6693_p4, %p10428_p13 }
 0xcd2   : > { %p6699_p11 = por %p6698_p1, %p6697_p10 }
 0xcd3   : > { %p6695_p7 = pneg %p6694_p8 }
 0xcd4   : > { %p6701_p6 = por %p6700_p12, %p6699_p11 }
 0xcd6   : > { %p6702_p9 = pnand %p6701_p6, %p6695_p7 }
 0xcd8   : > { %6705 = shalt.err (!%p6702_p9)
}
 0xcd9   : > { %s6779_s18 = smov 128   ;;  %s6780_s22 = smov 8  }
 0xcda   : > { %5795 = dma.vmem_to_hbm [thread:$0]  (%p10428_p13), %s10033_s4, 4096, %s10031_s28, %s5024_s19, %s6779_s18, %s6779_s18, %s6780_s22  }
 0xcdb PF: > { %s5052_s25 = sand.u32 1, %s6748_s13   ;;  %p10429_p0 = scmp.ne.s32.totalorder %s10212_s21, 0 }
 0xcdc   : > { %p10430_p5 = scmp.ge.s32.totalorder %s6760_s16, 2  ;;  %s5053_s7 = scalar_lea.sflag [#allocation4], %s5052_s25 }
 0xcde   : > { %p5821_p3 = pnand %p10430_p5, %p10429_p0 }
 0xce0   : > { %6743 = dma.done.wait (!%p5821_p3), %s5053_s7, 4096  }
 0xce1   : > { %6745 = vsyncadd (!%p5821_p3), %s5053_s7, 4294963200  ;;  %p28_p2 = scmp.ge.s32.totalorder %s6996_s11, 4   ;;  %s10431_s13 = smov %s6752_s14 }
 0xce2   : > { %s10432_s14 = smov %s6756_s15  ;;  %s10433_s15 = smov %s7008_s30 }
 0xce3   : > { %s10434_s16 = smov %s6996_s11  ;;  %30 = sbr.rel (!%p28_p2) target bundleno = 18 (0x12), region = 138 }
 0xcea   :  { %5058 = vsyncpa [#allocation3], 1 }
 0xceb   :  { %5060 = vsyncpa [#allocation3 + $0x1], 1 }
 0xcec   :  { %5061 = vsyncpa [#allocation6], 1 }
 0xced   :  { %5063 = vsyncpa [#allocation6 + $0x1], 1 }
 0xcee   :  { %5064 = vsyncpa [#allocation9], 1 }
 0xcef   :  { %5065 = vsyncpa [#allocation12], 1 }
 0xcf0   :  { %5066 = vsyncpa [#allocation4], 1 }
 0xcf1   :  { %5068 = vsyncpa [#allocation4 + $0x1], 1 }

</bundles_post_ra>
